<compile_context>
chip_gen: v7x
topology: tpu7x:2x2x1
jax: 0.10.0
libtpu: 0.0.40
codegen_flags: <defaults>
</compile_context>

<pallas_src>
import math

import jax
import jax.numpy as jnp
import numpy as np
from jax.experimental import pallas as pl
from jax.experimental.pallas import tpu as pltpu


def _cwra_kernel(q_ref, k_ref, v_ref, o_ref, *, scale, require_scaling):
    # Refs are (NB, C, H, W) VMEM blocks (NCHW layout, W on the lane axis).
    q = q_ref[...].astype(jnp.float32)
    k = k_ref[...].astype(jnp.float32)
    v = v_ref[...].astype(jnp.float32)
    if require_scaling:
        # Fold 1/sqrt(C) into q once (C*H*W muls) instead of scaling every
        # (H, H, W) score tensor.
        q = q * scale

    H = q.shape[2]
    # Unrolled static loop over query rows h: each iteration is pure VPU/XLU
    # work on (NB, C|H, W)-shaped tiles, no MXU, no relayouting reshapes.
    for h in range(H):
        qh = q[:, :, h:h + 1, :]                               # (NB, C, 1, W)
        # s[nb, g, w] = sum_c q[nb, c, h, w] * k[nb, c, g, w]
        s = jnp.sum(qh * k, axis=1)                            # (NB, H, W)
        if require_scaling:
            m = jnp.max(s, axis=1, keepdims=True)              # (NB, 1, W)
            p = jnp.exp(s - m)                                 # (NB, H, W)
            denom = jnp.sum(p, axis=1, keepdims=True)          # (NB, 1, W)
            inv = pl.reciprocal(denom, approx=True)            # EUP vrcp
            inv = inv * (2.0 - denom * inv)                    # 1 NR step -> f32 accurate
            p = p * inv
        else:
            p = s                                              # DotProductAttention path
        # out[nb, c, w] = sum_g p[nb, g, w] * v[nb, c, g, w]
        o_h = jnp.sum(p[:, None, :, :] * v, axis=2, keepdims=True)   # (NB, C, 1, W)
        o_ref[:, :, h:h + 1, :] = o_h.astype(o_ref.dtype)


def _round_up(x, m):
    return ((x + m - 1) // m) * m


def _pick_block_n(n, c, h, w, itemsize, budget_bytes=1 << 20):
    """Largest divisor of n whose VMEM-padded (NB,C,H,W) block fits the budget."""
    per_image = c * _round_up(h, 8) * _round_up(w, 128) * itemsize
    best = 1
    for d in range(1, n + 1):
        if n % d == 0 and d * per_image <= budget_bytes:
            best = d
    return best


def channel_wise_row_attention(q, k, v, require_scaling=True):
    """q, k, v: NCHW arrays (like the PyTorch module). Returns NCHW."""
    N, C, H, W = q.shape
    dtype = q.dtype

    # Block over the batch axis; ~1 MiB/block keeps 3 inputs + 1 output,
    # double-buffered, well under the scoped-VMEM default on v5e/v6e/v7x.
    nb = _pick_block_n(N, C, H, W, jnp.dtype(dtype).itemsize)
    grid = (N // nb,)

    scale = 1.0 / math.sqrt(C)
    kernel = lambda qr, kr, vr, orf: _cwra_kernel(
        qr, kr, vr, orf, scale=scale, require_scaling=require_scaling)

    block = pl.BlockSpec((nb, C, H, W), lambda b: (b, 0, 0, 0))
    return pl.pallas_call(
        kernel,
        out_shape=jax.ShapeDtypeStruct((N, C, H, W), dtype),
        grid_spec=pltpu.PrefetchScalarGridSpec(
            num_scalar_prefetch=0,
            grid=grid,
            in_specs=[block, block, block],
            out_specs=block,
        ),
        compiler_params=pltpu.CompilerParams(
            dimension_semantics=("parallel",),     # shards batch across TCs on v7x
            vmem_limit_bytes=32 * 1024 * 1024,
        ),
    )(q, k, v)


def _reference(q, k, v, require_scaling=True):
    # Pure-JAX reference mirroring the PyTorch module.
    qp = jnp.transpose(q, (0, 3, 2, 1)).astype(jnp.float32)
    kp = jnp.transpose(k, (0, 3, 2, 1)).astype(jnp.float32)
    vp = jnp.transpose(v, (0, 3, 2, 1)).astype(jnp.float32)
    attn = jnp.einsum("nwhc,nwgc->nwhg", qp, kp)
    if require_scaling:
        attn = jax.nn.softmax(attn / math.sqrt(kp.shape[-1]), axis=-1)
    out = jnp.einsum("nwhg,nwgc->nwhc", attn, vp)
    return jnp.transpose(out, (0, 3, 2, 1))


if __name__ == "__main__":
    N, C, H, W = 2, 4, 16, 16
    key = jax.random.PRNGKey(0)
    kq, kk, kv = jax.random.split(key, 3)
    q = jax.random.normal(kq, (N, C, H, W), dtype=jnp.float32)
    k = jax.random.normal(kk, (N, C, H, W), dtype=jnp.float32)
    v = jax.random.normal(kv, (N, C, H, W), dtype=jnp.float32)

    out = jax.block_until_ready(channel_wise_row_attention(q, k, v))
    ref = jax.block_until_ready(_reference(q, k, v))
    np.testing.assert_allclose(np.asarray(out), np.asarray(ref),
                               rtol=2e-5, atol=2e-5)
    print("KERNEL_OK")
</pallas_src>

<mosaic_0001>
module attributes {stable_mosaic.version = 11 : i64} {
  func.func @_lambda_(%arg0: i32, %arg1: memref<2x4x16x16xf32, #tpu.memory_space<vmem>>, %arg2: memref<2x4x16x16xf32, #tpu.memory_space<vmem>>, %arg3: memref<2x4x16x16xf32, #tpu.memory_space<vmem>>, %arg4: memref<2x4x16x16xf32, #tpu.memory_space<vmem>>) attributes {dimension_semantics = [#tpu.dimension_semantics<parallel>], iteration_bounds = array<i64: 1>, scalar_prefetch = 0 : i64, scratch_operands = 0 : i64, tpu.core_type = #tpu.core_type<tc>, window_params = [{transform_indices = @transform_0, window_bounds = array<i64: 2, 4, 16, 16>}, {transform_indices = @transform_1, window_bounds = array<i64: 2, 4, 16, 16>}, {transform_indices = @transform_2, window_bounds = array<i64: 2, 4, 16, 16>}, {transform_indices = @transform_3, window_bounds = array<i64: 2, 4, 16, 16>}]} {
    %c0 = arith.constant 0 : index
    %c0_0 = arith.constant 0 : index
    %c0_1 = arith.constant 0 : index
    %c0_2 = arith.constant 0 : index
    %0 = vector.load %arg1[%c0, %c0_0, %c0_1, %c0_2] : memref<2x4x16x16xf32, #tpu.memory_space<vmem>>, vector<2x4x16x16xf32>
    %c0_3 = arith.constant 0 : index
    %c0_4 = arith.constant 0 : index
    %c0_5 = arith.constant 0 : index
    %c0_6 = arith.constant 0 : index
    %1 = vector.load %arg2[%c0_3, %c0_4, %c0_5, %c0_6] : memref<2x4x16x16xf32, #tpu.memory_space<vmem>>, vector<2x4x16x16xf32>
    %c0_7 = arith.constant 0 : index
    %c0_8 = arith.constant 0 : index
    %c0_9 = arith.constant 0 : index
    %c0_10 = arith.constant 0 : index
    %2 = vector.load %arg3[%c0_7, %c0_8, %c0_9, %c0_10] : memref<2x4x16x16xf32, #tpu.memory_space<vmem>>, vector<2x4x16x16xf32>
    %cst = arith.constant 5.000000e-01 : f32
    %3 = vector.broadcast %cst : f32 to vector<2x4x16x16xf32>
    %4 = arith.mulf %0, %3 : vector<2x4x16x16xf32>
    %5 = vector.extract_strided_slice %4 {offsets = [0, 0, 0, 0], sizes = [2, 4, 1, 16], strides = [1, 1, 1, 1]} : vector<2x4x16x16xf32> to vector<2x4x1x16xf32>
    %6 = vector.broadcast %5 : vector<2x4x1x16xf32> to vector<2x4x16x16xf32>
    %7 = arith.mulf %6, %1 : vector<2x4x16x16xf32>
    %cst_11 = arith.constant dense<0.000000e+00> : vector<2x16x16xf32>
    %8 = vector.multi_reduction <add>, %7, %cst_11 [1] : vector<2x4x16x16xf32> to vector<2x16x16xf32>
    %cst_12 = arith.constant dense<0xFF800000> : vector<2x16xf32>
    %9 = vector.multi_reduction <maximumf>, %8, %cst_12 [1] : vector<2x16x16xf32> to vector<2x16xf32>
    %10 = vector.shape_cast %9 : vector<2x16xf32> to vector<2x1x16xf32>
    %11 = vector.broadcast %10 : vector<2x1x16xf32> to vector<2x16x16xf32>
    %12 = arith.subf %8, %11 : vector<2x16x16xf32>
    %13 = math.exp %12 : vector<2x16x16xf32>
    %cst_13 = arith.constant dense<0.000000e+00> : vector<2x16xf32>
    %14 = vector.multi_reduction <add>, %13, %cst_13 [1] : vector<2x16x16xf32> to vector<2x16xf32>
    %15 = vector.shape_cast %14 : vector<2x16xf32> to vector<2x1x16xf32>
    %16 = tpu.reciprocal %15 {approx = true} : vector<2x1x16xf32> -> vector<2x1x16xf32>
    %17 = arith.mulf %15, %16 : vector<2x1x16xf32>
    %cst_14 = arith.constant 2.000000e+00 : f32
    %18 = vector.broadcast %cst_14 : f32 to vector<2x1x16xf32>
    %19 = arith.subf %18, %17 : vector<2x1x16xf32>
    %20 = arith.mulf %16, %19 : vector<2x1x16xf32>
    %21 = vector.broadcast %20 : vector<2x1x16xf32> to vector<2x16x16xf32>
    %22 = arith.mulf %13, %21 : vector<2x16x16xf32>
    %23 = vector.shape_cast %22 : vector<2x16x16xf32> to vector<2x1x16x16xf32>
    %24 = vector.broadcast %23 : vector<2x1x16x16xf32> to vector<2x4x16x16xf32>
    %25 = arith.mulf %24, %2 : vector<2x4x16x16xf32>
    %cst_15 = arith.constant dense<0.000000e+00> : vector<2x4x16xf32>
    %26 = vector.multi_reduction <add>, %25, %cst_15 [2] : vector<2x4x16x16xf32> to vector<2x4x16xf32>
    %27 = vector.shape_cast %26 : vector<2x4x16xf32> to vector<2x4x1x16xf32>
    %c0_16 = arith.constant 0 : index
    %c0_17 = arith.constant 0 : index
    %c0_18 = arith.constant 0 : index
    %c0_19 = arith.constant 0 : index
    %28 = vector.load %arg4[%c0_16, %c0_17, %c0_18, %c0_19] : memref<2x4x16x16xf32, #tpu.memory_space<vmem>>, vector<2x4x1x16xf32>
    tpu.vector_store %arg4[%c0_16, %c0_17, %c0_18, %c0_19], %27 {strides = array<i32>} : memref<2x4x16x16xf32, #tpu.memory_space<vmem>>, vector<2x4x1x16xf32>,
    %29 = vector.extract_strided_slice %4 {offsets = [0, 0, 1, 0], sizes = [2, 4, 1, 16], strides = [1, 1, 1, 1]} : vector<2x4x16x16xf32> to vector<2x4x1x16xf32>
    %30 = vector.broadcast %29 : vector<2x4x1x16xf32> to vector<2x4x16x16xf32>
    %31 = arith.mulf %30, %1 : vector<2x4x16x16xf32>
    %cst_20 = arith.constant dense<0.000000e+00> : vector<2x16x16xf32>
    %32 = vector.multi_reduction <add>, %31, %cst_20 [1] : vector<2x4x16x16xf32> to vector<2x16x16xf32>
    %cst_21 = arith.constant dense<0xFF800000> : vector<2x16xf32>
    %33 = vector.multi_reduction <maximumf>, %32, %cst_21 [1] : vector<2x16x16xf32> to vector<2x16xf32>
    %34 = vector.shape_cast %33 : vector<2x16xf32> to vector<2x1x16xf32>
    %35 = vector.broadcast %34 : vector<2x1x16xf32> to vector<2x16x16xf32>
    %36 = arith.subf %32, %35 : vector<2x16x16xf32>
    %37 = math.exp %36 : vector<2x16x16xf32>
    %cst_22 = arith.constant dense<0.000000e+00> : vector<2x16xf32>
    %38 = vector.multi_reduction <add>, %37, %cst_22 [1] : vector<2x16x16xf32> to vector<2x16xf32>
    %39 = vector.shape_cast %38 : vector<2x16xf32> to vector<2x1x16xf32>
    %40 = tpu.reciprocal %39 {approx = true} : vector<2x1x16xf32> -> vector<2x1x16xf32>
    %41 = arith.mulf %39, %40 : vector<2x1x16xf32>
    %cst_23 = arith.constant 2.000000e+00 : f32
    %42 = vector.broadcast %cst_23 : f32 to vector<2x1x16xf32>
    %43 = arith.subf %42, %41 : vector<2x1x16xf32>
    %44 = arith.mulf %40, %43 : vector<2x1x16xf32>
    %45 = vector.broadcast %44 : vector<2x1x16xf32> to vector<2x16x16xf32>
    %46 = arith.mulf %37, %45 : vector<2x16x16xf32>
    %47 = vector.shape_cast %46 : vector<2x16x16xf32> to vector<2x1x16x16xf32>
    %48 = vector.broadcast %47 : vector<2x1x16x16xf32> to vector<2x4x16x16xf32>
    %49 = arith.mulf %48, %2 : vector<2x4x16x16xf32>
    %cst_24 = arith.constant dense<0.000000e+00> : vector<2x4x16xf32>
    %50 = vector.multi_reduction <add>, %49, %cst_24 [2] : vector<2x4x16x16xf32> to vector<2x4x16xf32>
    %51 = vector.shape_cast %50 : vector<2x4x16xf32> to vector<2x4x1x16xf32>
    %c0_25 = arith.constant 0 : index
    %c0_26 = arith.constant 0 : index
    %c1 = arith.constant 1 : index
    %c0_27 = arith.constant 0 : index
    %52 = vector.load %arg4[%c0_25, %c0_26, %c1, %c0_27] : memref<2x4x16x16xf32, #tpu.memory_space<vmem>>, vector<2x4x1x16xf32>
    tpu.vector_store %arg4[%c0_25, %c0_26, %c1, %c0_27], %51 {strides = array<i32>} : memref<2x4x16x16xf32, #tpu.memory_space<vmem>>, vector<2x4x1x16xf32>,
    %53 = vector.extract_strided_slice %4 {offsets = [0, 0, 2, 0], sizes = [2, 4, 1, 16], strides = [1, 1, 1, 1]} : vector<2x4x16x16xf32> to vector<2x4x1x16xf32>
    %54 = vector.broadcast %53 : vector<2x4x1x16xf32> to vector<2x4x16x16xf32>
    %55 = arith.mulf %54, %1 : vector<2x4x16x16xf32>
    %cst_28 = arith.constant dense<0.000000e+00> : vector<2x16x16xf32>
    %56 = vector.multi_reduction <add>, %55, %cst_28 [1] : vector<2x4x16x16xf32> to vector<2x16x16xf32>
    %cst_29 = arith.constant dense<0xFF800000> : vector<2x16xf32>
    %57 = vector.multi_reduction <maximumf>, %56, %cst_29 [1] : vector<2x16x16xf32> to vector<2x16xf32>
    %58 = vector.shape_cast %57 : vector<2x16xf32> to vector<2x1x16xf32>
    %59 = vector.broadcast %58 : vector<2x1x16xf32> to vector<2x16x16xf32>
    %60 = arith.subf %56, %59 : vector<2x16x16xf32>
    %61 = math.exp %60 : vector<2x16x16xf32>
    %cst_30 = arith.constant dense<0.000000e+00> : vector<2x16xf32>
    %62 = vector.multi_reduction <add>, %61, %cst_30 [1] : vector<2x16x16xf32> to vector<2x16xf32>
    %63 = vector.shape_cast %62 : vector<2x16xf32> to vector<2x1x16xf32>
    %64 = tpu.reciprocal %63 {approx = true} : vector<2x1x16xf32> -> vector<2x1x16xf32>
    %65 = arith.mulf %63, %64 : vector<2x1x16xf32>
    %cst_31 = arith.constant 2.000000e+00 : f32
    %66 = vector.broadcast %cst_31 : f32 to vector<2x1x16xf32>
    %67 = arith.subf %66, %65 : vector<2x1x16xf32>
    %68 = arith.mulf %64, %67 : vector<2x1x16xf32>
    %69 = vector.broadcast %68 : vector<2x1x16xf32> to vector<2x16x16xf32>
    %70 = arith.mulf %61, %69 : vector<2x16x16xf32>
    %71 = vector.shape_cast %70 : vector<2x16x16xf32> to vector<2x1x16x16xf32>
    %72 = vector.broadcast %71 : vector<2x1x16x16xf32> to vector<2x4x16x16xf32>
    %73 = arith.mulf %72, %2 : vector<2x4x16x16xf32>
    %cst_32 = arith.constant dense<0.000000e+00> : vector<2x4x16xf32>
    %74 = vector.multi_reduction <add>, %73, %cst_32 [2] : vector<2x4x16x16xf32> to vector<2x4x16xf32>
    %75 = vector.shape_cast %74 : vector<2x4x16xf32> to vector<2x4x1x16xf32>
    %c0_33 = arith.constant 0 : index
    %c0_34 = arith.constant 0 : index
    %c2 = arith.constant 2 : index
    %c0_35 = arith.constant 0 : index
    %76 = vector.load %arg4[%c0_33, %c0_34, %c2, %c0_35] : memref<2x4x16x16xf32, #tpu.memory_space<vmem>>, vector<2x4x1x16xf32>
    tpu.vector_store %arg4[%c0_33, %c0_34, %c2, %c0_35], %75 {strides = array<i32>} : memref<2x4x16x16xf32, #tpu.memory_space<vmem>>, vector<2x4x1x16xf32>,
    %77 = vector.extract_strided_slice %4 {offsets = [0, 0, 3, 0], sizes = [2, 4, 1, 16], strides = [1, 1, 1, 1]} : vector<2x4x16x16xf32> to vector<2x4x1x16xf32>
    %78 = vector.broadcast %77 : vector<2x4x1x16xf32> to vector<2x4x16x16xf32>
    %79 = arith.mulf %78, %1 : vector<2x4x16x16xf32>
    %cst_36 = arith.constant dense<0.000000e+00> : vector<2x16x16xf32>
    %80 = vector.multi_reduction <add>, %79, %cst_36 [1] : vector<2x4x16x16xf32> to vector<2x16x16xf32>
    %cst_37 = arith.constant dense<0xFF800000> : vector<2x16xf32>
    %81 = vector.multi_reduction <maximumf>, %80, %cst_37 [1] : vector<2x16x16xf32> to vector<2x16xf32>
    %82 = vector.shape_cast %81 : vector<2x16xf32> to vector<2x1x16xf32>
    %83 = vector.broadcast %82 : vector<2x1x16xf32> to vector<2x16x16xf32>
    %84 = arith.subf %80, %83 : vector<2x16x16xf32>
    %85 = math.exp %84 : vector<2x16x16xf32>
    %cst_38 = arith.constant dense<0.000000e+00> : vector<2x16xf32>
    %86 = vector.multi_reduction <add>, %85, %cst_38 [1] : vector<2x16x16xf32> to vector<2x16xf32>
    %87 = vector.shape_cast %86 : vector<2x16xf32> to vector<2x1x16xf32>
    %88 = tpu.reciprocal %87 {approx = true} : vector<2x1x16xf32> -> vector<2x1x16xf32>
    %89 = arith.mulf %87, %88 : vector<2x1x16xf32>
    %cst_39 = arith.constant 2.000000e+00 : f32
    %90 = vector.broadcast %cst_39 : f32 to vector<2x1x16xf32>
    %91 = arith.subf %90, %89 : vector<2x1x16xf32>
    %92 = arith.mulf %88, %91 : vector<2x1x16xf32>
    %93 = vector.broadcast %92 : vector<2x1x16xf32> to vector<2x16x16xf32>
    %94 = arith.mulf %85, %93 : vector<2x16x16xf32>
    %95 = vector.shape_cast %94 : vector<2x16x16xf32> to vector<2x1x16x16xf32>
    %96 = vector.broadcast %95 : vector<2x1x16x16xf32> to vector<2x4x16x16xf32>
    %97 = arith.mulf %96, %2 : vector<2x4x16x16xf32>
    %cst_40 = arith.constant dense<0.000000e+00> : vector<2x4x16xf32>
    %98 = vector.multi_reduction <add>, %97, %cst_40 [2] : vector<2x4x16x16xf32> to vector<2x4x16xf32>
    %99 = vector.shape_cast %98 : vector<2x4x16xf32> to vector<2x4x1x16xf32>
    %c0_41 = arith.constant 0 : index
    %c0_42 = arith.constant 0 : index
    %c3 = arith.constant 3 : index
    %c0_43 = arith.constant 0 : index
    %100 = vector.load %arg4[%c0_41, %c0_42, %c3, %c0_43] : memref<2x4x16x16xf32, #tpu.memory_space<vmem>>, vector<2x4x1x16xf32>
    tpu.vector_store %arg4[%c0_41, %c0_42, %c3, %c0_43], %99 {strides = array<i32>} : memref<2x4x16x16xf32, #tpu.memory_space<vmem>>, vector<2x4x1x16xf32>,
    %101 = vector.extract_strided_slice %4 {offsets = [0, 0, 4, 0], sizes = [2, 4, 1, 16], strides = [1, 1, 1, 1]} : vector<2x4x16x16xf32> to vector<2x4x1x16xf32>
    %102 = vector.broadcast %101 : vector<2x4x1x16xf32> to vector<2x4x16x16xf32>
    %103 = arith.mulf %102, %1 : vector<2x4x16x16xf32>
    %cst_44 = arith.constant dense<0.000000e+00> : vector<2x16x16xf32>
    %104 = vector.multi_reduction <add>, %103, %cst_44 [1] : vector<2x4x16x16xf32> to vector<2x16x16xf32>
    %cst_45 = arith.constant dense<0xFF800000> : vector<2x16xf32>
    %105 = vector.multi_reduction <maximumf>, %104, %cst_45 [1] : vector<2x16x16xf32> to vector<2x16xf32>
    %106 = vector.shape_cast %105 : vector<2x16xf32> to vector<2x1x16xf32>
    %107 = vector.broadcast %106 : vector<2x1x16xf32> to vector<2x16x16xf32>
    %108 = arith.subf %104, %107 : vector<2x16x16xf32>
    %109 = math.exp %108 : vector<2x16x16xf32>
    %cst_46 = arith.constant dense<0.000000e+00> : vector<2x16xf32>
    %110 = vector.multi_reduction <add>, %109, %cst_46 [1] : vector<2x16x16xf32> to vector<2x16xf32>
    %111 = vector.shape_cast %110 : vector<2x16xf32> to vector<2x1x16xf32>
    %112 = tpu.reciprocal %111 {approx = true} : vector<2x1x16xf32> -> vector<2x1x16xf32>
    %113 = arith.mulf %111, %112 : vector<2x1x16xf32>
    %cst_47 = arith.constant 2.000000e+00 : f32
    %114 = vector.broadcast %cst_47 : f32 to vector<2x1x16xf32>
    %115 = arith.subf %114, %113 : vector<2x1x16xf32>
    %116 = arith.mulf %112, %115 : vector<2x1x16xf32>
    %117 = vector.broadcast %116 : vector<2x1x16xf32> to vector<2x16x16xf32>
    %118 = arith.mulf %109, %117 : vector<2x16x16xf32>
    %119 = vector.shape_cast %118 : vector<2x16x16xf32> to vector<2x1x16x16xf32>
    %120 = vector.broadcast %119 : vector<2x1x16x16xf32> to vector<2x4x16x16xf32>
    %121 = arith.mulf %120, %2 : vector<2x4x16x16xf32>
    %cst_48 = arith.constant dense<0.000000e+00> : vector<2x4x16xf32>
    %122 = vector.multi_reduction <add>, %121, %cst_48 [2] : vector<2x4x16x16xf32> to vector<2x4x16xf32>
    %123 = vector.shape_cast %122 : vector<2x4x16xf32> to vector<2x4x1x16xf32>
    %c0_49 = arith.constant 0 : index
    %c0_50 = arith.constant 0 : index
    %c4 = arith.constant 4 : index
    %c0_51 = arith.constant 0 : index
    %124 = vector.load %arg4[%c0_49, %c0_50, %c4, %c0_51] : memref<2x4x16x16xf32, #tpu.memory_space<vmem>>, vector<2x4x1x16xf32>
    tpu.vector_store %arg4[%c0_49, %c0_50, %c4, %c0_51], %123 {strides = array<i32>} : memref<2x4x16x16xf32, #tpu.memory_space<vmem>>, vector<2x4x1x16xf32>,
    %125 = vector.extract_strided_slice %4 {offsets = [0, 0, 5, 0], sizes = [2, 4, 1, 16], strides = [1, 1, 1, 1]} : vector<2x4x16x16xf32> to vector<2x4x1x16xf32>
    %126 = vector.broadcast %125 : vector<2x4x1x16xf32> to vector<2x4x16x16xf32>
    %127 = arith.mulf %126, %1 : vector<2x4x16x16xf32>
    %cst_52 = arith.constant dense<0.000000e+00> : vector<2x16x16xf32>
    %128 = vector.multi_reduction <add>, %127, %cst_52 [1] : vector<2x4x16x16xf32> to vector<2x16x16xf32>
    %cst_53 = arith.constant dense<0xFF800000> : vector<2x16xf32>
    %129 = vector.multi_reduction <maximumf>, %128, %cst_53 [1] : vector<2x16x16xf32> to vector<2x16xf32>
    %130 = vector.shape_cast %129 : vector<2x16xf32> to vector<2x1x16xf32>
    %131 = vector.broadcast %130 : vector<2x1x16xf32> to vector<2x16x16xf32>
    %132 = arith.subf %128, %131 : vector<2x16x16xf32>
    %133 = math.exp %132 : vector<2x16x16xf32>
    %cst_54 = arith.constant dense<0.000000e+00> : vector<2x16xf32>
    %134 = vector.multi_reduction <add>, %133, %cst_54 [1] : vector<2x16x16xf32> to vector<2x16xf32>
    %135 = vector.shape_cast %134 : vector<2x16xf32> to vector<2x1x16xf32>
    %136 = tpu.reciprocal %135 {approx = true} : vector<2x1x16xf32> -> vector<2x1x16xf32>
    %137 = arith.mulf %135, %136 : vector<2x1x16xf32>
    %cst_55 = arith.constant 2.000000e+00 : f32
    %138 = vector.broadcast %cst_55 : f32 to vector<2x1x16xf32>
    %139 = arith.subf %138, %137 : vector<2x1x16xf32>
    %140 = arith.mulf %136, %139 : vector<2x1x16xf32>
    %141 = vector.broadcast %140 : vector<2x1x16xf32> to vector<2x16x16xf32>
    %142 = arith.mulf %133, %141 : vector<2x16x16xf32>
    %143 = vector.shape_cast %142 : vector<2x16x16xf32> to vector<2x1x16x16xf32>
    %144 = vector.broadcast %143 : vector<2x1x16x16xf32> to vector<2x4x16x16xf32>
    %145 = arith.mulf %144, %2 : vector<2x4x16x16xf32>
    %cst_56 = arith.constant dense<0.000000e+00> : vector<2x4x16xf32>
    %146 = vector.multi_reduction <add>, %145, %cst_56 [2] : vector<2x4x16x16xf32> to vector<2x4x16xf32>
    %147 = vector.shape_cast %146 : vector<2x4x16xf32> to vector<2x4x1x16xf32>
    %c0_57 = arith.constant 0 : index
    %c0_58 = arith.constant 0 : index
    %c5 = arith.constant 5 : index
    %c0_59 = arith.constant 0 : index
    %148 = vector.load %arg4[%c0_57, %c0_58, %c5, %c0_59] : memref<2x4x16x16xf32, #tpu.memory_space<vmem>>, vector<2x4x1x16xf32>
    tpu.vector_store %arg4[%c0_57, %c0_58, %c5, %c0_59], %147 {strides = array<i32>} : memref<2x4x16x16xf32, #tpu.memory_space<vmem>>, vector<2x4x1x16xf32>,
    %149 = vector.extract_strided_slice %4 {offsets = [0, 0, 6, 0], sizes = [2, 4, 1, 16], strides = [1, 1, 1, 1]} : vector<2x4x16x16xf32> to vector<2x4x1x16xf32>
    %150 = vector.broadcast %149 : vector<2x4x1x16xf32> to vector<2x4x16x16xf32>
    %151 = arith.mulf %150, %1 : vector<2x4x16x16xf32>
    %cst_60 = arith.constant dense<0.000000e+00> : vector<2x16x16xf32>
    %152 = vector.multi_reduction <add>, %151, %cst_60 [1] : vector<2x4x16x16xf32> to vector<2x16x16xf32>
    %cst_61 = arith.constant dense<0xFF800000> : vector<2x16xf32>
    %153 = vector.multi_reduction <maximumf>, %152, %cst_61 [1] : vector<2x16x16xf32> to vector<2x16xf32>
    %154 = vector.shape_cast %153 : vector<2x16xf32> to vector<2x1x16xf32>
    %155 = vector.broadcast %154 : vector<2x1x16xf32> to vector<2x16x16xf32>
    %156 = arith.subf %152, %155 : vector<2x16x16xf32>
    %157 = math.exp %156 : vector<2x16x16xf32>
    %cst_62 = arith.constant dense<0.000000e+00> : vector<2x16xf32>
    %158 = vector.multi_reduction <add>, %157, %cst_62 [1] : vector<2x16x16xf32> to vector<2x16xf32>
    %159 = vector.shape_cast %158 : vector<2x16xf32> to vector<2x1x16xf32>
    %160 = tpu.reciprocal %159 {approx = true} : vector<2x1x16xf32> -> vector<2x1x16xf32>
    %161 = arith.mulf %159, %160 : vector<2x1x16xf32>
    %cst_63 = arith.constant 2.000000e+00 : f32
    %162 = vector.broadcast %cst_63 : f32 to vector<2x1x16xf32>
    %163 = arith.subf %162, %161 : vector<2x1x16xf32>
    %164 = arith.mulf %160, %163 : vector<2x1x16xf32>
    %165 = vector.broadcast %164 : vector<2x1x16xf32> to vector<2x16x16xf32>
    %166 = arith.mulf %157, %165 : vector<2x16x16xf32>
    %167 = vector.shape_cast %166 : vector<2x16x16xf32> to vector<2x1x16x16xf32>
    %168 = vector.broadcast %167 : vector<2x1x16x16xf32> to vector<2x4x16x16xf32>
    %169 = arith.mulf %168, %2 : vector<2x4x16x16xf32>
    %cst_64 = arith.constant dense<0.000000e+00> : vector<2x4x16xf32>
    %170 = vector.multi_reduction <add>, %169, %cst_64 [2] : vector<2x4x16x16xf32> to vector<2x4x16xf32>
    %171 = vector.shape_cast %170 : vector<2x4x16xf32> to vector<2x4x1x16xf32>
    %c0_65 = arith.constant 0 : index
    %c0_66 = arith.constant 0 : index
    %c6 = arith.constant 6 : index
    %c0_67 = arith.constant 0 : index
    %172 = vector.load %arg4[%c0_65, %c0_66, %c6, %c0_67] : memref<2x4x16x16xf32, #tpu.memory_space<vmem>>, vector<2x4x1x16xf32>
    tpu.vector_store %arg4[%c0_65, %c0_66, %c6, %c0_67], %171 {strides = array<i32>} : memref<2x4x16x16xf32, #tpu.memory_space<vmem>>, vector<2x4x1x16xf32>,
    %173 = vector.extract_strided_slice %4 {offsets = [0, 0, 7, 0], sizes = [2, 4, 1, 16], strides = [1, 1, 1, 1]} : vector<2x4x16x16xf32> to vector<2x4x1x16xf32>
    %174 = vector.broadcast %173 : vector<2x4x1x16xf32> to vector<2x4x16x16xf32>
    %175 = arith.mulf %174, %1 : vector<2x4x16x16xf32>
    %cst_68 = arith.constant dense<0.000000e+00> : vector<2x16x16xf32>
    %176 = vector.multi_reduction <add>, %175, %cst_68 [1] : vector<2x4x16x16xf32> to vector<2x16x16xf32>
    %cst_69 = arith.constant dense<0xFF800000> : vector<2x16xf32>
    %177 = vector.multi_reduction <maximumf>, %176, %cst_69 [1] : vector<2x16x16xf32> to vector<2x16xf32>
    %178 = vector.shape_cast %177 : vector<2x16xf32> to vector<2x1x16xf32>
    %179 = vector.broadcast %178 : vector<2x1x16xf32> to vector<2x16x16xf32>
    %180 = arith.subf %176, %179 : vector<2x16x16xf32>
    %181 = math.exp %180 : vector<2x16x16xf32>
    %cst_70 = arith.constant dense<0.000000e+00> : vector<2x16xf32>
    %182 = vector.multi_reduction <add>, %181, %cst_70 [1] : vector<2x16x16xf32> to vector<2x16xf32>
    %183 = vector.shape_cast %182 : vector<2x16xf32> to vector<2x1x16xf32>
    %184 = tpu.reciprocal %183 {approx = true} : vector<2x1x16xf32> -> vector<2x1x16xf32>
    %185 = arith.mulf %183, %184 : vector<2x1x16xf32>
    %cst_71 = arith.constant 2.000000e+00 : f32
    %186 = vector.broadcast %cst_71 : f32 to vector<2x1x16xf32>
    %187 = arith.subf %186, %185 : vector<2x1x16xf32>
    %188 = arith.mulf %184, %187 : vector<2x1x16xf32>
    %189 = vector.broadcast %188 : vector<2x1x16xf32> to vector<2x16x16xf32>
    %190 = arith.mulf %181, %189 : vector<2x16x16xf32>
    %191 = vector.shape_cast %190 : vector<2x16x16xf32> to vector<2x1x16x16xf32>
    %192 = vector.broadcast %191 : vector<2x1x16x16xf32> to vector<2x4x16x16xf32>
    %193 = arith.mulf %192, %2 : vector<2x4x16x16xf32>
    %cst_72 = arith.constant dense<0.000000e+00> : vector<2x4x16xf32>
    %194 = vector.multi_reduction <add>, %193, %cst_72 [2] : vector<2x4x16x16xf32> to vector<2x4x16xf32>
    %195 = vector.shape_cast %194 : vector<2x4x16xf32> to vector<2x4x1x16xf32>
    %c0_73 = arith.constant 0 : index
    %c0_74 = arith.constant 0 : index
    %c7 = arith.constant 7 : index
    %c0_75 = arith.constant 0 : index
    %196 = vector.load %arg4[%c0_73, %c0_74, %c7, %c0_75] : memref<2x4x16x16xf32, #tpu.memory_space<vmem>>, vector<2x4x1x16xf32>
    tpu.vector_store %arg4[%c0_73, %c0_74, %c7, %c0_75], %195 {strides = array<i32>} : memref<2x4x16x16xf32, #tpu.memory_space<vmem>>, vector<2x4x1x16xf32>,
    %197 = vector.extract_strided_slice %4 {offsets = [0, 0, 8, 0], sizes = [2, 4, 1, 16], strides = [1, 1, 1, 1]} : vector<2x4x16x16xf32> to vector<2x4x1x16xf32>
    %198 = vector.broadcast %197 : vector<2x4x1x16xf32> to vector<2x4x16x16xf32>
    %199 = arith.mulf %198, %1 : vector<2x4x16x16xf32>
    %cst_76 = arith.constant dense<0.000000e+00> : vector<2x16x16xf32>
    %200 = vector.multi_reduction <add>, %199, %cst_76 [1] : vector<2x4x16x16xf32> to vector<2x16x16xf32>
    %cst_77 = arith.constant dense<0xFF800000> : vector<2x16xf32>
    %201 = vector.multi_reduction <maximumf>, %200, %cst_77 [1] : vector<2x16x16xf32> to vector<2x16xf32>
    %202 = vector.shape_cast %201 : vector<2x16xf32> to vector<2x1x16xf32>
    %203 = vector.broadcast %202 : vector<2x1x16xf32> to vector<2x16x16xf32>
    %204 = arith.subf %200, %203 : vector<2x16x16xf32>
    %205 = math.exp %204 : vector<2x16x16xf32>
    %cst_78 = arith.constant dense<0.000000e+00> : vector<2x16xf32>
    %206 = vector.multi_reduction <add>, %205, %cst_78 [1] : vector<2x16x16xf32> to vector<2x16xf32>
    %207 = vector.shape_cast %206 : vector<2x16xf32> to vector<2x1x16xf32>
    %208 = tpu.reciprocal %207 {approx = true} : vector<2x1x16xf32> -> vector<2x1x16xf32>
    %209 = arith.mulf %207, %208 : vector<2x1x16xf32>
    %cst_79 = arith.constant 2.000000e+00 : f32
    %210 = vector.broadcast %cst_79 : f32 to vector<2x1x16xf32>
    %211 = arith.subf %210, %209 : vector<2x1x16xf32>
    %212 = arith.mulf %208, %211 : vector<2x1x16xf32>
    %213 = vector.broadcast %212 : vector<2x1x16xf32> to vector<2x16x16xf32>
    %214 = arith.mulf %205, %213 : vector<2x16x16xf32>
    %215 = vector.shape_cast %214 : vector<2x16x16xf32> to vector<2x1x16x16xf32>
    %216 = vector.broadcast %215 : vector<2x1x16x16xf32> to vector<2x4x16x16xf32>
    %217 = arith.mulf %216, %2 : vector<2x4x16x16xf32>
    %cst_80 = arith.constant dense<0.000000e+00> : vector<2x4x16xf32>
    %218 = vector.multi_reduction <add>, %217, %cst_80 [2] : vector<2x4x16x16xf32> to vector<2x4x16xf32>
    %219 = vector.shape_cast %218 : vector<2x4x16xf32> to vector<2x4x1x16xf32>
    %c0_81 = arith.constant 0 : index
    %c0_82 = arith.constant 0 : index
    %c8 = arith.constant 8 : index
    %c0_83 = arith.constant 0 : index
    %220 = vector.load %arg4[%c0_81, %c0_82, %c8, %c0_83] : memref<2x4x16x16xf32, #tpu.memory_space<vmem>>, vector<2x4x1x16xf32>
    tpu.vector_store %arg4[%c0_81, %c0_82, %c8, %c0_83], %219 {strides = array<i32>} : memref<2x4x16x16xf32, #tpu.memory_space<vmem>>, vector<2x4x1x16xf32>,
    %221 = vector.extract_strided_slice %4 {offsets = [0, 0, 9, 0], sizes = [2, 4, 1, 16], strides = [1, 1, 1, 1]} : vector<2x4x16x16xf32> to vector<2x4x1x16xf32>
    %222 = vector.broadcast %221 : vector<2x4x1x16xf32> to vector<2x4x16x16xf32>
    %223 = arith.mulf %222, %1 : vector<2x4x16x16xf32>
    %cst_84 = arith.constant dense<0.000000e+00> : vector<2x16x16xf32>
    %224 = vector.multi_reduction <add>, %223, %cst_84 [1] : vector<2x4x16x16xf32> to vector<2x16x16xf32>
    %cst_85 = arith.constant dense<0xFF800000> : vector<2x16xf32>
    %225 = vector.multi_reduction <maximumf>, %224, %cst_85 [1] : vector<2x16x16xf32> to vector<2x16xf32>
    %226 = vector.shape_cast %225 : vector<2x16xf32> to vector<2x1x16xf32>
    %227 = vector.broadcast %226 : vector<2x1x16xf32> to vector<2x16x16xf32>
    %228 = arith.subf %224, %227 : vector<2x16x16xf32>
    %229 = math.exp %228 : vector<2x16x16xf32>
    %cst_86 = arith.constant dense<0.000000e+00> : vector<2x16xf32>
    %230 = vector.multi_reduction <add>, %229, %cst_86 [1] : vector<2x16x16xf32> to vector<2x16xf32>
    %231 = vector.shape_cast %230 : vector<2x16xf32> to vector<2x1x16xf32>
    %232 = tpu.reciprocal %231 {approx = true} : vector<2x1x16xf32> -> vector<2x1x16xf32>
    %233 = arith.mulf %231, %232 : vector<2x1x16xf32>
    %cst_87 = arith.constant 2.000000e+00 : f32
    %234 = vector.broadcast %cst_87 : f32 to vector<2x1x16xf32>
    %235 = arith.subf %234, %233 : vector<2x1x16xf32>
    %236 = arith.mulf %232, %235 : vector<2x1x16xf32>
    %237 = vector.broadcast %236 : vector<2x1x16xf32> to vector<2x16x16xf32>
    %238 = arith.mulf %229, %237 : vector<2x16x16xf32>
    %239 = vector.shape_cast %238 : vector<2x16x16xf32> to vector<2x1x16x16xf32>
    %240 = vector.broadcast %239 : vector<2x1x16x16xf32> to vector<2x4x16x16xf32>
    %241 = arith.mulf %240, %2 : vector<2x4x16x16xf32>
    %cst_88 = arith.constant dense<0.000000e+00> : vector<2x4x16xf32>
    %242 = vector.multi_reduction <add>, %241, %cst_88 [2] : vector<2x4x16x16xf32> to vector<2x4x16xf32>
    %243 = vector.shape_cast %242 : vector<2x4x16xf32> to vector<2x4x1x16xf32>
    %c0_89 = arith.constant 0 : index
    %c0_90 = arith.constant 0 : index
    %c9 = arith.constant 9 : index
    %c0_91 = arith.constant 0 : index
    %244 = vector.load %arg4[%c0_89, %c0_90, %c9, %c0_91] : memref<2x4x16x16xf32, #tpu.memory_space<vmem>>, vector<2x4x1x16xf32>
    tpu.vector_store %arg4[%c0_89, %c0_90, %c9, %c0_91], %243 {strides = array<i32>} : memref<2x4x16x16xf32, #tpu.memory_space<vmem>>, vector<2x4x1x16xf32>,
    %245 = vector.extract_strided_slice %4 {offsets = [0, 0, 10, 0], sizes = [2, 4, 1, 16], strides = [1, 1, 1, 1]} : vector<2x4x16x16xf32> to vector<2x4x1x16xf32>
    %246 = vector.broadcast %245 : vector<2x4x1x16xf32> to vector<2x4x16x16xf32>
    %247 = arith.mulf %246, %1 : vector<2x4x16x16xf32>
    %cst_92 = arith.constant dense<0.000000e+00> : vector<2x16x16xf32>
    %248 = vector.multi_reduction <add>, %247, %cst_92 [1] : vector<2x4x16x16xf32> to vector<2x16x16xf32>
    %cst_93 = arith.constant dense<0xFF800000> : vector<2x16xf32>
    %249 = vector.multi_reduction <maximumf>, %248, %cst_93 [1] : vector<2x16x16xf32> to vector<2x16xf32>
    %250 = vector.shape_cast %249 : vector<2x16xf32> to vector<2x1x16xf32>
    %251 = vector.broadcast %250 : vector<2x1x16xf32> to vector<2x16x16xf32>
    %252 = arith.subf %248, %251 : vector<2x16x16xf32>
    %253 = math.exp %252 : vector<2x16x16xf32>
    %cst_94 = arith.constant dense<0.000000e+00> : vector<2x16xf32>
    %254 = vector.multi_reduction <add>, %253, %cst_94 [1] : vector<2x16x16xf32> to vector<2x16xf32>
    %255 = vector.shape_cast %254 : vector<2x16xf32> to vector<2x1x16xf32>
    %256 = tpu.reciprocal %255 {approx = true} : vector<2x1x16xf32> -> vector<2x1x16xf32>
    %257 = arith.mulf %255, %256 : vector<2x1x16xf32>
    %cst_95 = arith.constant 2.000000e+00 : f32
    %258 = vector.broadcast %cst_95 : f32 to vector<2x1x16xf32>
    %259 = arith.subf %258, %257 : vector<2x1x16xf32>
    %260 = arith.mulf %256, %259 : vector<2x1x16xf32>
    %261 = vector.broadcast %260 : vector<2x1x16xf32> to vector<2x16x16xf32>
    %262 = arith.mulf %253, %261 : vector<2x16x16xf32>
    %263 = vector.shape_cast %262 : vector<2x16x16xf32> to vector<2x1x16x16xf32>
    %264 = vector.broadcast %263 : vector<2x1x16x16xf32> to vector<2x4x16x16xf32>
    %265 = arith.mulf %264, %2 : vector<2x4x16x16xf32>
    %cst_96 = arith.constant dense<0.000000e+00> : vector<2x4x16xf32>
    %266 = vector.multi_reduction <add>, %265, %cst_96 [2] : vector<2x4x16x16xf32> to vector<2x4x16xf32>
    %267 = vector.shape_cast %266 : vector<2x4x16xf32> to vector<2x4x1x16xf32>
    %c0_97 = arith.constant 0 : index
    %c0_98 = arith.constant 0 : index
    %c10 = arith.constant 10 : index
    %c0_99 = arith.constant 0 : index
    %268 = vector.load %arg4[%c0_97, %c0_98, %c10, %c0_99] : memref<2x4x16x16xf32, #tpu.memory_space<vmem>>, vector<2x4x1x16xf32>
    tpu.vector_store %arg4[%c0_97, %c0_98, %c10, %c0_99], %267 {strides = array<i32>} : memref<2x4x16x16xf32, #tpu.memory_space<vmem>>, vector<2x4x1x16xf32>,
    %269 = vector.extract_strided_slice %4 {offsets = [0, 0, 11, 0], sizes = [2, 4, 1, 16], strides = [1, 1, 1, 1]} : vector<2x4x16x16xf32> to vector<2x4x1x16xf32>
    %270 = vector.broadcast %269 : vector<2x4x1x16xf32> to vector<2x4x16x16xf32>
    %271 = arith.mulf %270, %1 : vector<2x4x16x16xf32>
    %cst_100 = arith.constant dense<0.000000e+00> : vector<2x16x16xf32>
    %272 = vector.multi_reduction <add>, %271, %cst_100 [1] : vector<2x4x16x16xf32> to vector<2x16x16xf32>
    %cst_101 = arith.constant dense<0xFF800000> : vector<2x16xf32>
    %273 = vector.multi_reduction <maximumf>, %272, %cst_101 [1] : vector<2x16x16xf32> to vector<2x16xf32>
    %274 = vector.shape_cast %273 : vector<2x16xf32> to vector<2x1x16xf32>
    %275 = vector.broadcast %274 : vector<2x1x16xf32> to vector<2x16x16xf32>
    %276 = arith.subf %272, %275 : vector<2x16x16xf32>
    %277 = math.exp %276 : vector<2x16x16xf32>
    %cst_102 = arith.constant dense<0.000000e+00> : vector<2x16xf32>
    %278 = vector.multi_reduction <add>, %277, %cst_102 [1] : vector<2x16x16xf32> to vector<2x16xf32>
    %279 = vector.shape_cast %278 : vector<2x16xf32> to vector<2x1x16xf32>
    %280 = tpu.reciprocal %279 {approx = true} : vector<2x1x16xf32> -> vector<2x1x16xf32>
    %281 = arith.mulf %279, %280 : vector<2x1x16xf32>
    %cst_103 = arith.constant 2.000000e+00 : f32
    %282 = vector.broadcast %cst_103 : f32 to vector<2x1x16xf32>
    %283 = arith.subf %282, %281 : vector<2x1x16xf32>
    %284 = arith.mulf %280, %283 : vector<2x1x16xf32>
    %285 = vector.broadcast %284 : vector<2x1x16xf32> to vector<2x16x16xf32>
    %286 = arith.mulf %277, %285 : vector<2x16x16xf32>
    %287 = vector.shape_cast %286 : vector<2x16x16xf32> to vector<2x1x16x16xf32>
    %288 = vector.broadcast %287 : vector<2x1x16x16xf32> to vector<2x4x16x16xf32>
    %289 = arith.mulf %288, %2 : vector<2x4x16x16xf32>
    %cst_104 = arith.constant dense<0.000000e+00> : vector<2x4x16xf32>
    %290 = vector.multi_reduction <add>, %289, %cst_104 [2] : vector<2x4x16x16xf32> to vector<2x4x16xf32>
    %291 = vector.shape_cast %290 : vector<2x4x16xf32> to vector<2x4x1x16xf32>
    %c0_105 = arith.constant 0 : index
    %c0_106 = arith.constant 0 : index
    %c11 = arith.constant 11 : index
    %c0_107 = arith.constant 0 : index
    %292 = vector.load %arg4[%c0_105, %c0_106, %c11, %c0_107] : memref<2x4x16x16xf32, #tpu.memory_space<vmem>>, vector<2x4x1x16xf32>
    tpu.vector_store %arg4[%c0_105, %c0_106, %c11, %c0_107], %291 {strides = array<i32>} : memref<2x4x16x16xf32, #tpu.memory_space<vmem>>, vector<2x4x1x16xf32>,
    %293 = vector.extract_strided_slice %4 {offsets = [0, 0, 12, 0], sizes = [2, 4, 1, 16], strides = [1, 1, 1, 1]} : vector<2x4x16x16xf32> to vector<2x4x1x16xf32>
    %294 = vector.broadcast %293 : vector<2x4x1x16xf32> to vector<2x4x16x16xf32>
    %295 = arith.mulf %294, %1 : vector<2x4x16x16xf32>
    %cst_108 = arith.constant dense<0.000000e+00> : vector<2x16x16xf32>
    %296 = vector.multi_reduction <add>, %295, %cst_108 [1] : vector<2x4x16x16xf32> to vector<2x16x16xf32>
    %cst_109 = arith.constant dense<0xFF800000> : vector<2x16xf32>
    %297 = vector.multi_reduction <maximumf>, %296, %cst_109 [1] : vector<2x16x16xf32> to vector<2x16xf32>
    %298 = vector.shape_cast %297 : vector<2x16xf32> to vector<2x1x16xf32>
    %299 = vector.broadcast %298 : vector<2x1x16xf32> to vector<2x16x16xf32>
    %300 = arith.subf %296, %299 : vector<2x16x16xf32>
    %301 = math.exp %300 : vector<2x16x16xf32>
    %cst_110 = arith.constant dense<0.000000e+00> : vector<2x16xf32>
    %302 = vector.multi_reduction <add>, %301, %cst_110 [1] : vector<2x16x16xf32> to vector<2x16xf32>
    %303 = vector.shape_cast %302 : vector<2x16xf32> to vector<2x1x16xf32>
    %304 = tpu.reciprocal %303 {approx = true} : vector<2x1x16xf32> -> vector<2x1x16xf32>
    %305 = arith.mulf %303, %304 : vector<2x1x16xf32>
    %cst_111 = arith.constant 2.000000e+00 : f32
    %306 = vector.broadcast %cst_111 : f32 to vector<2x1x16xf32>
    %307 = arith.subf %306, %305 : vector<2x1x16xf32>
    %308 = arith.mulf %304, %307 : vector<2x1x16xf32>
    %309 = vector.broadcast %308 : vector<2x1x16xf32> to vector<2x16x16xf32>
    %310 = arith.mulf %301, %309 : vector<2x16x16xf32>
    %311 = vector.shape_cast %310 : vector<2x16x16xf32> to vector<2x1x16x16xf32>
    %312 = vector.broadcast %311 : vector<2x1x16x16xf32> to vector<2x4x16x16xf32>
    %313 = arith.mulf %312, %2 : vector<2x4x16x16xf32>
    %cst_112 = arith.constant dense<0.000000e+00> : vector<2x4x16xf32>
    %314 = vector.multi_reduction <add>, %313, %cst_112 [2] : vector<2x4x16x16xf32> to vector<2x4x16xf32>
    %315 = vector.shape_cast %314 : vector<2x4x16xf32> to vector<2x4x1x16xf32>
    %c0_113 = arith.constant 0 : index
    %c0_114 = arith.constant 0 : index
    %c12 = arith.constant 12 : index
    %c0_115 = arith.constant 0 : index
    %316 = vector.load %arg4[%c0_113, %c0_114, %c12, %c0_115] : memref<2x4x16x16xf32, #tpu.memory_space<vmem>>, vector<2x4x1x16xf32>
    tpu.vector_store %arg4[%c0_113, %c0_114, %c12, %c0_115], %315 {strides = array<i32>} : memref<2x4x16x16xf32, #tpu.memory_space<vmem>>, vector<2x4x1x16xf32>,
    %317 = vector.extract_strided_slice %4 {offsets = [0, 0, 13, 0], sizes = [2, 4, 1, 16], strides = [1, 1, 1, 1]} : vector<2x4x16x16xf32> to vector<2x4x1x16xf32>
    %318 = vector.broadcast %317 : vector<2x4x1x16xf32> to vector<2x4x16x16xf32>
    %319 = arith.mulf %318, %1 : vector<2x4x16x16xf32>
    %cst_116 = arith.constant dense<0.000000e+00> : vector<2x16x16xf32>
    %320 = vector.multi_reduction <add>, %319, %cst_116 [1] : vector<2x4x16x16xf32> to vector<2x16x16xf32>
    %cst_117 = arith.constant dense<0xFF800000> : vector<2x16xf32>
    %321 = vector.multi_reduction <maximumf>, %320, %cst_117 [1] : vector<2x16x16xf32> to vector<2x16xf32>
    %322 = vector.shape_cast %321 : vector<2x16xf32> to vector<2x1x16xf32>
    %323 = vector.broadcast %322 : vector<2x1x16xf32> to vector<2x16x16xf32>
    %324 = arith.subf %320, %323 : vector<2x16x16xf32>
    %325 = math.exp %324 : vector<2x16x16xf32>
    %cst_118 = arith.constant dense<0.000000e+00> : vector<2x16xf32>
    %326 = vector.multi_reduction <add>, %325, %cst_118 [1] : vector<2x16x16xf32> to vector<2x16xf32>
    %327 = vector.shape_cast %326 : vector<2x16xf32> to vector<2x1x16xf32>
    %328 = tpu.reciprocal %327 {approx = true} : vector<2x1x16xf32> -> vector<2x1x16xf32>
    %329 = arith.mulf %327, %328 : vector<2x1x16xf32>
    %cst_119 = arith.constant 2.000000e+00 : f32
    %330 = vector.broadcast %cst_119 : f32 to vector<2x1x16xf32>
    %331 = arith.subf %330, %329 : vector<2x1x16xf32>
    %332 = arith.mulf %328, %331 : vector<2x1x16xf32>
    %333 = vector.broadcast %332 : vector<2x1x16xf32> to vector<2x16x16xf32>
    %334 = arith.mulf %325, %333 : vector<2x16x16xf32>
    %335 = vector.shape_cast %334 : vector<2x16x16xf32> to vector<2x1x16x16xf32>
    %336 = vector.broadcast %335 : vector<2x1x16x16xf32> to vector<2x4x16x16xf32>
    %337 = arith.mulf %336, %2 : vector<2x4x16x16xf32>
    %cst_120 = arith.constant dense<0.000000e+00> : vector<2x4x16xf32>
    %338 = vector.multi_reduction <add>, %337, %cst_120 [2] : vector<2x4x16x16xf32> to vector<2x4x16xf32>
    %339 = vector.shape_cast %338 : vector<2x4x16xf32> to vector<2x4x1x16xf32>
    %c0_121 = arith.constant 0 : index
    %c0_122 = arith.constant 0 : index
    %c13 = arith.constant 13 : index
    %c0_123 = arith.constant 0 : index
    %340 = vector.load %arg4[%c0_121, %c0_122, %c13, %c0_123] : memref<2x4x16x16xf32, #tpu.memory_space<vmem>>, vector<2x4x1x16xf32>
    tpu.vector_store %arg4[%c0_121, %c0_122, %c13, %c0_123], %339 {strides = array<i32>} : memref<2x4x16x16xf32, #tpu.memory_space<vmem>>, vector<2x4x1x16xf32>,
    %341 = vector.extract_strided_slice %4 {offsets = [0, 0, 14, 0], sizes = [2, 4, 1, 16], strides = [1, 1, 1, 1]} : vector<2x4x16x16xf32> to vector<2x4x1x16xf32>
    %342 = vector.broadcast %341 : vector<2x4x1x16xf32> to vector<2x4x16x16xf32>
    %343 = arith.mulf %342, %1 : vector<2x4x16x16xf32>
    %cst_124 = arith.constant dense<0.000000e+00> : vector<2x16x16xf32>
    %344 = vector.multi_reduction <add>, %343, %cst_124 [1] : vector<2x4x16x16xf32> to vector<2x16x16xf32>
    %cst_125 = arith.constant dense<0xFF800000> : vector<2x16xf32>
    %345 = vector.multi_reduction <maximumf>, %344, %cst_125 [1] : vector<2x16x16xf32> to vector<2x16xf32>
    %346 = vector.shape_cast %345 : vector<2x16xf32> to vector<2x1x16xf32>
    %347 = vector.broadcast %346 : vector<2x1x16xf32> to vector<2x16x16xf32>
    %348 = arith.subf %344, %347 : vector<2x16x16xf32>
    %349 = math.exp %348 : vector<2x16x16xf32>
    %cst_126 = arith.constant dense<0.000000e+00> : vector<2x16xf32>
    %350 = vector.multi_reduction <add>, %349, %cst_126 [1] : vector<2x16x16xf32> to vector<2x16xf32>
    %351 = vector.shape_cast %350 : vector<2x16xf32> to vector<2x1x16xf32>
    %352 = tpu.reciprocal %351 {approx = true} : vector<2x1x16xf32> -> vector<2x1x16xf32>
    %353 = arith.mulf %351, %352 : vector<2x1x16xf32>
    %cst_127 = arith.constant 2.000000e+00 : f32
    %354 = vector.broadcast %cst_127 : f32 to vector<2x1x16xf32>
    %355 = arith.subf %354, %353 : vector<2x1x16xf32>
    %356 = arith.mulf %352, %355 : vector<2x1x16xf32>
    %357 = vector.broadcast %356 : vector<2x1x16xf32> to vector<2x16x16xf32>
    %358 = arith.mulf %349, %357 : vector<2x16x16xf32>
    %359 = vector.shape_cast %358 : vector<2x16x16xf32> to vector<2x1x16x16xf32>
    %360 = vector.broadcast %359 : vector<2x1x16x16xf32> to vector<2x4x16x16xf32>
    %361 = arith.mulf %360, %2 : vector<2x4x16x16xf32>
    %cst_128 = arith.constant dense<0.000000e+00> : vector<2x4x16xf32>
    %362 = vector.multi_reduction <add>, %361, %cst_128 [2] : vector<2x4x16x16xf32> to vector<2x4x16xf32>
    %363 = vector.shape_cast %362 : vector<2x4x16xf32> to vector<2x4x1x16xf32>
    %c0_129 = arith.constant 0 : index
    %c0_130 = arith.constant 0 : index
    %c14 = arith.constant 14 : index
    %c0_131 = arith.constant 0 : index
    %364 = vector.load %arg4[%c0_129, %c0_130, %c14, %c0_131] : memref<2x4x16x16xf32, #tpu.memory_space<vmem>>, vector<2x4x1x16xf32>
    tpu.vector_store %arg4[%c0_129, %c0_130, %c14, %c0_131], %363 {strides = array<i32>} : memref<2x4x16x16xf32, #tpu.memory_space<vmem>>, vector<2x4x1x16xf32>,
    %365 = vector.extract_strided_slice %4 {offsets = [0, 0, 15, 0], sizes = [2, 4, 1, 16], strides = [1, 1, 1, 1]} : vector<2x4x16x16xf32> to vector<2x4x1x16xf32>
    %366 = vector.broadcast %365 : vector<2x4x1x16xf32> to vector<2x4x16x16xf32>
    %367 = arith.mulf %366, %1 : vector<2x4x16x16xf32>
    %cst_132 = arith.constant dense<0.000000e+00> : vector<2x16x16xf32>
    %368 = vector.multi_reduction <add>, %367, %cst_132 [1] : vector<2x4x16x16xf32> to vector<2x16x16xf32>
    %cst_133 = arith.constant dense<0xFF800000> : vector<2x16xf32>
    %369 = vector.multi_reduction <maximumf>, %368, %cst_133 [1] : vector<2x16x16xf32> to vector<2x16xf32>
    %370 = vector.shape_cast %369 : vector<2x16xf32> to vector<2x1x16xf32>
    %371 = vector.broadcast %370 : vector<2x1x16xf32> to vector<2x16x16xf32>
    %372 = arith.subf %368, %371 : vector<2x16x16xf32>
    %373 = math.exp %372 : vector<2x16x16xf32>
    %cst_134 = arith.constant dense<0.000000e+00> : vector<2x16xf32>
    %374 = vector.multi_reduction <add>, %373, %cst_134 [1] : vector<2x16x16xf32> to vector<2x16xf32>
    %375 = vector.shape_cast %374 : vector<2x16xf32> to vector<2x1x16xf32>
    %376 = tpu.reciprocal %375 {approx = true} : vector<2x1x16xf32> -> vector<2x1x16xf32>
    %377 = arith.mulf %375, %376 : vector<2x1x16xf32>
    %cst_135 = arith.constant 2.000000e+00 : f32
    %378 = vector.broadcast %cst_135 : f32 to vector<2x1x16xf32>
    %379 = arith.subf %378, %377 : vector<2x1x16xf32>
    %380 = arith.mulf %376, %379 : vector<2x1x16xf32>
    %381 = vector.broadcast %380 : vector<2x1x16xf32> to vector<2x16x16xf32>
    %382 = arith.mulf %373, %381 : vector<2x16x16xf32>
    %383 = vector.shape_cast %382 : vector<2x16x16xf32> to vector<2x1x16x16xf32>
    %384 = vector.broadcast %383 : vector<2x1x16x16xf32> to vector<2x4x16x16xf32>
    %385 = arith.mulf %384, %2 : vector<2x4x16x16xf32>
    %cst_136 = arith.constant dense<0.000000e+00> : vector<2x4x16xf32>
    %386 = vector.multi_reduction <add>, %385, %cst_136 [2] : vector<2x4x16x16xf32> to vector<2x4x16xf32>
    %387 = vector.shape_cast %386 : vector<2x4x16xf32> to vector<2x4x1x16xf32>
    %c0_137 = arith.constant 0 : index
    %c0_138 = arith.constant 0 : index
    %c15 = arith.constant 15 : index
    %c0_139 = arith.constant 0 : index
    %388 = vector.load %arg4[%c0_137, %c0_138, %c15, %c0_139] : memref<2x4x16x16xf32, #tpu.memory_space<vmem>>, vector<2x4x1x16xf32>
    tpu.vector_store %arg4[%c0_137, %c0_138, %c15, %c0_139], %387 {strides = array<i32>} : memref<2x4x16x16xf32, #tpu.memory_space<vmem>>, vector<2x4x1x16xf32>,
    return
  }
  func.func @transform_0(%arg0: i32) -> (i32, i32, i32, i32) {
    %c0_i32 = arith.constant 0 : i32
    %c0_i32_0 = arith.constant 0 : i32
    %c0_i32_1 = arith.constant 0 : i32
    %c0_i32_2 = arith.constant 0 : i32
    return %arg0, %c0_i32, %c0_i32_0, %c0_i32_1 : i32, i32, i32, i32
  }
  func.func @transform_1(%arg0: i32) -> (i32, i32, i32, i32) {
    %c0_i32 = arith.constant 0 : i32
    %c0_i32_0 = arith.constant 0 : i32
    %c0_i32_1 = arith.constant 0 : i32
    %c0_i32_2 = arith.constant 0 : i32
    return %arg0, %c0_i32, %c0_i32_0, %c0_i32_1 : i32, i32, i32, i32
  }
  func.func @transform_2(%arg0: i32) -> (i32, i32, i32, i32) {
    %c0_i32 = arith.constant 0 : i32
    %c0_i32_0 = arith.constant 0 : i32
    %c0_i32_1 = arith.constant 0 : i32
    %c0_i32_2 = arith.constant 0 : i32
    return %arg0, %c0_i32, %c0_i32_0, %c0_i32_1 : i32, i32, i32, i32
  }
  func.func @transform_3(%arg0: i32) -> (i32, i32, i32, i32) {
    %c0_i32 = arith.constant 0 : i32
    %c0_i32_0 = arith.constant 0 : i32
    %c0_i32_1 = arith.constant 0 : i32
    %c0_i32_2 = arith.constant 0 : i32
    return %arg0, %c0_i32, %c0_i32_0, %c0_i32_1 : i32, i32, i32, i32
  }
}

</mosaic_0001>

<bundles_post_ra>
// kernel: tpu_custom_call.1
= control target key start
LH: loop header
LB: loop body
LE: loop exit
PB: predicated region body
PF: predicated region fallthrough
CT: control target
= control target key end

     0   :  { %8 = vsyncpa [#allocation3], 0  ;;  %s7090_s0 = inlined_call_operand.hbm [shape: f32[2,4,16,16], index: 0, kind: input, shape index: {}]   ;;  %s7091_s1 = inlined_call_operand.hbm [shape: f32[2,4,16,16], index: 1, kind: input, shape index: {}]   ;;  %s7092_s2 = inlined_call_operand.hbm [shape: f32[2,4,16,16], index: 2, kind: input, shape index: {}]   ;;  %s7093_s3 = inlined_call_operand.hbm [shape: f32[2,4,16,16], index: 3, kind: output, shape index: {}]  }
   0x1   :  { %9 = vsyncpa [#allocation6], 0 }
   0x2   :  { %10 = vsyncpa [#allocation4], 0  ;;  %s4288_s12 = smov [#allocation5]   ;;  %s4289_s14 = smov [#allocation2]  }
   0x3   :  { %s28_s13 = sshll.u32 %s4288_s12, 4  ;;  %s16_s15 = sshll.u32 %s4289_s14, 4  ;;  %s29_s13 = int_to_ptr.vmem [resolvable:$true] %s28_s13  ;;  %s4314_s15 = int_to_ptr.vmem [resolvable:$true] %s16_s15 }
   0x4   :  { %s4194_s18 = scalar_lea.hbm %s7091_s1, 2048 }
   0x5   :  { %p4195_p0 = scmp.ne.s32.totalorder %s7091_s1, %s4194_s18  ;;  %p4198_p1 = scmp.lt.u32.totalorder %s4194_s18, %s7091_s1 }
   0x7   :  { %p4200_p2 = pnand %p4198_p1, %p4195_p0 }
   0x9   :  { %4203 = shalt.err (!%p4200_p2)
}
   0xa   :  { %s4204_s23 = scalar_lea.vmem %s29_s13, 2048  ;;  %p4209_p4 = scmp.lt.s32.totalorder %s29_s13, %s29_s13 }
   0xb   :  { %p4205_p3 = scmp.ne.s32.totalorder %s29_s13, %s4204_s23  ;;  %p4210_p5 = scmp.lt.s32.totalorder %s4204_s23, %s4204_s23 }
   0xd   :  { %p4211_p6 = por %p4210_p5, %p4209_p4 }
   0xf   :  { %p4212_p7 = pnand %p4211_p6, %p4205_p3 }
  0x11   :  { %4215 = shalt.err (!%p4212_p7)
}
  0x12   :  { %s4290_s24 = smov 128   ;;  %s4291_s25 = smov 8  }
  0x13   :  { %34 = dma.hbm_to_vmem [thread:$0]  %s7091_s1, 2048, %s29_s13, [#allocation6], %s4290_s24, %s4290_s24, %s4291_s25  }
  0x14   :  { %s4216_s30 = scalar_lea.hbm %s7090_s0, 2048 }
  0x15   :  { %p4217_p8 = scmp.ne.s32.totalorder %s7090_s0, %s4216_s30  ;;  %p4220_p9 = scmp.lt.u32.totalorder %s4216_s30, %s7090_s0 }
  0x17   :  { %p4222_p10 = pnand %p4220_p9, %p4217_p8 }
  0x19   :  { %4225 = shalt.err (!%p4222_p10)
}
  0x1a   :  { %s4226_s8 = scalar_lea.vmem %s4314_s15, 2048  ;;  %p4231_p12 = scmp.lt.s32.totalorder %s4314_s15, %s4314_s15 }
  0x1b   :  { %p4227_p11 = scmp.ne.s32.totalorder %s4314_s15, %s4226_s8  ;;  %p4232_p13 = scmp.lt.s32.totalorder %s4226_s8, %s4226_s8 }
  0x1d   :  { %p4233_p0 = por %p4232_p13, %p4231_p12 }
  0x1f   :  { %p4234_p1 = pnand %p4233_p0, %p4227_p11 }
  0x21   :  { %4237 = shalt.err (!%p4234_p1)
}
  0x22   :  { %22 = dma.hbm_to_vmem [thread:$0]  %s7090_s0, 2048, %s4314_s15, [#allocation3], %s4290_s24, %s4290_s24, %s4291_s25  }
  0x23   :  { %s4292_s10 = smov [#allocation7]   ;;  %s4238_s14 = scalar_lea.hbm %s7092_s2, 2048 }
  0x24   :  { %s40_s11 = sshll.u32 %s4292_s10, 4  ;;  %p4239_p2 = scmp.ne.s32.totalorder %s7092_s2, %s4238_s14  ;;  %s41_s11 = int_to_ptr.vmem [resolvable:$true] %s40_s11 }
  0x25   :  { %p4242_p3 = scmp.lt.u32.totalorder %s4238_s14, %s7092_s2 }
  0x27   :  { %p4244_p4 = pnand %p4242_p3, %p4239_p2 }
  0x29   :  { %4247 = shalt.err (!%p4244_p4)
}
  0x2a   :  { %s4248_s20 = scalar_lea.vmem %s41_s11, 2048  ;;  %p4253_p6 = scmp.lt.s32.totalorder %s41_s11, %s41_s11 }
  0x2b   :  { %p4249_p5 = scmp.ne.s32.totalorder %s41_s11, %s4248_s20  ;;  %p4254_p7 = scmp.lt.s32.totalorder %s4248_s20, %s4248_s20 }
  0x2d   :  { %p4255_p8 = por %p4254_p7, %p4253_p6 }
  0x2f   :  { %p4256_p9 = pnand %p4255_p8, %p4249_p5 }
  0x31   :  { %4259 = shalt.err (!%p4256_p9)
}
  0x32   :  { %46 = dma.hbm_to_vmem [thread:$0]  %s7092_s2, 2048, %s41_s11, [#allocation6], %s4290_s24, %s4290_s24, %s4291_s25  }
  0x33   :  { %4282 = dma.done.wait [#allocation3], 2048  }
  0x34   :  { %4283 = vsyncadd [#allocation3], 4294965248 }
  0x35   :  { %4284 = dma.done.wait [#allocation6], 4096  }
  0x36   :  { %4285 = vsyncadd [#allocation6], 4294963200  ;;  %v120_v0 = vlaneseq  ;;  %v56_v4 = vld [vmem:[#allocation2] sm:$0xff]  ;;  %v58_v5 = vld [vmem:[#allocation2 + $0x10] sm:$0xff]  ;;  %vm168_vm0 = vcmask 130048   ;;  %vm345_vm1 = vcmask 122880  }
  0x37   :  { %v60_v6 = vld [vmem:[#allocation2 + $0x20] sm:$0xff]  ;;  %v62_v7 = vld [vmem:[#allocation2 + $0x30] sm:$0xff]  ;;  %v4376_v9 = vld [vmem:[#allocation5 + $0x8] sm:$0xff]  ;;  %v4378_v10 = vmul.f32 0.5, %v56_v4  ;;  %v4380_v11 = vmul.f32 0.5, %v58_v5  ;;  %s4293_s2 = smov [#allocation8]  }
  0x38   :  { %v4366_v1 = vshrl.u32 %v120_v0, 7  ;;  %v4374_v8 = vld [vmem:[#allocation5] sm:$0xff]  ;;  %v4382_v12 = vmul.f32 0.5, %v60_v6  ;;  %v4384_v13 = vld [vmem:[#allocation5 + $0x10] sm:$0xff]  ;;  %v4386_v14 = vld [vmem:[#allocation5 + $0x18] sm:$0xff]  ;;  %v4390_v16 = vmul.f32 0.5, %v62_v7 }
  0x39   :  { %v4388_v15 = vld [vmem:[#allocation5 + $0x20] sm:$0xff]  ;;  %v4398_v19 = vld [vmem:[#allocation5 + $0x28] sm:$0xff]  ;;  %v4400_v20 = vld [vmem:[#allocation5 + $0x30] sm:$0xff]  ;;  %s3839_s21 = sshll.u32 %s4293_s2, 4  ;;  %s3840_s21 = int_to_ptr.vmem [resolvable:$true] %s3839_s21 }
  0x3a   :  { %v4369_v2 = vsub.s32 0, %v4366_v1  ;;  %v4372_v3 = vsub.s32 1, %v4366_v1  ;;  %7212 = vst [vmem:[#allocation14_spill] sm:$0xff] %v4382_v12  ;;  %7213 = vst [vmem:[#allocation15_spill] sm:$0xff] %v4390_v16  ;;  %v4393_v17 = vsub.s32 2, %v4366_v1  ;;  %v4396_v18 = vsub.s32 3, %v4366_v1  ;;  %p4265_p11 = scmp.lt.s32.totalorder %s3840_s21, %s3840_s21 }
  0x3b   :  { %v4402_v21 = vld [vmem:[#allocation5 + $0x38] sm:$0xff]  ;;  %v64_v38 = vld [vmem:[#allocation2 + $0x40] sm:$0xff]  ;;  %v66_v43 = vld [vmem:[#allocation2 + $0x50] sm:$0xff]  ;;  %s4260_s22 = scalar_lea.vmem %s3840_s21, 2048 }
  0x3c   :  { %7210 = vst [vmem:[#allocation12_spill] sm:$0xff] %v4369_v2  ;;  %7211 = vst [vmem:[#allocation13_spill] sm:$0xff] %v4372_v3  ;;  %v123_v22 = vrot.slane %v4378_v10, %v4369_v2  ;;  %v127_v23 = vrot.slane %v4380_v11, %v4369_v2  ;;  %v131_v24 = vrot.slane %v4382_v12, %v4369_v2  ;;  %v68_v44 = vld [vmem:[#allocation2 + $0x60] sm:$0xff]  ;;  %v70_v49 = vld [vmem:[#allocation2 + $0x70] sm:$0xff]  ;;  %v4440_v52 = vmul.f32 0.5, %v64_v38  ;;  %p4261_p10 = scmp.ne.s32.totalorder %s3840_s21, %s4260_s22  ;;  %p4266_p12 = scmp.lt.s32.totalorder %s4260_s22, %s4260_s22 }
  0x3d   :  { %7214 = vst [vmem:[#allocation16_spill] sm:$0xff] %v4393_v17  ;;  %7215 = vst [vmem:[#allocation17_spill] sm:$0xff] %v4396_v18  ;;  %v357_v25 = vrot.slane %v4378_v10, %v4372_v3  ;;  %v135_v26 = vrot.slane %v4390_v16, %v4369_v2  ;;  %v361_v27 = vrot.slane %v4380_v11, %v4372_v3  ;;  %v4443_v56 = vld [vmem:[#allocation5 + $0x40] sm:$0xff]  ;;  %v4445_v57 = vld [vmem:[#allocation5 + $0x48] sm:$0xff]  ;;  %v4447_v58 = vmul.f32 0.5, %v66_v43 }
  0x3e   :  { %v4418_v28 = vrot.slane %v4382_v12, %v4372_v3  ;;  %v4422_v29 = vrot.slane %v4390_v16, %v4372_v3  ;;  %v152_v30 = vmul.f32 %v123_v22, %v4374_v8  ;;  %v153_v31 = vmul.f32 %v123_v22, %v4376_v9  ;;  %v4451_v60 = vld [vmem:[#allocation5 + $0x50] sm:$0xff]  ;;  %v4453_v61 = vld [vmem:[#allocation5 + $0x58] sm:$0xff]  ;;  %v4465_v7 = vld [vmem:[#allocation5 + $0x60] sm:$0xff]  ;;  %p4267_p13 = por %p4266_p12, %p4265_p11 }
  0x3f   :  { %v154_v32 = vmul.f32 %v127_v23, %v4384_v13  ;;  %v155_v33 = vmul.f32 %v127_v23, %v4386_v14  ;;  %v156_v34 = vmul.f32 %v131_v24, %v4388_v15  ;;  %v157_v35 = vmul.f32 %v131_v24, %v4398_v19  ;;  %v4467_v22 = vld [vmem:[#allocation5 + $0x68] sm:$0xff]  ;;  %v4469_v23 = vld [vmem:[#allocation5 + $0x70] sm:$0xff] }
  0x40   :  { %v158_v36 = vmul.f32 %v135_v26, %v4400_v20  ;;  %v159_v37 = vmul.f32 %v135_v26, %v4402_v21  ;;  %v169_v39 = vsel %vm168_vm0, %v152_v30, 0.0  ;;  %v176_v41 = vsel %vm168_vm0, %v153_v31, 0.0  ;;  %v4475_v30 = vld [vmem:[#allocation5 + $0x78] sm:$0xff]  ;;  %p4268_p0 = pnand %p4267_p13, %p4261_p10 }
  0x41   :  { %v170_v40 = vsel %vm168_vm0, %v154_v32, 0.0  ;;  %v177_v42 = vsel %vm168_vm0, %v155_v33, 0.0  ;;  %v172_v46 = vsel %vm168_vm0, %v156_v34, 0.0  ;;  %v179_v50 = vsel %vm168_vm0, %v157_v35, 0.0 }
  0x42   :  { %v171_v45 = vadd.f32 %v170_v40, %v169_v39  ;;  %v174_v47 = vsel %vm168_vm0, %v158_v36, 0.0  ;;  %v178_v48 = vadd.f32 %v177_v42, %v176_v41  ;;  %v181_v51 = vsel %vm168_vm0, %v159_v37, 0.0 }
  0x43   :  { %v386_v53 = vmul.f32 %v357_v25, %v4374_v8  ;;  %v4449_v59 = vmul.f32 0.5, %v68_v44  ;;  %v4455_v62 = vmul.f32 0.5, %v70_v49  ;;  %v139_v63 = vrot.slane %v4440_v52, %v4369_v2 }
  0x44   :  { %v173_v54 = vadd.f32 %v172_v46, %v171_v45  ;;  %v180_v55 = vadd.f32 %v179_v50, %v178_v48  ;;  %v387_v0 = vmul.f32 %v357_v25, %v4376_v9  ;;  %v388_v4 = vmul.f32 %v361_v27, %v4384_v13 }
  0x45   :  { %v143_v24 = vrot.slane %v4447_v58, %v4369_v2  ;;  %v147_v26 = vrot.slane %v4449_v59, %v4369_v2  ;;  %v151_v25 = vrot.slane %v4455_v62, %v4369_v2  ;;  %v160_v31 = vmul.f32 %v139_v63, %v4443_v56 }
  0x46   :  { %v4461_v5 = vadd.f32 %v174_v47, %v173_v54  ;;  %v4463_v6 = vadd.f32 %v181_v51, %v180_v55  ;;  %v161_v32 = vmul.f32 %v139_v63, %v4445_v57  ;;  %v389_v33 = vmul.f32 %v361_v27, %v4386_v14 }
  0x47   :  { %v162_v36 = vmul.f32 %v143_v24, %v4451_v60  ;;  %v163_v37 = vmul.f32 %v143_v24, %v4453_v61  ;;  %v164_v39 = vmul.f32 %v147_v26, %v4465_v7  ;;  %v165_v40 = vmul.f32 %v147_v26, %v4467_v22 }
  0x48   :  { %v197_v34 = vsel %vm168_vm0, %v4461_v5, -inf  ;;  %v198_v35 = vsel %vm168_vm0, %v4463_v6, -inf  ;;  %v166_v41 = vmul.f32 %v151_v25, %v4469_v23  ;;  %v167_v42 = vmul.f32 %v151_v25, %v4475_v30 }
  0x49   :  { %v199_v38 = vmax.f32 %v197_v34, %v198_v35  ;;  %v183_v27 = vsel %vm168_vm0, %v160_v31, 0.0  ;;  %v184_v43 = vsel %vm168_vm0, %v162_v36, 0.0  ;;  %v190_v44 = vsel %vm168_vm0, %v161_v32, 0.0 }
  0x4a   :  { %v185_v46 = vadd.f32 %v184_v43, %v183_v27  ;;  %v186_v47 = vsel %vm168_vm0, %v164_v39, 0.0  ;;  %v188_v48 = vsel %vm168_vm0, %v166_v41, 0.0  ;;  %v191_v49 = vsel %vm168_vm0, %v163_v37, 0.0 }
  0x4b   :  { %v200_v45 = vrot.slane %v199_v38, 4  ;;  %v193_v50 = vsel %vm168_vm0, %v165_v40, 0.0  ;;  %v195_v51 = vsel %vm168_vm0, %v167_v42, 0.0  ;;  %v390_v54 = vmul.f32 %v4418_v28, %v4388_v15 }
  0x4c   :  { %v187_v63 = vadd.f32 %v186_v47, %v185_v46  ;;  %v192_v24 = vadd.f32 %v191_v49, %v190_v44  ;;  %v391_v26 = vmul.f32 %v4418_v28, %v4398_v19  ;;  %v392_v25 = vmul.f32 %v4422_v29, %v4400_v20 }
  0x4d   :  { %v201_v55 = vmax.f32 %v199_v38, %v200_v45  ;;  %v393_v31 = vmul.f32 %v4422_v29, %v4402_v21  ;;  %v402_v32 = vsel %vm168_vm0, %v386_v53, 0.0  ;;  %v403_v34 = vsel %vm168_vm0, %v388_v4, 0.0 }
  0x4e   :  { %v4510_v36 = vadd.f32 %v188_v48, %v187_v63  ;;  %v194_v37 = vadd.f32 %v193_v50, %v192_v24  ;;  %v404_v38 = vadd.f32 %v403_v34, %v402_v32  ;;  %v405_v39 = vsel %vm168_vm0, %v390_v54, 0.0 }
  0x4f   :  { %v202_v35 = vrot.slane %v201_v55, 2  ;;  %v407_v40 = vsel %vm168_vm0, %v392_v25, 0.0  ;;  %v409_v28 = vsel %vm168_vm0, %v387_v0, 0.0  ;;  %v410_v41 = vsel %vm168_vm0, %v389_v33, 0.0 }
  0x50   :  { %v4516_v27 = vadd.f32 %v195_v51, %v194_v37  ;;  %v206_v29 = vsel %vm168_vm0, %v4510_v36, -inf  ;;  %v406_v53 = vadd.f32 %v405_v39, %v404_v38  ;;  %v411_v4 = vadd.f32 %v410_v41, %v409_v28 }
  0x51   :  { %v203_v42 = vmax.f32 %v201_v55, %v202_v35  ;;  %v412_v43 = vsel %vm168_vm0, %v391_v26, 0.0  ;;  %v414_v44 = vsel %vm168_vm0, %v393_v31, 0.0  ;;  %v373_v45 = vrot.slane %v4440_v52, %v4372_v3 }
  0x52   :  { %v207_v0 = vsel %vm168_vm0, %v4516_v27, -inf  ;;  %v4526_v33 = vadd.f32 %v407_v40, %v406_v53  ;;  %v377_v47 = vrot.slane %v4447_v58, %v4372_v3  ;;  %v413_v49 = vadd.f32 %v412_v43, %v411_v4 }
  0x53   :  { %v204_v46 = vrot.slane %v203_v42, 1  ;;  %v208_v48 = vmax.f32 %v206_v29, %v207_v0  ;;  %v381_v50 = vrot.slane %v4449_v59, %v4372_v3  ;;  %v385_v51 = vrot.slane %v4455_v62, %v4372_v3  ;;  %v4761_v3 = vld [vmem:[#allocation7 + $0x50] sm:$0xff] }
  0x54   :  { %v430_v55 = vsel %vm168_vm0, %v4526_v33, -inf  ;;  %v394_v63 = vmul.f32 %v373_v45, %v4443_v56  ;;  %v395_v24 = vmul.f32 %v373_v45, %v4445_v57  ;;  %v4538_v25 = vadd.f32 %v414_v44, %v413_v49 }
  0x55   :  { %v205_v54 = vmax.f32 %v203_v42, %v204_v46  ;;  %v209_v26 = vrot.slane %v208_v48, 4  ;;  %v396_v31 = vmul.f32 %v377_v47, %v4451_v60  ;;  %v397_v32 = vmul.f32 %v377_v47, %v4453_v61 }
  0x56   :  { %v398_v37 = vmul.f32 %v381_v50, %v4465_v7  ;;  %v399_v38 = vmul.f32 %v381_v50, %v4467_v22  ;;  %v431_v40 = vsel %vm168_vm0, %v4538_v25, -inf  ;;  %v400_v28 = vmul.f32 %v385_v51, %v4469_v23 }
  0x57   :  { %v215_v34 = vsub.f32 %v4461_v5, %v205_v54  ;;  %v216_v35 = vsub.f32 %v4463_v6, %v205_v54  ;;  %v210_v39 = vmax.f32 %v208_v48, %v209_v26  ;;  %v401_v41 = vmul.f32 %v385_v51, %v4475_v30 }
  0x58   :  { %v432_v53 = vmax.f32 %v430_v55, %v431_v40  ;;  %v416_v4 = vsel %vm168_vm0, %v394_v63, 0.0  ;;  %v417_v6 = vsel %vm168_vm0, %v396_v31, 0.0  ;;  %v419_v43 = vsel %vm168_vm0, %v398_v37, 0.0 }
  0x59   :  { %v219_v42 = vmul.f32 1.442695, %v215_v34  ;;  %v221_v29 = vmul.f32 1.442695, %v216_v35  ;;  %v211_v5 = vrot.slane %v210_v39, 2  ;;  %v421_v44 = vsel %vm168_vm0, %v400_v28, 0.0 }
  0x5a   :  { %v433_v45 = vrot.slane %v432_v53, 4  ;;  %v418_v46 = vadd.f32 %v417_v6, %v416_v4  ;;  %v423_v0 = vsel %vm168_vm0, %v395_v24, 0.0  ;;  %v424_v48 = vsel %vm168_vm0, %v397_v32, 0.0 }
  0x5b   :  { %3858 = vpow2.f32 %v219_v42  ;;  %v212_v47 = vmax.f32 %v210_v39, %v211_v5  ;;  %v426_v49 = vsel %vm168_vm0, %v399_v38, 0.0  ;;  %v425_v54 = vadd.f32 %v424_v48, %v423_v0 }
  0x5c   :  { %3860 = vpow2.f32 %v221_v29  ;;  %v434_v50 = vmax.f32 %v432_v53, %v433_v45  ;;  %v420_v51 = vadd.f32 %v419_v43, %v418_v46  ;;  %v428_v55 = vsel %vm168_vm0, %v401_v41, 0.0 }
  0x5d   :  { %v213_v63 = vrot.slane %v212_v47, 1  ;;  %v589_v26 = vrot.slane %v4378_v10, %v4393_v17  ;;  %v593_v31 = vrot.slane %v4380_v11, %v4393_v17  ;;  %v597_v24 = vrot.slane %v4382_v12, %v4393_v17 }
  0x5e   :  { %v435_v34 = vrot.slane %v434_v50, 2  ;;  %v4564_v35 = vadd.f32 %v421_v44, %v420_v51  ;;  %v427_v32 = vadd.f32 %v426_v49, %v425_v54  ;;  %v601_v37 = vrot.slane %v4390_v16, %v4393_v17 }
  0x5f   :  { %v214_v38 = vmax.f32 %v212_v47, %v213_v63  ;;  %v618_v39 = vmul.f32 %v589_v26, %v4374_v8  ;;  %v619_v40 = vmul.f32 %v589_v26, %v4376_v9  ;;  %v620_v28 = vmul.f32 %v593_v31, %v4384_v13 }
  0x60   :  { %v436_v41 = vmax.f32 %v434_v50, %v435_v34  ;;  %v4571_v42 = vadd.f32 %v428_v55, %v427_v32  ;;  %v439_v29 = vsel %vm168_vm0, %v4564_v35, -inf  ;;  %v621_v53 = vmul.f32 %v593_v31, %v4386_v14 }
  0x61   :  { %v217_v4 = vsub.f32 %v4510_v36, %v214_v38  ;;  %v218_v5 = vsub.f32 %v4516_v27, %v214_v38  ;;  %v622_v6 = vmul.f32 %v597_v24, %v4388_v15  ;;  %v623_v43 = vmul.f32 %v597_v24, %v4398_v19 }
  0x62   :  { %v437_v44 = vrot.slane %v436_v41, 1  ;;  %v440_v45 = vsel %vm168_vm0, %v4571_v42, -inf  ;;  %v624_v46 = vmul.f32 %v601_v37, %v4400_v20  ;;  %v625_v0 = vmul.f32 %v601_v37, %v4402_v21 }
  0x63   :  { %v223_v47 = vmul.f32 1.442695, %v217_v4  ;;  %v225_v48 = vmul.f32 1.442695, %v218_v5  ;;  %v441_v49 = vmax.f32 %v439_v29, %v440_v45  ;;  %v634_v50 = vsel %vm168_vm0, %v618_v39, 0.0 }
  0x64   :  { %v438_v27 = vmax.f32 %v436_v41, %v437_v44  ;;  %v635_v51 = vsel %vm168_vm0, %v620_v28, 0.0  ;;  %v637_v54 = vsel %vm168_vm0, %v622_v6, 0.0  ;;  %v639_v55 = vsel %vm168_vm0, %v624_v46, 0.0 }
  0x65   :  { %v4585_v36 = vpop.eup %3858  ;;  %3862 = vpow2.f32 %v223_v47  ;;  %v442_v31 = vrot.slane %v441_v49, 4  ;;  %v636_v24 = vadd.f32 %v635_v51, %v634_v50  ;;  %v641_v41 = vsel %vm168_vm0, %v619_v40, 0.0 }
  0x66   :  { %v4590_v63 = vpop.eup %3860  ;;  %v227_v26 = vsel %vm168_vm0, %v4585_v36, 0.0  ;;  %3864 = vpow2.f32 %v225_v48  ;;  %v448_v32 = vsub.f32 %v4526_v33, %v438_v27  ;;  %v449_v37 = vsub.f32 %v4538_v25, %v438_v27 }
  0x67   :  { %v228_v34 = vsel %vm168_vm0, %v4590_v63, 0.0  ;;  %v443_v39 = vmax.f32 %v441_v49, %v442_v31  ;;  %v638_v28 = vadd.f32 %v637_v54, %v636_v24  ;;  %v642_v5 = vsel %vm168_vm0, %v621_v53, 0.0 }
  0x68   :  { %v229_v38 = vadd.f32 %v228_v34, %v227_v26  ;;  %v452_v29 = vmul.f32 1.442695, %v448_v32  ;;  %v454_v4 = vmul.f32 1.442695, %v449_v37  ;;  %v644_v6 = vsel %vm168_vm0, %v623_v43, 0.0 }
  0x69   :  { %v444_v45 = vrot.slane %v443_v39, 2  ;;  %v4601_v46 = vadd.f32 %v639_v55, %v638_v28  ;;  %v643_v47 = vadd.f32 %v642_v5, %v641_v41  ;;  %v646_v33 = vsel %vm168_vm0, %v625_v0, 0.0 }
  0x6a   :  { %v230_v44 = vrot.slane %v229_v38, 4  ;;  %3866 = vpow2.f32 %v452_v29  ;;  %v605_v25 = vrot.slane %v4440_v52, %v4393_v17  ;;  %v609_v40 = vrot.slane %v4447_v58, %v4393_v17 }
  0x6b   :  { %3868 = vpow2.f32 %v454_v4  ;;  %v445_v49 = vmax.f32 %v443_v39, %v444_v45  ;;  %v645_v53 = vadd.f32 %v644_v6, %v643_v47  ;;  %v662_v43 = vsel %vm168_vm0, %v4601_v46, -inf }
  0x6c   :  { %v231_v48 = vadd.f32 %v230_v44, %v229_v38  ;;  %v613_v50 = vrot.slane %v4449_v59, %v4393_v17  ;;  %v617_v27 = vrot.slane %v4455_v62, %v4393_v17  ;;  %v626_v0 = vmul.f32 %v605_v25, %v4443_v56  ;;  %v4759_v17 = vld [vmem:[#allocation7 + $0x48] sm:$0xff] }
  0x6d   :  { %v446_v54 = vrot.slane %v445_v49, 1  ;;  %v4615_v55 = vadd.f32 %v646_v33, %v645_v53  ;;  %v627_v26 = vmul.f32 %v605_v25, %v4445_v57  ;;  %v628_v31 = vmul.f32 %v609_v40, %v4451_v60 }
  0x6e   :  { %v232_v51 = vrot.slane %v231_v48, 2  ;;  %v629_v24 = vmul.f32 %v609_v40, %v4453_v61  ;;  %v630_v34 = vmul.f32 %v613_v50, %v4465_v7  ;;  %v631_v32 = vmul.f32 %v613_v50, %v4467_v22 }
  0x6f   :  { %v4622_v37 = vpop.eup %3862  ;;  %v447_v39 = vmax.f32 %v445_v49, %v446_v54  ;;  %v663_v56 = vsel %vm168_vm0, %v4615_v55, -inf  ;;  %v632_v28 = vmul.f32 %v617_v27, %v4469_v23  ;;  %v633_v61 = vmul.f32 %v617_v27, %v4475_v30 }
  0x70   :  { %v233_v38 = vadd.f32 %v232_v51, %v231_v48  ;;  %v4627_v41 = vpop.eup %3864  ;;  %v236_v57 = vsel %vm168_vm0, %v4622_v37, 0.0  ;;  %v664_v60 = vmax.f32 %v662_v43, %v663_v56  ;;  %v648_v7 = vsel %vm168_vm0, %v626_v0, 0.0 }
  0x71   :  { %v237_v29 = vsel %vm168_vm0, %v4627_v41, 0.0  ;;  %v450_v4 = vsub.f32 %v4564_v35, %v447_v39  ;;  %v451_v5 = vsub.f32 %v4571_v42, %v447_v39  ;;  %v649_v44 = vsel %vm168_vm0, %v628_v31, 0.0 }
  0x72   :  { %v234_v22 = vrot.slane %v233_v38, 1  ;;  %v238_v6 = vadd.f32 %v237_v29, %v236_v57  ;;  %v665_v23 = vrot.slane %v664_v60, 4  ;;  %v651_v45 = vsel %vm168_vm0, %v630_v34, 0.0 }
  0x73   :  { %v456_v33 = vmul.f32 1.442695, %v450_v4  ;;  %v458_v25 = vmul.f32 1.442695, %v451_v5  ;;  %v650_v30 = vadd.f32 %v649_v44, %v648_v7  ;;  %v653_v53 = vsel %vm168_vm0, %v632_v28, 0.0 }
  0x74   :  { %v235_v47 = vadd.f32 %v234_v22, %v233_v38  ;;  %v4639_v40 = vpop.eup %3866  ;;  %v239_v48 = vrot.slane %v238_v6, 4  ;;  %v666_v49 = vmax.f32 %v664_v60, %v665_v23  ;;  %v655_v35 = vsel %vm168_vm0, %v627_v26, 0.0 }
  0x75   :  { %v4643_v43 = vpop.eup %3868  ;;  %v460_v42 = vsel %vm168_vm0, %v4639_v40, 0.0  ;;  %v652_v50 = vadd.f32 %v651_v45, %v650_v30  ;;  %v656_v27 = vsel %vm168_vm0, %v629_v24, 0.0  ;;  %v658_v56 = vsel %vm168_vm0, %v631_v32, 0.0 }
  0x76   :  { %3870 = vrcp.f32 %v235_v47  ;;  %v240_v0 = vadd.f32 %v239_v48, %v238_v6  ;;  %v461_v51 = vsel %vm168_vm0, %v4643_v43, 0.0  ;;  %v667_v54 = vrot.slane %v666_v49, 2 }
  0x77   :  { %3872 = vpow2.f32 %v456_v33  ;;  %v462_v31 = vadd.f32 %v461_v51, %v460_v42  ;;  %v4650_v34 = vadd.f32 %v653_v53, %v652_v50  ;;  %v657_v26 = vadd.f32 %v656_v27, %v655_v35 }
  0x78   :  { %3874 = vpow2.f32 %v458_v25  ;;  %v241_v38 = vrot.slane %v240_v0, 2  ;;  %v668_v39 = vmax.f32 %v666_v49, %v667_v54  ;;  %v660_v28 = vsel %vm168_vm0, %v633_v61, 0.0 }
  0x79   :  { %v463_v57 = vrot.slane %v462_v31, 4  ;;  %v659_v60 = vadd.f32 %v658_v56, %v657_v26  ;;  %v671_v24 = vsel %vm168_vm0, %v4650_v34, -inf  ;;  %v821_v7 = vrot.slane %v4378_v10, %v4396_v18 }
  0x7a   :  { %v242_v22 = vadd.f32 %v241_v38, %v240_v0  ;;  %v669_v29 = vrot.slane %v668_v39, 1  ;;  %v825_v4 = vrot.slane %v4380_v11, %v4396_v18  ;;  %v829_v5 = vrot.slane %v4382_v12, %v4396_v18 }
  0x7b   :  { %v464_v6 = vadd.f32 %v463_v57, %v462_v31  ;;  %v4662_v32 = vadd.f32 %v660_v28, %v659_v60  ;;  %v833_v61 = vrot.slane %v4390_v16, %v4396_v18  ;;  %v850_v23 = vmul.f32 %v821_v7, %v4374_v8  ;;  %v4695_v57 = vld [vmem:[#allocation7] sm:$0xff]  ;;  %v4697_v60 = vld [vmem:[#allocation7 + $0x8] sm:$0xff] }
  0x7c   :  { %v243_v44 = vrot.slane %v242_v22, 1  ;;  %v670_v45 = vmax.f32 %v668_v39, %v669_v29  ;;  %v851_v33 = vmul.f32 %v821_v7, %v4376_v9  ;;  %v852_v25 = vmul.f32 %v825_v4, %v4384_v13 }
  0x7d   :  { %v465_v30 = vrot.slane %v464_v6, 2  ;;  %v672_v48 = vsel %vm168_vm0, %v4662_v32, -inf  ;;  %v853_v49 = vmul.f32 %v825_v4, %v4386_v14  ;;  %v854_v53 = vmul.f32 %v829_v5, %v4388_v15  ;;  %v4703_v4 = vld [vmem:[#allocation7 + $0x10] sm:$0xff] }
  0x7e   :  { %v4673_v35 = vadd.f32 %v243_v44, %v242_v22  ;;  %v680_v42 = vsub.f32 %v4601_v46, %v670_v45  ;;  %v681_v8 = vsub.f32 %v4615_v55, %v670_v45  ;;  %v673_v50 = vmax.f32 %v671_v24, %v672_v48  ;;  %v4715_v48 = vld [vmem:[#allocation7 + $0x30] sm:$0xff] }
  0x7f   :  { %v466_v0 = vadd.f32 %v465_v30, %v464_v6  ;;  %v855_v9 = vmul.f32 %v829_v5, %v4398_v19  ;;  %v856_v13 = vmul.f32 %v833_v61, %v4400_v20  ;;  %v4680_v51 = vmul.f32 %v833_v61, %v4402_v21  ;;  %v4705_v5 = vld [vmem:[#allocation7 + $0x18] sm:$0xff]  ;;  %v4707_v6 = vld [vmem:[#allocation7 + $0x20] sm:$0xff]  ;;  %v4713_v30 = vld [vmem:[#allocation7 + $0x28] sm:$0xff] }
  0x80   :  { %v3871_v27 = vpop.eup %3870  ;;  %3876 = vrcp.f32 %v4673_v35  ;;  %v684_v15 = vmul.f32 1.442695, %v680_v42  ;;  %v686_v31 = vmul.f32 1.442695, %v681_v8  ;;  %v674_v38 = vrot.slane %v673_v50, 4 }
  0x81   :  { %v4682_v54 = vpop.eup %3872  ;;  %v247_v14 = vmul.f32 %v3871_v27, %v235_v47  ;;  %v467_v55 = vrot.slane %v466_v0, 1  ;;  %v866_v19 = vsel %vm168_vm0, %v850_v23, 0.0  ;;  %v867_v47 = vsel %vm168_vm0, %v852_v25, 0.0 }
  0x82   :  { %v4685_v46 = vpop.eup %3874  ;;  %v469_v26 = vsel %vm168_vm0, %v4682_v54, 0.0  ;;  %3878 = vpow2.f32 %v684_v15  ;;  %v675_v28 = vmax.f32 %v673_v50, %v674_v38  ;;  %v868_v7 = vadd.f32 %v867_v47, %v866_v19 }
  0x83   :  { %v249_v20 = vsub.f32 2.0, %v247_v14  ;;  %v470_v21 = vsel %vm168_vm0, %v4685_v46, 0.0  ;;  %v4693_v39 = vadd.f32 %v467_v55, %v466_v0  ;;  %3880 = vpow2.f32 %v686_v31 }
  0x84   :  { %v471_v56 = vadd.f32 %v470_v21, %v469_v26  ;;  %v869_v22 = vsel %vm168_vm0, %v854_v53, 0.0  ;;  %v4701_v29 = vsel %vm168_vm0, %v856_v13, 0.0  ;;  %v676_v23 = vrot.slane %v675_v28, 2  ;;  %v4717_v53 = vld [vmem:[#allocation7 + $0x38] sm:$0xff] }
  0x85   :  { %v251_v24 = vmul.f32 %v3871_v27, %v249_v20  ;;  %3882 = vrcp.f32 %v4693_v39  ;;  %v873_v44 = vsel %vm168_vm0, %v851_v33, 0.0  ;;  %v4719_v42 = vadd.f32 %v869_v22, %v868_v7 }
  0x86   :  { %v472_v61 = vrot.slane %v471_v56, 4  ;;  %v874_v8 = vsel %vm168_vm0, %v853_v49, 0.0  ;;  %v4722_v27 = vmax.f32 %v675_v28, %v676_v23  ;;  %v4727_v33 = vsel %vm168_vm0, %v855_v9, 0.0 }
  0x87   :  { %v253_v45 = vmul.f32 %v4585_v36, %v251_v24  ;;  %v254_v25 = vmul.f32 %v4590_v63, %v251_v24  ;;  %v4724_v0 = vadd.f32 %v874_v8, %v873_v44 }
  0x88   :  { %v473_v50 = vadd.f32 %v472_v61, %v471_v56 }
  0x89   :  { %v257_v36 = vmul.f32 %v253_v45, %v4695_v57  ;;  %v258_v63 = vmul.f32 %v254_v25, %v4697_v60  ;;  %v259_v13 = vmul.f32 %v253_v45, %v4703_v4  ;;  %v260_v14 = vmul.f32 %v254_v25, %v4705_v5 }
  0x8a   :  { %v261_v15 = vmul.f32 %v253_v45, %v4707_v6  ;;  %v262_v49 = vmul.f32 %v254_v25, %v4713_v30  ;;  %v263_v31 = vmul.f32 %v253_v45, %v4715_v48  ;;  %v264_v55 = vmul.f32 %v254_v25, %v4717_v53  ;;  %v3877_v26 = vpop.eup %3876 }
  0x8b   :  { %v273_v9 = vsel %vm168_vm0, %v257_v36, 0.0  ;;  %v274_v38 = vsel %vm168_vm0, %v258_v63, 0.0  ;;  %v282_v19 = vsel %vm168_vm0, %v259_v13, 0.0  ;;  %v283_v20 = vsel %vm168_vm0, %v260_v14, 0.0 }
  0x8c   :  { %v275_v21 = vadd.f32 %v274_v38, %v273_v9  ;;  %v284_v47 = vadd.f32 %v283_v20, %v282_v19  ;;  %v291_v56 = vsel %vm168_vm0, %v261_v15, 0.0  ;;  %v292_v28 = vsel %vm168_vm0, %v262_v49, 0.0  ;;  %v4743_v24 = vpop.eup %3878 }
  0x8d   :  { %7216 = vst [vmem:[#allocation18_spill] sm:$0xff] %v4743_v24  ;;  %v293_v7 = vadd.f32 %v292_v28, %v291_v56  ;;  %v300_v22 = vsel %vm168_vm0, %v263_v31, 0.0  ;;  %v301_v61 = vsel %vm168_vm0, %v264_v55, 0.0  ;;  %v248_v23 = vmul.f32 %v3877_v26, %v4673_v35  ;;  %v4748_v44 = vpop.eup %3880 }
  0x8e   :  { %7217 = vst [vmem:[#allocation19_spill] sm:$0xff] %v4748_v44  ;;  %v276_v45 = vrot.slane %v275_v21, 4  ;;  %v285_v25 = vrot.slane %v284_v47, 4  ;;  %v302_v8 = vadd.f32 %v301_v61, %v300_v22  ;;  %v474_v36 = vrot.slane %v473_v50, 2 }
  0x8f   :  { %v294_v63 = vrot.slane %v293_v7, 4  ;;  %v250_v13 = vsub.f32 2.0, %v248_v23  ;;  %v692_v14 = vsel %vm168_vm0, %v4743_v24, 0.0  ;;  %v693_v15 = vsel %vm168_vm0, %v4748_v44, 0.0  ;;  %v3883_v49 = vpop.eup %3882  ;;  %v4757_v23 = vld [vmem:[#allocation7 + $0x40] sm:$0xff] }
  0x90   :  { %v277_v31 = vadd.f32 %v276_v45, %v275_v21  ;;  %v286_v55 = vadd.f32 %v285_v25, %v284_v47  ;;  %v303_v9 = vrot.slane %v302_v8, 4  ;;  %v475_v35 = vadd.f32 %v474_v36, %v473_v50 }
  0x91   :  { %v295_v38 = vadd.f32 %v294_v63, %v293_v7  ;;  %v252_v19 = vmul.f32 %v3877_v26, %v250_v13  ;;  %v480_v20 = vmul.f32 %v3883_v49, %v4693_v39  ;;  %v4755_v56 = vadd.f32 %v693_v15, %v692_v14  ;;  %v4765_v26 = vld [vmem:[#allocation7 + $0x58] sm:$0xff] }
  0x92   :  { %v278_v28 = vrot.slane %v277_v31, 2  ;;  %v287_v22 = vrot.slane %v286_v55, 2  ;;  %v304_v61 = vadd.f32 %v303_v9, %v302_v8  ;;  %v476_v2 = vrot.slane %v475_v35, 1 }
  0x93   :  { %v296_v21 = vrot.slane %v295_v38, 2  ;;  %v255_v47 = vmul.f32 %v4622_v37, %v252_v19  ;;  %v256_v50 = vmul.f32 %v4627_v41, %v252_v19  ;;  %v482_v39 = vsub.f32 2.0, %v480_v20  ;;  %v4773_v19 = vld [vmem:[#allocation7 + $0x60] sm:$0xff]  ;;  %v4775_v20 = vld [vmem:[#allocation7 + $0x68] sm:$0xff] }
  0x94   :  { %v279_v7 = vadd.f32 %v278_v28, %v277_v31  ;;  %v288_v45 = vadd.f32 %v287_v22, %v286_v55  ;;  %v305_v25 = vrot.slane %v304_v61, 2  ;;  %v4767_v36 = vadd.f32 %v476_v2, %v475_v35 }
  0x95   :  { %v297_v8 = vadd.f32 %v296_v21, %v295_v38  ;;  %v265_v63 = vmul.f32 %v255_v47, %v4757_v23  ;;  %v266_v13 = vmul.f32 %v256_v50, %v4759_v17  ;;  %v267_v14 = vmul.f32 %v255_v47, %v4761_v3  ;;  %v4780_v38 = vld [vmem:[#allocation7 + $0x70] sm:$0xff] }
  0x96   :  { %v280_v15 = vrot.slane %v279_v7, 1  ;;  %v289_v9 = vrot.slane %v288_v45, 1  ;;  %v306_v37 = vadd.f32 %v305_v25, %v304_v61  ;;  %v268_v41 = vmul.f32 %v256_v50, %v4765_v26  ;;  %v4782_v61 = vld [vmem:[#allocation7 + $0x78] sm:$0xff] }
  0x97   :  { %v298_v31 = vrot.slane %v297_v8, 1  ;;  %v309_v2 = vsel %vm168_vm0, %v265_v63, 0.0  ;;  %v310_v55 = vsel %vm168_vm0, %v266_v13, 0.0  ;;  %v318_v35 = vsel %vm168_vm0, %v267_v14, 0.0 }
  0x98   :  { %v281_v28 = vadd.f32 %v280_v15, %v279_v7  ;;  %v290_v22 = vadd.f32 %v289_v9, %v288_v45  ;;  %v307_v21 = vrot.slane %v306_v37, 1  ;;  %v311_v44 = vadd.f32 %v310_v55, %v309_v2 }
  0x99   :  { %v299_v25 = vadd.f32 %v298_v31, %v297_v8  ;;  %v319_v24 = vsel %vm168_vm0, %v268_v41, 0.0  ;;  %v269_v16 = vmul.f32 %v255_v47, %v4773_v19  ;;  %v270_v12 = vmul.f32 %v256_v50, %v4775_v20 }
  0x9a   :  { %346 = vst.msk [vmem:[#allocation8] sm:$0x1] %vm345_vm1, %v281_v28  ;;  %347 = vst.msk [vmem:[#allocation8 + $0x10] sm:$0x1] %vm345_vm1, %v290_v22  ;;  %v308_v63 = vadd.f32 %v307_v21, %v306_v37  ;;  %v312_v13 = vrot.slane %v311_v44, 4  ;;  %v320_v14 = vadd.f32 %v319_v24, %v318_v35  ;;  %v271_v7 = vmul.f32 %v255_v47, %v4780_v38 }
  0x9b   :  { %348 = vst.msk [vmem:[#allocation8 + $0x20] sm:$0x1] %vm345_vm1, %v299_v25  ;;  %v327_v45 = vsel %vm168_vm0, %v269_v16, 0.0  ;;  %v328_v8 = vsel %vm168_vm0, %v270_v12, 0.0  ;;  %v272_v15 = vmul.f32 %v256_v50, %v4782_v61  ;;  %v484_v9 = vmul.f32 %v3883_v49, %v482_v39 }
  0x9c   :  { %349 = vst.msk [vmem:[#allocation8 + $0x30] sm:$0x1] %vm345_vm1, %v308_v63  ;;  %v313_v41 = vadd.f32 %v312_v13, %v311_v44  ;;  %v321_v31 = vrot.slane %v320_v14, 4  ;;  %v329_v2 = vadd.f32 %v328_v8, %v327_v45  ;;  %v336_v37 = vsel %vm168_vm0, %v271_v7, 0.0 }
  0x9d   :  { %v337_v24 = vsel %vm168_vm0, %v272_v15, 0.0  ;;  %v486_v47 = vmul.f32 %v4639_v40, %v484_v9  ;;  %v487_v55 = vmul.f32 %v4643_v43, %v484_v9  ;;  %3884 = vrcp.f32 %v4767_v36 }
  0x9e   :  { %v314_v16 = vrot.slane %v313_v41, 2  ;;  %v322_v12 = vadd.f32 %v321_v31, %v320_v14  ;;  %v330_v35 = vrot.slane %v329_v2, 4  ;;  %v338_v50 = vadd.f32 %v337_v24, %v336_v37 }
  0x9f   :  { %v490_v49 = vmul.f32 %v486_v47, %v4695_v57  ;;  %v491_v44 = vmul.f32 %v487_v55, %v4697_v60  ;;  %v492_v39 = vmul.f32 %v486_v47, %v4703_v4  ;;  %v493_v28 = vmul.f32 %v487_v55, %v4705_v5 }
  0xa0   :  { %v315_v22 = vadd.f32 %v314_v16, %v313_v41  ;;  %v323_v21 = vrot.slane %v322_v12, 2  ;;  %v331_v25 = vadd.f32 %v330_v35, %v329_v2  ;;  %v339_v40 = vrot.slane %v338_v50, 4 }
  0xa1   :  { %v506_v43 = vsel %vm168_vm0, %v490_v49, 0.0  ;;  %v507_v63 = vsel %vm168_vm0, %v491_v44, 0.0  ;;  %v515_v13 = vsel %vm168_vm0, %v492_v39, 0.0  ;;  %v516_v14 = vsel %vm168_vm0, %v493_v28, 0.0 }
  0xa2   :  { %v316_v7 = vrot.slane %v315_v22, 1  ;;  %v324_v45 = vadd.f32 %v323_v21, %v322_v12  ;;  %v332_v8 = vrot.slane %v331_v25, 2  ;;  %v340_v15 = vadd.f32 %v339_v40, %v338_v50 }
  0xa3   :  { %v508_v9 = vadd.f32 %v507_v63, %v506_v43  ;;  %v517_v31 = vadd.f32 %v516_v14, %v515_v13  ;;  %v494_v37 = vmul.f32 %v486_v47, %v4707_v6  ;;  %v495_v41 = vmul.f32 %v487_v55, %v4713_v30 }
  0xa4   :  { %v317_v2 = vadd.f32 %v316_v7, %v315_v22  ;;  %v325_v24 = vrot.slane %v324_v45, 1  ;;  %v333_v16 = vadd.f32 %v332_v8, %v331_v25  ;;  %v341_v35 = vrot.slane %v340_v15, 2 }
  0xa5   :  { %v509_v49 = vrot.slane %v508_v9, 4  ;;  %v518_v44 = vrot.slane %v517_v31, 4  ;;  %v524_v39 = vsel %vm168_vm0, %v494_v37, 0.0  ;;  %v525_v28 = vsel %vm168_vm0, %v495_v41, 0.0 }
  0xa6   :  { %350 = vst.msk [vmem:[#allocation8 + $0x40] sm:$0x1] %vm345_vm1, %v317_v2  ;;  %v326_v12 = vadd.f32 %v325_v24, %v324_v45  ;;  %v334_v50 = vrot.slane %v333_v16, 1  ;;  %v342_v21 = vadd.f32 %v341_v35, %v340_v15  ;;  %v526_v40 = vadd.f32 %v525_v28, %v524_v39 }
  0xa7   :  { %v3885_v43 = vpop.eup %3884  ;;  %v510_v63 = vadd.f32 %v509_v49, %v508_v9  ;;  %v519_v13 = vadd.f32 %v518_v44, %v517_v31  ;;  %v496_v22 = vmul.f32 %v486_v47, %v4715_v48  ;;  %v497_v25 = vmul.f32 %v487_v55, %v4717_v53 }
  0xa8   :  { %351 = vst.msk [vmem:[#allocation8 + $0x50] sm:$0x1] %vm345_vm1, %v326_v12  ;;  %v335_v14 = vadd.f32 %v334_v50, %v333_v16  ;;  %v343_v7 = vrot.slane %v342_v21, 1  ;;  %v527_v8 = vrot.slane %v526_v40, 4  ;;  %v481_v37 = vmul.f32 %v3885_v43, %v4767_v36 }
  0xa9   :  { %v511_v41 = vrot.slane %v510_v63, 2  ;;  %v520_v2 = vrot.slane %v519_v13, 2  ;;  %v533_v45 = vsel %vm168_vm0, %v496_v22, 0.0  ;;  %v534_v15 = vsel %vm168_vm0, %v497_v25, 0.0 }
  0xaa   :  { %352 = vst.msk [vmem:[#allocation8 + $0x60] sm:$0x1] %vm345_vm1, %v335_v14  ;;  %v344_v9 = vadd.f32 %v343_v7, %v342_v21  ;;  %v528_v31 = vadd.f32 %v527_v8, %v526_v40  ;;  %v535_v47 = vadd.f32 %v534_v15, %v533_v45  ;;  %v483_v24 = vsub.f32 2.0, %v481_v37 }
  0xab   :  { %v512_v55 = vadd.f32 %v511_v41, %v510_v63  ;;  %v521_v35 = vadd.f32 %v520_v2, %v519_v13  ;;  %v695_v16 = vrot.slane %v4755_v56, 4  ;;  %v678_v49 = vrot.slane %v4722_v27, 1 }
  0xac   :  { %353 = vst.msk [vmem:[#allocation8 + $0x70] sm:$0x1] %vm345_vm1, %v344_v9  ;;  %v529_v36 = vrot.slane %v528_v31, 2  ;;  %v536_v44 = vrot.slane %v535_v47, 4  ;;  %v485_v39 = vmul.f32 %v3885_v43, %v483_v24  ;;  %v4825_v28 = vadd.f32 %v4701_v29, %v4719_v42 }
  0xad   :  { %v513_v12 = vrot.slane %v512_v55, 1  ;;  %v522_v50 = vrot.slane %v521_v35, 1  ;;  %v696_v21 = vadd.f32 %v695_v16, %v4755_v56  ;;  %v679_v40 = vmax.f32 %v4722_v27, %v678_v49 }
  0xae   :  { %v530_v63 = vadd.f32 %v529_v36, %v528_v31  ;;  %v537_v13 = vadd.f32 %v536_v44, %v535_v47  ;;  %v488_v22 = vmul.f32 %v4682_v54, %v485_v39  ;;  %v489_v25 = vmul.f32 %v4685_v46, %v485_v39 }
  0xaf   :  { %v514_v14 = vadd.f32 %v513_v12, %v512_v55  ;;  %v523_v7 = vadd.f32 %v522_v50, %v521_v35  ;;  %v697_v8 = vrot.slane %v696_v21, 2  ;;  %v682_v43 = vsub.f32 %v4650_v34, %v679_v40 }
  0xb0   :  { %v531_v37 = vrot.slane %v530_v63, 1  ;;  %v538_v29 = vrot.slane %v537_v13, 2  ;;  %v498_v42 = vmul.f32 %v488_v22, %v4757_v23  ;;  %v499_v41 = vmul.f32 %v489_v25, %v4759_v17 }
  0xb1   :  { %578 = vst.msk [vmem:[#allocation8 + $0x1] sm:$0x1] %vm345_vm1, %v514_v14  ;;  %579 = vst.msk [vmem:[#allocation8 + $0x11] sm:$0x1] %vm345_vm1, %v523_v7  ;;  %v500_v27 = vmul.f32 %v488_v22, %v4761_v3  ;;  %v501_v54 = vmul.f32 %v489_v25, %v4765_v26  ;;  %v502_v46 = vmul.f32 %v488_v22, %v4773_v19 }
  0xb2   :  { %v503_v56 = vmul.f32 %v489_v25, %v4775_v20  ;;  %v532_v2 = vadd.f32 %v531_v37, %v530_v63  ;;  %v539_v34 = vadd.f32 %v538_v29, %v537_v13  ;;  %v542_v45 = vsel %vm168_vm0, %v498_v42, 0.0 }
  0xb3   :  { %v543_v15 = vsel %vm168_vm0, %v499_v41, 0.0  ;;  %v551_v31 = vsel %vm168_vm0, %v500_v27, 0.0  ;;  %v552_v47 = vsel %vm168_vm0, %v501_v54, 0.0  ;;  %v560_v24 = vsel %vm168_vm0, %v502_v46, 0.0 }
  0xb4   :  { %v544_v9 = vadd.f32 %v543_v15, %v542_v45  ;;  %580 = vst.msk [vmem:[#allocation8 + $0x21] sm:$0x1] %vm345_vm1, %v532_v2  ;;  %v540_v55 = vrot.slane %v539_v34, 1  ;;  %v553_v35 = vadd.f32 %v552_v47, %v551_v31  ;;  %v561_v16 = vsel %vm168_vm0, %v503_v56, 0.0 }
  0xb5   :  { %v504_v49 = vmul.f32 %v488_v22, %v4780_v38  ;;  %v562_v44 = vadd.f32 %v561_v16, %v560_v24  ;;  %v505_v39 = vmul.f32 %v489_v25, %v4782_v61  ;;  %v698_v12 = vadd.f32 %v697_v8, %v696_v21 }
  0xb6   :  { %v545_v36 = vrot.slane %v544_v9, 4  ;;  %v541_v50 = vadd.f32 %v540_v55, %v539_v34  ;;  %v554_v63 = vrot.slane %v553_v35, 4  ;;  %v683_v14 = vsub.f32 %v4662_v32, %v679_v40 }
  0xb7   :  { %v569_v13 = vsel %vm168_vm0, %v504_v49, 0.0  ;;  %v563_v37 = vrot.slane %v562_v44, 4  ;;  %v570_v29 = vsel %vm168_vm0, %v505_v39, 0.0  ;;  %v699_v42 = vrot.slane %v698_v12, 1 }
  0xb8   :  { %v546_v7 = vadd.f32 %v545_v36, %v544_v9  ;;  %581 = vst.msk [vmem:[#allocation8 + $0x31] sm:$0x1] %vm345_vm1, %v541_v50  ;;  %v555_v41 = vadd.f32 %v554_v63, %v553_v35  ;;  %v571_v22 = vadd.f32 %v570_v29, %v569_v13  ;;  %v688_v27 = vmul.f32 1.442695, %v682_v43  ;;  %v4874_v63 = vld [vmem:[#allocation5 + $0x40] sm:$0xff]  ;;  %v4881_v29 = vld [vmem:[#allocation5 + $0x50] sm:$0xff] }
  0xb9   :  { %v690_v54 = vmul.f32 1.442695, %v683_v14  ;;  %v564_v25 = vadd.f32 %v563_v37, %v562_v44  ;;  %v4853_v21 = vadd.f32 %v699_v42, %v698_v12  ;;  %v877_v8 = vadd.f32 %v4727_v33, %v4724_v0 }
  0xba   :  { %v547_v46 = vrot.slane %v546_v7, 2  ;;  %v556_v56 = vrot.slane %v555_v41, 2  ;;  %v572_v32 = vrot.slane %v571_v22, 4  ;;  %3886 = vpow2.f32 %v688_v27 }
  0xbb   :  { %v878_v40 = vsel %vm168_vm0, %v4680_v51, 0.0  ;;  %v565_v34 = vrot.slane %v564_v25, 2  ;;  %3888 = vrcp.f32 %v4853_v21  ;;  %v894_v9 = vsel %vm168_vm0, %v4825_v28, -inf }
  0xbc   :  { %v548_v2 = vadd.f32 %v547_v46, %v546_v7  ;;  %v4860_v45 = vadd.f32 %v878_v40, %v877_v8  ;;  %v557_v43 = vadd.f32 %v556_v56, %v555_v41  ;;  %v573_v15 = vadd.f32 %v572_v32, %v571_v22  ;;  %v4878_v7 = vld [vmem:[#allocation5 + $0x48] sm:$0xff]  ;;  %v4884_v41 = vld [vmem:[#allocation5 + $0x58] sm:$0xff]  ;;  %v4888_v46 = vld [vmem:[#allocation5 + $0x60] sm:$0xff] }
  0xbd   :  { %3890 = vpow2.f32 %v690_v54  ;;  %v566_v0 = vadd.f32 %v565_v34, %v564_v25  ;;  %v837_v51 = vrot.slane %v4440_v52, %v4396_v18  ;;  %v841_v35 = vrot.slane %v4447_v58, %v4396_v18  ;;  %v4891_v8 = vld [vmem:[#allocation5 + $0x68] sm:$0xff]  ;;  %v4895_v32 = vld [vmem:[#allocation5 + $0x70] sm:$0xff] }
  0xbe   :  { %v549_v31 = vrot.slane %v548_v2, 1  ;;  %v895_v33 = vsel %vm168_vm0, %v4860_v45, -inf  ;;  %v558_v47 = vrot.slane %v557_v43, 1  ;;  %v574_v24 = vrot.slane %v573_v15, 2 }
  0xbf   :  { %v896_v55 = vmax.f32 %v894_v9, %v895_v33  ;;  %v567_v49 = vrot.slane %v566_v0, 1  ;;  %v845_v36 = vrot.slane %v4449_v59, %v4396_v18  ;;  %v849_v44 = vrot.slane %v4455_v62, %v4396_v18  ;;  %v4961_v18 = vld [vmem:[#allocation5 + $0x18] sm:$0xff] }
  0xc0   :  { %v550_v16 = vadd.f32 %v549_v31, %v548_v2  ;;  %v559_v39 = vadd.f32 %v558_v47, %v557_v43  ;;  %v575_v12 = vadd.f32 %v574_v24, %v573_v15  ;;  %v858_v13 = vmul.f32 %v4874_v63, %v837_v51  ;;  %v4898_v2 = vld [vmem:[#allocation5 + $0x78] sm:$0xff] }
  0xc1   :  { %v897_v50 = vrot.slane %v896_v55, 4  ;;  %v568_v14 = vadd.f32 %v567_v49, %v566_v0  ;;  %v859_v37 = vmul.f32 %v4878_v7, %v837_v51  ;;  %v860_v42 = vmul.f32 %v4881_v29, %v841_v35 }
  0xc2   :  { %582 = vst.msk [vmem:[#allocation8 + $0x41] sm:$0x1] %vm345_vm1, %v550_v16  ;;  %v861_v22 = vmul.f32 %v4884_v41, %v841_v35  ;;  %583 = vst.msk [vmem:[#allocation8 + $0x51] sm:$0x1] %vm345_vm1, %v559_v39  ;;  %v576_v27 = vrot.slane %v575_v12, 1  ;;  %v862_v25 = vmul.f32 %v4888_v46, %v845_v36  ;;  %v863_v56 = vmul.f32 %v4891_v8, %v845_v36 }
  0xc3   :  { %v898_v54 = vmax.f32 %v896_v55, %v897_v50  ;;  %584 = vst.msk [vmem:[#allocation8 + $0x61] sm:$0x1] %vm345_vm1, %v568_v14  ;;  %v864_v40 = vmul.f32 %v4895_v32, %v849_v44  ;;  %v865_v34 = vmul.f32 %v4898_v2, %v849_v44  ;;  %v880_v43 = vsel %vm168_vm0, %v858_v13, 0.0 }
  0xc4   :  { %v881_v15 = vsel %vm168_vm0, %v860_v42, 0.0  ;;  %v4903_v9 = vpop.eup %3886  ;;  %v577_v31 = vadd.f32 %v576_v27, %v575_v12  ;;  %v883_v51 = vsel %vm168_vm0, %v862_v25, 0.0  ;;  %v887_v35 = vsel %vm168_vm0, %v859_v37, 0.0 }
  0xc5   :  { %v899_v0 = vrot.slane %v898_v54, 2  ;;  %v882_v33 = vadd.f32 %v881_v15, %v880_v43  ;;  %v3889_v47 = vpop.eup %3888  ;;  %v701_v24 = vsel %vm168_vm0, %v4903_v9, 0.0  ;;  %v885_v55 = vsel %vm168_vm0, %v864_v40, 0.0  ;;  %v7219_v43 = vld [vmem:[#allocation14_spill] sm:$0xff] }
  0xc6   :  { %v888_v16 = vsel %vm168_vm0, %v861_v22, 0.0  ;;  %585 = vst.msk [vmem:[#allocation8 + $0x71] sm:$0x1] %vm345_vm1, %v577_v31  ;;  %v712_v36 = vmul.f32 %v3889_v47, %v4853_v21  ;;  %v890_v13 = vsel %vm168_vm0, %v863_v56, 0.0  ;;  %v892_v14 = vsel %vm168_vm0, %v865_v34, 0.0 }
  0xc7   :  { %v4911_v49 = vpop.eup %3890  ;;  %v900_v44 = vmax.f32 %v898_v54, %v899_v0  ;;  %v884_v39 = vadd.f32 %v883_v51, %v882_v33  ;;  %v889_v12 = vadd.f32 %v888_v16, %v887_v35  ;;  %v4920_v37 = vsub.s32 4, %v4366_v1  ;;  %v7220_v51 = vld [vmem:[#allocation15_spill] sm:$0xff]  ;;  %v4945_v16 = vld [vmem:[#allocation5 + $0x8] sm:$0xff] }
  0xc8   :  { %v702_v50 = vsel %vm168_vm0, %v4911_v49, 0.0  ;;  %v714_v42 = vsub.f32 2.0, %v712_v36  ;;  %7222 = vst [vmem:[#allocation22_spill] sm:$0xff] %v4945_v16  ;;  %v7223_v36 = vld [vmem:[#allocation18_spill] sm:$0xff] }
  0xc9   :  { %7218 = vst [vmem:[#allocation20_spill] sm:$0xff] %v4920_v37  ;;  %v703_v22 = vadd.f32 %v702_v50, %v701_v24  ;;  %v901_v27 = vrot.slane %v900_v44, 1  ;;  %v4922_v25 = vadd.f32 %v885_v55, %v884_v39  ;;  %v891_v40 = vadd.f32 %v890_v13, %v889_v12  ;;  %v4940_v55 = vld [vmem:[#allocation5] sm:$0xff]  ;;  %v7224_v39 = vld [vmem:[#allocation19_spill] sm:$0xff] }
  0xca   :  { %v1053_v21 = vrot.slane %v4378_v10, %v4920_v37  ;;  %v1057_v54 = vrot.slane %v4380_v11, %v4920_v37  ;;  %v4930_v56 = vrot.slane %v7219_v43, %v4920_v37  ;;  %v716_v34 = vmul.f32 %v3889_v47, %v714_v42  ;;  %7221 = vst [vmem:[#allocation21_spill] sm:$0xff] %v4940_v55 }
  0xcb   :  { %v704_v15 = vrot.slane %v703_v22, 4  ;;  %v902_v31 = vmax.f32 %v900_v44, %v901_v27  ;;  %v903_v0 = vsel %vm168_vm0, %v4922_v25, -inf  ;;  %v4934_v33 = vadd.f32 %v892_v14, %v891_v40  ;;  %v4956_v27 = vld [vmem:[#allocation5 + $0x10] sm:$0xff]  ;;  %7226 = vst [vmem:[#allocation19_spill] sm:$0xff] %v4961_v18 }
  0xcc   :  { %v4938_v24 = vrot.slane %v7220_v51, %v4920_v37  ;;  %v4943_v35 = vmul.f32 %v4940_v55, %v1053_v21  ;;  %v4948_v47 = vmul.f32 %v4945_v16, %v1053_v21  ;;  %v718_v44 = vmul.f32 %v7223_v36, %v716_v34  ;;  %7225 = vst [vmem:[#allocation18_spill] sm:$0xff] %v4956_v27 }
  0xcd   :  { %v719_v12 = vmul.f32 %v7224_v39, %v716_v34  ;;  %v705_v50 = vadd.f32 %v704_v15, %v703_v22  ;;  %v912_v13 = vsub.f32 %v4825_v28, %v902_v31  ;;  %v913_v14 = vsub.f32 %v4860_v45, %v902_v31 }
  0xce   :  { %v904_v42 = vsel %vm168_vm0, %v4934_v33, -inf  ;;  %v4959_v40 = vmul.f32 %v4956_v27, %v1057_v54  ;;  %v4964_v21 = vmul.f32 %v4961_v18, %v1057_v54  ;;  %v722_v34 = vmul.f32 %v718_v44, %v4695_v57 }
  0xcf   :  { %v723_v22 = vmul.f32 %v719_v12, %v4697_v60  ;;  %v724_v28 = vmul.f32 %v718_v44, %v4703_v4  ;;  %v725_v45 = vmul.f32 %v719_v12, %v4705_v5  ;;  %v726_v15 = vmul.f32 %v718_v44, %v4707_v6 }
  0xd0   :  { %v727_v31 = vmul.f32 %v719_v12, %v4713_v30  ;;  %v728_v36 = vmul.f32 %v718_v44, %v4715_v48  ;;  %v729_v39 = vmul.f32 %v719_v12, %v4717_v53  ;;  %v738_v27 = vsel %vm168_vm0, %v722_v34, 0.0 }
  0xd1   :  { %v739_v54 = vsel %vm168_vm0, %v723_v22, 0.0  ;;  %v747_v57 = vsel %vm168_vm0, %v724_v28, 0.0  ;;  %v748_v60 = vsel %vm168_vm0, %v725_v45, 0.0  ;;  %v756_v5 = vsel %vm168_vm0, %v726_v15, 0.0 }
  0xd2   :  { %v740_v18 = vadd.f32 %v739_v54, %v738_v27  ;;  %v749_v4 = vadd.f32 %v748_v60, %v747_v57  ;;  %v757_v6 = vsel %vm168_vm0, %v727_v31, 0.0  ;;  %v765_v30 = vsel %vm168_vm0, %v728_v36, 0.0 }
  0xd3   :  { %v758_v16 = vadd.f32 %v757_v6, %v756_v5  ;;  %v766_v48 = vsel %vm168_vm0, %v729_v39, 0.0  ;;  %v706_v53 = vrot.slane %v705_v50, 2  ;;  %v916_v22 = vmul.f32 1.442695, %v912_v13  ;;  %v4982_v6 = vld [vmem:[#allocation5 + $0x20] sm:$0xff] }
  0xd4   :  { %v741_v44 = vrot.slane %v740_v18, 4  ;;  %v750_v12 = vrot.slane %v749_v4, 4  ;;  %v767_v34 = vadd.f32 %v766_v48, %v765_v30  ;;  %v918_v51 = vmul.f32 1.442695, %v913_v14  ;;  %7227 = vst [vmem:[#allocation23_spill] sm:$0xff] %v4982_v6 }
  0xd5   :  { %v759_v55 = vrot.slane %v758_v16, 4  ;;  %v707_v28 = vadd.f32 %v706_v53, %v705_v50  ;;  %v905_v45 = vmax.f32 %v903_v0, %v904_v42  ;;  %3892 = vpow2.f32 %v916_v22  ;;  %v4986_v0 = vld [vmem:[#allocation5 + $0x28] sm:$0xff]  ;;  %v4990_v42 = vld [vmem:[#allocation5 + $0x30] sm:$0xff] }
  0xd6   :  { %v742_v27 = vadd.f32 %v741_v44, %v740_v18  ;;  %v751_v54 = vadd.f32 %v750_v12, %v749_v4  ;;  %v768_v57 = vrot.slane %v767_v34, 4  ;;  %3894 = vpow2.f32 %v918_v51  ;;  %7228 = vst [vmem:[#allocation24_spill] sm:$0xff] %v4986_v0  ;;  %7229 = vst [vmem:[#allocation25_spill] sm:$0xff] %v4990_v42  ;;  %v4994_v44 = vld [vmem:[#allocation5 + $0x38] sm:$0xff] }
  0xd7   :  { %v760_v15 = vadd.f32 %v759_v55, %v758_v16  ;;  %v708_v31 = vrot.slane %v707_v28, 1  ;;  %v906_v60 = vrot.slane %v905_v45, 4  ;;  %v1086_v13 = vmul.f32 %v4982_v6, %v4930_v56  ;;  %7230 = vst [vmem:[#allocation26_spill] sm:$0xff] %v4994_v44 }
  0xd8   :  { %v743_v36 = vrot.slane %v742_v27, 2  ;;  %v752_v5 = vrot.slane %v751_v54, 2  ;;  %v769_v39 = vadd.f32 %v768_v57, %v767_v34  ;;  %v1087_v18 = vmul.f32 %v4986_v0, %v4930_v56 }
  0xd9   :  { %v761_v30 = vrot.slane %v760_v15, 2  ;;  %v709_v50 = vadd.f32 %v708_v31, %v707_v28  ;;  %v907_v14 = vmax.f32 %v905_v45, %v906_v60  ;;  %v1088_v4 = vmul.f32 %v4990_v42, %v4938_v24 }
  0xda   :  { %v744_v55 = vadd.f32 %v743_v36, %v742_v27  ;;  %v753_v16 = vadd.f32 %v752_v5, %v751_v54  ;;  %v770_v51 = vrot.slane %v769_v39, 2  ;;  %v1089_v12 = vmul.f32 %v4994_v44, %v4938_v24 }
  0xdb   :  { %v762_v48 = vadd.f32 %v761_v30, %v760_v15  ;;  %3896 = vrcp.f32 %v709_v50  ;;  %v908_v53 = vrot.slane %v907_v14, 2  ;;  %v1098_v56 = vsel %vm168_vm0, %v4943_v35, 0.0 }
  0xdc   :  { %v745_v34 = vrot.slane %v744_v55, 1  ;;  %v754_v22 = vrot.slane %v753_v16, 1  ;;  %v771_v28 = vadd.f32 %v770_v51, %v769_v39  ;;  %v1099_v54 = vsel %vm168_vm0, %v4959_v40, 0.0 }
  0xdd   :  { %v763_v45 = vrot.slane %v762_v48, 1  ;;  %v909_v27 = vmax.f32 %v907_v14, %v908_v53  ;;  %v1101_v57 = vsel %vm168_vm0, %v1086_v13, 0.0  ;;  %v1100_v36 = vadd.f32 %v1099_v54, %v1098_v56 }
  0xde   :  { %v746_v15 = vadd.f32 %v745_v34, %v744_v55  ;;  %v755_v31 = vadd.f32 %v754_v22, %v753_v16  ;;  %v772_v60 = vrot.slane %v771_v28, 1  ;;  %v1103_v24 = vsel %vm168_vm0, %v1088_v4, 0.0 }
  0xdf   :  { %v764_v5 = vadd.f32 %v763_v45, %v762_v48  ;;  %v910_v30 = vrot.slane %v909_v27, 1  ;;  %v1105_v39 = vsel %vm168_vm0, %v4948_v47, 0.0  ;;  %v5006_v51 = vpop.eup %3892  ;;  %v1102_v40 = vadd.f32 %v1101_v57, %v1100_v36 }
  0xe0   :  { %810 = vst.msk [vmem:[#allocation8 + $0x2] sm:$0x1] %vm345_vm1, %v746_v15  ;;  %811 = vst.msk [vmem:[#allocation8 + $0x12] sm:$0x1] %vm345_vm1, %v755_v31  ;;  %v773_v35 = vadd.f32 %v772_v60, %v771_v28  ;;  %v1106_v13 = vsel %vm168_vm0, %v4964_v21, 0.0  ;;  %v1108_v14 = vsel %vm168_vm0, %v1087_v18, 0.0  ;;  %v5013_v55 = vpop.eup %3894  ;;  %v1069_v21 = vrot.slane %v4440_v52, %v4920_v37 }
  0xe1   :  { %812 = vst.msk [vmem:[#allocation8 + $0x22] sm:$0x1] %vm345_vm1, %v764_v5  ;;  %v924_v47 = vsel %vm168_vm0, %v5006_v51, 0.0  ;;  %v911_v16 = vmax.f32 %v909_v27, %v910_v30  ;;  %v1107_v4 = vadd.f32 %v1106_v13, %v1105_v39  ;;  %v1110_v48 = vsel %vm168_vm0, %v1089_v12, 0.0 }
  0xe2   :  { %813 = vst.msk [vmem:[#allocation8 + $0x32] sm:$0x1] %vm345_vm1, %v773_v35  ;;  %v925_v53 = vsel %vm168_vm0, %v5013_v55, 0.0  ;;  %v5022_v34 = vadd.f32 %v1103_v24, %v1102_v40  ;;  %v1073_v18 = vrot.slane %v4447_v58, %v4920_v37  ;;  %v1077_v27 = vrot.slane %v4449_v59, %v4920_v37 }
  0xe3   :  { %v926_v22 = vadd.f32 %v925_v53, %v924_v47  ;;  %v914_v28 = vsub.f32 %v4922_v25, %v911_v16  ;;  %v915_v56 = vsub.f32 %v4934_v33, %v911_v16  ;;  %v1109_v45 = vadd.f32 %v1108_v14, %v1107_v4 }
  0xe4   :  { %v1126_v12 = vsel %vm168_vm0, %v5022_v34, -inf  ;;  %v1081_v54 = vrot.slane %v4455_v62, %v4920_v37  ;;  %v1090_v57 = vmul.f32 %v4874_v63, %v1069_v21  ;;  %v1091_v33 = vmul.f32 %v4878_v7, %v1069_v21 }
  0xe5   :  { %v3897_v15 = vpop.eup %3896  ;;  %v927_v31 = vrot.slane %v926_v22, 4  ;;  %v920_v60 = vmul.f32 1.442695, %v914_v28  ;;  %v922_v36 = vmul.f32 1.442695, %v915_v56  ;;  %v5037_v5 = vadd.f32 %v1110_v48, %v1109_v45 }
  0xe6   :  { %v713_v25 = vmul.f32 %v3897_v15, %v709_v50  ;;  %v1092_v30 = vmul.f32 %v4881_v29, %v1073_v18  ;;  %v1093_v24 = vmul.f32 %v4884_v41, %v1073_v18  ;;  %v1094_v40 = vmul.f32 %v4888_v46, %v1077_v27 }
  0xe7   :  { %v928_v39 = vadd.f32 %v927_v31, %v926_v22  ;;  %3898 = vpow2.f32 %v920_v60  ;;  %v1127_v35 = vsel %vm168_vm0, %v5037_v5, -inf  ;;  %v1095_v47 = vmul.f32 %v4891_v8, %v1077_v27 }
  0xe8   :  { %v715_v13 = vsub.f32 2.0, %v713_v25  ;;  %3900 = vpow2.f32 %v922_v36  ;;  %v1128_v14 = vmax.f32 %v1126_v12, %v1127_v35  ;;  %v1096_v50 = vmul.f32 %v4895_v32, %v1081_v54 }
  0xe9   :  { %v929_v16 = vrot.slane %v928_v39, 2  ;;  %v1097_v4 = vmul.f32 %v4898_v2, %v1081_v54  ;;  %v1112_v48 = vsel %vm168_vm0, %v1090_v57, 0.0  ;;  %v1113_v18 = vsel %vm168_vm0, %v1092_v30, 0.0 }
  0xea   :  { %v717_v53 = vmul.f32 %v3897_v15, %v715_v13  ;;  %v1129_v21 = vrot.slane %v1128_v14, 4  ;;  %v1115_v22 = vsel %vm168_vm0, %v1094_v40, 0.0  ;;  %v1114_v56 = vadd.f32 %v1113_v18, %v1112_v48 }
  0xeb   :  { %v930_v28 = vadd.f32 %v929_v16, %v928_v39  ;;  %v1117_v45 = vsel %vm168_vm0, %v1096_v50, 0.0  ;;  %v1119_v12 = vsel %vm168_vm0, %v1091_v33, 0.0  ;;  %v1120_v54 = vsel %vm168_vm0, %v1093_v24, 0.0 }
  0xec   :  { %v720_v27 = vmul.f32 %v4903_v9, %v717_v53  ;;  %v721_v31 = vmul.f32 %v4911_v49, %v717_v53  ;;  %v1130_v60 = vmax.f32 %v1128_v14, %v1129_v21  ;;  %v1116_v15 = vadd.f32 %v1115_v22, %v1114_v56 }
  0xed   :  { %v931_v57 = vrot.slane %v930_v28, 1  ;;  %v1121_v36 = vadd.f32 %v1120_v54, %v1119_v12  ;;  %v1122_v25 = vsel %vm168_vm0, %v1095_v47, 0.0 }
  0xee   :  { %v730_v30 = vmul.f32 %v720_v27, %v4757_v23  ;;  %v731_v39 = vmul.f32 %v721_v31, %v4759_v17  ;;  %v732_v35 = vmul.f32 %v720_v27, %v4761_v3  ;;  %v733_v33 = vmul.f32 %v721_v31, %v4765_v26 }
  0xef   :  { %v734_v9 = vmul.f32 %v720_v27, %v4773_v19  ;;  %v735_v49 = vmul.f32 %v721_v31, %v4775_v20  ;;  %v736_v40 = vmul.f32 %v720_v27, %v4780_v38  ;;  %v737_v24 = vmul.f32 %v721_v31, %v4782_v61 }
  0xf0   :  { %v774_v13 = vsel %vm168_vm0, %v730_v30, 0.0  ;;  %v775_v14 = vsel %vm168_vm0, %v731_v39, 0.0  ;;  %v783_v23 = vsel %vm168_vm0, %v732_v35, 0.0  ;;  %v784_v17 = vsel %vm168_vm0, %v733_v33, 0.0 }
  0xf1   :  { %v5069_v47 = vpop.eup %3898  ;;  %v776_v3 = vadd.f32 %v775_v14, %v774_v13  ;;  %v785_v26 = vadd.f32 %v784_v17, %v783_v23  ;;  %v792_v19 = vsel %vm168_vm0, %v734_v9, 0.0  ;;  %v793_v20 = vsel %vm168_vm0, %v735_v49, 0.0 }
  0xf2   :  { %v5073_v16 = vpop.eup %3900  ;;  %v794_v38 = vadd.f32 %v793_v20, %v792_v19  ;;  %v801_v61 = vsel %vm168_vm0, %v736_v40, 0.0  ;;  %v802_v50 = vsel %vm168_vm0, %v737_v24, 0.0  ;;  %v932_v48 = vadd.f32 %v931_v57, %v930_v28 }
  0xf3   :  { %v777_v53 = vrot.slane %v776_v3, 4  ;;  %v786_v21 = vrot.slane %v785_v26, 4  ;;  %v803_v18 = vadd.f32 %v802_v50, %v801_v61  ;;  %v933_v22 = vsel %vm168_vm0, %v5069_v47, 0.0 }
  0xf4   :  { %v795_v56 = vrot.slane %v794_v38, 4  ;;  %3902 = vrcp.f32 %v932_v48  ;;  %v934_v12 = vsel %vm168_vm0, %v5073_v16, 0.0  ;;  %v1131_v27 = vrot.slane %v1130_v60, 2 }
  0xf5   :  { %v778_v31 = vadd.f32 %v777_v53, %v776_v3  ;;  %v787_v54 = vadd.f32 %v786_v21, %v785_v26  ;;  %v804_v30 = vrot.slane %v803_v18, 4  ;;  %v935_v39 = vadd.f32 %v934_v12, %v933_v22 }
  0xf6   :  { %v796_v35 = vadd.f32 %v795_v56, %v794_v38  ;;  %v1132_v33 = vmax.f32 %v1130_v60, %v1131_v27  ;;  %v5081_v9 = vadd.f32 %v1117_v45, %v1116_v15  ;;  %v1123_v28 = vadd.f32 %v1122_v25, %v1121_v36 }
  0xf7   :  { %v779_v57 = vrot.slane %v778_v31, 2  ;;  %v788_v49 = vrot.slane %v787_v54, 2  ;;  %v805_v40 = vadd.f32 %v804_v30, %v803_v18  ;;  %v936_v24 = vrot.slane %v935_v39, 4 }
  0xf8   :  { %v797_v13 = vrot.slane %v796_v35, 2  ;;  %v1133_v14 = vrot.slane %v1132_v33, 1  ;;  %v1124_v23 = vsel %vm168_vm0, %v1097_v4, 0.0  ;;  %v1135_v17 = vsel %vm168_vm0, %v5081_v9, -inf }
  0xf9   :  { %v780_v3 = vadd.f32 %v779_v57, %v778_v31  ;;  %v789_v26 = vadd.f32 %v788_v49, %v787_v54  ;;  %v806_v19 = vrot.slane %v805_v40, 2  ;;  %v937_v20 = vadd.f32 %v936_v24, %v935_v39 }
  0xfa   :  { %v798_v38 = vadd.f32 %v797_v13, %v796_v35  ;;  %v1134_v60 = vmax.f32 %v1132_v33, %v1133_v14  ;;  %v5086_v45 = vadd.f32 %v1124_v23, %v1123_v28  ;;  %v5089_v15 = vsub.s32 5, %v4366_v1 }
  0xfb   :  { %v781_v36 = vrot.slane %v780_v3, 1  ;;  %v790_v25 = vrot.slane %v789_v26, 1  ;;  %v807_v61 = vadd.f32 %v806_v19, %v805_v40  ;;  %v938_v50 = vrot.slane %v937_v20, 2 }
  0xfc   :  { %7231 = vst [vmem:[#allocation27_spill] sm:$0xff] %v5089_v15  ;;  %v799_v53 = vrot.slane %v798_v38, 1  ;;  %v1144_v4 = vsub.f32 %v5022_v34, %v1134_v60  ;;  %v1145_v21 = vsub.f32 %v5037_v5, %v1134_v60  ;;  %v1136_v18 = vsel %vm168_vm0, %v5086_v45, -inf }
  0xfd   :  { %v782_v22 = vadd.f32 %v781_v36, %v780_v3  ;;  %v791_v56 = vadd.f32 %v790_v25, %v789_v26  ;;  %v808_v12 = vrot.slane %v807_v61, 1  ;;  %v939_v27 = vadd.f32 %v938_v50, %v937_v20  ;;  %v7234_v26 = vld [vmem:[#allocation22_spill] sm:$0xff]  ;;  %v7236_v36 = vld [vmem:[#allocation19_spill] sm:$0xff] }
  0xfe   :  { %v3903_v31 = vpop.eup %3902  ;;  %v800_v54 = vadd.f32 %v799_v53, %v798_v38  ;;  %v1148_v30 = vmul.f32 1.442695, %v1144_v4  ;;  %v1150_v39 = vmul.f32 1.442695, %v1145_v21  ;;  %v1137_v35 = vmax.f32 %v1135_v17, %v1136_v18  ;;  %v7233_v17 = vld [vmem:[#allocation21_spill] sm:$0xff]  ;;  %v7235_v20 = vld [vmem:[#allocation18_spill] sm:$0xff] }
  0xff   :  { %814 = vst.msk [vmem:[#allocation8 + $0x42] sm:$0x1] %vm345_vm1, %v782_v22  ;;  %815 = vst.msk [vmem:[#allocation8 + $0x52] sm:$0x1] %vm345_vm1, %v791_v56  ;;  %v809_v33 = vadd.f32 %v808_v12, %v807_v61  ;;  %v944_v34 = vmul.f32 %v3903_v31, %v932_v48  ;;  %v940_v28 = vrot.slane %v939_v27, 1  ;;  %v1285_v5 = vrot.slane %v4378_v10, %v5089_v15  ;;  %v7232_v48 = vld [vmem:[#allocation15_spill] sm:$0xff] }
 0x100   :  { %816 = vst.msk [vmem:[#allocation8 + $0x62] sm:$0x1] %vm345_vm1, %v800_v54  ;;  %3904 = vpow2.f32 %v1148_v30  ;;  %v1138_v57 = vrot.slane %v1137_v35, 4  ;;  %v1289_v49 = vrot.slane %v4380_v11, %v5089_v15  ;;  %v1293_v40 = vrot.slane %v7219_v43, %v5089_v15 }
 0x101   :  { %817 = vst.msk [vmem:[#allocation8 + $0x72] sm:$0x1] %vm345_vm1, %v809_v33  ;;  %v946_v24 = vsub.f32 2.0, %v944_v34  ;;  %v5105_v13 = vadd.f32 %v940_v28, %v939_v27  ;;  %3906 = vpow2.f32 %v1150_v39  ;;  %v1297_v14 = vrot.slane %v7232_v48, %v5089_v15  ;;  %v5132_v39 = vld [vmem:[#allocation7] sm:$0xff]  ;;  %v5135_v33 = vld [vmem:[#allocation7 + $0x8] sm:$0xff]  ;;  %v5138_v34 = vld [vmem:[#allocation7 + $0x10] sm:$0xff] }
 0x102   :  { %v1139_v23 = vmax.f32 %v1137_v35, %v1138_v57  ;;  %v1314_v3 = vmul.f32 %v7233_v17, %v1285_v5  ;;  %v5111_v19 = vmul.f32 %v7234_v26, %v1285_v5  ;;  %v1316_v38 = vmul.f32 %v7235_v20, %v1289_v49  ;;  %v5141_v28 = vld [vmem:[#allocation7 + $0x18] sm:$0xff]  ;;  %v5144_v57 = vld [vmem:[#allocation7 + $0x20] sm:$0xff] }
 0x103   :  { %v948_v60 = vmul.f32 %v3903_v31, %v946_v24  ;;  %3908 = vrcp.f32 %v5105_v13  ;;  %v5116_v25 = vmul.f32 %v7236_v36, %v1289_v49  ;;  %v1318_v61 = vmul.f32 %v4982_v6, %v1293_v40 }
 0x104   :  { %v1140_v50 = vrot.slane %v1139_v23, 2  ;;  %v5120_v53 = vmul.f32 %v4986_v0, %v1293_v40  ;;  %v1320_v4 = vmul.f32 %v4990_v42, %v1297_v14  ;;  %v5124_v21 = vmul.f32 %v4994_v44, %v1297_v14  ;;  %v5147_v40 = vld [vmem:[#allocation7 + $0x28] sm:$0xff]  ;;  %v5150_v14 = vld [vmem:[#allocation7 + $0x30] sm:$0xff] }
 0x105   :  { %v950_v18 = vmul.f32 %v5006_v51, %v948_v60  ;;  %v951_v22 = vmul.f32 %v5013_v55, %v948_v60  ;;  %v1330_v56 = vsel %vm168_vm0, %v1314_v3, 0.0  ;;  %v1331_v12 = vsel %vm168_vm0, %v1316_v38, 0.0  ;;  %7237 = vst [vmem:[#allocation28_spill] sm:$0xff] %v5150_v14  ;;  %v5153_v3 = vld [vmem:[#allocation7 + $0x38] sm:$0xff] }
 0x106   :  { %v1141_v27 = vmax.f32 %v1139_v23, %v1140_v50  ;;  %v1332_v31 = vadd.f32 %v1331_v12, %v1330_v56  ;;  %v1333_v54 = vsel %vm168_vm0, %v1318_v61, 0.0  ;;  %v1335_v30 = vsel %vm168_vm0, %v1320_v4, 0.0  ;;  %7238 = vst [vmem:[#allocation29_spill] sm:$0xff] %v5153_v3 }
 0x107   :  { %v954_v35 = vmul.f32 %v5132_v39, %v950_v18  ;;  %v955_v51 = vmul.f32 %v5135_v33, %v951_v22  ;;  %v956_v55 = vmul.f32 %v5138_v34, %v950_v18  ;;  %v957_v5 = vmul.f32 %v5141_v28, %v951_v22 }
 0x108   :  { %v958_v49 = vmul.f32 %v5144_v57, %v950_v18  ;;  %v959_v24 = vmul.f32 %v5147_v40, %v951_v22  ;;  %v960_v23 = vmul.f32 %v5150_v14, %v950_v18  ;;  %v961_v38 = vmul.f32 %v5153_v3, %v951_v22 }
 0x109   :  { %v970_v60 = vsel %vm168_vm0, %v954_v35, 0.0  ;;  %v971_v61 = vsel %vm168_vm0, %v955_v51, 0.0  ;;  %v979_v50 = vsel %vm168_vm0, %v956_v55, 0.0  ;;  %v980_v4 = vsel %vm168_vm0, %v957_v5, 0.0 }
 0x10a   :  { %v5160_v56 = vpop.eup %3904  ;;  %v972_v12 = vadd.f32 %v971_v61, %v970_v60  ;;  %v981_v37 = vadd.f32 %v980_v4, %v979_v50  ;;  %v988_v44 = vsel %vm168_vm0, %v958_v49, 0.0  ;;  %v989_v18 = vsel %vm168_vm0, %v959_v24, 0.0 }
 0x10b   :  { %v5164_v42 = vpop.eup %3906  ;;  %v990_v0 = vadd.f32 %v989_v18, %v988_v44  ;;  %v997_v22 = vsel %vm168_vm0, %v960_v23, 0.0  ;;  %v998_v35 = vsel %vm168_vm0, %v961_v38, 0.0  ;;  %v1156_v51 = vsel %vm168_vm0, %v5160_v56, 0.0 }
 0x10c   :  { %v973_v55 = vrot.slane %v972_v12, 4  ;;  %v982_v5 = vrot.slane %v981_v37, 4  ;;  %v999_v6 = vadd.f32 %v998_v35, %v997_v22  ;;  %v1157_v60 = vsel %vm168_vm0, %v5164_v42, 0.0 }
 0x10d   :  { %v3909_v61 = vpop.eup %3908  ;;  %v991_v49 = vrot.slane %v990_v0, 4  ;;  %v1158_v50 = vadd.f32 %v1157_v60, %v1156_v51  ;;  %v1142_v24 = vrot.slane %v1141_v27, 1  ;;  %v1334_v4 = vadd.f32 %v1333_v54, %v1332_v31 }
 0x10e   :  { %v974_v36 = vadd.f32 %v973_v55, %v972_v12  ;;  %v983_v44 = vadd.f32 %v982_v5, %v981_v37  ;;  %v1000_v18 = vrot.slane %v999_v6, 4  ;;  %v945_v23 = vmul.f32 %v3909_v61, %v5105_v13 }
 0x10f   :  { %v992_v38 = vadd.f32 %v991_v49, %v990_v0  ;;  %v1159_v20 = vrot.slane %v1158_v50, 4  ;;  %v1143_v26 = vmax.f32 %v1141_v27, %v1142_v24  ;;  %v5173_v17 = vadd.f32 %v1335_v30, %v1334_v4  ;;  %v5185_v4 = vld [vmem:[#allocation7 + $0x50] sm:$0xff] }
 0x110   :  { %v975_v48 = vrot.slane %v974_v36, 2  ;;  %v984_v22 = vrot.slane %v983_v44, 2  ;;  %v1001_v35 = vadd.f32 %v1000_v18, %v999_v6  ;;  %v947_v43 = vsub.f32 2.0, %v945_v23  ;;  %v5194_v23 = vld [vmem:[#allocation7 + $0x60] sm:$0xff] }
 0x111   :  { %v993_v3 = vrot.slane %v992_v38, 2  ;;  %v1160_v14 = vadd.f32 %v1159_v20, %v1158_v50  ;;  %v1146_v51 = vsub.f32 %v5081_v9, %v1143_v26  ;;  %v1147_v31 = vsub.f32 %v5086_v45, %v1143_v26  ;;  %v5179_v26 = vld [vmem:[#allocation7 + $0x40] sm:$0xff] }
 0x112   :  { %v976_v54 = vadd.f32 %v975_v48, %v974_v36  ;;  %v985_v37 = vadd.f32 %v984_v22, %v983_v44  ;;  %v1002_v12 = vrot.slane %v1001_v35, 2  ;;  %v949_v55 = vmul.f32 %v3909_v61, %v947_v43  ;;  %v5188_v44 = vld [vmem:[#allocation7 + $0x58] sm:$0xff]  ;;  %v5197_v22 = vld [vmem:[#allocation7 + $0x68] sm:$0xff] }
 0x113   :  { %v994_v13 = vadd.f32 %v993_v3, %v992_v38  ;;  %v1161_v0 = vrot.slane %v1160_v14, 2  ;;  %v1152_v5 = vmul.f32 1.442695, %v1146_v51  ;;  %v1154_v27 = vmul.f32 1.442695, %v1147_v31  ;;  %v5182_v3 = vld [vmem:[#allocation7 + $0x48] sm:$0xff] }
 0x114   :  { %v977_v30 = vrot.slane %v976_v54, 1  ;;  %v986_v60 = vrot.slane %v985_v37, 1  ;;  %v1003_v49 = vadd.f32 %v1002_v12, %v1001_v35  ;;  %v952_v6 = vmul.f32 %v5069_v47, %v949_v55 }
 0x115   :  { %v995_v24 = vrot.slane %v994_v13, 1  ;;  %v953_v20 = vmul.f32 %v5073_v16, %v949_v55  ;;  %v1162_v50 = vadd.f32 %v1161_v0, %v1160_v14  ;;  %3910 = vpow2.f32 %v1152_v5 }
 0x116   :  { %v978_v9 = vadd.f32 %v977_v30, %v976_v54  ;;  %v987_v45 = vadd.f32 %v986_v60, %v985_v37  ;;  %v1004_v48 = vrot.slane %v1003_v49, 1  ;;  %v962_v43 = vmul.f32 %v5179_v26, %v952_v6  ;;  %v5204_v37 = vld [vmem:[#allocation7 + $0x70] sm:$0xff]  ;;  %v5210_v60 = vld [vmem:[#allocation7 + $0x78] sm:$0xff] }
 0x117   :  { %v996_v36 = vadd.f32 %v995_v24, %v994_v13  ;;  %v963_v61 = vmul.f32 %v5182_v3, %v953_v20  ;;  %v964_v47 = vmul.f32 %v5185_v4, %v952_v6  ;;  %v965_v16 = vmul.f32 %v5188_v44, %v953_v20 }
 0x118   :  { %1042 = vst.msk [vmem:[#allocation8 + $0x3] sm:$0x1] %vm345_vm1, %v978_v9  ;;  %1043 = vst.msk [vmem:[#allocation8 + $0x13] sm:$0x1] %vm345_vm1, %v987_v45  ;;  %v1005_v14 = vadd.f32 %v1004_v48, %v1003_v49  ;;  %v1006_v18 = vsel %vm168_vm0, %v962_v43, 0.0  ;;  %v966_v38 = vmul.f32 %v5194_v23, %v952_v6  ;;  %v967_v35 = vmul.f32 %v5197_v22, %v953_v20 }
 0x119   :  { %1044 = vst.msk [vmem:[#allocation8 + $0x23] sm:$0x1] %vm345_vm1, %v996_v36  ;;  %v1007_v51 = vsel %vm168_vm0, %v963_v61, 0.0  ;;  %v1015_v31 = vsel %vm168_vm0, %v964_v47, 0.0  ;;  %v1016_v54 = vsel %vm168_vm0, %v965_v16, 0.0  ;;  %v968_v12 = vmul.f32 %v5204_v37, %v952_v6 }
 0x11a   :  { %1045 = vst.msk [vmem:[#allocation8 + $0x33] sm:$0x1] %vm345_vm1, %v1005_v14  ;;  %v1008_v55 = vadd.f32 %v1007_v51, %v1006_v18  ;;  %v1017_v13 = vadd.f32 %v1016_v54, %v1015_v31  ;;  %v1024_v0 = vsel %vm168_vm0, %v966_v38, 0.0  ;;  %v1025_v5 = vsel %vm168_vm0, %v967_v35, 0.0 }
 0x11b   :  { %v1026_v30 = vadd.f32 %v1025_v5, %v1024_v0  ;;  %v969_v49 = vmul.f32 %v5210_v60, %v953_v20  ;;  %v1033_v24 = vsel %vm168_vm0, %v968_v12, 0.0  ;;  %v1163_v9 = vrot.slane %v1162_v50, 1 }
 0x11c   :  { %v1009_v45 = vrot.slane %v1008_v55, 4  ;;  %v1018_v48 = vrot.slane %v1017_v13, 4  ;;  %3912 = vpow2.f32 %v1154_v27  ;;  %v1337_v6 = vsel %vm168_vm0, %v5111_v19, 0.0 }
 0x11d   :  { %v1027_v43 = vrot.slane %v1026_v30, 4  ;;  %v1034_v36 = vsel %vm168_vm0, %v969_v49, 0.0  ;;  %v1164_v61 = vadd.f32 %v1163_v9, %v1162_v50  ;;  %v1338_v47 = vsel %vm168_vm0, %v5116_v25, 0.0 }
 0x11e   :  { %v1010_v16 = vadd.f32 %v1009_v45, %v1008_v55  ;;  %v1019_v14 = vadd.f32 %v1018_v48, %v1017_v13  ;;  %v1035_v18 = vadd.f32 %v1034_v36, %v1033_v24  ;;  %v1339_v20 = vadd.f32 %v1338_v47, %v1337_v6 }
 0x11f   :  { %v5219_v38 = vpop.eup %3910  ;;  %v1028_v35 = vadd.f32 %v1027_v43, %v1026_v30  ;;  %3914 = vrcp.f32 %v1164_v61  ;;  %v1340_v27 = vsel %vm168_vm0, %v5120_v53, 0.0  ;;  %v1342_v19 = vsel %vm168_vm0, %v5124_v21, 0.0 }
 0x120   :  { %v1011_v51 = vrot.slane %v1010_v16, 2  ;;  %v1020_v31 = vrot.slane %v1019_v14, 2  ;;  %v1036_v50 = vrot.slane %v1035_v18, 4  ;;  %v1165_v25 = vsel %vm168_vm0, %v5219_v38, 0.0 }
 0x121   :  { %v1029_v54 = vrot.slane %v1028_v35, 2  ;;  %v1341_v12 = vadd.f32 %v1340_v27, %v1339_v20  ;;  %v1358_v55 = vsel %vm168_vm0, %v5173_v17, -inf  ;;  %v1301_v13 = vrot.slane %v4440_v52, %v5089_v15 }
 0x122   :  { %v1012_v0 = vadd.f32 %v1011_v51, %v1010_v16  ;;  %v1021_v5 = vadd.f32 %v1020_v31, %v1019_v14  ;;  %v1037_v53 = vadd.f32 %v1036_v50, %v1035_v18  ;;  %v1305_v21 = vrot.slane %v4447_v58, %v5089_v15 }
 0x123   :  { %v1030_v30 = vadd.f32 %v1029_v54, %v1028_v35  ;;  %v5233_v49 = vadd.f32 %v1342_v19, %v1341_v12  ;;  %v1309_v24 = vrot.slane %v4449_v59, %v5089_v15  ;;  %v1313_v9 = vrot.slane %v4455_v62, %v5089_v15  ;;  %v7249_v15 = vld [vmem:[#allocation19_spill] sm:$0xff] }
 0x124   :  { %v1013_v45 = vrot.slane %v1012_v0, 1  ;;  %v1022_v48 = vrot.slane %v1021_v5, 1  ;;  %v1038_v6 = vrot.slane %v1037_v53, 2  ;;  %v1322_v43 = vmul.f32 %v4874_v63, %v1301_v13 }
 0x125   :  { %v1031_v36 = vrot.slane %v1030_v30, 1  ;;  %v1359_v47 = vsel %vm168_vm0, %v5233_v49, -inf  ;;  %v1323_v16 = vmul.f32 %v4878_v7, %v1301_v13  ;;  %v1324_v14 = vmul.f32 %v4881_v29, %v1305_v21 }
 0x126   :  { %v5244_v18 = vpop.eup %3912  ;;  %v1014_v20 = vadd.f32 %v1013_v45, %v1012_v0  ;;  %v1023_v35 = vadd.f32 %v1022_v48, %v1021_v5  ;;  %v1039_v27 = vadd.f32 %v1038_v6, %v1037_v53  ;;  %v1360_v19 = vmax.f32 %v1358_v55, %v1359_v47  ;;  %v57_v6 = vld [vmem:[#allocation2 + $0x8] sm:$0xff] }
 0x127   :  { %v1032_v51 = vadd.f32 %v1031_v36, %v1030_v30  ;;  %v1166_v31 = vsel %vm168_vm0, %v5244_v18, 0.0  ;;  %v1325_v63 = vmul.f32 %v4884_v41, %v1305_v21  ;;  %v1326_v50 = vmul.f32 %v4888_v46, %v1309_v24 }
 0x128   :  { %1046 = vst.msk [vmem:[#allocation8 + $0x43] sm:$0x1] %vm345_vm1, %v1014_v20  ;;  %1047 = vst.msk [vmem:[#allocation8 + $0x53] sm:$0x1] %vm345_vm1, %v1023_v35  ;;  %v1040_v7 = vrot.slane %v1039_v27, 1  ;;  %v1167_v29 = vadd.f32 %v1166_v31, %v1165_v25  ;;  %v1361_v54 = vrot.slane %v1360_v19, 4  ;;  %v1327_v12 = vmul.f32 %v4891_v8, %v1309_v24 }
 0x129   :  { %v3915_v13 = vpop.eup %3914  ;;  %1048 = vst.msk [vmem:[#allocation8 + $0x63] sm:$0x1] %vm345_vm1, %v1032_v51  ;;  %v1328_v55 = vmul.f32 %v4895_v32, %v1313_v9  ;;  %v1329_v0 = vmul.f32 %v4898_v2, %v1313_v9  ;;  %v1344_v41 = vsel %vm168_vm0, %v1322_v43, 0.0  ;;  %v1345_v46 = vsel %vm168_vm0, %v1324_v14, 0.0 }
 0x12a   :  { %v1041_v5 = vadd.f32 %v1040_v7, %v1039_v27  ;;  %v1176_v53 = vmul.f32 %v3915_v13, %v1164_v61  ;;  %v1168_v21 = vrot.slane %v1167_v29, 4  ;;  %v1362_v30 = vmax.f32 %v1360_v19, %v1361_v54 }
 0x12b   :  { %v1346_v45 = vadd.f32 %v1345_v46, %v1344_v41  ;;  %v1347_v25 = vsel %vm168_vm0, %v1326_v50, 0.0  ;;  %v1349_v8 = vsel %vm168_vm0, %v1328_v55, 0.0  ;;  %v1351_v24 = vsel %vm168_vm0, %v1323_v16, 0.0 }
 0x12c   :  { %1049 = vst.msk [vmem:[#allocation8 + $0x73] sm:$0x1] %vm345_vm1, %v1041_v5  ;;  %v1178_v32 = vsub.f32 2.0, %v1176_v53  ;;  %v1169_v48 = vadd.f32 %v1168_v21, %v1167_v29  ;;  %v1363_v2 = vrot.slane %v1362_v30, 2  ;;  %v1352_v9 = vsel %vm168_vm0, %v1325_v63, 0.0  ;;  %v7242_v5 = vld [vmem:[#allocation28_spill] sm:$0xff] }
 0x12d   :  { %v1348_v43 = vadd.f32 %v1347_v25, %v1346_v45  ;;  %v1353_v36 = vadd.f32 %v1352_v9, %v1351_v24  ;;  %v1354_v61 = vsel %vm168_vm0, %v1327_v12, 0.0  ;;  %v1356_v47 = vsel %vm168_vm0, %v1329_v0, 0.0  ;;  %v7243_v21 = vld [vmem:[#allocation29_spill] sm:$0xff] }
 0x12e   :  { %v1180_v14 = vmul.f32 %v3915_v13, %v1178_v32  ;;  %v1170_v20 = vrot.slane %v1169_v48, 2  ;;  %v1364_v35 = vmax.f32 %v1362_v30, %v1363_v2  ;;  %v5266_v27 = vsub.s32 6, %v4366_v1 }
 0x12f   :  { %v5268_v16 = vadd.f32 %v1349_v8, %v1348_v43  ;;  %v1355_v19 = vadd.f32 %v1354_v61, %v1353_v36  ;;  %v5271_v51 = vsub.s32 7, %v4366_v1  ;;  %v5273_v31 = vmul.f32 0.5, %v57_v6 }
 0x130   :  { %7239 = vst [vmem:[#allocation30_spill] sm:$0xff] %v5266_v27  ;;  %v1182_v63 = vmul.f32 %v5160_v56, %v1180_v14  ;;  %v1183_v50 = vmul.f32 %v5164_v42, %v1180_v14  ;;  %v1171_v7 = vadd.f32 %v1170_v20, %v1169_v48  ;;  %v1365_v29 = vrot.slane %v1364_v35, 1 }
 0x131   :  { %7240 = vst [vmem:[#allocation31_spill] sm:$0xff] %v5271_v51  ;;  %7241 = vst [vmem:[#allocation32_spill] sm:$0xff] %v5273_v31  ;;  %v5277_v54 = vadd.f32 %v1356_v47, %v1355_v19  ;;  %v1367_v12 = vsel %vm168_vm0, %v5268_v16, -inf  ;;  %v1517_v13 = vrot.slane %v4378_v10, %v5266_v27  ;;  %v1521_v1 = vrot.slane %v4380_v11, %v5266_v27 }
 0x132   :  { %v1186_v55 = vmul.f32 %v5132_v39, %v1182_v63  ;;  %v1187_v0 = vmul.f32 %v5135_v33, %v1183_v50  ;;  %v1188_v56 = vmul.f32 %v5138_v34, %v1182_v63  ;;  %v1189_v42 = vmul.f32 %v5141_v28, %v1183_v50 }
 0x133   :  { %v1190_v41 = vmul.f32 %v5144_v57, %v1182_v63  ;;  %v1191_v46 = vmul.f32 %v5147_v40, %v1183_v50  ;;  %v1192_v53 = vmul.f32 %v7242_v5, %v1182_v63  ;;  %v1193_v30 = vmul.f32 %v7243_v21, %v1183_v50 }
 0x134   :  { %v1202_v45 = vsel %vm168_vm0, %v1186_v55, 0.0  ;;  %v1203_v25 = vsel %vm168_vm0, %v1187_v0, 0.0  ;;  %v1211_v8 = vsel %vm168_vm0, %v1188_v56, 0.0  ;;  %v1212_v24 = vsel %vm168_vm0, %v1189_v42, 0.0  ;;  %v7244_v0 = vld [vmem:[#allocation14_spill] sm:$0xff] }
 0x135   :  { %v1204_v32 = vadd.f32 %v1203_v25, %v1202_v45  ;;  %v1213_v48 = vadd.f32 %v1212_v24, %v1211_v8  ;;  %v1220_v2 = vsel %vm168_vm0, %v1190_v41, 0.0  ;;  %v1221_v9 = vsel %vm168_vm0, %v1191_v46, 0.0 }
 0x136   :  { %v1222_v6 = vadd.f32 %v1221_v9, %v1220_v2  ;;  %v1229_v43 = vsel %vm168_vm0, %v1192_v53, 0.0  ;;  %v1230_v36 = vsel %vm168_vm0, %v1193_v30, 0.0  ;;  %v1172_v61 = vrot.slane %v1171_v7, 1 }
 0x137   :  { %v1205_v47 = vrot.slane %v1204_v32, 4  ;;  %v1214_v14 = vrot.slane %v1213_v48, 4  ;;  %v1231_v20 = vadd.f32 %v1230_v36, %v1229_v43  ;;  %v1366_v19 = vmax.f32 %v1364_v35, %v1365_v29  ;;  %v7245_v43 = vld [vmem:[#allocation15_spill] sm:$0xff] }
 0x138   :  { %v1223_v63 = vrot.slane %v1222_v6, 4  ;;  %v1173_v50 = vadd.f32 %v1172_v61, %v1171_v7  ;;  %v1368_v55 = vsel %vm168_vm0, %v5277_v54, -inf  ;;  %v1525_v56 = vrot.slane %v7244_v0, %v5266_v27 }
 0x139   :  { %v1206_v42 = vadd.f32 %v1205_v47, %v1204_v32  ;;  %v1215_v41 = vadd.f32 %v1214_v14, %v1213_v48  ;;  %v1232_v46 = vrot.slane %v1231_v20, 4  ;;  %v1376_v53 = vsub.f32 %v5173_v17, %v1366_v19  ;;  %v7246_v47 = vld [vmem:[#allocation21_spill] sm:$0xff] }
 0x13a   :  { %v1224_v45 = vadd.f32 %v1223_v63, %v1222_v6  ;;  %3916 = vrcp.f32 %v1173_v50  ;;  %v1377_v30 = vsub.f32 %v5233_v49, %v1366_v19  ;;  %v1369_v25 = vmax.f32 %v1367_v12, %v1368_v55 }
 0x13b   :  { %v1207_v8 = vrot.slane %v1206_v42, 2  ;;  %v1216_v35 = vrot.slane %v1215_v41, 2  ;;  %v1233_v29 = vadd.f32 %v1232_v46, %v1231_v20  ;;  %v1380_v7 = vmul.f32 1.442695, %v1376_v53  ;;  %v7247_v20 = vld [vmem:[#allocation22_spill] sm:$0xff] }
 0x13c   :  { %v1225_v24 = vrot.slane %v1224_v45, 2  ;;  %v1382_v2 = vmul.f32 1.442695, %v1377_v30  ;;  %v1370_v9 = vrot.slane %v1369_v25, 4  ;;  %v1529_v36 = vrot.slane %v7245_v43, %v5266_v27  ;;  %v7248_v53 = vld [vmem:[#allocation18_spill] sm:$0xff] }
 0x13d   :  { %v1208_v32 = vadd.f32 %v1207_v8, %v1206_v42  ;;  %v1217_v48 = vadd.f32 %v1216_v35, %v1215_v41  ;;  %v1234_v61 = vrot.slane %v1233_v29, 2  ;;  %3918 = vpow2.f32 %v1380_v7  ;;  %v7250_v35 = vld [vmem:[#allocation23_spill] sm:$0xff] }
 0x13e   :  { %v1226_v17 = vadd.f32 %v1225_v24, %v1224_v45  ;;  %3920 = vpow2.f32 %v1382_v2  ;;  %v1371_v6 = vmax.f32 %v1369_v25, %v1370_v9  ;;  %v1546_v49 = vmul.f32 %v7246_v47, %v1517_v13  ;;  %v7251_v24 = vld [vmem:[#allocation24_spill] sm:$0xff]  ;;  %v7252_v9 = vld [vmem:[#allocation25_spill] sm:$0xff] }
 0x13f   :  { %v1209_v12 = vrot.slane %v1208_v32, 1  ;;  %v1218_v14 = vrot.slane %v1217_v48, 1  ;;  %v1235_v19 = vadd.f32 %v1234_v61, %v1233_v29  ;;  %v1547_v63 = vmul.f32 %v7247_v20, %v1517_v13  ;;  %v7253_v29 = vld [vmem:[#allocation26_spill] sm:$0xff] }
 0x140   :  { %v1227_v55 = vrot.slane %v1226_v17, 1  ;;  %v1372_v46 = vrot.slane %v1371_v6, 2  ;;  %v1548_v30 = vmul.f32 %v7248_v53, %v1521_v1  ;;  %v1549_v31 = vmul.f32 %v7249_v15, %v1521_v1 }
 0x141   :  { %v1210_v42 = vadd.f32 %v1209_v12, %v1208_v32  ;;  %v1219_v41 = vadd.f32 %v1218_v14, %v1217_v48  ;;  %v1236_v8 = vrot.slane %v1235_v19, 1  ;;  %v1550_v45 = vmul.f32 %v7250_v35, %v1525_v56 }
 0x142   :  { %v1228_v7 = vadd.f32 %v1227_v55, %v1226_v17  ;;  %v1373_v25 = vmax.f32 %v1371_v6, %v1372_v46  ;;  %v1551_v2 = vmul.f32 %v7251_v24, %v1525_v56  ;;  %v1552_v47 = vmul.f32 %v7252_v9, %v1529_v36 }
 0x143   :  { %1274 = vst.msk [vmem:[#allocation8 + $0x4] sm:$0x1] %vm345_vm1, %v1210_v42  ;;  %1275 = vst.msk [vmem:[#allocation8 + $0x14] sm:$0x1] %vm345_vm1, %v1219_v41  ;;  %v1237_v13 = vadd.f32 %v1236_v8, %v1235_v19  ;;  %v1553_v61 = vmul.f32 %v7253_v29, %v1529_v36  ;;  %v1562_v15 = vsel %vm168_vm0, %v1546_v49, 0.0  ;;  %v1563_v1 = vsel %vm168_vm0, %v1548_v30, 0.0 }
 0x144   :  { %v3917_v32 = vpop.eup %3916  ;;  %1276 = vst.msk [vmem:[#allocation8 + $0x24] sm:$0x1] %vm345_vm1, %v1228_v7  ;;  %v1374_v48 = vrot.slane %v1373_v25, 1  ;;  %v1564_v17 = vadd.f32 %v1563_v1, %v1562_v15  ;;  %v1565_v56 = vsel %vm168_vm0, %v1550_v45, 0.0  ;;  %v1567_v6 = vsel %vm168_vm0, %v1552_v47, 0.0  ;;  %v5359_v15 = vld [vmem:[#allocation5 + $0x40] sm:$0xff] }
 0x145   :  { %1277 = vst.msk [vmem:[#allocation8 + $0x34] sm:$0x1] %vm345_vm1, %v1237_v13  ;;  %v1177_v12 = vmul.f32 %v3917_v32, %v1173_v50  ;;  %v1569_v14 = vsel %vm168_vm0, %v1547_v63, 0.0  ;;  %v1570_v36 = vsel %vm168_vm0, %v1549_v31, 0.0  ;;  %v1572_v49 = vsel %vm168_vm0, %v1551_v2, 0.0  ;;  %7254 = vst [vmem:[#allocation28_spill] sm:$0xff] %v5359_v15 }
 0x146   :  { %v1375_v19 = vmax.f32 %v1373_v25, %v1374_v48  ;;  %v1566_v20 = vadd.f32 %v1565_v56, %v1564_v17  ;;  %v1571_v55 = vadd.f32 %v1570_v36, %v1569_v14  ;;  %v1574_v46 = vsel %vm168_vm0, %v1553_v61, 0.0  ;;  %v5364_v48 = vld [vmem:[#allocation5 + $0x48] sm:$0xff]  ;;  %v5369_v56 = vld [vmem:[#allocation5 + $0x50] sm:$0xff] }
 0x147   :  { %v5329_v53 = vpop.eup %3918  ;;  %v1179_v30 = vsub.f32 2.0, %v1177_v12  ;;  %v1533_v42 = vrot.slane %v4440_v52, %v5266_v27  ;;  %v1537_v50 = vrot.slane %v4447_v58, %v5266_v27  ;;  %v5337_v63 = vrot.slane %v4449_v59, %v5266_v27  ;;  %7255 = vst [vmem:[#allocation29_spill] sm:$0xff] %v5364_v48  ;;  %7256 = vst [vmem:[#allocation14_spill] sm:$0xff] %v5369_v56 }
 0x148   :  { %v5339_v31 = vpop.eup %3920  ;;  %v1388_v41 = vsel %vm168_vm0, %v5329_v53, 0.0  ;;  %v1378_v8 = vsub.f32 %v5268_v16, %v1375_v19  ;;  %v1379_v35 = vsub.f32 %v5277_v54, %v1375_v19  ;;  %v5345_v45 = vadd.f32 %v1567_v6, %v1566_v20 }
 0x149   :  { %v1181_v7 = vmul.f32 %v3917_v32, %v1179_v30  ;;  %v1389_v25 = vsel %vm168_vm0, %v5339_v31, 0.0  ;;  %v1573_v24 = vadd.f32 %v1572_v49, %v1571_v55  ;;  %v5351_v2 = vrot.slane %v4455_v62, %v5266_v27 }
 0x14a   :  { %v1390_v9 = vadd.f32 %v1389_v25, %v1388_v41  ;;  %v1384_v47 = vmul.f32 1.442695, %v1378_v8  ;;  %v1386_v13 = vmul.f32 1.442695, %v1379_v35  ;;  %v1590_v29 = vsel %vm168_vm0, %v5345_v45, -inf }
 0x14b   :  { %v1184_v16 = vmul.f32 %v5219_v38, %v1181_v7  ;;  %v1185_v54 = vmul.f32 %v5244_v18, %v1181_v7  ;;  %v5357_v61 = vadd.f32 %v1574_v46, %v1573_v24  ;;  %v5362_v1 = vmul.f32 %v5359_v15, %v1533_v42 }
 0x14c   :  { %v1391_v32 = vrot.slane %v1390_v9, 4  ;;  %3922 = vpow2.f32 %v1384_v47  ;;  %v5367_v17 = vmul.f32 %v5364_v48, %v1533_v42  ;;  %v5372_v38 = vmul.f32 %v5369_v56, %v1537_v50 }
 0x14d   :  { %v1194_v18 = vmul.f32 %v5179_v26, %v1184_v16  ;;  %v1195_v6 = vmul.f32 %v5182_v3, %v1185_v54  ;;  %v1196_v12 = vmul.f32 %v5185_v4, %v1184_v16  ;;  %v1197_v14 = vmul.f32 %v5188_v44, %v1185_v54 }
 0x14e   :  { %v1198_v36 = vmul.f32 %v5194_v23, %v1184_v16  ;;  %v1199_v49 = vmul.f32 %v5197_v22, %v1185_v54  ;;  %v1200_v19 = vmul.f32 %v5204_v37, %v1184_v16  ;;  %v1201_v20 = vmul.f32 %v5210_v60, %v1185_v54 }
 0x14f   :  { %v1238_v55 = vsel %vm168_vm0, %v1194_v18, 0.0  ;;  %v1239_v46 = vsel %vm168_vm0, %v1195_v6, 0.0  ;;  %v1247_v30 = vsel %vm168_vm0, %v1196_v12, 0.0  ;;  %v1248_v42 = vsel %vm168_vm0, %v1197_v14, 0.0 }
 0x150   :  { %v1240_v41 = vadd.f32 %v1239_v46, %v1238_v55  ;;  %v1249_v8 = vadd.f32 %v1248_v42, %v1247_v30  ;;  %v1256_v35 = vsel %vm168_vm0, %v1198_v36, 0.0  ;;  %v1257_v7 = vsel %vm168_vm0, %v1199_v49, 0.0  ;;  %v5392_v55 = vld [vmem:[#allocation5 + $0x58] sm:$0xff] }
 0x151   :  { %v1258_v25 = vadd.f32 %v1257_v7, %v1256_v35  ;;  %v1265_v24 = vsel %vm168_vm0, %v1200_v19, 0.0  ;;  %v1266_v47 = vsel %vm168_vm0, %v1201_v20, 0.0  ;;  %v1392_v16 = vadd.f32 %v1391_v32, %v1390_v9  ;;  %7257 = vst [vmem:[#allocation15_spill] sm:$0xff] %v5392_v55  ;;  %v5395_v9 = vld [vmem:[#allocation5 + $0x60] sm:$0xff]  ;;  %v5399_v32 = vld [vmem:[#allocation5 + $0x68] sm:$0xff] }
 0x152   :  { %v1241_v54 = vrot.slane %v1240_v41, 4  ;;  %v1250_v18 = vrot.slane %v1249_v8, 4  ;;  %v1267_v27 = vadd.f32 %v1266_v47, %v1265_v24  ;;  %3924 = vpow2.f32 %v1386_v13  ;;  %7258 = vst [vmem:[#allocation21_spill] sm:$0xff] %v5395_v9  ;;  %7259 = vst [vmem:[#allocation22_spill] sm:$0xff] %v5399_v32 }
 0x153   :  { %v1259_v6 = vrot.slane %v1258_v25, 4  ;;  %v1393_v12 = vrot.slane %v1392_v16, 2  ;;  %v1591_v14 = vsel %vm168_vm0, %v5357_v61, -inf  ;;  %v1557_v36 = vmul.f32 %v5392_v55, %v1537_v50 }
 0x154   :  { %v1242_v49 = vadd.f32 %v1241_v54, %v1240_v41  ;;  %v1251_v46 = vadd.f32 %v1250_v18, %v1249_v8  ;;  %v1268_v30 = vrot.slane %v1267_v27, 4  ;;  %v1592_v19 = vmax.f32 %v1590_v29, %v1591_v14 }
 0x155   :  { %v1260_v42 = vadd.f32 %v1259_v6, %v1258_v25  ;;  %v1394_v20 = vadd.f32 %v1393_v12, %v1392_v16  ;;  %v1558_v13 = vmul.f32 %v5395_v9, %v5337_v63  ;;  %v1559_v35 = vmul.f32 %v5399_v32, %v5337_v63  ;;  %v5407_v16 = vld [vmem:[#allocation5 + $0x70] sm:$0xff]  ;;  %v5413_v9 = vld [vmem:[#allocation5 + $0x78] sm:$0xff] }
 0x156   :  { %v5403_v7 = vpop.eup %3922  ;;  %v1243_v24 = vrot.slane %v1242_v49, 2  ;;  %v1252_v50 = vrot.slane %v1251_v46, 2  ;;  %v1269_v41 = vadd.f32 %v1268_v30, %v1267_v27  ;;  %v1593_v8 = vrot.slane %v1592_v19, 4  ;;  %7260 = vst [vmem:[#allocation18_spill] sm:$0xff] %v5407_v16 }
 0x157   :  { %v1261_v47 = vrot.slane %v1260_v42, 2  ;;  %v1395_v29 = vrot.slane %v1394_v20, 1  ;;  %v1397_v25 = vsel %vm168_vm0, %v5403_v7, 0.0  ;;  %v1560_v54 = vmul.f32 %v5407_v16, %v5351_v2 }
 0x158   :  { %v1244_v18 = vadd.f32 %v1243_v24, %v1242_v49  ;;  %v1253_v6 = vadd.f32 %v1252_v50, %v1251_v46  ;;  %v1270_v12 = vrot.slane %v1269_v41, 2  ;;  %v1594_v63 = vmax.f32 %v1592_v19, %v1593_v8 }
 0x159   :  { %v1262_v14 = vadd.f32 %v1261_v47, %v1260_v42  ;;  %v5411_v32 = vadd.f32 %v1395_v29, %v1394_v20  ;;  %v1561_v27 = vmul.f32 %v5413_v9, %v5351_v2  ;;  %v1576_v30 = vsel %vm168_vm0, %v5362_v1, 0.0 }
 0x15a   :  { %v1245_v55 = vrot.slane %v1244_v18, 1  ;;  %v1254_v56 = vrot.slane %v1253_v6, 1  ;;  %v1271_v48 = vadd.f32 %v1270_v12, %v1269_v41  ;;  %v1595_v15 = vrot.slane %v1594_v63, 2 }
 0x15b   :  { %v1263_v16 = vrot.slane %v1262_v14, 1  ;;  %3926 = vrcp.f32 %v5411_v32  ;;  %v1577_v49 = vsel %vm168_vm0, %v5372_v38, 0.0  ;;  %v1579_v46 = vsel %vm168_vm0, %v1558_v13, 0.0 }
 0x15c   :  { %v5423_v19 = vpop.eup %3924  ;;  %v1246_v42 = vadd.f32 %v1245_v55, %v1244_v18  ;;  %v1255_v20 = vadd.f32 %v1254_v56, %v1253_v6  ;;  %v1272_v2 = vrot.slane %v1271_v48, 1  ;;  %v1596_v24 = vmax.f32 %v1594_v63, %v1595_v15 }
 0x15d   :  { %v1264_v50 = vadd.f32 %v1263_v16, %v1262_v14  ;;  %v1398_v1 = vsel %vm168_vm0, %v5423_v19, 0.0  ;;  %v1578_v41 = vadd.f32 %v1577_v49, %v1576_v30  ;;  %v1581_v8 = vsel %vm168_vm0, %v1560_v54, 0.0  ;;  %v5451_v30 = vld [vmem:[#allocation5] sm:$0xff] }
 0x15e   :  { %1278 = vst.msk [vmem:[#allocation8 + $0x44] sm:$0x1] %vm345_vm1, %v1246_v42  ;;  %1279 = vst.msk [vmem:[#allocation8 + $0x54] sm:$0x1] %vm345_vm1, %v1255_v20  ;;  %v1273_v38 = vadd.f32 %v1272_v2, %v1271_v48  ;;  %v1399_v47 = vadd.f32 %v1398_v1, %v1397_v25  ;;  %v1597_v13 = vrot.slane %v1596_v24, 1  ;;  %v1583_v55 = vsel %vm168_vm0, %v5367_v17, 0.0 }
 0x15f   :  { %1280 = vst.msk [vmem:[#allocation8 + $0x64] sm:$0x1] %vm345_vm1, %v1264_v50  ;;  %v1580_v15 = vadd.f32 %v1579_v46, %v1578_v41  ;;  %v1584_v56 = vsel %vm168_vm0, %v1557_v36, 0.0  ;;  %v1586_v29 = vsel %vm168_vm0, %v1559_v35, 0.0  ;;  %v1588_v16 = vsel %vm168_vm0, %v1561_v27, 0.0  ;;  %v5457_v46 = vld [vmem:[#allocation5 + $0x10] sm:$0xff] }
 0x160   :  { %1281 = vst.msk [vmem:[#allocation8 + $0x74] sm:$0x1] %vm345_vm1, %v1273_v38  ;;  %v1400_v54 = vrot.slane %v1399_v47, 4  ;;  %v1598_v18 = vmax.f32 %v1596_v24, %v1597_v13  ;;  %v1585_v6 = vadd.f32 %v1584_v56, %v1583_v55  ;;  %v1749_v48 = vrot.slane %v4378_v10, %v5271_v51  ;;  %v5462_v24 = vld [vmem:[#allocation5 + $0x18] sm:$0xff]  ;;  %v5465_v1 = vld [vmem:[#allocation5 + $0x20] sm:$0xff] }
 0x161   :  { %v5439_v25 = vadd.f32 %v1581_v8, %v1580_v15  ;;  %v1753_v17 = vrot.slane %v4380_v11, %v5271_v51  ;;  %v1757_v36 = vrot.slane %v7244_v0, %v5271_v51  ;;  %v1761_v35 = vrot.slane %v7245_v43, %v5271_v51  ;;  %v5454_v11 = vld [vmem:[#allocation5 + $0x8] sm:$0xff] }
 0x162   :  { %v1401_v12 = vadd.f32 %v1400_v54, %v1399_v47  ;;  %v1608_v63 = vsub.f32 %v5345_v45, %v1598_v18  ;;  %v1609_v14 = vsub.f32 %v5357_v61, %v1598_v18  ;;  %v1587_v27 = vadd.f32 %v1586_v29, %v1585_v6  ;;  %v5468_v8 = vld [vmem:[#allocation5 + $0x28] sm:$0xff]  ;;  %v5471_v47 = vld [vmem:[#allocation5 + $0x30] sm:$0xff] }
 0x163   :  { %v1599_v10 = vsel %vm168_vm0, %v5439_v25, -inf  ;;  %v1778_v49 = vmul.f32 %v5451_v30, %v1749_v48  ;;  %v1779_v0 = vmul.f32 %v5454_v11, %v1749_v48  ;;  %v1780_v43 = vmul.f32 %v5457_v46, %v1753_v17 }
 0x164   :  { %v1402_v42 = vrot.slane %v1401_v12, 2  ;;  %v1612_v45 = vmul.f32 1.442695, %v1608_v63  ;;  %v1614_v20 = vmul.f32 1.442695, %v1609_v14  ;;  %v5460_v61 = vadd.f32 %v1588_v16, %v1587_v27  ;;  %v5477_v16 = vld [vmem:[#allocation5 + $0x38] sm:$0xff] }
 0x165   :  { %v3927_v2 = vpop.eup %3926  ;;  %v1781_v50 = vmul.f32 %v5462_v24, %v1753_v17  ;;  %v1782_v41 = vmul.f32 %v5465_v1, %v1757_v36  ;;  %v1783_v38 = vmul.f32 %v5468_v8, %v1757_v36  ;;  %v1784_v13 = vmul.f32 %v5471_v47, %v1761_v35 }
 0x166   :  { %v1408_v55 = vmul.f32 %v3927_v2, %v5411_v32  ;;  %v1403_v15 = vadd.f32 %v1402_v42, %v1401_v12  ;;  %3928 = vpow2.f32 %v1612_v45  ;;  %v1600_v56 = vsel %vm168_vm0, %v5460_v61, -inf }
 0x167   :  { %3930 = vpow2.f32 %v1614_v20  ;;  %v1601_v29 = vmax.f32 %v1599_v10, %v1600_v56  ;;  %v1785_v54 = vmul.f32 %v5477_v16, %v1761_v35  ;;  %v1794_v18 = vsel %vm168_vm0, %v1778_v49, 0.0 }
 0x168   :  { %v1410_v6 = vsub.f32 2.0, %v1408_v55  ;;  %v1404_v48 = vrot.slane %v1403_v15, 1  ;;  %v1795_v17 = vsel %vm168_vm0, %v1780_v43, 0.0  ;;  %v1797_v36 = vsel %vm168_vm0, %v1782_v41, 0.0 }
 0x169   :  { %v1602_v32 = vrot.slane %v1601_v29, 4  ;;  %v1796_v12 = vadd.f32 %v1795_v17, %v1794_v18  ;;  %v1799_v63 = vsel %vm168_vm0, %v1784_v13, 0.0  ;;  %v1801_v14 = vsel %vm168_vm0, %v1779_v0, 0.0 }
 0x16a   :  { %v1412_v27 = vmul.f32 %v3927_v2, %v1410_v6  ;;  %v1405_v10 = vadd.f32 %v1404_v48, %v1403_v15  ;;  %v1802_v42 = vsel %vm168_vm0, %v1781_v50, 0.0  ;;  %v1804_v35 = vsel %vm168_vm0, %v1783_v38, 0.0 }
 0x16b   :  { %v1603_v45 = vmax.f32 %v1601_v29, %v1602_v32  ;;  %v1798_v49 = vadd.f32 %v1797_v36, %v1796_v12  ;;  %v1803_v20 = vadd.f32 %v1802_v42, %v1801_v14  ;;  %v1806_v55 = vsel %vm168_vm0, %v1785_v54, 0.0 }
 0x16c   :  { %v1414_v43 = vmul.f32 %v5329_v53, %v1412_v27  ;;  %v1415_v41 = vmul.f32 %v5339_v31, %v1412_v27  ;;  %3932 = vrcp.f32 %v1405_v10  ;;  %v5492_v13 = vrot.slane %v4440_v52, %v5271_v51 }
 0x16d   :  { %v1604_v0 = vrot.slane %v1603_v45, 2  ;;  %v5494_v2 = vadd.f32 %v1799_v63, %v1798_v49  ;;  %v1805_v50 = vadd.f32 %v1804_v35, %v1803_v20  ;;  %v5498_v38 = vrot.slane %v4447_v58, %v5271_v51 }
 0x16e   :  { %v1418_v15 = vmul.f32 %v5132_v39, %v1414_v43  ;;  %v1419_v56 = vmul.f32 %v5135_v33, %v1415_v41  ;;  %v1420_v53 = vmul.f32 %v5138_v34, %v1414_v43  ;;  %v1421_v31 = vmul.f32 %v5141_v28, %v1415_v41 }
 0x16f   :  { %v1422_v29 = vmul.f32 %v5144_v57, %v1414_v43  ;;  %v1423_v52 = vmul.f32 %v5147_v40, %v1415_v41  ;;  %v1424_v54 = vmul.f32 %v7242_v5, %v1414_v43  ;;  %v1425_v18 = vmul.f32 %v7243_v21, %v1415_v41 }
 0x170   :  { %v5508_v6 = vpop.eup %3928  ;;  %v1434_v58 = vsel %vm168_vm0, %v1418_v15, 0.0  ;;  %v1435_v39 = vsel %vm168_vm0, %v1419_v56, 0.0  ;;  %v1443_v33 = vsel %vm168_vm0, %v1420_v53, 0.0  ;;  %v1444_v34 = vsel %vm168_vm0, %v1421_v31, 0.0 }
 0x171   :  { %v5514_v48 = vpop.eup %3930  ;;  %v1436_v28 = vadd.f32 %v1435_v39, %v1434_v58  ;;  %v1445_v57 = vadd.f32 %v1444_v34, %v1443_v33  ;;  %v1452_v40 = vsel %vm168_vm0, %v1422_v29, 0.0  ;;  %v1453_v5 = vsel %vm168_vm0, %v1423_v52, 0.0 }
 0x172   :  { %v1454_v17 = vadd.f32 %v1453_v5, %v1452_v40  ;;  %v1461_v21 = vsel %vm168_vm0, %v1424_v54, 0.0  ;;  %v1462_v36 = vsel %vm168_vm0, %v1425_v18, 0.0  ;;  %v1620_v32 = vsel %vm168_vm0, %v5508_v6, 0.0 }
 0x173   :  { %v1437_v12 = vrot.slane %v1436_v28, 4  ;;  %v1446_v63 = vrot.slane %v1445_v57, 4  ;;  %v1463_v14 = vadd.f32 %v1462_v36, %v1461_v21  ;;  %v1621_v27 = vsel %vm168_vm0, %v5514_v48, 0.0 }
 0x174   :  { %v1455_v42 = vrot.slane %v1454_v17, 4  ;;  %v1622_v35 = vadd.f32 %v1621_v27, %v1620_v32  ;;  %v1605_v49 = vmax.f32 %v1603_v45, %v1604_v0  ;;  %v5524_v20 = vadd.f32 %v1806_v55, %v1805_v50 }
 0x175   :  { %v1438_v43 = vadd.f32 %v1437_v12, %v1436_v28  ;;  %v1447_v41 = vadd.f32 %v1446_v63, %v1445_v57  ;;  %v1464_v15 = vrot.slane %v1463_v14, 4  ;;  %v1822_v56 = vsel %vm168_vm0, %v5494_v2, -inf }
 0x176   :  { %v3933_v53 = vpop.eup %3932  ;;  %v1456_v31 = vadd.f32 %v1455_v42, %v1454_v17  ;;  %v1623_v29 = vrot.slane %v1622_v35, 4  ;;  %v1606_v52 = vrot.slane %v1605_v49, 1  ;;  %v1823_v54 = vsel %vm168_vm0, %v5524_v20, -inf }
 0x177   :  { %v1439_v18 = vrot.slane %v1438_v43, 2  ;;  %v1448_v58 = vrot.slane %v1447_v41, 2  ;;  %v1465_v39 = vadd.f32 %v1464_v15, %v1463_v14  ;;  %v1409_v33 = vmul.f32 %v3933_v53, %v1405_v10 }
 0x178   :  { %v1457_v45 = vrot.slane %v1456_v31, 2  ;;  %v1624_v55 = vadd.f32 %v1623_v29, %v1622_v35  ;;  %v1607_v0 = vmax.f32 %v1605_v49, %v1606_v52  ;;  %v1824_v50 = vmax.f32 %v1822_v56, %v1823_v54 }
 0x179   :  { %v1440_v34 = vadd.f32 %v1439_v18, %v1438_v43  ;;  %v1449_v28 = vadd.f32 %v1448_v58, %v1447_v41  ;;  %v1466_v57 = vrot.slane %v1465_v39, 2  ;;  %v1411_v40 = vsub.f32 2.0, %v1409_v33 }
 0x17a   :  { %v1458_v5 = vadd.f32 %v1457_v45, %v1456_v31  ;;  %v1625_v21 = vrot.slane %v1624_v55, 2  ;;  %v1610_v17 = vsub.f32 %v5439_v25, %v1607_v0  ;;  %v1611_v36 = vsub.f32 %v5460_v61, %v1607_v0 }
 0x17b   :  { %v1441_v32 = vrot.slane %v1440_v34, 1  ;;  %v1450_v12 = vrot.slane %v1449_v28, 1  ;;  %v1467_v63 = vadd.f32 %v1466_v57, %v1465_v39  ;;  %v1413_v27 = vmul.f32 %v3933_v53, %v1411_v40 }
 0x17c   :  { %v1459_v14 = vrot.slane %v1458_v5, 1  ;;  %v1626_v10 = vadd.f32 %v1625_v21, %v1624_v55  ;;  %v1616_v42 = vmul.f32 1.442695, %v1610_v17  ;;  %v1618_v35 = vmul.f32 1.442695, %v1611_v36 }
 0x17d   :  { %v1442_v49 = vadd.f32 %v1441_v32, %v1440_v34  ;;  %v1451_v15 = vadd.f32 %v1450_v12, %v1449_v28  ;;  %v1468_v43 = vrot.slane %v1467_v63, 1  ;;  %v1416_v41 = vmul.f32 %v5403_v7, %v1413_v27 }
 0x17e   :  { %v1460_v56 = vadd.f32 %v1459_v14, %v1458_v5  ;;  %v1417_v31 = vmul.f32 %v5423_v19, %v1413_v27  ;;  %v1627_v29 = vrot.slane %v1626_v10, 1  ;;  %3934 = vpow2.f32 %v1616_v42  ;;  %v7261_v27 = vld [vmem:[#allocation28_spill] sm:$0xff] }
 0x17f   :  { %1506 = vst.msk [vmem:[#allocation8 + $0x5] sm:$0x1] %vm345_vm1, %v1442_v49  ;;  %1507 = vst.msk [vmem:[#allocation8 + $0x15] sm:$0x1] %vm345_vm1, %v1451_v15  ;;  %v1469_v25 = vadd.f32 %v1468_v43, %v1467_v63  ;;  %v1426_v61 = vmul.f32 %v5179_v26, %v1416_v41  ;;  %v1428_v53 = vmul.f32 %v5185_v4, %v1416_v41  ;;  %3936 = vpow2.f32 %v1618_v35  ;;  %v7262_v49 = vld [vmem:[#allocation29_spill] sm:$0xff] }
 0x180   :  { %v1430_v52 = vmul.f32 %v5194_v23, %v1416_v41  ;;  %1508 = vst.msk [vmem:[#allocation8 + $0x25] sm:$0x1] %vm345_vm1, %v1460_v56  ;;  %v1427_v7 = vmul.f32 %v5182_v3, %v1417_v31  ;;  %v1429_v54 = vmul.f32 %v5188_v44, %v1417_v31  ;;  %v1431_v19 = vmul.f32 %v5197_v22, %v1417_v31 }
 0x181   :  { %v1432_v18 = vmul.f32 %v5204_v37, %v1416_v41  ;;  %1509 = vst.msk [vmem:[#allocation8 + $0x35] sm:$0x1] %vm345_vm1, %v1469_v25  ;;  %v1470_v58 = vsel %vm168_vm0, %v1426_v61, 0.0  ;;  %v1479_v26 = vsel %vm168_vm0, %v1428_v53, 0.0  ;;  %v1433_v23 = vmul.f32 %v5210_v60, %v1417_v31  ;;  %v7264_v25 = vld [vmem:[#allocation15_spill] sm:$0xff]  ;;  %v7265_v53 = vld [vmem:[#allocation21_spill] sm:$0xff] }
 0x182   :  { %v1488_v4 = vsel %vm168_vm0, %v1430_v52, 0.0  ;;  %v1471_v39 = vsel %vm168_vm0, %v1427_v7, 0.0  ;;  %v1480_v3 = vsel %vm168_vm0, %v1429_v54, 0.0  ;;  %v1489_v44 = vsel %vm168_vm0, %v1431_v19, 0.0 }
 0x183   :  { %v1497_v22 = vsel %vm168_vm0, %v1432_v18, 0.0  ;;  %v1472_v33 = vadd.f32 %v1471_v39, %v1470_v58  ;;  %v1481_v37 = vadd.f32 %v1480_v3, %v1479_v26  ;;  %v1490_v45 = vadd.f32 %v1489_v44, %v1488_v4  ;;  %v7267_v4 = vld [vmem:[#allocation18_spill] sm:$0xff] }
 0x184   :  { %v1498_v55 = vsel %vm168_vm0, %v1433_v23, 0.0  ;;  %v1628_v34 = vadd.f32 %v1627_v29, %v1626_v10  ;;  %v1825_v28 = vrot.slane %v1824_v50, 4  ;;  %v1773_v5 = vrot.slane %v4449_v59, %v5271_v51  ;;  %v7263_v59 = vld [vmem:[#allocation14_spill] sm:$0xff] }
 0x185   :  { %v1499_v0 = vadd.f32 %v1498_v55, %v1497_v22  ;;  %v1473_v57 = vrot.slane %v1472_v33, 4  ;;  %v1482_v40 = vrot.slane %v1481_v37, 4  ;;  %v1491_v60 = vrot.slane %v1490_v45, 4 }
 0x186   :  { %3938 = vrcp.f32 %v1628_v34  ;;  %v1826_v17 = vmax.f32 %v1824_v50, %v1825_v28  ;;  %v1777_v36 = vrot.slane %v4455_v62, %v5271_v51  ;;  %v1786_v14 = vmul.f32 %v7261_v27, %v5492_v13 }
 0x187   :  { %v1500_v21 = vrot.slane %v1499_v0, 4  ;;  %v1474_v32 = vadd.f32 %v1473_v57, %v1472_v33  ;;  %v1483_v12 = vadd.f32 %v1482_v40, %v1481_v37  ;;  %v1492_v63 = vadd.f32 %v1491_v60, %v1490_v45 }
 0x188   :  { %v5560_v10 = vpop.eup %3934  ;;  %v1827_v35 = vrot.slane %v1826_v17, 2  ;;  %v1787_v15 = vmul.f32 %v7262_v49, %v5492_v13  ;;  %v1788_v43 = vmul.f32 %v7263_v59, %v5498_v38  ;;  %v1789_v61 = vmul.f32 %v7264_v25, %v5498_v38  ;;  %v7266_v13 = vld [vmem:[#allocation22_spill] sm:$0xff] }
 0x189   :  { %v1501_v42 = vadd.f32 %v1500_v21, %v1499_v0  ;;  %v1475_v50 = vrot.slane %v1474_v32, 2  ;;  %v1484_v41 = vrot.slane %v1483_v12, 2  ;;  %v1493_v56 = vrot.slane %v1492_v63, 2  ;;  %v5575_v37 = vpop.eup %3936 }
 0x18a   :  { %v1629_v62 = vsel %vm168_vm0, %v5560_v10, 0.0  ;;  %v1828_v29 = vmax.f32 %v1826_v17, %v1827_v35  ;;  %v1790_v52 = vmul.f32 %v7265_v53, %v1773_v5  ;;  %v1791_v18 = vmul.f32 %v7266_v13, %v1773_v5  ;;  %v59_v35 = vld [vmem:[#allocation2 + $0x18] sm:$0xff] }
 0x18b   :  { %v1502_v31 = vrot.slane %v1501_v42, 2  ;;  %v1476_v7 = vadd.f32 %v1475_v50, %v1474_v32  ;;  %v1485_v54 = vadd.f32 %v1484_v41, %v1483_v12  ;;  %v1494_v19 = vadd.f32 %v1493_v56, %v1492_v63 }
 0x18c   :  { %v1829_v26 = vrot.slane %v1828_v29, 1  ;;  %v1792_v23 = vmul.f32 %v7267_v4, %v1777_v36  ;;  %v1793_v39 = vmul.f32 %v5413_v9, %v1777_v36  ;;  %v1808_v33 = vsel %vm168_vm0, %v1786_v14, 0.0 }
 0x18d   :  { %v1503_v58 = vadd.f32 %v1502_v31, %v1501_v42  ;;  %v1477_v3 = vrot.slane %v1476_v7, 1  ;;  %v1486_v44 = vrot.slane %v1485_v54, 1  ;;  %v1495_v22 = vrot.slane %v1494_v19, 1 }
 0x18e   :  { %v1830_v45 = vmax.f32 %v1828_v29, %v1829_v26  ;;  %v1809_v55 = vsel %vm168_vm0, %v1788_v43, 0.0  ;;  %v1811_v0 = vsel %vm168_vm0, %v1790_v52, 0.0  ;;  %v1630_v60 = vsel %vm168_vm0, %v5575_v37, 0.0  ;;  %v61_v29 = vld [vmem:[#allocation2 + $0x28] sm:$0xff] }
 0x18f   :  { %v1504_v38 = vrot.slane %v1503_v58, 1  ;;  %v1478_v28 = vadd.f32 %v1477_v3, %v1476_v7  ;;  %v1487_v57 = vadd.f32 %v1486_v44, %v1485_v54  ;;  %v1496_v40 = vadd.f32 %v1495_v22, %v1494_v19  ;;  %v7269_v3 = vld [vmem:[#allocation12_spill] sm:$0xff] }
 0x190   :  { %v3939_v5 = vpop.eup %3938  ;;  %v1631_v17 = vadd.f32 %v1630_v60, %v1629_v62  ;;  %v1840_v36 = vsub.f32 %v5494_v2, %v1830_v45  ;;  %v1841_v32 = vsub.f32 %v5524_v20, %v1830_v45  ;;  %v1810_v63 = vadd.f32 %v1809_v55, %v1808_v33  ;;  %v5626_v60 = vld [vmem:[#allocation7 + $0x10] sm:$0xff] }
 0x191   :  { %v1505_v21 = vadd.f32 %v1504_v38, %v1503_v58  ;;  %1510 = vst.msk [vmem:[#allocation8 + $0x45] sm:$0x1] %vm345_vm1, %v1478_v28  ;;  %1511 = vst.msk [vmem:[#allocation8 + $0x55] sm:$0x1] %vm345_vm1, %v1487_v57  ;;  %v1640_v12 = vmul.f32 %v3939_v5, %v1628_v34  ;;  %v1813_v14 = vsel %vm168_vm0, %v1792_v23, 0.0  ;;  %v1815_v42 = vsel %vm168_vm0, %v1787_v15, 0.0 }
 0x192   :  { %1512 = vst.msk [vmem:[#allocation8 + $0x65] sm:$0x1] %vm345_vm1, %v1496_v40  ;;  %v1632_v43 = vrot.slane %v1631_v17, 4  ;;  %v1844_v50 = vmul.f32 1.442695, %v1840_v36  ;;  %v1816_v20 = vsel %vm168_vm0, %v1789_v61, 0.0  ;;  %v1812_v56 = vadd.f32 %v1811_v0, %v1810_v63 }
 0x193   :  { %1513 = vst.msk [vmem:[#allocation8 + $0x75] sm:$0x1] %vm345_vm1, %v1505_v21  ;;  %v1846_v2 = vmul.f32 1.442695, %v1841_v32  ;;  %v1642_v41 = vsub.f32 2.0, %v1640_v12  ;;  %v1817_v62 = vadd.f32 %v1816_v20, %v1815_v42  ;;  %v1818_v31 = vsel %vm168_vm0, %v1791_v18, 0.0 }
 0x194   :  { %v63_v34 = vld [vmem:[#allocation2 + $0x38] sm:$0xff]  ;;  %v1633_v52 = vadd.f32 %v1632_v43, %v1631_v17  ;;  %3940 = vpow2.f32 %v1844_v50  ;;  %v1820_v7 = vsel %vm168_vm0, %v1793_v39, 0.0  ;;  %v5592_v15 = vmul.f32 0.5, %v59_v35  ;;  %v7270_v18 = vld [vmem:[#allocation32_spill] sm:$0xff]  ;;  %v5623_v57 = vld [vmem:[#allocation7 + $0x8] sm:$0xff] }
 0x195   :  { %v1644_v54 = vmul.f32 %v3939_v5, %v1642_v41  ;;  %3942 = vpow2.f32 %v1846_v2  ;;  %v5594_v19 = vadd.f32 %v1813_v14, %v1812_v56  ;;  %v1819_v58 = vadd.f32 %v1818_v31, %v1817_v62  ;;  %v5629_v21 = vld [vmem:[#allocation7 + $0x18] sm:$0xff]  ;;  %v5632_v36 = vld [vmem:[#allocation7 + $0x20] sm:$0xff]  ;;  %v5635_v12 = vld [vmem:[#allocation7 + $0x28] sm:$0xff] }
 0x196   :  { %v1634_v26 = vrot.slane %v1633_v52, 2  ;;  %v5596_v61 = vmul.f32 0.5, %v61_v29  ;;  %v5598_v23 = vmul.f32 0.5, %v63_v34  ;;  %v1981_v44 = vrot.slane %v7270_v18, %v7269_v3  ;;  %v5638_v14 = vld [vmem:[#allocation7 + $0x30] sm:$0xff]  ;;  %v5641_v35 = vld [vmem:[#allocation7 + $0x38] sm:$0xff] }
 0x197   :  { %v1646_v22 = vmul.f32 %v5508_v6, %v1644_v54  ;;  %v1647_v33 = vmul.f32 %v5514_v48, %v1644_v54  ;;  %v5604_v39 = vadd.f32 %v1820_v7, %v1819_v58  ;;  %v1831_v38 = vsel %vm168_vm0, %v5594_v19, -inf  ;;  %v5620_v6 = vld [vmem:[#allocation7] sm:$0xff] }
 0x198   :  { %7268 = vst [vmem:[#allocation19_spill] sm:$0xff] %v5598_v23  ;;  %v1635_v45 = vadd.f32 %v1634_v26, %v1633_v52  ;;  %v5610_v55 = vrot.slane %v5592_v15, %v7269_v3  ;;  %v5614_v0 = vrot.slane %v5596_v61, %v7269_v3  ;;  %v5618_v28 = vrot.slane %v5598_v23, %v7269_v3 }
 0x199   :  { %v1650_v48 = vmul.f32 %v5620_v6, %v1646_v22  ;;  %v1651_v40 = vmul.f32 %v5623_v57, %v1647_v33  ;;  %v1652_v5 = vmul.f32 %v5626_v60, %v1646_v22  ;;  %v1653_v17 = vmul.f32 %v5629_v21, %v1647_v33 }
 0x19a   :  { %v1654_v32 = vmul.f32 %v5632_v36, %v1646_v22  ;;  %v1655_v63 = vmul.f32 %v5635_v12, %v1647_v33  ;;  %v1656_v42 = vmul.f32 %v5638_v14, %v1646_v22  ;;  %v1657_v43 = vmul.f32 %v5641_v35, %v1647_v33 }
 0x19b   :  { %v1666_v50 = vsel %vm168_vm0, %v1650_v48, 0.0  ;;  %v1667_v2 = vsel %vm168_vm0, %v1651_v40, 0.0  ;;  %v1675_v20 = vsel %vm168_vm0, %v1652_v5, 0.0  ;;  %v1676_v41 = vsel %vm168_vm0, %v1653_v17, 0.0 }
 0x19c   :  { %v1668_v56 = vadd.f32 %v1667_v2, %v1666_v50  ;;  %v1677_v62 = vadd.f32 %v1676_v41, %v1675_v20  ;;  %v1684_v31 = vsel %vm168_vm0, %v1654_v32, 0.0  ;;  %v1685_v29 = vsel %vm168_vm0, %v1655_v63, 0.0 }
 0x19d   :  { %v1686_v34 = vadd.f32 %v1685_v29, %v1684_v31  ;;  %v1693_v52 = vsel %vm168_vm0, %v1656_v42, 0.0  ;;  %v1694_v7 = vsel %vm168_vm0, %v1657_v43, 0.0  ;;  %v1636_v54 = vrot.slane %v1635_v45, 1 }
 0x19e   :  { %v5652_v58 = vpop.eup %3940  ;;  %v1669_v26 = vrot.slane %v1668_v56, 4  ;;  %v1678_v22 = vrot.slane %v1677_v62, 4  ;;  %v1695_v33 = vadd.f32 %v1694_v7, %v1693_v52  ;;  %v1832_v48 = vsel %vm168_vm0, %v5604_v39, -inf }
 0x19f   :  { %v5656_v40 = vpop.eup %3942  ;;  %v1687_v5 = vrot.slane %v1686_v34, 4  ;;  %v1637_v17 = vadd.f32 %v1636_v54, %v1635_v45  ;;  %v1852_v32 = vsel %vm168_vm0, %v5652_v58, 0.0  ;;  %v1833_v63 = vmax.f32 %v1831_v38, %v1832_v48 }
 0x1a0   :  { %v1670_v42 = vadd.f32 %v1669_v26, %v1668_v56  ;;  %v1679_v50 = vadd.f32 %v1678_v22, %v1677_v62  ;;  %v1696_v43 = vrot.slane %v1695_v33, 4  ;;  %v1853_v2 = vsel %vm168_vm0, %v5656_v40, 0.0 }
 0x1a1   :  { %v1688_v20 = vadd.f32 %v1687_v5, %v1686_v34  ;;  %3944 = vrcp.f32 %v1637_v17  ;;  %v1854_v41 = vadd.f32 %v1853_v2, %v1852_v32  ;;  %v1834_v31 = vrot.slane %v1833_v63, 4 }
 0x1a2   :  { %v1671_v29 = vrot.slane %v1670_v42, 2  ;;  %v1680_v52 = vrot.slane %v1679_v50, 2  ;;  %v1697_v7 = vadd.f32 %v1696_v43, %v1695_v33  ;;  %v2010_v51 = vmul.f32 %v5451_v30, %v1981_v44 }
 0x1a3   :  { %v1689_v45 = vrot.slane %v1688_v20, 2  ;;  %v1855_v54 = vrot.slane %v1854_v41, 4  ;;  %v1835_v23 = vmax.f32 %v1833_v63, %v1834_v31  ;;  %v2011_v38 = vmul.f32 %v5454_v11, %v1981_v44 }
 0x1a4   :  { %v1672_v56 = vadd.f32 %v1671_v29, %v1670_v42  ;;  %v1681_v62 = vadd.f32 %v1680_v52, %v1679_v50  ;;  %v1698_v26 = vrot.slane %v1697_v7, 2  ;;  %v2012_v22 = vmul.f32 %v5457_v46, %v5610_v55 }
 0x1a5   :  { %v1690_v34 = vadd.f32 %v1689_v45, %v1688_v20  ;;  %v1856_v48 = vadd.f32 %v1855_v54, %v1854_v41  ;;  %v1836_v5 = vrot.slane %v1835_v23, 2  ;;  %v2013_v32 = vmul.f32 %v5462_v24, %v5610_v55 }
 0x1a6   :  { %v1673_v33 = vrot.slane %v1672_v56, 1  ;;  %v1682_v43 = vrot.slane %v1681_v62, 1  ;;  %v1699_v2 = vadd.f32 %v1698_v26, %v1697_v7  ;;  %v2014_v63 = vmul.f32 %v5465_v1, %v5614_v0 }
 0x1a7   :  { %v1691_v31 = vrot.slane %v1690_v34, 1  ;;  %v1857_v44 = vrot.slane %v1856_v48, 2  ;;  %v1837_v42 = vmax.f32 %v1835_v23, %v1836_v5  ;;  %v2015_v50 = vmul.f32 %v5468_v8, %v5614_v0 }
 0x1a8   :  { %v1674_v29 = vadd.f32 %v1673_v33, %v1672_v56  ;;  %v1683_v52 = vadd.f32 %v1682_v43, %v1681_v62  ;;  %v1700_v20 = vrot.slane %v1699_v2, 1  ;;  %v2016_v41 = vmul.f32 %v5471_v47, %v5618_v28 }
 0x1a9   :  { %v1692_v45 = vadd.f32 %v1691_v31, %v1690_v34  ;;  %v1858_v55 = vadd.f32 %v1857_v44, %v1856_v48  ;;  %v1838_v54 = vrot.slane %v1837_v42, 1  ;;  %v2017_v7 = vmul.f32 %v5477_v16, %v5618_v28  ;;  %v65_v28 = vld [vmem:[#allocation2 + $0x48] sm:$0xff] }
 0x1aa   :  { %1738 = vst.msk [vmem:[#allocation8 + $0x6] sm:$0x1] %vm345_vm1, %v1674_v29  ;;  %1739 = vst.msk [vmem:[#allocation8 + $0x16] sm:$0x1] %vm345_vm1, %v1683_v52  ;;  %v1701_v23 = vadd.f32 %v1700_v20, %v1699_v2  ;;  %v2026_v26 = vsel %vm168_vm0, %v2010_v51, 0.0  ;;  %v2027_v0 = vsel %vm168_vm0, %v2012_v22, 0.0 }
 0x1ab   :  { %v2029_v56 = vsel %vm168_vm0, %v2014_v63, 0.0  ;;  %v3945_v62 = vpop.eup %3944  ;;  %1740 = vst.msk [vmem:[#allocation8 + $0x26] sm:$0x1] %vm345_vm1, %v1692_v45  ;;  %v1859_v34 = vrot.slane %v1858_v55, 1  ;;  %v1839_v48 = vmax.f32 %v1837_v42, %v1838_v54  ;;  %v2028_v5 = vadd.f32 %v2027_v0, %v2026_v26  ;;  %v67_v29 = vld [vmem:[#allocation2 + $0x58] sm:$0xff]  ;;  %v69_v52 = vld [vmem:[#allocation2 + $0x68] sm:$0xff] }
 0x1ac   :  { %v2031_v33 = vsel %vm168_vm0, %v2016_v41, 0.0  ;;  %1741 = vst.msk [vmem:[#allocation8 + $0x36] sm:$0x1] %vm345_vm1, %v1701_v23  ;;  %v1641_v43 = vmul.f32 %v3945_v62, %v1637_v17  ;;  %v2033_v2 = vsel %vm168_vm0, %v2011_v38, 0.0  ;;  %v2034_v51 = vsel %vm168_vm0, %v2013_v32, 0.0  ;;  %v71_v17 = vld [vmem:[#allocation2 + $0x78] sm:$0xff] }
 0x1ad   :  { %v2036_v22 = vsel %vm168_vm0, %v2015_v50, 0.0  ;;  %v5687_v31 = vadd.f32 %v1859_v34, %v1858_v55  ;;  %v1842_v63 = vsub.f32 %v5594_v19, %v1839_v48  ;;  %v1843_v44 = vsub.f32 %v5604_v39, %v1839_v48 }
 0x1ae   :  { %v2030_v42 = vadd.f32 %v2029_v56, %v2028_v5  ;;  %v1643_v20 = vsub.f32 2.0, %v1641_v43  ;;  %v2035_v41 = vadd.f32 %v2034_v51, %v2033_v2  ;;  %v2038_v45 = vsel %vm168_vm0, %v2017_v7, 0.0  ;;  %v5727_v43 = vld [vmem:[#allocation7 + $0x48] sm:$0xff]  ;;  %v5730_v51 = vld [vmem:[#allocation7 + $0x50] sm:$0xff] }
 0x1af   :  { %v5692_v54 = vmul.f32 0.5, %v65_v28  ;;  %3946 = vrcp.f32 %v5687_v31  ;;  %v1848_v38 = vmul.f32 1.442695, %v1842_v63  ;;  %v1850_v32 = vmul.f32 1.442695, %v1843_v44  ;;  %7273 = vst [vmem:[#allocation25_spill] sm:$0xff] %v5727_v43 }
 0x1b0   :  { %v5695_v50 = vadd.f32 %v2031_v33, %v2030_v42  ;;  %v1645_v55 = vmul.f32 %v3945_v62, %v1643_v20  ;;  %v2037_v19 = vadd.f32 %v2036_v22, %v2035_v41  ;;  %v5697_v23 = vmul.f32 0.5, %v67_v29  ;;  %7274 = vst [vmem:[#allocation26_spill] sm:$0xff] %v5730_v51  ;;  %v5733_v63 = vld [vmem:[#allocation7 + $0x58] sm:$0xff]  ;;  %v5736_v44 = vld [vmem:[#allocation7 + $0x60] sm:$0xff]  ;;  %v5739_v42 = vld [vmem:[#allocation7 + $0x68] sm:$0xff] }
 0x1b1   :  { %v5699_v39 = vmul.f32 0.5, %v69_v52  ;;  %3948 = vpow2.f32 %v1848_v38  ;;  %v5703_v7 = vmul.f32 0.5, %v71_v17  ;;  %v1997_v0 = vrot.slane %v5692_v54, %v7269_v3  ;;  %7275 = vst [vmem:[#allocation28_spill] sm:$0xff] %v5733_v63  ;;  %7276 = vst [vmem:[#allocation29_spill] sm:$0xff] %v5736_v44  ;;  %v5742_v52 = vld [vmem:[#allocation7 + $0x70] sm:$0xff]  ;;  %v5745_v41 = vld [vmem:[#allocation7 + $0x78] sm:$0xff] }
 0x1b2   :  { %v2054_v26 = vsel %vm168_vm0, %v5695_v50, -inf  ;;  %v1648_v56 = vmul.f32 %v5560_v10, %v1645_v55  ;;  %v1649_v34 = vmul.f32 %v5575_v37, %v1645_v55  ;;  %3950 = vpow2.f32 %v1850_v32  ;;  %v5724_v10 = vld [vmem:[#allocation7 + $0x40] sm:$0xff]  ;;  %7277 = vst [vmem:[#allocation14_spill] sm:$0xff] %v5739_v42  ;;  %7278 = vst [vmem:[#allocation15_spill] sm:$0xff] %v5742_v52 }
 0x1b3   :  { %7271 = vst [vmem:[#allocation23_spill] sm:$0xff] %v5703_v7  ;;  %v5709_v62 = vadd.f32 %v2038_v45, %v2037_v19  ;;  %v2001_v48 = vrot.slane %v5697_v23, %v7269_v3  ;;  %v5715_v5 = vrot.slane %v5699_v39, %v7269_v3  ;;  %v5719_v33 = vrot.slane %v5703_v7, %v7269_v3 }
 0x1b4   :  { %v5722_v28 = vmul.f32 %v7261_v27, %v1997_v0  ;;  %7272 = vst [vmem:[#allocation24_spill] sm:$0xff] %v5724_v10  ;;  %v1658_v37 = vmul.f32 %v5724_v10, %v1648_v56  ;;  %v1659_v2 = vmul.f32 %v5727_v43, %v1649_v34  ;;  %v1660_v22 = vmul.f32 %v5730_v51, %v1648_v56 }
 0x1b5   :  { %v1661_v3 = vmul.f32 %v5733_v63, %v1649_v34  ;;  %v1662_v27 = vmul.f32 %v5736_v44, %v1648_v56  ;;  %v1663_v29 = vmul.f32 %v5739_v42, %v1649_v34  ;;  %v1664_v20 = vmul.f32 %v5742_v52, %v1648_v56  ;;  %7279 = vst [vmem:[#allocation21_spill] sm:$0xff] %v5745_v41 }
 0x1b6   :  { %v1665_v45 = vmul.f32 %v5745_v41, %v1649_v34  ;;  %v1702_v17 = vsel %vm168_vm0, %v1658_v37, 0.0  ;;  %v1703_v38 = vsel %vm168_vm0, %v1659_v2, 0.0  ;;  %v1711_v32 = vsel %vm168_vm0, %v1660_v22, 0.0 }
 0x1b7   :  { %v1712_v55 = vsel %vm168_vm0, %v1661_v3, 0.0  ;;  %v1704_v19 = vadd.f32 %v1703_v38, %v1702_v17  ;;  %v1720_v42 = vsel %vm168_vm0, %v1662_v27, 0.0  ;;  %v1721_v63 = vsel %vm168_vm0, %v1663_v29, 0.0 }
 0x1b8   :  { %v1713_v44 = vadd.f32 %v1712_v55, %v1711_v32  ;;  %v1722_v51 = vadd.f32 %v1721_v63, %v1720_v42  ;;  %v1729_v56 = vsel %vm168_vm0, %v1664_v20, 0.0  ;;  %v1730_v52 = vsel %vm168_vm0, %v1665_v45, 0.0 }
 0x1b9   :  { %v2055_v34 = vsel %vm168_vm0, %v5709_v62, -inf  ;;  %v3947_v37 = vpop.eup %3946  ;;  %v1705_v2 = vrot.slane %v1704_v19, 4  ;;  %v1731_v22 = vadd.f32 %v1730_v52, %v1729_v56  ;;  %v5760_v27 = vmul.f32 %v7262_v49, %v1997_v0 }
 0x1ba   :  { %v1714_v41 = vrot.slane %v1713_v44, 4  ;;  %v2056_v43 = vmax.f32 %v2054_v26, %v2055_v34  ;;  %v1723_v3 = vrot.slane %v1722_v51, 4  ;;  %v1872_v17 = vmul.f32 %v3947_v37, %v5687_v31 }
 0x1bb   :  { %v5763_v63 = vmul.f32 %v7263_v59, %v2001_v48  ;;  %v5765_v42 = vpop.eup %3948  ;;  %v1706_v29 = vadd.f32 %v1705_v2, %v1704_v19  ;;  %v1732_v45 = vrot.slane %v1731_v22, 4  ;;  %v5772_v31 = vmul.f32 %v7264_v25, %v2001_v48 }
 0x1bc   :  { %7280 = vst [vmem:[#allocation22_spill] sm:$0xff] %v5765_v42  ;;  %v1715_v20 = vadd.f32 %v1714_v41, %v1713_v44  ;;  %v2057_v38 = vrot.slane %v2056_v43, 4  ;;  %v5767_v32 = vpop.eup %3950  ;;  %v1724_v55 = vadd.f32 %v1723_v3, %v1722_v51  ;;  %v1874_v52 = vsub.f32 2.0, %v1872_v17 }
 0x1bd   :  { %7281 = vst [vmem:[#allocation18_spill] sm:$0xff] %v5767_v32  ;;  %v1861_v26 = vsel %vm168_vm0, %v5765_v42, 0.0  ;;  %v1707_v49 = vrot.slane %v1706_v29, 2  ;;  %v1733_v59 = vadd.f32 %v1732_v45, %v1731_v22  ;;  %v1862_v56 = vsel %vm168_vm0, %v5767_v32, 0.0 }
 0x1be   :  { %v1716_v0 = vrot.slane %v1715_v20, 2  ;;  %v1725_v19 = vrot.slane %v1724_v55, 2  ;;  %v1876_v44 = vmul.f32 %v3947_v37, %v1874_v52  ;;  %v1863_v41 = vadd.f32 %v1862_v56, %v1861_v26 }
 0x1bf   :  { %v2058_v34 = vmax.f32 %v2056_v43, %v2057_v38  ;;  %v1708_v2 = vadd.f32 %v1707_v49, %v1706_v29  ;;  %v1734_v51 = vrot.slane %v1733_v59, 2  ;;  %v5778_v3 = vmul.f32 %v7265_v53, %v5715_v5 }
 0x1c0   :  { %v1717_v10 = vadd.f32 %v1716_v0, %v1715_v20  ;;  %v1726_v17 = vadd.f32 %v1725_v19, %v1724_v55  ;;  %v1878_v25 = vmul.f32 %v5652_v58, %v1876_v44  ;;  %v1879_v48 = vmul.f32 %v5656_v40, %v1876_v44 }
 0x1c1   :  { %v1864_v22 = vrot.slane %v1863_v41, 4  ;;  %v1709_v45 = vrot.slane %v1708_v2, 1  ;;  %v1735_v32 = vadd.f32 %v1734_v51, %v1733_v59  ;;  %v2059_v7 = vrot.slane %v2058_v34, 2 }
 0x1c2   :  { %v1718_v42 = vrot.slane %v1717_v10, 1  ;;  %v1727_v37 = vrot.slane %v1726_v17, 1  ;;  %v1882_v43 = vmul.f32 %v5620_v6, %v1878_v25  ;;  %v1883_v29 = vmul.f32 %v5623_v57, %v1879_v48 }
 0x1c3   :  { %v1884_v20 = vmul.f32 %v5626_v60, %v1878_v25  ;;  %v1710_v38 = vadd.f32 %v1709_v45, %v1708_v2  ;;  %v1736_v52 = vrot.slane %v1735_v32, 1  ;;  %v1885_v55 = vmul.f32 %v5629_v21, %v1879_v48 }
 0x1c4   :  { %v1719_v53 = vadd.f32 %v1718_v42, %v1717_v10  ;;  %v1728_v58 = vadd.f32 %v1727_v37, %v1726_v17  ;;  %v1898_v40 = vsel %vm168_vm0, %v1882_v43, 0.0  ;;  %v1899_v26 = vsel %vm168_vm0, %v1883_v29, 0.0 }
 0x1c5   :  { %v1907_v49 = vsel %vm168_vm0, %v1884_v20, 0.0  ;;  %1742 = vst.msk [vmem:[#allocation8 + $0x46] sm:$0x1] %vm345_vm1, %v1710_v38  ;;  %v1737_v0 = vadd.f32 %v1736_v52, %v1735_v32  ;;  %v1900_v59 = vadd.f32 %v1899_v26, %v1898_v40  ;;  %v1908_v56 = vsel %vm168_vm0, %v1885_v55, 0.0 }
 0x1c6   :  { %1743 = vst.msk [vmem:[#allocation8 + $0x56] sm:$0x1] %vm345_vm1, %v1719_v53  ;;  %v1886_v10 = vmul.f32 %v5632_v36, %v1878_v25  ;;  %1744 = vst.msk [vmem:[#allocation8 + $0x66] sm:$0x1] %vm345_vm1, %v1728_v58  ;;  %v1909_v42 = vadd.f32 %v1908_v56, %v1907_v49  ;;  %v1887_v19 = vmul.f32 %v5635_v12, %v1879_v48 }
 0x1c7   :  { %v1888_v44 = vmul.f32 %v5638_v14, %v1878_v25  ;;  %v1889_v2 = vmul.f32 %v5641_v35, %v1879_v48  ;;  %1745 = vst.msk [vmem:[#allocation8 + $0x76] sm:$0x1] %vm345_vm1, %v1737_v0  ;;  %v1901_v51 = vrot.slane %v1900_v59, 4  ;;  %v1865_v32 = vadd.f32 %v1864_v22, %v1863_v41 }
 0x1c8   :  { %v1916_v17 = vsel %vm168_vm0, %v1886_v10, 0.0  ;;  %v2060_v45 = vmax.f32 %v2058_v34, %v2059_v7  ;;  %v1910_v37 = vrot.slane %v1909_v42, 4  ;;  %v1917_v43 = vsel %vm168_vm0, %v1887_v19, 0.0 }
 0x1c9   :  { %v1925_v29 = vsel %vm168_vm0, %v1888_v44, 0.0  ;;  %v1926_v20 = vsel %vm168_vm0, %v1889_v2, 0.0  ;;  %v1902_v38 = vadd.f32 %v1901_v51, %v1900_v59  ;;  %v1918_v53 = vadd.f32 %v1917_v43, %v1916_v17 }
 0x1ca   :  { %v1927_v52 = vadd.f32 %v1926_v20, %v1925_v29  ;;  %v1866_v25 = vrot.slane %v1865_v32, 2  ;;  %v1911_v55 = vadd.f32 %v1910_v37, %v1909_v42  ;;  %v2061_v48 = vrot.slane %v2060_v45, 1 }
 0x1cb   :  { %v2023_v58 = vmul.f32 %v7266_v13, %v5715_v5  ;;  %v2024_v41 = vmul.f32 %v7267_v4, %v5719_v33  ;;  %v1903_v7 = vrot.slane %v1902_v38, 2  ;;  %v1919_v34 = vrot.slane %v1918_v53, 4 }
 0x1cc   :  { %v1928_v22 = vrot.slane %v1927_v52, 4  ;;  %v1867_v40 = vadd.f32 %v1866_v25, %v1865_v32  ;;  %v1912_v26 = vrot.slane %v1911_v55, 2  ;;  %v2062_v49 = vmax.f32 %v2060_v45, %v2061_v48 }
 0x1cd   :  { %v2025_v0 = vmul.f32 %v5413_v9, %v5719_v33  ;;  %v2040_v59 = vsel %vm168_vm0, %v5722_v28, 0.0  ;;  %v1904_v56 = vadd.f32 %v1903_v7, %v1902_v38  ;;  %v1920_v10 = vadd.f32 %v1919_v34, %v1918_v53 }
 0x1ce   :  { %v1929_v42 = vadd.f32 %v1928_v22, %v1927_v52  ;;  %v1868_v19 = vrot.slane %v1867_v40, 1  ;;  %v1913_v13 = vadd.f32 %v1912_v26, %v1911_v55  ;;  %v2072_v5 = vsub.f32 %v5695_v50, %v2062_v49  ;;  %v7282_v22 = vld [vmem:[#allocation13_spill] sm:$0xff] }
 0x1cf   :  { %v2073_v4 = vsub.f32 %v5709_v62, %v2062_v49  ;;  %v2041_v44 = vsel %vm168_vm0, %v5763_v63, 0.0  ;;  %v1905_v2 = vrot.slane %v1904_v56, 1  ;;  %v1921_v51 = vrot.slane %v1920_v10, 2 }
 0x1d0   :  { %v1930_v17 = vrot.slane %v1929_v42, 2  ;;  %v1869_v32 = vadd.f32 %v1868_v19, %v1867_v40  ;;  %v1914_v9 = vrot.slane %v1913_v13, 1  ;;  %v2076_v33 = vmul.f32 1.442695, %v2072_v5 }
 0x1d1   :  { %v2078_v45 = vmul.f32 1.442695, %v2073_v4  ;;  %v2042_v28 = vadd.f32 %v2041_v44, %v2040_v59  ;;  %v1906_v37 = vadd.f32 %v1905_v2, %v1904_v56  ;;  %v1922_v43 = vadd.f32 %v1921_v51, %v1920_v10 }
 0x1d2   :  { %v1931_v29 = vadd.f32 %v1930_v17, %v1929_v42  ;;  %3952 = vrcp.f32 %v1869_v32  ;;  %v1915_v20 = vadd.f32 %v1914_v9, %v1913_v13  ;;  %v2043_v50 = vsel %vm168_vm0, %v5778_v3, 0.0 }
 0x1d3   :  { %3954 = vpow2.f32 %v2076_v33  ;;  %v2045_v62 = vsel %vm168_vm0, %v2024_v41, 0.0  ;;  %1970 = vst.msk [vmem:[#allocation8 + $0x7] sm:$0x1] %vm345_vm1, %v1906_v37  ;;  %v1923_v63 = vrot.slane %v1922_v43, 1  ;;  %v2044_v53 = vadd.f32 %v2043_v50, %v2042_v28 }
 0x1d4   :  { %v1932_v38 = vrot.slane %v1931_v29, 1  ;;  %3956 = vpow2.f32 %v2078_v45  ;;  %1971 = vst.msk [vmem:[#allocation8 + $0x17] sm:$0x1] %vm345_vm1, %v1915_v20  ;;  %v2047_v52 = vsel %vm168_vm0, %v5760_v27, 0.0  ;;  %v2048_v25 = vsel %vm168_vm0, %v5772_v31, 0.0  ;;  %v7283_v31 = vld [vmem:[#allocation19_spill] sm:$0xff] }
 0x1d5   :  { %v2050_v55 = vsel %vm168_vm0, %v2023_v58, 0.0  ;;  %v2052_v3 = vsel %vm168_vm0, %v2025_v0, 0.0  ;;  %v1924_v48 = vadd.f32 %v1923_v63, %v1922_v43  ;;  %v5825_v7 = vadd.f32 %v2045_v62, %v2044_v53 }
 0x1d6   :  { %v1933_v41 = vadd.f32 %v1932_v38, %v1931_v29  ;;  %v2049_v34 = vadd.f32 %v2048_v25, %v2047_v52  ;;  %v2213_v40 = vrot.slane %v7270_v18, %v7282_v22  ;;  %v2217_v26 = vrot.slane %v5592_v15, %v7282_v22 }
 0x1d7   :  { %v2221_v27 = vrot.slane %v5596_v61, %v7282_v22  ;;  %v2225_v49 = vrot.slane %v7283_v31, %v7282_v22  ;;  %1972 = vst.msk [vmem:[#allocation8 + $0x27] sm:$0x1] %vm345_vm1, %v1924_v48  ;;  %v2063_v0 = vsel %vm168_vm0, %v5825_v7, -inf  ;;  %v2229_v59 = vrot.slane %v5692_v54, %v7282_v22 }
 0x1d8   :  { %1973 = vst.msk [vmem:[#allocation8 + $0x37] sm:$0x1] %vm345_vm1, %v1933_v41  ;;  %v2051_v58 = vadd.f32 %v2050_v55, %v2049_v34  ;;  %v2233_v56 = vrot.slane %v5697_v23, %v7282_v22  ;;  %v2242_v10 = vmul.f32 %v5451_v30, %v2213_v40  ;;  %v2243_v42 = vmul.f32 %v5454_v11, %v2213_v40  ;;  %v7284_v55 = vld [vmem:[#allocation23_spill] sm:$0xff]  ;;  %v5877_v34 = vld [vmem:[#allocation5 + $0x40] sm:$0xff] }
 0x1d9   :  { %v2244_v19 = vmul.f32 %v5457_v46, %v2217_v26  ;;  %v2245_v13 = vmul.f32 %v5462_v24, %v2217_v26  ;;  %v2246_v4 = vmul.f32 %v5465_v1, %v2221_v27  ;;  %v2247_v44 = vmul.f32 %v5468_v8, %v2221_v27  ;;  %v5882_v26 = vld [vmem:[#allocation5 + $0x48] sm:$0xff] }
 0x1da   :  { %v5847_v5 = vadd.f32 %v2052_v3, %v2051_v58  ;;  %v2248_v2 = vmul.f32 %v5471_v47, %v2225_v49  ;;  %v2249_v51 = vmul.f32 %v5477_v16, %v2225_v49  ;;  %v2258_v17 = vsel %vm168_vm0, %v2242_v10, 0.0  ;;  %v5891_v10 = vld [vmem:[#allocation5 + $0x50] sm:$0xff] }
 0x1db   :  { %v2259_v30 = vsel %vm168_vm0, %v2244_v19, 0.0  ;;  %v2265_v11 = vsel %vm168_vm0, %v2243_v42, 0.0  ;;  %v2261_v33 = vsel %vm168_vm0, %v2246_v4, 0.0  ;;  %v2266_v16 = vsel %vm168_vm0, %v2245_v13, 0.0  ;;  %v7285_v42 = vld [vmem:[#allocation22_spill] sm:$0xff] }
 0x1dc   :  { %v3953_v9 = vpop.eup %3952  ;;  %v2064_v46 = vsel %vm168_vm0, %v5847_v5, -inf  ;;  %v2260_v24 = vadd.f32 %v2259_v30, %v2258_v17  ;;  %v2263_v1 = vsel %vm168_vm0, %v2248_v2, 0.0  ;;  %v2268_v28 = vsel %vm168_vm0, %v2247_v44, 0.0  ;;  %v7286_v13 = vld [vmem:[#allocation18_spill] sm:$0xff]  ;;  %v5898_v2 = vld [vmem:[#allocation5 + $0x58] sm:$0xff]  ;;  %v5905_v30 = vld [vmem:[#allocation5 + $0x60] sm:$0xff] }
 0x1dd   :  { %v5860_v8 = vpop.eup %3954  ;;  %v1873_v47 = vmul.f32 %v3953_v9, %v1869_v32  ;;  %v2065_v45 = vmax.f32 %v2063_v0, %v2064_v46  ;;  %v2267_v20 = vadd.f32 %v2266_v16, %v2265_v11  ;;  %v2270_v50 = vsel %vm168_vm0, %v2249_v51, 0.0  ;;  %v7290_v16 = vld [vmem:[#allocation28_spill] sm:$0xff] }
 0x1de   :  { %v5864_v37 = vpop.eup %3956  ;;  %v2084_v43 = vsel %vm168_vm0, %v5860_v8, 0.0  ;;  %v2262_v29 = vadd.f32 %v2261_v33, %v2260_v24  ;;  %v2237_v32 = vrot.slane %v5699_v39, %v7282_v22  ;;  %v2241_v3 = vrot.slane %v7284_v55, %v7282_v22  ;;  %v7287_v24 = vld [vmem:[#allocation24_spill] sm:$0xff] }
 0x1df   :  { %v1875_v62 = vsub.f32 2.0, %v1873_v47  ;;  %v2085_v63 = vsel %vm168_vm0, %v5864_v37, 0.0  ;;  %v2066_v38 = vrot.slane %v2065_v45, 4  ;;  %v2269_v25 = vadd.f32 %v2268_v28, %v2267_v20  ;;  %v7292_v20 = vld [vmem:[#allocation14_spill] sm:$0xff] }
 0x1e0   :  { %v2086_v53 = vadd.f32 %v2085_v63, %v2084_v43  ;;  %v5873_v52 = vadd.f32 %v2263_v1, %v2262_v29  ;;  %v5880_v40 = vmul.f32 %v5877_v34, %v2229_v59  ;;  %v5885_v27 = vmul.f32 %v5882_v26, %v2229_v59  ;;  %v7288_v1 = vld [vmem:[#allocation25_spill] sm:$0xff] }
 0x1e1   :  { %v1877_v48 = vmul.f32 %v3953_v9, %v1875_v62  ;;  %v2067_v41 = vmax.f32 %v2065_v45, %v2066_v38  ;;  %v5887_v58 = vadd.f32 %v2270_v50, %v2269_v25  ;;  %v5894_v22 = vmul.f32 %v5891_v10, %v2233_v56  ;;  %v5910_v9 = vld [vmem:[#allocation5 + $0x68] sm:$0xff]  ;;  %v7293_v62 = vld [vmem:[#allocation15_spill] sm:$0xff] }
 0x1e2   :  { %v2087_v49 = vrot.slane %v2086_v53, 4  ;;  %v2286_v0 = vsel %vm168_vm0, %v5873_v52, -inf  ;;  %v5901_v59 = vmul.f32 %v5898_v2, %v2233_v56  ;;  %v5908_v11 = vmul.f32 %v5905_v30, %v2237_v32  ;;  %v7289_v56 = vld [vmem:[#allocation26_spill] sm:$0xff]  ;;  %v7291_v43 = vld [vmem:[#allocation29_spill] sm:$0xff] }
 0x1e3   :  { %v1880_v19 = vmul.f32 %v7285_v42, %v1877_v48  ;;  %v1881_v4 = vmul.f32 %v7286_v13, %v1877_v48  ;;  %v2068_v44 = vrot.slane %v2067_v41, 2  ;;  %v2287_v17 = vsel %vm168_vm0, %v5887_v58, -inf  ;;  %v7294_v38 = vld [vmem:[#allocation21_spill] sm:$0xff] }
 0x1e4   :  { %v2088_v51 = vadd.f32 %v2087_v49, %v2086_v53  ;;  %v5913_v46 = vmul.f32 %v5910_v9, %v2237_v32 }
 0x1e5   :  { %v1890_v33 = vmul.f32 %v7287_v24, %v1880_v19  ;;  %v1891_v47 = vmul.f32 %v7288_v1, %v1881_v4  ;;  %v1892_v45 = vmul.f32 %v7289_v56, %v1880_v19  ;;  %v1893_v28 = vmul.f32 %v7290_v16, %v1881_v4 }
 0x1e6   :  { %v1894_v29 = vmul.f32 %v7291_v43, %v1880_v19  ;;  %v1895_v50 = vmul.f32 %v7292_v20, %v1881_v4  ;;  %v1896_v63 = vmul.f32 %v7293_v62, %v1880_v19  ;;  %v1897_v53 = vmul.f32 %v7294_v38, %v1881_v4 }
 0x1e7   :  { %v1934_v25 = vsel %vm168_vm0, %v1890_v33, 0.0  ;;  %v1935_v32 = vsel %vm168_vm0, %v1891_v47, 0.0  ;;  %v1943_v48 = vsel %vm168_vm0, %v1892_v45, 0.0  ;;  %v1944_v49 = vsel %vm168_vm0, %v1893_v28, 0.0  ;;  %v5931_v28 = vld [vmem:[#allocation5 + $0x70] sm:$0xff] }
 0x1e8   :  { %v1936_v42 = vadd.f32 %v1935_v32, %v1934_v25  ;;  %v1945_v13 = vadd.f32 %v1944_v49, %v1943_v48  ;;  %v1952_v16 = vsel %vm168_vm0, %v1894_v29, 0.0  ;;  %v1953_v43 = vsel %vm168_vm0, %v1895_v50, 0.0  ;;  %7295 = vst [vmem:[#allocation12_spill] sm:$0xff] %v5931_v28 }
 0x1e9   :  { %v1954_v56 = vadd.f32 %v1953_v43, %v1952_v16  ;;  %v1961_v20 = vsel %vm168_vm0, %v1896_v63, 0.0  ;;  %v1962_v19 = vsel %vm168_vm0, %v1897_v53, 0.0  ;;  %v2089_v4 = vrot.slane %v2088_v51, 2  ;;  %v5934_v53 = vld [vmem:[#allocation5 + $0x78] sm:$0xff] }
 0x1ea   :  { %v1937_v38 = vrot.slane %v1936_v42, 4  ;;  %v1946_v33 = vrot.slane %v1945_v13, 4  ;;  %v1963_v62 = vadd.f32 %v1962_v19, %v1961_v20  ;;  %v2069_v47 = vmax.f32 %v2067_v41, %v2068_v44  ;;  %7296 = vst [vmem:[#allocation32_spill] sm:$0xff] %v5934_v53 }
 0x1eb   :  { %v1955_v1 = vrot.slane %v1954_v56, 4  ;;  %v2090_v45 = vadd.f32 %v2089_v4, %v2088_v51  ;;  %v2288_v24 = vmax.f32 %v2286_v0, %v2287_v17  ;;  %v2256_v25 = vmul.f32 %v5931_v28, %v2241_v3 }
 0x1ec   :  { %v1938_v29 = vadd.f32 %v1937_v38, %v1936_v42  ;;  %v1947_v32 = vadd.f32 %v1946_v33, %v1945_v13  ;;  %v1964_v50 = vrot.slane %v1963_v62, 4  ;;  %v2070_v16 = vrot.slane %v2069_v47, 1 }
 0x1ed   :  { %v1956_v43 = vadd.f32 %v1955_v1, %v1954_v56  ;;  %v2091_v63 = vrot.slane %v2090_v45, 1  ;;  %v2289_v48 = vrot.slane %v2288_v24, 4  ;;  %v2257_v49 = vmul.f32 %v5934_v53, %v2241_v3 }
 0x1ee   :  { %v1939_v20 = vrot.slane %v1938_v29, 2  ;;  %v1948_v41 = vrot.slane %v1947_v32, 2  ;;  %v1965_v44 = vadd.f32 %v1964_v50, %v1963_v62  ;;  %v2071_v51 = vmax.f32 %v2069_v47, %v2070_v16 }
 0x1ef   :  { %v1957_v0 = vrot.slane %v1956_v43, 2  ;;  %v2092_v17 = vadd.f32 %v2091_v63, %v2090_v45  ;;  %v2290_v19 = vmax.f32 %v2288_v24, %v2289_v48  ;;  %v2272_v38 = vsel %vm168_vm0, %v5880_v40, 0.0 }
 0x1f0   :  { %v1940_v42 = vadd.f32 %v1939_v20, %v1938_v29  ;;  %v1949_v13 = vadd.f32 %v1948_v41, %v1947_v32  ;;  %v1966_v4 = vrot.slane %v1965_v44, 2  ;;  %v2074_v1 = vsub.f32 %v5825_v7, %v2071_v51 }
 0x1f1   :  { %v1958_v56 = vadd.f32 %v1957_v0, %v1956_v43  ;;  %3958 = vrcp.f32 %v2092_v17  ;;  %v2075_v33 = vsub.f32 %v5847_v5, %v2071_v51  ;;  %v2291_v3 = vrot.slane %v2290_v19, 2  ;;  %v7297_v0 = vld [vmem:[#allocation16_spill] sm:$0xff] }
 0x1f2   :  { %v1941_v53 = vrot.slane %v1940_v42, 1  ;;  %v1950_v28 = vrot.slane %v1949_v13, 1  ;;  %v1967_v62 = vadd.f32 %v1966_v4, %v1965_v44  ;;  %v2080_v47 = vmul.f32 1.442695, %v2074_v1  ;;  %v5972_v1 = vld [vmem:[#allocation5 + $0x8] sm:$0xff] }
 0x1f3   :  { %v1959_v50 = vrot.slane %v1958_v56, 1  ;;  %v2082_v45 = vmul.f32 1.442695, %v2075_v33  ;;  %v2292_v24 = vmax.f32 %v2290_v19, %v2291_v3  ;;  %v2273_v40 = vsel %vm168_vm0, %v5894_v22, 0.0 }
 0x1f4   :  { %v1942_v29 = vadd.f32 %v1941_v53, %v1940_v42  ;;  %v1951_v32 = vadd.f32 %v1950_v28, %v1949_v13  ;;  %v1968_v16 = vrot.slane %v1967_v62, 1  ;;  %3960 = vpow2.f32 %v2080_v47 }
 0x1f5   :  { %v1960_v7 = vadd.f32 %v1959_v50, %v1958_v56  ;;  %3962 = vpow2.f32 %v2082_v45  ;;  %v2293_v43 = vrot.slane %v2292_v24, 1  ;;  %v2274_v63 = vadd.f32 %v2273_v40, %v2272_v38 }
 0x1f6   :  { %1974 = vst.msk [vmem:[#allocation8 + $0x47] sm:$0x1] %vm345_vm1, %v1942_v29  ;;  %1975 = vst.msk [vmem:[#allocation8 + $0x57] sm:$0x1] %vm345_vm1, %v1951_v32  ;;  %v1969_v5 = vadd.f32 %v1968_v16, %v1967_v62  ;;  %v2275_v48 = vsel %vm168_vm0, %v5908_v11, 0.0  ;;  %v2277_v20 = vsel %vm168_vm0, %v2256_v25, 0.0  ;;  %v2445_v25 = vrot.slane %v7270_v18, %v7297_v0 }
 0x1f7   :  { %v2279_v22 = vsel %vm168_vm0, %v5885_v27, 0.0  ;;  %1976 = vst.msk [vmem:[#allocation8 + $0x67] sm:$0x1] %vm345_vm1, %v1960_v7  ;;  %v2294_v28 = vmax.f32 %v2292_v24, %v2293_v43  ;;  %v2276_v53 = vadd.f32 %v2275_v48, %v2274_v63  ;;  %v2280_v41 = vsel %vm168_vm0, %v5901_v59, 0.0  ;;  %v5977_v62 = vld [vmem:[#allocation5 + $0x10] sm:$0xff]  ;;  %v5982_v24 = vld [vmem:[#allocation5 + $0x18] sm:$0xff] }
 0x1f8   :  { %v2282_v44 = vsel %vm168_vm0, %v5913_v46, 0.0  ;;  %1977 = vst.msk [vmem:[#allocation8 + $0x77] sm:$0x1] %vm345_vm1, %v1969_v5  ;;  %v2281_v51 = vadd.f32 %v2280_v41, %v2279_v22  ;;  %v2284_v11 = vsel %vm168_vm0, %v2257_v49, 0.0  ;;  %v2449_v27 = vrot.slane %v5592_v15, %v7297_v0  ;;  %v5969_v49 = vld [vmem:[#allocation5] sm:$0xff]  ;;  %v5988_v16 = vld [vmem:[#allocation5 + $0x28] sm:$0xff] }
 0x1f9   :  { %v2304_v19 = vsub.f32 %v5873_v52, %v2294_v28  ;;  %v2305_v38 = vsub.f32 %v5887_v58, %v2294_v28  ;;  %v5963_v42 = vadd.f32 %v2277_v20, %v2276_v53  ;;  %v2453_v59 = vrot.slane %v5596_v61, %v7297_v0  ;;  %v5985_v29 = vld [vmem:[#allocation5 + $0x20] sm:$0xff]  ;;  %7299 = vst [vmem:[#allocation19_spill] sm:$0xff] %v5988_v16  ;;  %v5991_v43 = vld [vmem:[#allocation5 + $0x30] sm:$0xff] }
 0x1fa   :  { %v2283_v46 = vadd.f32 %v2282_v44, %v2281_v51  ;;  %v2457_v13 = vrot.slane %v7283_v31, %v7297_v0  ;;  %v2474_v4 = vmul.f32 %v5969_v49, %v2445_v25  ;;  %v2475_v56 = vmul.f32 %v5972_v1, %v2445_v25  ;;  %7298 = vst [vmem:[#allocation13_spill] sm:$0xff] %v5985_v29 }
 0x1fb   :  { %v3959_v52 = vpop.eup %3958  ;;  %v2308_v33 = vmul.f32 1.442695, %v2304_v19  ;;  %v2310_v58 = vmul.f32 1.442695, %v2305_v38  ;;  %v2295_v3 = vsel %vm168_vm0, %v5963_v42, -inf  ;;  %v2476_v47 = vmul.f32 %v5977_v62, %v2449_v27  ;;  %7300 = vst [vmem:[#allocation22_spill] sm:$0xff] %v5991_v43 }
 0x1fc   :  { %v2104_v50 = vmul.f32 %v3959_v52, %v2092_v17  ;;  %v5980_v45 = vadd.f32 %v2284_v11, %v2283_v46  ;;  %v2477_v40 = vmul.f32 %v5982_v24, %v2449_v27  ;;  %v2478_v32 = vmul.f32 %v5985_v29, %v2453_v59  ;;  %v5994_v17 = vld [vmem:[#allocation5 + $0x38] sm:$0xff] }
 0x1fd   :  { %3964 = vpow2.f32 %v2308_v33  ;;  %v2479_v7 = vmul.f32 %v5988_v16, %v2453_v59  ;;  %v2480_v63 = vmul.f32 %v5991_v43, %v2457_v13  ;;  %7301 = vst [vmem:[#allocation18_spill] sm:$0xff] %v5994_v17  ;;  %v2481_v5 = vmul.f32 %v5994_v17, %v2457_v13 }
 0x1fe   :  { %v5997_v48 = vpop.eup %3960  ;;  %v2106_v20 = vsub.f32 2.0, %v2104_v50  ;;  %3966 = vpow2.f32 %v2310_v58  ;;  %v2296_v22 = vsel %vm168_vm0, %v5980_v45, -inf  ;;  %v2490_v28 = vsel %vm168_vm0, %v2474_v4, 0.0 }
 0x1ff   :  { %v6002_v53 = vpop.eup %3962  ;;  %v2093_v41 = vsel %vm168_vm0, %v5997_v48, 0.0  ;;  %v2297_v44 = vmax.f32 %v2295_v3, %v2296_v22  ;;  %v2491_v51 = vsel %vm168_vm0, %v2476_v47, 0.0  ;;  %v2493_v11 = vsel %vm168_vm0, %v2478_v32, 0.0 }
 0x200   :  { %v2108_v25 = vmul.f32 %v3959_v52, %v2106_v20  ;;  %v2094_v27 = vsel %vm168_vm0, %v6002_v53, 0.0  ;;  %v2492_v19 = vadd.f32 %v2491_v51, %v2490_v28  ;;  %v2495_v38 = vsel %vm168_vm0, %v2480_v63, 0.0 }
 0x201   :  { %v2095_v59 = vadd.f32 %v2094_v27, %v2093_v41  ;;  %v2298_v46 = vrot.slane %v2297_v44, 4  ;;  %v2497_v13 = vsel %vm168_vm0, %v2475_v56, 0.0  ;;  %v2498_v4 = vsel %vm168_vm0, %v2477_v40, 0.0 }
 0x202   :  { %v2110_v33 = vmul.f32 %v5860_v8, %v2108_v25  ;;  %v2111_v58 = vmul.f32 %v5864_v37, %v2108_v25  ;;  %v2494_v3 = vadd.f32 %v2493_v11, %v2492_v19  ;;  %v2499_v47 = vadd.f32 %v2498_v4, %v2497_v13 }
 0x203   :  { %v2096_v50 = vrot.slane %v2095_v59, 4  ;;  %v2299_v52 = vmax.f32 %v2297_v44, %v2298_v46  ;;  %v2500_v32 = vsel %vm168_vm0, %v2479_v7, 0.0  ;;  %v2502_v20 = vsel %vm168_vm0, %v2481_v5, 0.0 }
 0x204   :  { %v2114_v63 = vmul.f32 %v5620_v6, %v2110_v33  ;;  %v2115_v22 = vmul.f32 %v5623_v57, %v2111_v58  ;;  %v2116_v56 = vmul.f32 %v5626_v60, %v2110_v33  ;;  %v2117_v40 = vmul.f32 %v5629_v21, %v2111_v58 }
 0x205   :  { %v2118_v8 = vmul.f32 %v5632_v36, %v2110_v33  ;;  %v2119_v37 = vmul.f32 %v5635_v12, %v2111_v58  ;;  %v2120_v28 = vmul.f32 %v5638_v14, %v2110_v33  ;;  %v2121_v41 = vmul.f32 %v5641_v35, %v2111_v58 }
 0x206   :  { %v2130_v7 = vsel %vm168_vm0, %v2114_v63, 0.0  ;;  %v2131_v5 = vsel %vm168_vm0, %v2115_v22, 0.0  ;;  %v2139_v6 = vsel %vm168_vm0, %v2116_v56, 0.0  ;;  %v2140_v57 = vsel %vm168_vm0, %v2117_v40, 0.0 }
 0x207   :  { %v6029_v44 = vpop.eup %3964  ;;  %v2132_v60 = vadd.f32 %v2131_v5, %v2130_v7  ;;  %v2141_v21 = vadd.f32 %v2140_v57, %v2139_v6  ;;  %v2148_v36 = vsel %vm168_vm0, %v2118_v8, 0.0  ;;  %v2149_v12 = vsel %vm168_vm0, %v2119_v37, 0.0 }
 0x208   :  { %v6033_v51 = vpop.eup %3966  ;;  %v2150_v14 = vadd.f32 %v2149_v12, %v2148_v36  ;;  %v2157_v35 = vsel %vm168_vm0, %v2120_v28, 0.0  ;;  %v2158_v11 = vsel %vm168_vm0, %v2121_v41, 0.0  ;;  %v2097_v25 = vadd.f32 %v2096_v50, %v2095_v59 }
 0x209   :  { %v2133_v27 = vrot.slane %v2132_v60, 4  ;;  %v2142_v19 = vrot.slane %v2141_v21, 4  ;;  %v2159_v46 = vadd.f32 %v2158_v11, %v2157_v35  ;;  %v2316_v13 = vsel %vm168_vm0, %v6029_v44, 0.0 }
 0x20a   :  { %v2151_v4 = vrot.slane %v2150_v14, 4  ;;  %v2098_v33 = vrot.slane %v2097_v25, 2  ;;  %v2317_v58 = vsel %vm168_vm0, %v6033_v51, 0.0  ;;  %v2300_v63 = vrot.slane %v2299_v52, 2 }
 0x20b   :  { %v2134_v22 = vadd.f32 %v2133_v27, %v2132_v60  ;;  %v2143_v56 = vadd.f32 %v2142_v19, %v2141_v21  ;;  %v2160_v40 = vrot.slane %v2159_v46, 4  ;;  %v2318_v8 = vadd.f32 %v2317_v58, %v2316_v13 }
 0x20c   :  { %v2152_v37 = vadd.f32 %v2151_v4, %v2150_v14  ;;  %v2099_v28 = vadd.f32 %v2098_v33, %v2097_v25  ;;  %v2301_v41 = vmax.f32 %v2299_v52, %v2300_v63  ;;  %v6041_v59 = vadd.f32 %v2495_v38, %v2494_v3 }
 0x20d   :  { %v2135_v50 = vrot.slane %v2134_v22, 2  ;;  %v2144_v7 = vrot.slane %v2143_v56, 2  ;;  %v2161_v5 = vadd.f32 %v2160_v40, %v2159_v46  ;;  %v2319_v6 = vrot.slane %v2318_v8, 4 }
 0x20e   :  { %v2153_v57 = vrot.slane %v2152_v37, 2  ;;  %v2100_v36 = vrot.slane %v2099_v28, 1  ;;  %v2302_v12 = vrot.slane %v2301_v41, 1  ;;  %v2501_v35 = vadd.f32 %v2500_v32, %v2499_v47 }
 0x20f   :  { %v2136_v11 = vadd.f32 %v2135_v50, %v2134_v22  ;;  %v2145_v17 = vadd.f32 %v2144_v7, %v2143_v56  ;;  %v2162_v43 = vrot.slane %v2161_v5, 2  ;;  %v2320_v60 = vadd.f32 %v2319_v6, %v2318_v8 }
 0x210   :  { %v2154_v21 = vadd.f32 %v2153_v57, %v2152_v37  ;;  %v2101_v27 = vadd.f32 %v2100_v36, %v2099_v28  ;;  %v2303_v19 = vmax.f32 %v2301_v41, %v2302_v12  ;;  %v6043_v14 = vadd.f32 %v2502_v20, %v2501_v35  ;;  %v7302_v35 = vld [vmem:[#allocation12_spill] sm:$0xff] }
 0x211   :  { %v2137_v52 = vrot.slane %v2136_v11, 1  ;;  %v2146_v38 = vrot.slane %v2145_v17, 1  ;;  %v2163_v3 = vadd.f32 %v2162_v43, %v2161_v5  ;;  %v2321_v25 = vrot.slane %v2320_v60, 2 }
 0x212   :  { %v2155_v13 = vrot.slane %v2154_v21, 1  ;;  %3968 = vrcp.f32 %v2101_v27  ;;  %v2306_v46 = vsub.f32 %v5963_v42, %v2303_v19  ;;  %v2307_v4 = vsub.f32 %v5980_v45, %v2303_v19 }
 0x213   :  { %v2138_v47 = vadd.f32 %v2137_v52, %v2136_v11  ;;  %v2147_v32 = vadd.f32 %v2146_v38, %v2145_v17  ;;  %v2164_v33 = vrot.slane %v2163_v3, 1  ;;  %v2322_v58 = vadd.f32 %v2321_v25, %v2320_v60 }
 0x214   :  { %v2156_v63 = vadd.f32 %v2155_v13, %v2154_v21  ;;  %v2312_v22 = vmul.f32 1.442695, %v2306_v46  ;;  %v2314_v56 = vmul.f32 1.442695, %v2307_v4  ;;  %v2518_v20 = vsel %vm168_vm0, %v6041_v59, -inf  ;;  %v7303_v21 = vld [vmem:[#allocation32_spill] sm:$0xff] }
 0x215   :  { %2202 = vst.msk [vmem:[#allocation8 + $0x8] sm:$0x1] %vm345_vm1, %v2138_v47  ;;  %2203 = vst.msk [vmem:[#allocation8 + $0x18] sm:$0x1] %vm345_vm1, %v2147_v32  ;;  %v2165_v43 = vadd.f32 %v2164_v33, %v2163_v3  ;;  %v2323_v40 = vrot.slane %v2322_v58, 1  ;;  %v2519_v42 = vsel %vm168_vm0, %v6043_v14, -inf  ;;  %v2461_v45 = vrot.slane %v5692_v54, %v7297_v0 }
 0x216   :  { %2204 = vst.msk [vmem:[#allocation8 + $0x28] sm:$0x1] %vm345_vm1, %v2156_v63  ;;  %3970 = vpow2.f32 %v2312_v22  ;;  %v2520_v17 = vmax.f32 %v2518_v20, %v2519_v42  ;;  %v2465_v8 = vrot.slane %v5697_v23, %v7297_v0  ;;  %v2469_v37 = vrot.slane %v5699_v39, %v7297_v0 }
 0x217   :  { %2205 = vst.msk [vmem:[#allocation8 + $0x38] sm:$0x1] %vm345_vm1, %v2165_v43  ;;  %v2324_v28 = vadd.f32 %v2323_v40, %v2322_v58  ;;  %3972 = vpow2.f32 %v2314_v56  ;;  %v2473_v41 = vrot.slane %v7284_v55, %v7297_v0  ;;  %v2482_v50 = vmul.f32 %v5877_v34, %v2461_v45  ;;  %v7304_v56 = vld [vmem:[#allocation17_spill] sm:$0xff] }
 0x218   :  { %v2521_v7 = vrot.slane %v2520_v17, 4  ;;  %v2483_v5 = vmul.f32 %v5882_v26, %v2461_v45  ;;  %v2484_v6 = vmul.f32 %v5891_v10, %v2465_v8  ;;  %v2485_v57 = vmul.f32 %v5898_v2, %v2465_v8 }
 0x219   :  { %3974 = vrcp.f32 %v2324_v28  ;;  %v2486_v36 = vmul.f32 %v5905_v30, %v2469_v37  ;;  %v2487_v12 = vmul.f32 %v5910_v9, %v2469_v37  ;;  %v2488_v11 = vmul.f32 %v7302_v35, %v2473_v41 }
 0x21a   :  { %v2522_v60 = vmax.f32 %v2520_v17, %v2521_v7  ;;  %v2489_v19 = vmul.f32 %v7303_v21, %v2473_v41  ;;  %v2504_v0 = vsel %vm168_vm0, %v2482_v50, 0.0  ;;  %v2505_v52 = vsel %vm168_vm0, %v2484_v6, 0.0 }
 0x21b   :  { %v2506_v38 = vadd.f32 %v2505_v52, %v2504_v0  ;;  %v2507_v3 = vsel %vm168_vm0, %v2486_v36, 0.0  ;;  %v2509_v25 = vsel %vm168_vm0, %v2488_v11, 0.0  ;;  %v2511_v13 = vsel %vm168_vm0, %v2483_v5, 0.0 }
 0x21c   :  { %v3969_v46 = vpop.eup %3968  ;;  %v2523_v4 = vrot.slane %v2522_v60, 2  ;;  %v2512_v47 = vsel %vm168_vm0, %v2485_v57, 0.0  ;;  %v2514_v32 = vsel %vm168_vm0, %v2487_v12, 0.0  ;;  %v2516_v33 = vsel %vm168_vm0, %v2489_v19, 0.0 }
 0x21d   :  { %v2105_v58 = vmul.f32 %v3969_v46, %v2101_v27  ;;  %v2508_v63 = vadd.f32 %v2507_v3, %v2506_v38  ;;  %v2513_v22 = vadd.f32 %v2512_v47, %v2511_v13  ;;  %v2677_v20 = vrot.slane %v7270_v18, %v7304_v56 }
 0x21e   :  { %v2524_v43 = vmax.f32 %v2522_v60, %v2523_v4  ;;  %v2681_v40 = vrot.slane %v5592_v15, %v7304_v56  ;;  %v2685_v42 = vrot.slane %v5596_v61, %v7304_v56  ;;  %v6087_v45 = vrot.slane %v7283_v31, %v7304_v56 }
 0x21f   :  { %v2107_v17 = vsub.f32 2.0, %v2105_v58  ;;  %v6089_v8 = vadd.f32 %v2509_v25, %v2508_v63  ;;  %v2515_v27 = vadd.f32 %v2514_v32, %v2513_v22  ;;  %v6092_v37 = vmul.f32 %v5969_v49, %v2677_v20  ;;  %v7305_v63 = vld [vmem:[#allocation24_spill] sm:$0xff] }
 0x220   :  { %v6094_v41 = vpop.eup %3970  ;;  %v2525_v50 = vrot.slane %v2524_v43, 1  ;;  %v6097_v7 = vmul.f32 %v5972_v1, %v2677_v20  ;;  %v6100_v5 = vmul.f32 %v5977_v62, %v2681_v40  ;;  %v6103_v6 = vmul.f32 %v5982_v24, %v2681_v40  ;;  %v7306_v20 = vld [vmem:[#allocation25_spill] sm:$0xff]  ;;  %v7307_v40 = vld [vmem:[#allocation26_spill] sm:$0xff] }
 0x221   :  { %v6105_v57 = vpop.eup %3972  ;;  %v2109_v36 = vmul.f32 %v3969_v46, %v2107_v17  ;;  %v2325_v12 = vsel %vm168_vm0, %v6094_v41, 0.0  ;;  %v6109_v11 = vadd.f32 %v2516_v33, %v2515_v27  ;;  %v2527_v60 = vsel %vm168_vm0, %v6089_v8, -inf }
 0x222   :  { %v2326_v19 = vsel %vm168_vm0, %v6105_v57, 0.0  ;;  %v2526_v0 = vmax.f32 %v2524_v43, %v2525_v50  ;;  %v6116_v52 = vmul.f32 %v5985_v29, %v2685_v42  ;;  %v6119_v38 = vmul.f32 %v5988_v16, %v2685_v42  ;;  %v7310_v50 = vld [vmem:[#allocation14_spill] sm:$0xff] }
 0x223   :  { %v3975_v3 = vpop.eup %3974  ;;  %v2112_v25 = vmul.f32 %v5997_v48, %v2109_v36  ;;  %v2113_v13 = vmul.f32 %v6002_v53, %v2109_v36  ;;  %v2327_v46 = vadd.f32 %v2326_v19, %v2325_v12  ;;  %v2528_v4 = vsel %vm168_vm0, %v6109_v11, -inf  ;;  %v7308_v48 = vld [vmem:[#allocation28_spill] sm:$0xff]  ;;  %v7309_v53 = vld [vmem:[#allocation29_spill] sm:$0xff]  ;;  %v7311_v12 = vld [vmem:[#allocation15_spill] sm:$0xff] }
 0x224   :  { %v2336_v47 = vmul.f32 %v3975_v3, %v2324_v28  ;;  %v2536_v32 = vsub.f32 %v6041_v59, %v2526_v0  ;;  %v2537_v33 = vsub.f32 %v6043_v14, %v2526_v0  ;;  %v6127_v58 = vmax.f32 %v2527_v60, %v2528_v4  ;;  %v7312_v19 = vld [vmem:[#allocation21_spill] sm:$0xff] }
 0x225   :  { %v2122_v22 = vmul.f32 %v7305_v63, %v2112_v25  ;;  %v2123_v43 = vmul.f32 %v7306_v20, %v2113_v13  ;;  %v2124_v42 = vmul.f32 %v7307_v40, %v2112_v25  ;;  %v2125_v17 = vmul.f32 %v7308_v48, %v2113_v13 }
 0x226   :  { %v2126_v27 = vmul.f32 %v7309_v53, %v2112_v25  ;;  %v2127_v36 = vmul.f32 %v7310_v50, %v2113_v13  ;;  %v2128_v28 = vmul.f32 %v7311_v12, %v2112_v25  ;;  %v2129_v59 = vmul.f32 %v7312_v19, %v2113_v13 }
 0x227   :  { %v2166_v14 = vsel %vm168_vm0, %v2122_v22, 0.0  ;;  %v2167_v60 = vsel %vm168_vm0, %v2123_v43, 0.0  ;;  %v2175_v0 = vsel %vm168_vm0, %v2124_v42, 0.0  ;;  %v2176_v4 = vsel %vm168_vm0, %v2125_v17, 0.0 }
 0x228   :  { %v2168_v63 = vadd.f32 %v2167_v60, %v2166_v14  ;;  %v2177_v20 = vadd.f32 %v2176_v4, %v2175_v0  ;;  %v2184_v40 = vsel %vm168_vm0, %v2126_v27, 0.0  ;;  %v2185_v48 = vsel %vm168_vm0, %v2127_v36, 0.0 }
 0x229   :  { %v2186_v53 = vadd.f32 %v2185_v48, %v2184_v40  ;;  %v2193_v50 = vsel %vm168_vm0, %v2128_v28, 0.0  ;;  %v2194_v25 = vsel %vm168_vm0, %v2129_v59, 0.0  ;;  %v2338_v13 = vsub.f32 2.0, %v2336_v47 }
 0x22a   :  { %v2169_v12 = vrot.slane %v2168_v63, 4  ;;  %v2178_v22 = vrot.slane %v2177_v20, 4  ;;  %v2195_v19 = vadd.f32 %v2194_v25, %v2193_v50  ;;  %v2328_v43 = vrot.slane %v2327_v46, 4  ;;  %v6147_v25 = vld [vmem:[#allocation7] sm:$0xff] }
 0x22b   :  { %v2187_v16 = vrot.slane %v2186_v53, 4  ;;  %v2340_v42 = vmul.f32 %v3975_v3, %v2338_v13  ;;  %v2540_v29 = vmul.f32 1.442695, %v2536_v32  ;;  %v2542_v17 = vmul.f32 1.442695, %v2537_v33  ;;  %v6150_v32 = vld [vmem:[#allocation7 + $0x8] sm:$0xff] }
 0x22c   :  { %v2170_v14 = vadd.f32 %v2169_v12, %v2168_v63  ;;  %v2179_v60 = vadd.f32 %v2178_v22, %v2177_v20  ;;  %v2196_v0 = vrot.slane %v2195_v19, 4  ;;  %v2329_v27 = vadd.f32 %v2328_v43, %v2327_v46  ;;  %7313 = vst [vmem:[#allocation16_spill] sm:$0xff] %v6150_v32  ;;  %v6153_v46 = vld [vmem:[#allocation7 + $0x10] sm:$0xff]  ;;  %v6156_v63 = vld [vmem:[#allocation7 + $0x18] sm:$0xff] }
 0x22d   :  { %v2188_v4 = vadd.f32 %v2187_v16, %v2186_v53  ;;  %v2342_v36 = vmul.f32 %v6029_v44, %v2340_v42  ;;  %v2343_v28 = vmul.f32 %v6033_v51, %v2340_v42  ;;  %3976 = vpow2.f32 %v2540_v29  ;;  %7314 = vst [vmem:[#allocation12_spill] sm:$0xff] %v6153_v46  ;;  %7315 = vst [vmem:[#allocation32_spill] sm:$0xff] %v6156_v63 }
 0x22e   :  { %v2171_v59 = vrot.slane %v2170_v14, 2  ;;  %v2180_v47 = vrot.slane %v2179_v60, 2  ;;  %v2197_v40 = vadd.f32 %v2196_v0, %v2195_v19  ;;  %v2330_v48 = vrot.slane %v2329_v27, 2 }
 0x22f   :  { %v2189_v50 = vrot.slane %v2188_v4, 2  ;;  %v2346_v3 = vmul.f32 %v6147_v25, %v2342_v36  ;;  %v2347_v33 = vmul.f32 %v6150_v32, %v2343_v28  ;;  %v2348_v16 = vmul.f32 %v6153_v46, %v2342_v36 }
 0x230   :  { %v2172_v44 = vadd.f32 %v2171_v59, %v2170_v14  ;;  %v2181_v51 = vadd.f32 %v2180_v47, %v2179_v60  ;;  %v2198_v29 = vrot.slane %v2197_v40, 2  ;;  %v2349_v20 = vmul.f32 %v6156_v63, %v2343_v28  ;;  %v6163_v60 = vld [vmem:[#allocation7 + $0x20] sm:$0xff]  ;;  %v6166_v47 = vld [vmem:[#allocation7 + $0x28] sm:$0xff] }
 0x231   :  { %v2190_v53 = vadd.f32 %v2189_v50, %v2188_v4  ;;  %v2362_v13 = vsel %vm168_vm0, %v2346_v3, 0.0  ;;  %v2363_v12 = vsel %vm168_vm0, %v2347_v33, 0.0  ;;  %v2371_v22 = vsel %vm168_vm0, %v2348_v16, 0.0  ;;  %7316 = vst [vmem:[#allocation17_spill] sm:$0xff] %v6163_v60  ;;  %7317 = vst [vmem:[#allocation24_spill] sm:$0xff] %v6166_v47 }
 0x232   :  { %v2173_v19 = vrot.slane %v2172_v44, 1  ;;  %v2182_v43 = vrot.slane %v2181_v51, 1  ;;  %v2199_v42 = vadd.f32 %v2198_v29, %v2197_v40  ;;  %v2364_v0 = vadd.f32 %v2363_v12, %v2362_v13 }
 0x233   :  { %v2191_v32 = vrot.slane %v2190_v53, 1  ;;  %v2372_v14 = vsel %vm168_vm0, %v2349_v20, 0.0  ;;  %v2350_v59 = vmul.f32 %v6163_v60, %v2342_v36  ;;  %v2351_v4 = vmul.f32 %v6166_v47, %v2343_v28  ;;  %v6173_v60 = vld [vmem:[#allocation7 + $0x30] sm:$0xff] }
 0x234   :  { %v2174_v50 = vadd.f32 %v2173_v19, %v2172_v44  ;;  %v2183_v3 = vadd.f32 %v2182_v43, %v2181_v51  ;;  %v2200_v33 = vrot.slane %v2199_v42, 1  ;;  %v2365_v63 = vrot.slane %v2364_v0, 4  ;;  %7318 = vst [vmem:[#allocation25_spill] sm:$0xff] %v6173_v60 }
 0x235   :  { %v2192_v16 = vadd.f32 %v2191_v32, %v2190_v53  ;;  %v2373_v46 = vadd.f32 %v2372_v14, %v2371_v22  ;;  %v2380_v40 = vsel %vm168_vm0, %v2350_v59, 0.0  ;;  %v2381_v29 = vsel %vm168_vm0, %v2351_v4, 0.0  ;;  %v6179_v53 = vld [vmem:[#allocation7 + $0x38] sm:$0xff] }
 0x236   :  { %2206 = vst.msk [vmem:[#allocation8 + $0x48] sm:$0x1] %vm345_vm1, %v2174_v50  ;;  %2207 = vst.msk [vmem:[#allocation8 + $0x58] sm:$0x1] %vm345_vm1, %v2183_v3  ;;  %v2201_v20 = vadd.f32 %v2200_v33, %v2199_v42  ;;  %v2366_v13 = vadd.f32 %v2365_v63, %v2364_v0  ;;  %v2382_v12 = vadd.f32 %v2381_v29, %v2380_v40  ;;  %3978 = vpow2.f32 %v2542_v17  ;;  %v7320_v17 = vld [vmem:[#allocation22_spill] sm:$0xff] }
 0x237   :  { %v2352_v44 = vmul.f32 %v6173_v60, %v2342_v36  ;;  %v6176_v51 = vpop.eup %3976  ;;  %2208 = vst.msk [vmem:[#allocation8 + $0x68] sm:$0x1] %vm345_vm1, %v2192_v16  ;;  %v2374_v32 = vrot.slane %v2373_v46, 4  ;;  %7319 = vst [vmem:[#allocation26_spill] sm:$0xff] %v6179_v53  ;;  %v2353_v22 = vmul.f32 %v6179_v53, %v2343_v28  ;;  %v2331_v19 = vadd.f32 %v2330_v48, %v2329_v27  ;;  %v7321_v40 = vld [vmem:[#allocation18_spill] sm:$0xff] }
 0x238   :  { %2209 = vst.msk [vmem:[#allocation8 + $0x78] sm:$0x1] %vm345_vm1, %v2201_v20  ;;  %v2367_v43 = vrot.slane %v2366_v13, 2  ;;  %v2383_v63 = vrot.slane %v2382_v12, 4  ;;  %v2548_v36 = vsel %vm168_vm0, %v6176_v51, 0.0  ;;  %v2530_v4 = vrot.slane %v6127_v58, 4 }
 0x239   :  { %v2389_v42 = vsel %vm168_vm0, %v2352_v44, 0.0  ;;  %v2375_v0 = vadd.f32 %v2374_v32, %v2373_v46  ;;  %v2390_v14 = vsel %vm168_vm0, %v2353_v22, 0.0  ;;  %v2332_v59 = vrot.slane %v2331_v19, 1 }
 0x23a   :  { %v2368_v50 = vadd.f32 %v2367_v43, %v2366_v13  ;;  %v2384_v3 = vadd.f32 %v2383_v63, %v2382_v12  ;;  %v2391_v28 = vadd.f32 %v2390_v14, %v2389_v42  ;;  %v2712_v27 = vmul.f32 %v7320_v17, %v6087_v45 }
 0x23b   :  { %v2376_v48 = vrot.slane %v2375_v0, 2  ;;  %v2333_v33 = vadd.f32 %v2332_v59, %v2331_v19  ;;  %v2531_v16 = vmax.f32 %v6127_v58, %v2530_v4  ;;  %v2713_v29 = vmul.f32 %v7321_v40, %v6087_v45 }
 0x23c   :  { %v2369_v20 = vrot.slane %v2368_v50, 1  ;;  %v2385_v46 = vrot.slane %v2384_v3, 2  ;;  %v2392_v44 = vrot.slane %v2391_v28, 4  ;;  %v2722_v32 = vsel %vm168_vm0, %v6092_v37, 0.0 }
 0x23d   :  { %v2377_v22 = vadd.f32 %v2376_v48, %v2375_v0  ;;  %3980 = vrcp.f32 %v2333_v33  ;;  %v2532_v13 = vrot.slane %v2531_v16, 2  ;;  %v2723_v12 = vsel %vm168_vm0, %v6100_v5, 0.0 }
 0x23e   :  { %v2370_v43 = vadd.f32 %v2369_v20, %v2368_v50  ;;  %v2386_v63 = vadd.f32 %v2385_v46, %v2384_v3  ;;  %v2393_v19 = vadd.f32 %v2392_v44, %v2391_v28  ;;  %v2724_v42 = vadd.f32 %v2723_v12, %v2722_v32 }
 0x23f   :  { %v2378_v58 = vrot.slane %v2377_v22, 1  ;;  %v2533_v14 = vmax.f32 %v2531_v16, %v2532_v13  ;;  %v2725_v45 = vsel %vm168_vm0, %v6116_v52, 0.0  ;;  %v2727_v59 = vsel %vm168_vm0, %v2712_v27, 0.0 }
 0x240   :  { %2434 = vst.msk [vmem:[#allocation8 + $0x9] sm:$0x1] %vm345_vm1, %v2370_v43  ;;  %v2387_v37 = vrot.slane %v2386_v63, 1  ;;  %v2394_v0 = vrot.slane %v2393_v19, 2  ;;  %v2726_v4 = vadd.f32 %v2725_v45, %v2724_v42  ;;  %v2729_v48 = vsel %vm168_vm0, %v6097_v7, 0.0  ;;  %v6203_v5 = vpop.eup %3978 }
 0x241   :  { %v2379_v50 = vadd.f32 %v2378_v58, %v2377_v22  ;;  %v2534_v3 = vrot.slane %v2533_v14, 1  ;;  %v2730_v28 = vsel %vm168_vm0, %v6103_v6, 0.0  ;;  %v2732_v52 = vsel %vm168_vm0, %v6119_v38, 0.0 }
 0x242   :  { %v2388_v16 = vadd.f32 %v2387_v37, %v2386_v63  ;;  %v2395_v27 = vadd.f32 %v2394_v0, %v2393_v19  ;;  %v2549_v20 = vsel %vm168_vm0, %v6203_v5, 0.0  ;;  %v6211_v46 = vadd.f32 %v2727_v59, %v2726_v4 }
 0x243   :  { %2435 = vst.msk [vmem:[#allocation8 + $0x19] sm:$0x1] %vm345_vm1, %v2379_v50  ;;  %v2550_v7 = vadd.f32 %v2549_v20, %v2548_v36  ;;  %v2535_v44 = vmax.f32 %v2533_v14, %v2534_v3  ;;  %v2731_v32 = vadd.f32 %v2730_v28, %v2729_v48  ;;  %v2734_v22 = vsel %vm168_vm0, %v2713_v29, 0.0 }
 0x244   :  { %2436 = vst.msk [vmem:[#allocation8 + $0x29] sm:$0x1] %vm345_vm1, %v2388_v16  ;;  %v2396_v6 = vrot.slane %v2395_v27, 1  ;;  %v2750_v38 = vsel %vm168_vm0, %v6211_v46, -inf  ;;  %v2693_v13 = vrot.slane %v5692_v54, %v7304_v56  ;;  %v2697_v12 = vrot.slane %v5697_v23, %v7304_v56 }
 0x245   :  { %v2551_v43 = vrot.slane %v2550_v7, 4  ;;  %v2538_v63 = vsub.f32 %v6089_v8, %v2535_v44  ;;  %v2539_v36 = vsub.f32 %v6109_v11, %v2535_v44  ;;  %v2733_v19 = vadd.f32 %v2732_v52, %v2731_v32 }
 0x246   :  { %v2397_v42 = vadd.f32 %v2396_v6, %v2395_v27  ;;  %v2701_v29 = vrot.slane %v5699_v39, %v7304_v56  ;;  %v2705_v58 = vrot.slane %v7284_v55, %v7304_v56  ;;  %v2714_v14 = vmul.f32 %v5877_v34, %v2693_v13 }
 0x247   :  { %v3981_v45 = vpop.eup %3980  ;;  %v2552_v59 = vadd.f32 %v2551_v43, %v2550_v7  ;;  %v2544_v37 = vmul.f32 1.442695, %v2538_v63  ;;  %v2546_v0 = vmul.f32 1.442695, %v2539_v36  ;;  %v6229_v4 = vadd.f32 %v2734_v22, %v2733_v19  ;;  %v6254_v36 = vld [vmem:[#allocation7 + $0x40] sm:$0xff] }
 0x248   :  { %2437 = vst.msk [vmem:[#allocation8 + $0x39] sm:$0x1] %vm345_vm1, %v2397_v42  ;;  %v2337_v8 = vmul.f32 %v3981_v45, %v2333_v33  ;;  %v2715_v11 = vmul.f32 %v5882_v26, %v2693_v13  ;;  %v2716_v48 = vmul.f32 %v5891_v10, %v2697_v12  ;;  %v2717_v50 = vmul.f32 %v5898_v2, %v2697_v12  ;;  %v6257_v42 = vld [vmem:[#allocation7 + $0x48] sm:$0xff] }
 0x249   :  { %v2553_v3 = vrot.slane %v2552_v59, 2  ;;  %3982 = vpow2.f32 %v2544_v37  ;;  %v2751_v34 = vsel %vm168_vm0, %v6229_v4, -inf  ;;  %v2718_v56 = vmul.f32 %v5905_v30, %v2701_v29  ;;  %v6269_v37 = vld [vmem:[#allocation7 + $0x68] sm:$0xff] }
 0x24a   :  { %v2339_v28 = vsub.f32 2.0, %v2337_v8  ;;  %3984 = vpow2.f32 %v2546_v0  ;;  %v2752_v52 = vmax.f32 %v2750_v38, %v2751_v34  ;;  %v2719_v16 = vmul.f32 %v5910_v9, %v2701_v29  ;;  %v6272_v8 = vld [vmem:[#allocation7 + $0x70] sm:$0xff] }
 0x24b   :  { %v2554_v27 = vadd.f32 %v2553_v3, %v2552_v59  ;;  %v2720_v33 = vmul.f32 %v7302_v35, %v2705_v58  ;;  %v6241_v26 = vmul.f32 %v7303_v21, %v2705_v58  ;;  %v2736_v10 = vsel %vm168_vm0, %v2714_v14, 0.0  ;;  %v6263_v58 = vld [vmem:[#allocation7 + $0x58] sm:$0xff] }
 0x24c   :  { %v2341_v2 = vmul.f32 %v3981_v45, %v2339_v28  ;;  %v2753_v20 = vrot.slane %v2752_v52, 4  ;;  %v2737_v7 = vsel %vm168_vm0, %v2716_v48, 0.0  ;;  %v2739_v44 = vsel %vm168_vm0, %v2718_v56, 0.0  ;;  %v6266_v45 = vld [vmem:[#allocation7 + $0x60] sm:$0xff]  ;;  %v6275_v48 = vld [vmem:[#allocation7 + $0x78] sm:$0xff] }
 0x24d   :  { %v2555_v30 = vrot.slane %v2554_v27, 1  ;;  %v2738_v32 = vadd.f32 %v2737_v7, %v2736_v10  ;;  %v2741_v22 = vsel %vm168_vm0, %v2720_v33, 0.0  ;;  %v2743_v9 = vsel %vm168_vm0, %v2715_v11, 0.0 }
 0x24e   :  { %v2344_v6 = vmul.f32 %v6094_v41, %v2341_v2  ;;  %v2345_v35 = vmul.f32 %v6105_v57, %v2341_v2  ;;  %v2754_v21 = vmax.f32 %v2752_v52, %v2753_v20  ;;  %v2744_v38 = vsel %vm168_vm0, %v2717_v50, 0.0  ;;  %v6260_v41 = vld [vmem:[#allocation7 + $0x50] sm:$0xff] }
 0x24f   :  { %v6251_v13 = vadd.f32 %v2555_v30, %v2554_v27  ;;  %v2740_v12 = vadd.f32 %v2739_v44, %v2738_v32  ;;  %v2745_v43 = vadd.f32 %v2744_v38, %v2743_v9  ;;  %v2746_v63 = vsel %vm168_vm0, %v2719_v16, 0.0 }
 0x250   :  { %v2354_v19 = vmul.f32 %v6254_v36, %v2344_v6  ;;  %v2355_v29 = vmul.f32 %v6257_v42, %v2345_v35  ;;  %v2356_v57 = vmul.f32 %v6260_v41, %v2344_v6  ;;  %v2357_v14 = vmul.f32 %v6263_v58, %v2345_v35 }
 0x251   :  { %v2358_v59 = vmul.f32 %v6266_v45, %v2344_v6  ;;  %v2359_v0 = vmul.f32 %v6269_v37, %v2345_v35  ;;  %v2360_v11 = vmul.f32 %v6272_v8, %v2344_v6  ;;  %v2361_v50 = vmul.f32 %v6275_v48, %v2345_v35 }
 0x252   :  { %v2398_v3 = vsel %vm168_vm0, %v2354_v19, 0.0  ;;  %v2399_v34 = vsel %vm168_vm0, %v2355_v29, 0.0  ;;  %v2407_v56 = vsel %vm168_vm0, %v2356_v57, 0.0  ;;  %v2408_v28 = vsel %vm168_vm0, %v2357_v14, 0.0 }
 0x253   :  { %v6282_v52 = vpop.eup %3982  ;;  %v2400_v16 = vadd.f32 %v2399_v34, %v2398_v3  ;;  %v2409_v27 = vadd.f32 %v2408_v28, %v2407_v56  ;;  %v2416_v33 = vsel %vm168_vm0, %v2358_v59, 0.0  ;;  %v2417_v10 = vsel %vm168_vm0, %v2359_v0, 0.0 }
 0x254   :  { %v6286_v2 = vpop.eup %3984  ;;  %v2418_v20 = vadd.f32 %v2417_v10, %v2416_v33  ;;  %v2425_v7 = vsel %vm168_vm0, %v2360_v11, 0.0  ;;  %v2426_v44 = vsel %vm168_vm0, %v2361_v50, 0.0  ;;  %3986 = vrcp.f32 %v6251_v13 }
 0x255   :  { %v2401_v30 = vrot.slane %v2400_v16, 4  ;;  %v2410_v32 = vrot.slane %v2409_v27, 4  ;;  %v2427_v9 = vadd.f32 %v2426_v44, %v2425_v7  ;;  %v2557_v6 = vsel %vm168_vm0, %v6282_v52, 0.0 }
 0x256   :  { %v2419_v35 = vrot.slane %v2418_v20, 4  ;;  %v2558_v38 = vsel %vm168_vm0, %v6286_v2, 0.0  ;;  %v2755_v19 = vrot.slane %v2754_v21, 2  ;;  %v6295_v29 = vadd.f32 %v2741_v22, %v2740_v12 }
 0x257   :  { %v2402_v57 = vadd.f32 %v2401_v30, %v2400_v16  ;;  %v2411_v14 = vadd.f32 %v2410_v32, %v2409_v27  ;;  %v2428_v59 = vrot.slane %v2427_v9, 4  ;;  %v2559_v0 = vadd.f32 %v2558_v38, %v2557_v6 }
 0x258   :  { %v2420_v11 = vadd.f32 %v2419_v35, %v2418_v20  ;;  %v2756_v50 = vmax.f32 %v2754_v21, %v2755_v19  ;;  %v2747_v3 = vadd.f32 %v2746_v63, %v2745_v43  ;;  %v2748_v34 = vsel %vm168_vm0, %v6241_v26, 0.0  ;;  %v7322_v63 = vld [vmem:[#allocation20_spill] sm:$0xff] }
 0x259   :  { %v2403_v56 = vrot.slane %v2402_v57, 2  ;;  %v2412_v28 = vrot.slane %v2411_v14, 2  ;;  %v2429_v33 = vadd.f32 %v2428_v59, %v2427_v9  ;;  %v2560_v10 = vrot.slane %v2559_v0, 4 }
 0x25a   :  { %v2421_v7 = vrot.slane %v2420_v11, 2  ;;  %v2757_v44 = vrot.slane %v2756_v50, 1  ;;  %v6299_v55 = vadd.f32 %v2748_v34, %v2747_v3  ;;  %v2759_v22 = vsel %vm168_vm0, %v6295_v29, -inf }
 0x25b   :  { %v2404_v12 = vadd.f32 %v2403_v56, %v2402_v57  ;;  %v2413_v16 = vadd.f32 %v2412_v28, %v2411_v14  ;;  %v2430_v27 = vrot.slane %v2429_v33, 2  ;;  %v2561_v20 = vadd.f32 %v2560_v10, %v2559_v0 }
 0x25c   :  { %v2422_v21 = vadd.f32 %v2421_v7, %v2420_v11  ;;  %v2758_v43 = vmax.f32 %v2756_v50, %v2757_v44  ;;  %v2760_v26 = vsel %vm168_vm0, %v6299_v55, -inf  ;;  %v2909_v30 = vrot.slane %v7270_v18, %v7322_v63 }
 0x25d   :  { %v2405_v32 = vrot.slane %v2404_v12, 1  ;;  %v2414_v9 = vrot.slane %v2413_v16, 1  ;;  %v2431_v6 = vadd.f32 %v2430_v27, %v2429_v33  ;;  %v2562_v35 = vrot.slane %v2561_v20, 2 }
 0x25e   :  { %v3987_v38 = vpop.eup %3986  ;;  %v2423_v19 = vrot.slane %v2422_v21, 1  ;;  %v2768_v59 = vsub.f32 %v6211_v46, %v2758_v43  ;;  %v2769_v57 = vsub.f32 %v6229_v4, %v2758_v43  ;;  %v2761_v14 = vmax.f32 %v2759_v22, %v2760_v26 }
 0x25f   :  { %v2406_v0 = vadd.f32 %v2405_v32, %v2404_v12  ;;  %v2415_v11 = vadd.f32 %v2414_v9, %v2413_v16  ;;  %v2432_v50 = vrot.slane %v2431_v6, 1  ;;  %v2568_v3 = vmul.f32 %v3987_v38, %v6251_v13 }
 0x260   :  { %v2424_v34 = vadd.f32 %v2423_v19, %v2422_v21  ;;  %v2563_v56 = vadd.f32 %v2562_v35, %v2561_v20  ;;  %v2772_v28 = vmul.f32 1.442695, %v2768_v59  ;;  %v2774_v10 = vmul.f32 1.442695, %v2769_v57  ;;  %v7323_v35 = vld [vmem:[#allocation13_spill] sm:$0xff]  ;;  %v7324_v19 = vld [vmem:[#allocation19_spill] sm:$0xff] }
 0x261   :  { %2438 = vst.msk [vmem:[#allocation8 + $0x49] sm:$0x1] %vm345_vm1, %v2406_v0  ;;  %2439 = vst.msk [vmem:[#allocation8 + $0x59] sm:$0x1] %vm345_vm1, %v2415_v11  ;;  %v2433_v33 = vadd.f32 %v2432_v50, %v2431_v6  ;;  %v2570_v7 = vsub.f32 2.0, %v2568_v3  ;;  %v2762_v44 = vrot.slane %v2761_v14, 4  ;;  %v2913_v46 = vrot.slane %v5592_v15, %v7322_v63 }
 0x262   :  { %2440 = vst.msk [vmem:[#allocation8 + $0x69] sm:$0x1] %vm345_vm1, %v2424_v34  ;;  %v2564_v4 = vrot.slane %v2563_v56, 1  ;;  %3988 = vpow2.f32 %v2772_v28  ;;  %v2917_v13 = vrot.slane %v5596_v61, %v7322_v63  ;;  %v2921_v22 = vrot.slane %v7283_v31, %v7322_v63  ;;  %v7328_v0 = vld [vmem:[#allocation17_spill] sm:$0xff] }
 0x263   :  { %2441 = vst.msk [vmem:[#allocation8 + $0x79] sm:$0x1] %vm345_vm1, %v2433_v33  ;;  %v2572_v12 = vmul.f32 %v3987_v38, %v2570_v7  ;;  %3990 = vpow2.f32 %v2774_v10  ;;  %v2763_v16 = vmax.f32 %v2761_v14, %v2762_v44  ;;  %v2938_v27 = vmul.f32 %v5969_v49, %v2909_v30 }
 0x264   :  { %v2565_v20 = vadd.f32 %v2564_v4, %v2563_v56  ;;  %v6322_v21 = vmul.f32 %v5972_v1, %v2909_v30  ;;  %v2940_v43 = vmul.f32 %v5977_v62, %v2913_v46  ;;  %v6326_v26 = vmul.f32 %v5982_v24, %v2913_v46  ;;  %v7325_v24 = vld [vmem:[#allocation16_spill] sm:$0xff] }
 0x265   :  { %v2574_v32 = vmul.f32 %v6176_v51, %v2572_v12  ;;  %v2575_v9 = vmul.f32 %v6203_v5, %v2572_v12  ;;  %v2764_v6 = vrot.slane %v2763_v16, 2  ;;  %v2942_v38 = vmul.f32 %v7323_v35, %v2917_v13  ;;  %v7326_v51 = vld [vmem:[#allocation12_spill] sm:$0xff] }
 0x266   :  { %3992 = vrcp.f32 %v2565_v20  ;;  %v6332_v59 = vmul.f32 %v7324_v19, %v2917_v13  ;;  %v6335_v49 = vmul.f32 %v7320_v17, %v2921_v22  ;;  %v6338_v1 = vmul.f32 %v7321_v40, %v2921_v22  ;;  %v7327_v5 = vld [vmem:[#allocation32_spill] sm:$0xff] }
 0x267   :  { %v2578_v62 = vmul.f32 %v6147_v25, %v2574_v32  ;;  %v2579_v30 = vmul.f32 %v7325_v24, %v2575_v9  ;;  %v2580_v57 = vmul.f32 %v7326_v51, %v2574_v32  ;;  %v2581_v14 = vmul.f32 %v7327_v5, %v2575_v9 }
 0x268   :  { %v2582_v11 = vmul.f32 %v7328_v0, %v2574_v32  ;;  %v2583_v50 = vmul.f32 %v6166_v47, %v2575_v9  ;;  %v2584_v3 = vmul.f32 %v6173_v60, %v2574_v32  ;;  %v2585_v17 = vmul.f32 %v6179_v53, %v2575_v9 }
 0x269   :  { %v2594_v34 = vsel %vm168_vm0, %v2578_v62, 0.0  ;;  %v2595_v40 = vsel %vm168_vm0, %v2579_v30, 0.0  ;;  %v2603_v56 = vsel %vm168_vm0, %v2580_v57, 0.0  ;;  %v2604_v28 = vsel %vm168_vm0, %v2581_v14, 0.0 }
 0x26a   :  { %v2596_v10 = vadd.f32 %v2595_v40, %v2594_v34  ;;  %v2605_v33 = vadd.f32 %v2604_v28, %v2603_v56  ;;  %v2612_v7 = vsel %vm168_vm0, %v2582_v11, 0.0  ;;  %v2613_v44 = vsel %vm168_vm0, %v2583_v50, 0.0 }
 0x26b   :  { %v2614_v46 = vadd.f32 %v2613_v44, %v2612_v7  ;;  %v2621_v4 = vsel %vm168_vm0, %v2584_v3, 0.0  ;;  %v2622_v13 = vsel %vm168_vm0, %v2585_v17, 0.0  ;;  %v2765_v22 = vmax.f32 %v2763_v16, %v2764_v6 }
 0x26c   :  { %v6356_v12 = vpop.eup %3988  ;;  %v2597_v32 = vrot.slane %v2596_v10, 4  ;;  %v2606_v9 = vrot.slane %v2605_v33, 4  ;;  %v2623_v35 = vadd.f32 %v2622_v13, %v2621_v4  ;;  %v2954_v19 = vsel %vm168_vm0, %v2938_v27, 0.0 }
 0x26d   :  { %v6359_v62 = vpop.eup %3990  ;;  %v2615_v30 = vrot.slane %v2614_v46, 4  ;;  %v2780_v57 = vsel %vm168_vm0, %v6356_v12, 0.0  ;;  %v2766_v14 = vrot.slane %v2765_v22, 1  ;;  %v2955_v11 = vsel %vm168_vm0, %v2940_v43, 0.0 }
 0x26e   :  { %v2598_v50 = vadd.f32 %v2597_v32, %v2596_v10  ;;  %v2607_v3 = vadd.f32 %v2606_v9, %v2605_v33  ;;  %v2624_v17 = vrot.slane %v2623_v35, 4  ;;  %v2781_v16 = vsel %vm168_vm0, %v6359_v62, 0.0 }
 0x26f   :  { %v2616_v6 = vadd.f32 %v2615_v30, %v2614_v46  ;;  %v2782_v34 = vadd.f32 %v2781_v16, %v2780_v57  ;;  %v2767_v40 = vmax.f32 %v2765_v22, %v2766_v14  ;;  %v2956_v56 = vadd.f32 %v2955_v11, %v2954_v19 }
 0x270   :  { %v3993_v27 = vpop.eup %3992  ;;  %v2599_v28 = vrot.slane %v2598_v50, 2  ;;  %v2608_v7 = vrot.slane %v2607_v3, 2  ;;  %v2625_v44 = vadd.f32 %v2624_v17, %v2623_v35  ;;  %v2957_v4 = vsel %vm168_vm0, %v2942_v38, 0.0 }
 0x271   :  { %v2617_v13 = vrot.slane %v2616_v6, 2  ;;  %v2569_v53 = vmul.f32 %v3993_v27, %v2565_v20  ;;  %v2783_v60 = vrot.slane %v2782_v34, 4  ;;  %v2770_v43 = vsub.f32 %v6295_v29, %v2767_v40 }
 0x272   :  { %v2600_v10 = vadd.f32 %v2599_v28, %v2598_v50  ;;  %v2609_v33 = vadd.f32 %v2608_v7, %v2607_v3  ;;  %v2626_v32 = vrot.slane %v2625_v44, 2  ;;  %v2771_v9 = vsub.f32 %v6299_v55, %v2767_v40 }
 0x273   :  { %v2618_v46 = vadd.f32 %v2617_v13, %v2616_v6  ;;  %v2571_v30 = vsub.f32 2.0, %v2569_v53  ;;  %v2784_v22 = vadd.f32 %v2783_v60, %v2782_v34  ;;  %v2776_v19 = vmul.f32 1.442695, %v2770_v43 }
 0x274   :  { %v2601_v57 = vrot.slane %v2600_v10, 1  ;;  %v2610_v14 = vrot.slane %v2609_v33, 1  ;;  %v2627_v11 = vadd.f32 %v2626_v32, %v2625_v44  ;;  %v2778_v35 = vmul.f32 1.442695, %v2771_v9 }
 0x275   :  { %v2619_v17 = vrot.slane %v2618_v46, 1  ;;  %v2573_v38 = vmul.f32 %v3993_v27, %v2571_v30  ;;  %v2785_v16 = vrot.slane %v2784_v22, 2  ;;  %3994 = vpow2.f32 %v2776_v19 }
 0x276   :  { %v2602_v20 = vadd.f32 %v2601_v57, %v2600_v10  ;;  %v2611_v47 = vadd.f32 %v2610_v14, %v2609_v33  ;;  %v2628_v29 = vrot.slane %v2627_v11, 1  ;;  %3996 = vpow2.f32 %v2778_v35 }
 0x277   :  { %v2620_v50 = vadd.f32 %v2619_v17, %v2618_v46  ;;  %v2576_v3 = vmul.f32 %v6282_v52, %v2573_v38  ;;  %v2577_v55 = vmul.f32 %v6286_v2, %v2573_v38  ;;  %v2786_v53 = vadd.f32 %v2785_v16, %v2784_v22 }
 0x278   :  { %2666 = vst.msk [vmem:[#allocation8 + $0xa] sm:$0x1] %vm345_vm1, %v2602_v20  ;;  %2667 = vst.msk [vmem:[#allocation8 + $0x1a] sm:$0x1] %vm345_vm1, %v2611_v47  ;;  %v2629_v60 = vadd.f32 %v2628_v29, %v2627_v11  ;;  %v2958_v6 = vadd.f32 %v2957_v4, %v2956_v56  ;;  %v2959_v34 = vsel %vm168_vm0, %v6335_v49, 0.0  ;;  %v2961_v40 = vsel %vm168_vm0, %v6322_v21, 0.0 }
 0x279   :  { %2668 = vst.msk [vmem:[#allocation8 + $0x2a] sm:$0x1] %vm345_vm1, %v2620_v50  ;;  %v2586_v27 = vmul.f32 %v6254_v36, %v2576_v3  ;;  %v2587_v52 = vmul.f32 %v6257_v42, %v2577_v55  ;;  %v2588_v2 = vmul.f32 %v6260_v41, %v2576_v3  ;;  %v2589_v28 = vmul.f32 %v6263_v58, %v2577_v55 }
 0x27a   :  { %2669 = vst.msk [vmem:[#allocation8 + $0x3a] sm:$0x1] %vm345_vm1, %v2629_v60  ;;  %v2590_v47 = vmul.f32 %v6266_v45, %v2576_v3  ;;  %v2591_v56 = vmul.f32 %v6269_v37, %v2577_v55  ;;  %v2592_v49 = vmul.f32 %v6272_v8, %v2576_v3  ;;  %v2593_v21 = vmul.f32 %v6275_v48, %v2577_v55 }
 0x27b   :  { %v2630_v7 = vsel %vm168_vm0, %v2586_v27, 0.0  ;;  %v2631_v44 = vsel %vm168_vm0, %v2587_v52, 0.0  ;;  %v2639_v4 = vsel %vm168_vm0, %v2588_v2, 0.0  ;;  %v2640_v13 = vsel %vm168_vm0, %v2589_v28, 0.0 }
 0x27c   :  { %v2632_v43 = vadd.f32 %v2631_v44, %v2630_v7  ;;  %v2641_v10 = vadd.f32 %v2640_v13, %v2639_v4  ;;  %v2648_v33 = vsel %vm168_vm0, %v2590_v47, 0.0  ;;  %v2649_v32 = vsel %vm168_vm0, %v2591_v56, 0.0 }
 0x27d   :  { %v2650_v9 = vadd.f32 %v2649_v32, %v2648_v33  ;;  %v2657_v46 = vsel %vm168_vm0, %v2592_v49, 0.0  ;;  %v2658_v30 = vsel %vm168_vm0, %v2593_v21, 0.0  ;;  %v2787_v22 = vrot.slane %v2786_v53, 1 }
 0x27e   :  { %v2633_v19 = vrot.slane %v2632_v43, 4  ;;  %v2642_v57 = vrot.slane %v2641_v10, 4  ;;  %v2659_v14 = vadd.f32 %v2658_v30, %v2657_v46  ;;  %v6395_v11 = vadd.f32 %v2959_v34, %v2958_v6 }
 0x27f   :  { %v6397_v35 = vpop.eup %3994  ;;  %v2651_v17 = vrot.slane %v2650_v9, 4  ;;  %v6399_v38 = vadd.f32 %v2787_v22, %v2786_v53  ;;  %v2962_v16 = vsel %vm168_vm0, %v6326_v26, 0.0  ;;  %v2964_v20 = vsel %vm168_vm0, %v6332_v59, 0.0  ;;  %v7329_v22 = vld [vmem:[#allocation23_spill] sm:$0xff] }
 0x280   :  { %v6405_v29 = vpop.eup %3996  ;;  %v2634_v50 = vadd.f32 %v2633_v19, %v2632_v43  ;;  %v2643_v3 = vadd.f32 %v2642_v57, %v2641_v10  ;;  %v2660_v55 = vrot.slane %v2659_v14, 4  ;;  %v2789_v60 = vsel %vm168_vm0, %v6397_v35, 0.0 }
 0x281   :  { %v2652_v6 = vadd.f32 %v2651_v17, %v2650_v9  ;;  %3998 = vrcp.f32 %v6399_v38  ;;  %v2790_v53 = vsel %vm168_vm0, %v6405_v29, 0.0  ;;  %v2963_v34 = vadd.f32 %v2962_v16, %v2961_v40 }
 0x282   :  { %v2635_v27 = vrot.slane %v2634_v50, 2  ;;  %v2644_v26 = vrot.slane %v2643_v3, 2  ;;  %v2661_v52 = vadd.f32 %v2660_v55, %v2659_v14  ;;  %v2791_v2 = vadd.f32 %v2790_v53, %v2789_v60  ;;  %v6431_v60 = vld [vmem:[#allocation5 + $0x48] sm:$0xff] }
 0x283   :  { %v2653_v59 = vrot.slane %v2652_v6, 2  ;;  %v2965_v28 = vadd.f32 %v2964_v20, %v2963_v34  ;;  %v2966_v47 = vsel %vm168_vm0, %v6338_v1, 0.0  ;;  %v2982_v56 = vsel %vm168_vm0, %v6395_v11, -inf  ;;  %v6436_v34 = vld [vmem:[#allocation5 + $0x50] sm:$0xff] }
 0x284   :  { %v2636_v49 = vadd.f32 %v2635_v27, %v2634_v50  ;;  %v2645_v21 = vadd.f32 %v2644_v26, %v2643_v3  ;;  %v2662_v7 = vrot.slane %v2661_v52, 2  ;;  %v2792_v44 = vrot.slane %v2791_v2, 4  ;;  %v6428_v3 = vld [vmem:[#allocation5 + $0x40] sm:$0xff]  ;;  %v6439_v26 = vld [vmem:[#allocation5 + $0x58] sm:$0xff] }
 0x285   :  { %v2654_v4 = vadd.f32 %v2653_v59, %v2652_v6  ;;  %v6416_v13 = vadd.f32 %v2966_v47, %v2965_v28  ;;  %v2925_v40 = vrot.slane %v5692_v54, %v7322_v63  ;;  %v2929_v43 = vrot.slane %v5697_v23, %v7322_v63  ;;  %v6443_v28 = vld [vmem:[#allocation5 + $0x60] sm:$0xff] }
 0x286   :  { %v2637_v10 = vrot.slane %v2636_v49, 1  ;;  %v2646_v33 = vrot.slane %v2645_v21, 1  ;;  %v2663_v32 = vadd.f32 %v2662_v7, %v2661_v52  ;;  %v2793_v1 = vadd.f32 %v2792_v44, %v2791_v2 }
 0x287   :  { %v2655_v9 = vrot.slane %v2654_v4, 1  ;;  %v2983_v46 = vsel %vm168_vm0, %v6416_v13, -inf  ;;  %v2933_v30 = vrot.slane %v5699_v39, %v7322_v63  ;;  %v2937_v19 = vrot.slane %v7329_v22, %v7322_v63 }
 0x288   :  { %v2638_v57 = vadd.f32 %v2637_v10, %v2636_v49  ;;  %v2647_v14 = vadd.f32 %v2646_v33, %v2645_v21  ;;  %v2664_v17 = vrot.slane %v2663_v32, 1  ;;  %v2794_v16 = vrot.slane %v2793_v1, 2  ;;  %v6449_v21 = vld [vmem:[#allocation5 + $0x70] sm:$0xff] }
 0x289   :  { %v2656_v20 = vadd.f32 %v2655_v9, %v2654_v4  ;;  %v2984_v50 = vmax.f32 %v2982_v56, %v2983_v46  ;;  %v2946_v55 = vmul.f32 %v6428_v3, %v2925_v40  ;;  %v2947_v6 = vmul.f32 %v6431_v60, %v2925_v40  ;;  %v6446_v56 = vld [vmem:[#allocation5 + $0x68] sm:$0xff]  ;;  %v6454_v40 = vld [vmem:[#allocation5 + $0x78] sm:$0xff] }
 0x28a   :  { %2670 = vst.msk [vmem:[#allocation8 + $0x4a] sm:$0x1] %vm345_vm1, %v2638_v57  ;;  %2671 = vst.msk [vmem:[#allocation8 + $0x5a] sm:$0x1] %vm345_vm1, %v2647_v14  ;;  %v2665_v53 = vadd.f32 %v2664_v17, %v2663_v32  ;;  %v2795_v63 = vadd.f32 %v2794_v16, %v2793_v1  ;;  %v2948_v27 = vmul.f32 %v6436_v34, %v2929_v43 }
 0x28b   :  { %v2949_v52 = vmul.f32 %v6439_v26, %v2929_v43  ;;  %v3999_v2 = vpop.eup %3998  ;;  %2672 = vst.msk [vmem:[#allocation8 + $0x6a] sm:$0x1] %vm345_vm1, %v2656_v20  ;;  %v2985_v59 = vrot.slane %v2984_v50, 4  ;;  %v2950_v47 = vmul.f32 %v6443_v28, %v2933_v30  ;;  %v2951_v49 = vmul.f32 %v6446_v56, %v2933_v30 }
 0x28c   :  { %v2952_v7 = vmul.f32 %v6449_v21, %v2937_v19  ;;  %2673 = vst.msk [vmem:[#allocation8 + $0x7a] sm:$0x1] %vm345_vm1, %v2665_v53  ;;  %v2800_v44 = vmul.f32 %v3999_v2, %v6399_v38  ;;  %v2796_v4 = vrot.slane %v2795_v63, 1  ;;  %v2953_v43 = vmul.f32 %v6454_v40, %v2937_v19 }
 0x28d   :  { %v2968_v10 = vsel %vm168_vm0, %v2946_v55, 0.0  ;;  %v2986_v33 = vmax.f32 %v2984_v50, %v2985_v59  ;;  %v2969_v32 = vsel %vm168_vm0, %v2948_v27, 0.0  ;;  %v2971_v1 = vsel %vm168_vm0, %v2950_v47, 0.0  ;;  %v7330_v27 = vld [vmem:[#allocation27_spill] sm:$0xff] }
 0x28e   :  { %v2973_v9 = vsel %vm168_vm0, %v2952_v7, 0.0  ;;  %v2802_v46 = vsub.f32 2.0, %v2800_v44  ;;  %v2797_v30 = vadd.f32 %v2796_v4, %v2795_v63  ;;  %v2970_v57 = vadd.f32 %v2969_v32, %v2968_v10  ;;  %v6483_v4 = vld [vmem:[#allocation5] sm:$0xff]  ;;  %v6488_v10 = vld [vmem:[#allocation5 + $0x8] sm:$0xff] }
 0x28f   :  { %v2975_v14 = vsel %vm168_vm0, %v2947_v6, 0.0  ;;  %v2987_v38 = vrot.slane %v2986_v33, 2  ;;  %v2976_v17 = vsel %vm168_vm0, %v2949_v52, 0.0  ;;  %v2978_v16 = vsel %vm168_vm0, %v2951_v49, 0.0  ;;  %7331 = vst [vmem:[#allocation28_spill] sm:$0xff] %v6488_v10 }
 0x290   :  { %v2980_v19 = vsel %vm168_vm0, %v2953_v43, 0.0  ;;  %v2804_v20 = vmul.f32 %v3999_v2, %v2802_v46  ;;  %4000 = vrcp.f32 %v2797_v30  ;;  %v2972_v50 = vadd.f32 %v2971_v1, %v2970_v57  ;;  %v7332_v46 = vld [vmem:[#allocation24_spill] sm:$0xff] }
 0x291   :  { %v2977_v55 = vadd.f32 %v2976_v17, %v2975_v14  ;;  %v2988_v53 = vmax.f32 %v2986_v33, %v2987_v38  ;;  %v3141_v59 = vrot.slane %v7270_v18, %v7330_v27  ;;  %v6469_v63 = vrot.slane %v5592_v15, %v7330_v27  ;;  %v7333_v14 = vld [vmem:[#allocation25_spill] sm:$0xff]  ;;  %v7334_v17 = vld [vmem:[#allocation26_spill] sm:$0xff] }
 0x292   :  { %v6473_v6 = vrot.slane %v5596_v61, %v7330_v27  ;;  %v2806_v52 = vmul.f32 %v6356_v12, %v2804_v20  ;;  %v2807_v47 = vmul.f32 %v6359_v62, %v2804_v20  ;;  %v6477_v2 = vadd.f32 %v2973_v9, %v2972_v50 }
 0x293   :  { %v2979_v49 = vadd.f32 %v2978_v16, %v2977_v55  ;;  %v2989_v7 = vrot.slane %v2988_v53, 1  ;;  %v6481_v44 = vrot.slane %v7283_v31, %v7330_v27  ;;  %v6486_v43 = vmul.f32 %v6483_v4, %v3141_v59 }
 0x294   :  { %v6491_v33 = vmul.f32 %v6488_v10, %v3141_v59  ;;  %v2810_v12 = vmul.f32 %v6147_v25, %v2806_v52  ;;  %v2811_v62 = vmul.f32 %v7325_v24, %v2807_v47  ;;  %v2812_v32 = vmul.f32 %v7326_v51, %v2806_v52 }
 0x295   :  { %v2813_v1 = vmul.f32 %v7327_v5, %v2807_v47  ;;  %v2814_v9 = vmul.f32 %v7328_v0, %v2806_v52  ;;  %v2815_v57 = vmul.f32 %v7332_v46, %v2807_v47  ;;  %v2816_v38 = vmul.f32 %v7333_v14, %v2806_v52 }
 0x296   :  { %v2817_v16 = vmul.f32 %v7334_v17, %v2807_v47  ;;  %v2826_v20 = vsel %vm168_vm0, %v2810_v12, 0.0  ;;  %v2827_v50 = vsel %vm168_vm0, %v2811_v62, 0.0  ;;  %v2835_v25 = vsel %vm168_vm0, %v2812_v32, 0.0 }
 0x297   :  { %v2836_v24 = vsel %vm168_vm0, %v2813_v1, 0.0  ;;  %v2828_v55 = vadd.f32 %v2827_v50, %v2826_v20  ;;  %v2844_v5 = vsel %vm168_vm0, %v2814_v9, 0.0  ;;  %v2845_v0 = vsel %vm168_vm0, %v2815_v57, 0.0 }
 0x298   :  { %v2837_v51 = vadd.f32 %v2836_v24, %v2835_v25  ;;  %v2846_v59 = vadd.f32 %v2845_v0, %v2844_v5  ;;  %v2853_v46 = vsel %vm168_vm0, %v2816_v38, 0.0  ;;  %v2854_v52 = vsel %vm168_vm0, %v2817_v16, 0.0 }
 0x299   :  { %v2990_v47 = vmax.f32 %v2988_v53, %v2989_v7  ;;  %v2829_v14 = vrot.slane %v2828_v55, 4  ;;  %v2855_v17 = vadd.f32 %v2854_v52, %v2853_v46  ;;  %v6509_v62 = vadd.f32 %v2980_v19, %v2979_v49  ;;  %v6517_v46 = vld [vmem:[#allocation5 + $0x10] sm:$0xff] }
 0x29a   :  { %v2838_v12 = vrot.slane %v2837_v51, 4  ;;  %v4001_v32 = vpop.eup %4000  ;;  %v2847_v10 = vrot.slane %v2846_v59, 4  ;;  %v2991_v9 = vsel %vm168_vm0, %v6477_v2, -inf }
 0x29b   :  { %v3000_v1 = vsub.f32 %v6395_v11, %v2990_v47  ;;  %v3001_v20 = vsub.f32 %v6416_v13, %v2990_v47  ;;  %v2830_v57 = vadd.f32 %v2829_v14, %v2828_v55  ;;  %v2856_v38 = vrot.slane %v2855_v17, 4  ;;  %v6523_v14 = vld [vmem:[#allocation5 + $0x18] sm:$0xff] }
 0x29c   :  { %v2839_v50 = vadd.f32 %v2838_v12, %v2837_v51  ;;  %v2801_v25 = vmul.f32 %v4001_v32, %v2797_v30  ;;  %v2848_v16 = vadd.f32 %v2847_v10, %v2846_v59  ;;  %v2992_v19 = vsel %vm168_vm0, %v6509_v62, -inf }
 0x29d   :  { %v3004_v53 = vmul.f32 1.442695, %v3000_v1  ;;  %v3006_v7 = vmul.f32 1.442695, %v3001_v20  ;;  %v2831_v49 = vrot.slane %v2830_v57, 2  ;;  %v2857_v5 = vadd.f32 %v2856_v38, %v2855_v17 }
 0x29e   :  { %v2840_v24 = vrot.slane %v2839_v50, 2  ;;  %v2803_v0 = vsub.f32 2.0, %v2801_v25  ;;  %v2849_v11 = vrot.slane %v2848_v16, 2  ;;  %v2993_v13 = vmax.f32 %v2991_v9, %v2992_v19  ;;  %v6531_v25 = vld [vmem:[#allocation5 + $0x20] sm:$0xff] }
 0x29f   :  { %4002 = vpow2.f32 %v3004_v53  ;;  %v6521_v55 = vmul.f32 %v6517_v46, %v6469_v63  ;;  %v2832_v30 = vadd.f32 %v2831_v49, %v2830_v57  ;;  %v2858_v51 = vrot.slane %v2857_v5, 2 }
 0x2a0   :  { %v2841_v10 = vadd.f32 %v2840_v24, %v2839_v50  ;;  %v2805_v59 = vmul.f32 %v4001_v32, %v2803_v0  ;;  %v2850_v52 = vadd.f32 %v2849_v11, %v2848_v16  ;;  %4004 = vpow2.f32 %v3006_v7 }
 0x2a1   :  { %v2994_v47 = vrot.slane %v2993_v13, 4  ;;  %v6527_v12 = vmul.f32 %v6523_v14, %v6469_v63  ;;  %v2833_v17 = vrot.slane %v2832_v30, 1  ;;  %v2859_v20 = vadd.f32 %v2858_v51, %v2857_v5 }
 0x2a2   :  { %v2842_v1 = vrot.slane %v2841_v10, 1  ;;  %v2808_v9 = vmul.f32 %v6397_v35, %v2805_v59  ;;  %v2851_v38 = vrot.slane %v2850_v52, 1  ;;  %v2809_v57 = vmul.f32 %v6405_v29, %v2805_v59 }
 0x2a3   :  { %v2995_v50 = vmax.f32 %v2993_v13, %v2994_v47  ;;  %v6535_v32 = vmul.f32 %v6531_v25, %v6473_v6  ;;  %v2834_v16 = vadd.f32 %v2833_v17, %v2832_v30  ;;  %v2860_v7 = vrot.slane %v2859_v20, 1 }
 0x2a4   :  { %v2843_v53 = vadd.f32 %v2842_v1, %v2841_v10  ;;  %v2818_v63 = vmul.f32 %v6254_v36, %v2808_v9  ;;  %v2852_v19 = vadd.f32 %v2851_v38, %v2850_v52  ;;  %v2819_v49 = vmul.f32 %v6257_v42, %v2809_v57 }
 0x2a5   :  { %v2820_v35 = vmul.f32 %v6260_v41, %v2808_v9  ;;  %v2821_v24 = vmul.f32 %v6263_v58, %v2809_v57  ;;  %2898 = vst.msk [vmem:[#allocation8 + $0xb] sm:$0x1] %vm345_vm1, %v2834_v16  ;;  %v2861_v29 = vadd.f32 %v2860_v7, %v2859_v20  ;;  %v2822_v0 = vmul.f32 %v6266_v45, %v2808_v9  ;;  %v6560_v20 = vld [vmem:[#allocation5 + $0x28] sm:$0xff] }
 0x2a6   :  { %2899 = vst.msk [vmem:[#allocation8 + $0x1b] sm:$0x1] %vm345_vm1, %v2843_v53  ;;  %v2862_v5 = vsel %vm168_vm0, %v2818_v63, 0.0  ;;  %v2823_v11 = vmul.f32 %v6269_v37, %v2809_v57  ;;  %2900 = vst.msk [vmem:[#allocation8 + $0x2b] sm:$0x1] %vm345_vm1, %v2852_v19  ;;  %v2863_v36 = vsel %vm168_vm0, %v2819_v49, 0.0  ;;  %v2824_v58 = vmul.f32 %v6272_v8, %v2808_v9 }
 0x2a7   :  { %v2871_v42 = vsel %vm168_vm0, %v2820_v35, 0.0  ;;  %v2872_v41 = vsel %vm168_vm0, %v2821_v24, 0.0  ;;  %2901 = vst.msk [vmem:[#allocation8 + $0x3b] sm:$0x1] %vm345_vm1, %v2861_v29  ;;  %v2864_v13 = vadd.f32 %v2863_v36, %v2862_v5  ;;  %v2880_v10 = vsel %vm168_vm0, %v2822_v0, 0.0  ;;  %v6573_v5 = vld [vmem:[#allocation5 + $0x38] sm:$0xff] }
 0x2a8   :  { %v2873_v30 = vadd.f32 %v2872_v41, %v2871_v42  ;;  %v2881_v45 = vsel %vm168_vm0, %v2823_v11, 0.0  ;;  %v2825_v59 = vmul.f32 %v6275_v48, %v2809_v57  ;;  %v2889_v52 = vsel %vm168_vm0, %v2824_v58, 0.0  ;;  %v6567_v48 = vld [vmem:[#allocation5 + $0x30] sm:$0xff] }
 0x2a9   :  { %v6554_v51 = vpop.eup %4002  ;;  %v2882_v37 = vadd.f32 %v2881_v45, %v2880_v10  ;;  %v2996_v47 = vrot.slane %v2995_v50, 2  ;;  %v2865_v17 = vrot.slane %v2864_v13, 4  ;;  %v3175_v9 = vmul.f32 %v6560_v20, %v6473_v6 }
 0x2aa   :  { %v2874_v1 = vrot.slane %v2873_v30, 4  ;;  %v3012_v8 = vsel %vm168_vm0, %v6554_v51, 0.0  ;;  %v6564_v38 = vpop.eup %4004  ;;  %v2890_v53 = vsel %vm168_vm0, %v2825_v59, 0.0  ;;  %v3176_v57 = vmul.f32 %v6567_v48, %v6481_v44 }
 0x2ab   :  { %v2883_v16 = vrot.slane %v2882_v37, 4  ;;  %v2997_v7 = vmax.f32 %v2995_v50, %v2996_v47  ;;  %v2866_v63 = vadd.f32 %v2865_v17, %v2864_v13  ;;  %v2891_v49 = vadd.f32 %v2890_v53, %v2889_v52 }
 0x2ac   :  { %v2875_v19 = vadd.f32 %v2874_v1, %v2873_v30  ;;  %v3013_v35 = vsel %vm168_vm0, %v6564_v38, 0.0  ;;  %v3177_v0 = vmul.f32 %v6573_v5, %v6481_v44  ;;  %v3186_v42 = vsel %vm168_vm0, %v6486_v43, 0.0 }
 0x2ad   :  { %v2884_v24 = vadd.f32 %v2883_v16, %v2882_v37  ;;  %v3014_v29 = vadd.f32 %v3013_v35, %v3012_v8  ;;  %v2998_v6 = vrot.slane %v2997_v7, 1  ;;  %v2867_v50 = vrot.slane %v2866_v63, 2 }
 0x2ae   :  { %v2876_v11 = vrot.slane %v2875_v19, 2  ;;  %v2892_v36 = vrot.slane %v2891_v49, 4  ;;  %v3187_v30 = vsel %vm168_vm0, %v6521_v55, 0.0  ;;  %v3189_v43 = vsel %vm168_vm0, %v6535_v32, 0.0 }
 0x2af   :  { %v2885_v41 = vrot.slane %v2884_v24, 2  ;;  %v3015_v58 = vrot.slane %v3014_v29, 4  ;;  %v2999_v13 = vmax.f32 %v2997_v7, %v2998_v6  ;;  %v2868_v10 = vadd.f32 %v2867_v50, %v2866_v63 }
 0x2b0   :  { %v2877_v45 = vadd.f32 %v2876_v11, %v2875_v19  ;;  %v2893_v37 = vadd.f32 %v2892_v36, %v2891_v49  ;;  %v3188_v59 = vadd.f32 %v3187_v30, %v3186_v42  ;;  %v3193_v50 = vsel %vm168_vm0, %v6491_v33, 0.0 }
 0x2b1   :  { %v2886_v52 = vadd.f32 %v2885_v41, %v2884_v24  ;;  %v3016_v47 = vadd.f32 %v3015_v58, %v3014_v29  ;;  %v3002_v44 = vsub.f32 %v6477_v2, %v2999_v13  ;;  %v3003_v17 = vsub.f32 %v6509_v62, %v2999_v13 }
 0x2b2   :  { %v2869_v1 = vrot.slane %v2868_v10, 1  ;;  %v2878_v8 = vrot.slane %v2877_v45, 1  ;;  %v2894_v16 = vrot.slane %v2893_v37, 2  ;;  %v3190_v6 = vadd.f32 %v3189_v43, %v3188_v59  ;;  %v7335_v59 = vld [vmem:[#allocation30_spill] sm:$0xff] }
 0x2b3   :  { %v2887_v53 = vrot.slane %v2886_v52, 1  ;;  %v3017_v7 = vrot.slane %v3016_v47, 2  ;;  %v3008_v35 = vmul.f32 1.442695, %v3002_v44  ;;  %v3010_v55 = vmul.f32 1.442695, %v3003_v17 }
 0x2b4   :  { %v2870_v63 = vadd.f32 %v2869_v1, %v2868_v10  ;;  %v2879_v19 = vadd.f32 %v2878_v8, %v2877_v45  ;;  %v2895_v49 = vadd.f32 %v2894_v16, %v2893_v37  ;;  %v3191_v2 = vsel %vm168_vm0, %v3176_v57, 0.0 }
 0x2b5   :  { %v2888_v24 = vadd.f32 %v2887_v53, %v2886_v52  ;;  %v3018_v29 = vadd.f32 %v3017_v7, %v3016_v47  ;;  %4006 = vpow2.f32 %v3008_v35  ;;  %v6588_v32 = vadd.f32 %v3191_v2, %v3190_v6 }
 0x2b6   :  { %2902 = vst.msk [vmem:[#allocation8 + $0x4b] sm:$0x1] %vm345_vm1, %v2870_v63  ;;  %2903 = vst.msk [vmem:[#allocation8 + $0x5b] sm:$0x1] %vm345_vm1, %v2879_v19  ;;  %v2896_v62 = vrot.slane %v2895_v49, 1  ;;  %4008 = vpow2.f32 %v3010_v55  ;;  %v3194_v36 = vsel %vm168_vm0, %v6527_v12, 0.0  ;;  %v3157_v30 = vrot.slane %v5692_v54, %v7330_v27 }
 0x2b7   :  { %2904 = vst.msk [vmem:[#allocation8 + $0x6b] sm:$0x1] %vm345_vm1, %v2888_v24  ;;  %v3019_v11 = vrot.slane %v3018_v29, 1  ;;  %v3196_v42 = vsel %vm168_vm0, %v3175_v9, 0.0  ;;  %v3198_v57 = vsel %vm168_vm0, %v3177_v0, 0.0  ;;  %v3195_v58 = vadd.f32 %v3194_v36, %v3193_v50 }
 0x2b8   :  { %v2897_v41 = vadd.f32 %v2896_v62, %v2895_v49  ;;  %v3214_v13 = vsel %vm168_vm0, %v6588_v32, -inf  ;;  %v3161_v33 = vrot.slane %v5697_v23, %v7330_v27  ;;  %v3165_v45 = vrot.slane %v5699_v39, %v7330_v27 }
 0x2b9   :  { %v3020_v10 = vadd.f32 %v3019_v11, %v3018_v29  ;;  %v3169_v12 = vrot.slane %v7329_v22, %v7330_v27  ;;  %v3197_v9 = vadd.f32 %v3196_v42, %v3195_v58  ;;  %v3178_v0 = vmul.f32 %v6428_v3, %v3157_v30 }
 0x2ba   :  { %2905 = vst.msk [vmem:[#allocation8 + $0x7b] sm:$0x1] %vm345_vm1, %v2897_v41  ;;  %v3179_v37 = vmul.f32 %v6431_v60, %v3157_v30  ;;  %v3373_v52 = vrot.slane %v7270_v18, %v7335_v59  ;;  %v3180_v47 = vmul.f32 %v6436_v34, %v3161_v33  ;;  %v3181_v44 = vmul.f32 %v6439_v26, %v3161_v33 }
 0x2bb   :  { %4010 = vrcp.f32 %v3020_v10  ;;  %v3182_v17 = vmul.f32 %v6443_v28, %v3165_v45  ;;  %v6615_v1 = vadd.f32 %v3198_v57, %v3197_v9  ;;  %v3183_v27 = vmul.f32 %v6446_v56, %v3165_v45  ;;  %v7336_v9 = vld [vmem:[#allocation28_spill] sm:$0xff] }
 0x2bc   :  { %v3184_v8 = vmul.f32 %v6449_v21, %v3169_v12  ;;  %v3185_v16 = vmul.f32 %v6454_v40, %v3169_v12  ;;  %v3200_v43 = vsel %vm168_vm0, %v3178_v0, 0.0  ;;  %v3201_v53 = vsel %vm168_vm0, %v3180_v47, 0.0 }
 0x2bd   :  { %v3203_v7 = vsel %vm168_vm0, %v3182_v17, 0.0  ;;  %v3207_v35 = vsel %vm168_vm0, %v3179_v37, 0.0  ;;  %v3215_v55 = vsel %vm168_vm0, %v6615_v1, -inf  ;;  %v3202_v63 = vadd.f32 %v3201_v53, %v3200_v43 }
 0x2be   :  { %v3205_v19 = vsel %vm168_vm0, %v3184_v8, 0.0  ;;  %v3208_v49 = vsel %vm168_vm0, %v3181_v44, 0.0  ;;  %v3216_v24 = vmax.f32 %v3214_v13, %v3215_v55  ;;  %v3210_v2 = vsel %vm168_vm0, %v3183_v27, 0.0 }
 0x2bf   :  { %v6628_v6 = vpop.eup %4006  ;;  %v3209_v29 = vadd.f32 %v3208_v49, %v3207_v35  ;;  %v3212_v62 = vsel %vm168_vm0, %v3185_v16, 0.0  ;;  %v3204_v36 = vadd.f32 %v3203_v7, %v3202_v63  ;;  %v3377_v42 = vrot.slane %v5592_v15, %v7335_v59 }
 0x2c0   :  { %v6632_v50 = vpop.eup %4008  ;;  %v3021_v11 = vsel %vm168_vm0, %v6628_v6, 0.0  ;;  %v3381_v57 = vrot.slane %v5596_v61, %v7335_v59  ;;  %v3217_v58 = vrot.slane %v3216_v24, 4  ;;  %v3385_v30 = vrot.slane %v7283_v31, %v7335_v59 }
 0x2c1   :  { %v3022_v41 = vsel %vm168_vm0, %v6632_v50, 0.0  ;;  %v3211_v13 = vadd.f32 %v3210_v2, %v3209_v29  ;;  %v6644_v45 = vadd.f32 %v3205_v19, %v3204_v36  ;;  %v3402_v12 = vmul.f32 %v6483_v4, %v3373_v52 }
 0x2c2   :  { %v3023_v33 = vadd.f32 %v3022_v41, %v3021_v11  ;;  %v3403_v0 = vmul.f32 %v7336_v9, %v3373_v52  ;;  %v3218_v37 = vmax.f32 %v3216_v24, %v3217_v58  ;;  %v3404_v44 = vmul.f32 %v6517_v46, %v3377_v42 }
 0x2c3   :  { %v6648_v47 = vadd.f32 %v3212_v62, %v3211_v13  ;;  %v3405_v17 = vmul.f32 %v6523_v14, %v3377_v42  ;;  %v3223_v8 = vsel %vm168_vm0, %v6644_v45, -inf  ;;  %v3406_v16 = vmul.f32 %v6531_v25, %v3381_v57 }
 0x2c4   :  { %v3024_v27 = vrot.slane %v3023_v33, 4  ;;  %v3407_v43 = vmul.f32 %v6560_v20, %v3381_v57  ;;  %v3219_v7 = vrot.slane %v3218_v37, 2  ;;  %v3408_v35 = vmul.f32 %v6567_v48, %v3385_v30 }
 0x2c5   :  { %v4011_v53 = vpop.eup %4010  ;;  %v3224_v52 = vsel %vm168_vm0, %v6648_v47, -inf  ;;  %v3409_v55 = vmul.f32 %v6573_v5, %v3385_v30  ;;  %v3418_v24 = vsel %vm168_vm0, %v3402_v12, 0.0  ;;  %v3419_v2 = vsel %vm168_vm0, %v3404_v44, 0.0 }
 0x2c6   :  { %v3032_v63 = vmul.f32 %v4011_v53, %v3020_v10  ;;  %v3025_v19 = vadd.f32 %v3024_v27, %v3023_v33  ;;  %v3225_v49 = vmax.f32 %v3223_v8, %v3224_v52  ;;  %v3220_v29 = vmax.f32 %v3218_v37, %v3219_v7 }
 0x2c7   :  { %v3421_v62 = vsel %vm168_vm0, %v3406_v16, 0.0  ;;  %v3423_v11 = vsel %vm168_vm0, %v3408_v35, 0.0  ;;  %v3420_v41 = vadd.f32 %v3419_v2, %v3418_v24  ;;  %v3425_v13 = vsel %vm168_vm0, %v3403_v0, 0.0  ;;  %v6681_v24 = vld [vmem:[#allocation7 + $0x8] sm:$0xff]  ;;  %v6687_v2 = vld [vmem:[#allocation7 + $0x18] sm:$0xff] }
 0x2c8   :  { %v3034_v36 = vsub.f32 2.0, %v3032_v63  ;;  %v3026_v42 = vrot.slane %v3025_v19, 2  ;;  %v3226_v57 = vrot.slane %v3225_v49, 4  ;;  %v3221_v58 = vrot.slane %v3220_v29, 1  ;;  %7338 = vst [vmem:[#allocation14_spill] sm:$0xff] %v6687_v2 }
 0x2c9   :  { %v3426_v10 = vsel %vm168_vm0, %v3405_v17, 0.0  ;;  %v3428_v30 = vsel %vm168_vm0, %v3407_v43, 0.0  ;;  %v3422_v27 = vadd.f32 %v3421_v62, %v3420_v41  ;;  %v3430_v16 = vsel %vm168_vm0, %v3409_v55, 0.0  ;;  %v6699_v41 = vld [vmem:[#allocation7 + $0x38] sm:$0xff] }
 0x2ca   :  { %v3036_v33 = vmul.f32 %v4011_v53, %v3034_v36  ;;  %v3027_v12 = vadd.f32 %v3026_v42, %v3025_v19  ;;  %v3227_v37 = vmax.f32 %v3225_v49, %v3226_v57  ;;  %v3222_v44 = vmax.f32 %v3220_v29, %v3221_v58  ;;  %v6678_v49 = vld [vmem:[#allocation7] sm:$0xff]  ;;  %v6696_v42 = vld [vmem:[#allocation7 + $0x30] sm:$0xff]  ;;  %7342 = vst [vmem:[#allocation18_spill] sm:$0xff] %v6699_v41 }
 0x2cb   :  { %v3427_v8 = vadd.f32 %v3426_v10, %v3425_v13  ;;  %v6670_v7 = vrot.slane %v5692_v54, %v7335_v59  ;;  %v6676_v63 = vadd.f32 %v3423_v11, %v3422_v27  ;;  %v6693_v11 = vld [vmem:[#allocation7 + $0x28] sm:$0xff]  ;;  %7341 = vst [vmem:[#allocation22_spill] sm:$0xff] %v6696_v42 }
 0x2cc   :  { %v3038_v52 = vmul.f32 %v6554_v51, %v3036_v33  ;;  %v3039_v0 = vmul.f32 %v6564_v38, %v3036_v33  ;;  %v3028_v35 = vrot.slane %v3027_v12, 1  ;;  %v3228_v17 = vrot.slane %v3227_v37, 2  ;;  %v6684_v51 = vld [vmem:[#allocation7 + $0x10] sm:$0xff]  ;;  %7340 = vst [vmem:[#allocation21_spill] sm:$0xff] %v6693_v11 }
 0x2cd   :  { %v3232_v43 = vsub.f32 %v6588_v32, %v3222_v44  ;;  %v3233_v53 = vsub.f32 %v6615_v1, %v3222_v44  ;;  %v3429_v19 = vadd.f32 %v3428_v30, %v3427_v8  ;;  %7337 = vst [vmem:[#allocation29_spill] sm:$0xff] %v6684_v51  ;;  %v6690_v1 = vld [vmem:[#allocation7 + $0x20] sm:$0xff] }
 0x2ce   :  { %v3042_v55 = vmul.f32 %v6678_v49, %v3038_v52  ;;  %v3043_v29 = vmul.f32 %v6681_v24, %v3039_v0  ;;  %v3044_v38 = vmul.f32 %v6684_v51, %v3038_v52  ;;  %v3045_v32 = vmul.f32 %v6687_v2, %v3039_v0  ;;  %7339 = vst [vmem:[#allocation15_spill] sm:$0xff] %v6690_v1 }
 0x2cf   :  { %v3046_v62 = vmul.f32 %v6690_v1, %v3038_v52  ;;  %v3047_v36 = vmul.f32 %v6693_v11, %v3039_v0  ;;  %v3048_v57 = vmul.f32 %v6696_v42, %v3038_v52  ;;  %v3049_v58 = vmul.f32 %v6699_v41, %v3039_v0 }
 0x2d0   :  { %v3058_v13 = vsel %vm168_vm0, %v3042_v55, 0.0  ;;  %v3059_v10 = vsel %vm168_vm0, %v3043_v29, 0.0  ;;  %v3067_v30 = vsel %vm168_vm0, %v3044_v38, 0.0  ;;  %v3068_v33 = vsel %vm168_vm0, %v3045_v32, 0.0 }
 0x2d1   :  { %v3060_v27 = vadd.f32 %v3059_v10, %v3058_v13  ;;  %v3069_v44 = vadd.f32 %v3068_v33, %v3067_v30  ;;  %v3076_v8 = vsel %vm168_vm0, %v3046_v62, 0.0  ;;  %v3077_v11 = vsel %vm168_vm0, %v3047_v36, 0.0 }
 0x2d2   :  { %v3078_v1 = vadd.f32 %v3077_v11, %v3076_v8  ;;  %v3085_v52 = vsel %vm168_vm0, %v3048_v57, 0.0  ;;  %v3086_v42 = vsel %vm168_vm0, %v3049_v58, 0.0  ;;  %v3029_v0 = vadd.f32 %v3028_v35, %v3027_v12 }
 0x2d3   :  { %v3061_v41 = vrot.slane %v3060_v27, 4  ;;  %v3070_v55 = vrot.slane %v3069_v44, 4  ;;  %v3087_v2 = vadd.f32 %v3086_v42, %v3085_v52  ;;  %v3236_v29 = vmul.f32 1.442695, %v3232_v43 }
 0x2d4   :  { %v3079_v51 = vrot.slane %v3078_v1, 4  ;;  %4012 = vrcp.f32 %v3029_v0  ;;  %v3238_v38 = vmul.f32 1.442695, %v3233_v53  ;;  %v3229_v32 = vmax.f32 %v3227_v37, %v3228_v17 }
 0x2d5   :  { %v3062_v13 = vadd.f32 %v3061_v41, %v3060_v27  ;;  %v3071_v10 = vadd.f32 %v3070_v55, %v3069_v44  ;;  %v3088_v30 = vrot.slane %v3087_v2, 4  ;;  %4014 = vpow2.f32 %v3236_v29 }
 0x2d6   :  { %v3080_v62 = vadd.f32 %v3079_v51, %v3078_v1  ;;  %4016 = vpow2.f32 %v3238_v38  ;;  %v3230_v11 = vrot.slane %v3229_v32, 1  ;;  %v6710_v36 = vadd.f32 %v3430_v16, %v3429_v19 }
 0x2d7   :  { %v3063_v57 = vrot.slane %v3062_v13, 2  ;;  %v3072_v58 = vrot.slane %v3071_v10, 2  ;;  %v3089_v12 = vadd.f32 %v3088_v30, %v3087_v2  ;;  %v3446_v35 = vsel %vm168_vm0, %v6676_v63, -inf }
 0x2d8   :  { %v3081_v43 = vrot.slane %v3080_v62, 2  ;;  %v3231_v42 = vmax.f32 %v3229_v32, %v3230_v11  ;;  %v3447_v37 = vsel %vm168_vm0, %v6710_v36, -inf  ;;  %v3393_v17 = vrot.slane %v5697_v23, %v7335_v59 }
 0x2d9   :  { %v3064_v53 = vadd.f32 %v3063_v57, %v3062_v13  ;;  %v3073_v51 = vadd.f32 %v3072_v58, %v3071_v10  ;;  %v3090_v1 = vrot.slane %v3089_v12, 2  ;;  %v3448_v41 = vmax.f32 %v3446_v35, %v3447_v37 }
 0x2da   :  { %v3082_v16 = vadd.f32 %v3081_v43, %v3080_v62  ;;  %v3234_v19 = vsub.f32 %v6644_v45, %v3231_v42  ;;  %v3235_v2 = vsub.f32 %v6648_v47, %v3231_v42  ;;  %v3397_v33 = vrot.slane %v5699_v39, %v7335_v59 }
 0x2db   :  { %v3065_v27 = vrot.slane %v3064_v53, 1  ;;  %v3074_v44 = vrot.slane %v3073_v51, 1  ;;  %v3091_v8 = vadd.f32 %v3090_v1, %v3089_v12  ;;  %v3449_v52 = vrot.slane %v3448_v41, 4 }
 0x2dc   :  { %v3083_v55 = vrot.slane %v3082_v16, 1  ;;  %v3240_v29 = vmul.f32 1.442695, %v3234_v19  ;;  %v3242_v38 = vmul.f32 1.442695, %v3235_v2  ;;  %v3401_v32 = vrot.slane %v7329_v22, %v7335_v59 }
 0x2dd   :  { %v3066_v13 = vadd.f32 %v3065_v27, %v3064_v53  ;;  %v3075_v10 = vadd.f32 %v3074_v44, %v3073_v51  ;;  %v3092_v30 = vrot.slane %v3091_v8, 1  ;;  %v3450_v62 = vmax.f32 %v3448_v41, %v3449_v52 }
 0x2de   :  { %v4013_v45 = vpop.eup %4012  ;;  %v3084_v11 = vadd.f32 %v3083_v55, %v3082_v16  ;;  %4018 = vpow2.f32 %v3240_v29  ;;  %v3410_v47 = vmul.f32 %v6428_v3, %v6670_v7  ;;  %v3411_v57 = vmul.f32 %v6431_v60, %v6670_v7 }
 0x2df   :  { %v6728_v58 = vpop.eup %4014  ;;  %3130 = vst.msk [vmem:[#allocation8 + $0xc] sm:$0x1] %vm345_vm1, %v3066_v13  ;;  %3131 = vst.msk [vmem:[#allocation8 + $0x1c] sm:$0x1] %vm345_vm1, %v3075_v10  ;;  %v3093_v59 = vadd.f32 %v3092_v30, %v3091_v8  ;;  %v3033_v12 = vmul.f32 %v4013_v45, %v3029_v0  ;;  %4020 = vpow2.f32 %v3242_v38  ;;  %v3451_v35 = vrot.slane %v3450_v62, 2  ;;  %v6766_v10 = vld [vmem:[#allocation7 + $0x48] sm:$0xff] }
 0x2e0   :  { %v6732_v43 = vpop.eup %4016  ;;  %3132 = vst.msk [vmem:[#allocation8 + $0x2c] sm:$0x1] %vm345_vm1, %v3084_v11  ;;  %v3244_v3 = vsel %vm168_vm0, %v6728_v58, 0.0  ;;  %v3412_v42 = vmul.f32 %v6436_v34, %v3393_v17  ;;  %v3413_v60 = vmul.f32 %v6439_v26, %v3393_v17  ;;  %v3414_v7 = vmul.f32 %v6443_v28, %v3397_v33  ;;  %v6769_v30 = vld [vmem:[#allocation7 + $0x50] sm:$0xff] }
 0x2e1   :  { %3133 = vst.msk [vmem:[#allocation8 + $0x3c] sm:$0x1] %vm345_vm1, %v3093_v59  ;;  %v3035_v37 = vsub.f32 2.0, %v3033_v12  ;;  %v3245_v0 = vsel %vm168_vm0, %v6732_v43, 0.0  ;;  %v3452_v53 = vmax.f32 %v3450_v62, %v3451_v35  ;;  %v3415_v51 = vmul.f32 %v6446_v56, %v3397_v33  ;;  %v6772_v62 = vld [vmem:[#allocation7 + $0x58] sm:$0xff]  ;;  %v6780_v59 = vld [vmem:[#allocation7 + $0x68] sm:$0xff] }
 0x2e2   :  { %v3246_v1 = vadd.f32 %v3245_v0, %v3244_v3  ;;  %v3416_v41 = vmul.f32 %v6449_v21, %v3401_v32  ;;  %v6746_v16 = vmul.f32 %v6454_v40, %v3401_v32  ;;  %v3432_v34 = vsel %vm168_vm0, %v3410_v47, 0.0  ;;  %v6763_v32 = vld [vmem:[#allocation7 + $0x40] sm:$0xff]  ;;  %v6783_v35 = vld [vmem:[#allocation7 + $0x70] sm:$0xff] }
 0x2e3   :  { %v3037_v26 = vmul.f32 %v4013_v45, %v3035_v37  ;;  %v3453_v17 = vrot.slane %v3452_v53, 1  ;;  %v3433_v28 = vsel %vm168_vm0, %v3412_v42, 0.0  ;;  %v3435_v19 = vsel %vm168_vm0, %v3414_v7, 0.0  ;;  %v6777_v47 = vld [vmem:[#allocation7 + $0x60] sm:$0xff]  ;;  %7343 = vst [vmem:[#allocation20_spill] sm:$0xff] %v6783_v35  ;;  %v6786_v42 = vld [vmem:[#allocation7 + $0x78] sm:$0xff] }
 0x2e4   :  { %v3247_v2 = vrot.slane %v3246_v1, 4  ;;  %v3434_v27 = vadd.f32 %v3433_v28, %v3432_v34  ;;  %v6752_v44 = vsel %vm168_vm0, %v3416_v41, 0.0  ;;  %v3439_v56 = vsel %vm168_vm0, %v3411_v57, 0.0  ;;  %7344 = vst [vmem:[#allocation13_spill] sm:$0xff] %v6786_v42 }
 0x2e5   :  { %v3040_v21 = vmul.f32 %v6628_v6, %v3037_v26  ;;  %v3041_v40 = vmul.f32 %v6632_v50, %v3037_v26  ;;  %v3454_v33 = vmax.f32 %v3452_v53, %v3453_v17  ;;  %v3440_v8 = vsel %vm168_vm0, %v3413_v60, 0.0 }
 0x2e6   :  { %v3248_v52 = vadd.f32 %v3247_v2, %v3246_v1  ;;  %v6758_v55 = vadd.f32 %v3435_v19, %v3434_v27  ;;  %v6760_v29 = vadd.f32 %v3440_v8, %v3439_v56  ;;  %v3442_v38 = vsel %vm168_vm0, %v3415_v51, 0.0 }
 0x2e7   :  { %v3050_v13 = vmul.f32 %v6763_v32, %v3040_v21  ;;  %v3051_v6 = vmul.f32 %v6766_v10, %v3041_v40  ;;  %v3052_v50 = vmul.f32 %v6769_v30, %v3040_v21  ;;  %v3053_v45 = vmul.f32 %v6772_v62, %v3041_v40 }
 0x2e8   :  { %v6775_v11 = vpop.eup %4018  ;;  %v3054_v57 = vmul.f32 %v6777_v47, %v3040_v21  ;;  %v3055_v12 = vmul.f32 %v6780_v59, %v3041_v40  ;;  %v3056_v3 = vmul.f32 %v6783_v35, %v3040_v21  ;;  %v3057_v60 = vmul.f32 %v6786_v42, %v3041_v40 }
 0x2e9   :  { %v6789_v7 = vpop.eup %4020  ;;  %v3094_v37 = vsel %vm168_vm0, %v3050_v13, 0.0  ;;  %v3095_v0 = vsel %vm168_vm0, %v3051_v6, 0.0  ;;  %v3103_v53 = vsel %vm168_vm0, %v3052_v50, 0.0  ;;  %v3104_v51 = vsel %vm168_vm0, %v3053_v45, 0.0 }
 0x2ea   :  { %v3096_v1 = vadd.f32 %v3095_v0, %v3094_v37  ;;  %v3105_v41 = vadd.f32 %v3104_v51, %v3103_v53  ;;  %v3112_v34 = vsel %vm168_vm0, %v3054_v57, 0.0  ;;  %v3113_v26 = vsel %vm168_vm0, %v3055_v12, 0.0 }
 0x2eb   :  { %v3114_v17 = vadd.f32 %v3113_v26, %v3112_v34  ;;  %v3121_v28 = vsel %vm168_vm0, %v3056_v3, 0.0  ;;  %v3122_v19 = vsel %vm168_vm0, %v3057_v60, 0.0  ;;  %v3249_v2 = vrot.slane %v3248_v52, 2 }
 0x2ec   :  { %v3097_v27 = vrot.slane %v3096_v1, 4  ;;  %v3106_v56 = vrot.slane %v3105_v41, 4  ;;  %v3123_v21 = vadd.f32 %v3122_v19, %v3121_v28  ;;  %v3253_v40 = vsel %vm168_vm0, %v6775_v11, 0.0 }
 0x2ed   :  { %v3115_v8 = vrot.slane %v3114_v17, 4  ;;  %v3250_v13 = vadd.f32 %v3249_v2, %v3248_v52  ;;  %v3254_v6 = vsel %vm168_vm0, %v6789_v7, 0.0  ;;  %v3464_v50 = vsub.f32 %v6676_v63, %v3454_v33 }
 0x2ee   :  { %v3098_v45 = vadd.f32 %v3097_v27, %v3096_v1  ;;  %v3107_v57 = vadd.f32 %v3106_v56, %v3105_v41  ;;  %v3124_v12 = vrot.slane %v3123_v21, 4  ;;  %v3255_v3 = vadd.f32 %v3254_v6, %v3253_v40 }
 0x2ef   :  { %v3116_v37 = vadd.f32 %v3115_v8, %v3114_v17  ;;  %v3251_v60 = vrot.slane %v3250_v13, 1  ;;  %v3465_v0 = vsub.f32 %v6710_v36, %v3454_v33  ;;  %v3468_v53 = vmul.f32 1.442695, %v3464_v50 }
 0x2f0   :  { %v3099_v51 = vrot.slane %v3098_v45, 2  ;;  %v3108_v34 = vrot.slane %v3107_v57, 2  ;;  %v3125_v26 = vadd.f32 %v3124_v12, %v3123_v21  ;;  %v3256_v28 = vrot.slane %v3255_v3, 4 }
 0x2f1   :  { %v3117_v19 = vrot.slane %v3116_v37, 2  ;;  %v3252_v52 = vadd.f32 %v3251_v60, %v3250_v13  ;;  %4022 = vpow2.f32 %v3468_v53  ;;  %v3470_v2 = vmul.f32 1.442695, %v3465_v0 }
 0x2f2   :  { %v3100_v42 = vadd.f32 %v3099_v51, %v3098_v45  ;;  %v3109_v35 = vadd.f32 %v3108_v34, %v3107_v57  ;;  %v3126_v63 = vrot.slane %v3125_v26, 2  ;;  %v3257_v1 = vadd.f32 %v3256_v28, %v3255_v3 }
 0x2f3   :  { %v3118_v41 = vadd.f32 %v3117_v19, %v3116_v37  ;;  %4024 = vrcp.f32 %v3252_v52  ;;  %v6807_v17 = vadd.f32 %v6752_v44, %v6758_v55  ;;  %v3443_v36 = vadd.f32 %v3442_v38, %v6760_v29  ;;  %v7345_v29 = vld [vmem:[#allocation31_spill] sm:$0xff] }
 0x2f4   :  { %v3101_v33 = vrot.slane %v3100_v42, 1  ;;  %v3110_v27 = vrot.slane %v3109_v35, 1  ;;  %v3127_v56 = vadd.f32 %v3126_v63, %v3125_v26  ;;  %v3258_v21 = vrot.slane %v3257_v1, 2 }
 0x2f5   :  { %v3119_v40 = vrot.slane %v3118_v41, 1  ;;  %4026 = vpow2.f32 %v3470_v2  ;;  %v3444_v8 = vsel %vm168_vm0, %v6746_v16, 0.0  ;;  %v3455_v13 = vsel %vm168_vm0, %v6807_v17, -inf }
 0x2f6   :  { %v3102_v6 = vadd.f32 %v3101_v33, %v3100_v42  ;;  %v3111_v50 = vadd.f32 %v3110_v27, %v3109_v35  ;;  %v3128_v45 = vrot.slane %v3127_v56, 1  ;;  %v3259_v57 = vadd.f32 %v3258_v21, %v3257_v1 }
 0x2f7   :  { %v3120_v44 = vadd.f32 %v3119_v40, %v3118_v41  ;;  %v6814_v55 = vadd.f32 %v3444_v8, %v3443_v36  ;;  %v3605_v38 = vrot.slane %v7270_v18, %v7345_v29  ;;  %v3609_v12 = vrot.slane %v5592_v15, %v7345_v29 }
 0x2f8   :  { %3134 = vst.msk [vmem:[#allocation8 + $0x4c] sm:$0x1] %vm345_vm1, %v3102_v6  ;;  %3135 = vst.msk [vmem:[#allocation8 + $0x5c] sm:$0x1] %vm345_vm1, %v3111_v50  ;;  %v3129_v16 = vadd.f32 %v3128_v45, %v3127_v56  ;;  %v3260_v3 = vrot.slane %v3259_v57, 1  ;;  %v3613_v35 = vrot.slane %v5596_v61, %v7345_v29  ;;  %v3617_v42 = vrot.slane %v7283_v31, %v7345_v29 }
 0x2f9   :  { %3136 = vst.msk [vmem:[#allocation8 + $0x6c] sm:$0x1] %vm345_vm1, %v3120_v44  ;;  %v3456_v18 = vsel %vm168_vm0, %v6814_v55, -inf  ;;  %v3634_v37 = vmul.f32 %v6483_v4, %v3605_v38  ;;  %v3635_v15 = vmul.f32 %v7336_v9, %v3605_v38  ;;  %v3636_v60 = vmul.f32 %v6517_v46, %v3609_v12 }
 0x2fa   :  { %3137 = vst.msk [vmem:[#allocation8 + $0x7c] sm:$0x1] %vm345_vm1, %v3129_v16  ;;  %v6833_v0 = vadd.f32 %v3260_v3, %v3259_v57  ;;  %v3457_v53 = vmax.f32 %v3455_v13, %v3456_v18  ;;  %v3637_v61 = vmul.f32 %v6523_v14, %v3609_v12  ;;  %v3638_v31 = vmul.f32 %v6531_v25, %v3613_v35  ;;  %v4178_v12 = vld [vmem:[#allocation5 + $0x40] sm:$0xff] }
 0x2fb   :  { %v6837_v51 = vpop.eup %4022  ;;  %v3639_v34 = vmul.f32 %v6560_v20, %v3613_v35  ;;  %v3640_v26 = vmul.f32 %v6567_v48, %v3617_v42  ;;  %v3641_v4 = vmul.f32 %v6573_v5, %v3617_v42  ;;  %v3650_v9 = vsel %vm168_vm0, %v3634_v37, 0.0  ;;  %v4179_v42 = vld [vmem:[#allocation5 + $0x48] sm:$0xff] }
 0x2fc   :  { %4028 = vrcp.f32 %v6833_v0  ;;  %v3476_v46 = vsel %vm168_vm0, %v6837_v51, 0.0  ;;  %v3458_v28 = vrot.slane %v3457_v53, 4  ;;  %v3651_v14 = vsel %vm168_vm0, %v3636_v60, 0.0  ;;  %v4180_v60 = vld [vmem:[#allocation5 + $0x50] sm:$0xff] }
 0x2fd   :  { %v4025_v19 = vpop.eup %4024  ;;  %v3652_v25 = vadd.f32 %v3651_v14, %v3650_v9  ;;  %v3653_v2 = vsel %vm168_vm0, %v3638_v31, 0.0  ;;  %v3655_v20 = vsel %vm168_vm0, %v3640_v26, 0.0  ;;  %v3657_v48 = vsel %vm168_vm0, %v3635_v15, 0.0  ;;  %v7346_v9 = vld [vmem:[#allocation29_spill] sm:$0xff] }
 0x2fe   :  { %v3264_v63 = vmul.f32 %v4025_v19, %v3252_v52  ;;  %v3459_v5 = vmax.f32 %v3457_v53, %v3458_v28  ;;  %v3658_v1 = vsel %vm168_vm0, %v3637_v61, 0.0  ;;  %v3660_v41 = vsel %vm168_vm0, %v3639_v34, 0.0  ;;  %v4181_v61 = vld [vmem:[#allocation5 + $0x58] sm:$0xff]  ;;  %v4182_v34 = vld [vmem:[#allocation5 + $0x60] sm:$0xff]  ;;  %v7347_v28 = vld [vmem:[#allocation14_spill] sm:$0xff] }
 0x2ff   :  { %v6852_v36 = vpop.eup %4026  ;;  %v3654_v33 = vadd.f32 %v3653_v2, %v3652_v25  ;;  %v3659_v27 = vadd.f32 %v3658_v1, %v3657_v48  ;;  %v3662_v56 = vsel %vm168_vm0, %v3641_v4, 0.0  ;;  %v3621_v21 = vrot.slane %v5692_v54, %v7345_v29  ;;  %v7349_v2 = vld [vmem:[#allocation21_spill] sm:$0xff]  ;;  %v7350_v48 = vld [vmem:[#allocation22_spill] sm:$0xff] }
 0x300   :  { %v3266_v40 = vsub.f32 2.0, %v3264_v63  ;;  %v3477_v8 = vsel %vm168_vm0, %v6852_v36, 0.0  ;;  %v3460_v13 = vrot.slane %v3459_v5, 2  ;;  %v3625_v52 = vrot.slane %v5697_v23, %v7345_v29 }
 0x301   :  { %v3478_v6 = vadd.f32 %v3477_v8, %v3476_v46  ;;  %v6861_v50 = vadd.f32 %v3655_v20, %v3654_v33  ;;  %v3661_v45 = vadd.f32 %v3660_v41, %v3659_v27  ;;  %v6865_v57 = vrot.slane %v5699_v39, %v7345_v29 }
 0x302   :  { %v3268_v44 = vmul.f32 %v4025_v19, %v3266_v40  ;;  %v3461_v38 = vmax.f32 %v3459_v5, %v3460_v13  ;;  %v6869_v54 = vrot.slane %v7329_v22, %v7345_v29  ;;  %v6871_v16 = vmul.f32 %v4178_v12, %v3621_v21  ;;  %v7348_v19 = vld [vmem:[#allocation15_spill] sm:$0xff]  ;;  %v7351_v5 = vld [vmem:[#allocation18_spill] sm:$0xff] }
 0x303   :  { %v3479_v3 = vrot.slane %v3478_v6, 4  ;;  %v6873_v35 = vadd.f32 %v3662_v56, %v3661_v45  ;;  %v3678_v23 = vsel %vm168_vm0, %v6861_v50, -inf  ;;  %v6877_v18 = vmul.f32 %v4179_v42, %v3621_v21 }
 0x304   :  { %v3270_v39 = vmul.f32 %v6728_v58, %v3268_v44  ;;  %v3271_v37 = vmul.f32 %v6732_v43, %v3268_v44  ;;  %v3462_v15 = vrot.slane %v3461_v38, 1  ;;  %v6881_v22 = vmul.f32 %v4180_v60, %v3625_v52 }
 0x305   :  { %v3480_v29 = vadd.f32 %v3479_v3, %v3478_v6  ;;  %v3679_v53 = vsel %vm168_vm0, %v6873_v35, -inf  ;;  %v6885_v31 = vmul.f32 %v4181_v61, %v3625_v52  ;;  %v6888_v26 = vmul.f32 %v4182_v34, %v6865_v57 }
 0x306   :  { %v4029_v4 = vpop.eup %4028  ;;  %v3274_v58 = vmul.f32 %v6678_v49, %v3270_v39  ;;  %v3275_v43 = vmul.f32 %v6681_v24, %v3271_v37  ;;  %v3276_v46 = vmul.f32 %v7346_v9, %v3270_v39  ;;  %v3277_v14 = vmul.f32 %v7347_v28, %v3271_v37 }
 0x307   :  { %v3278_v25 = vmul.f32 %v7348_v19, %v3270_v39  ;;  %v3279_v20 = vmul.f32 %v7349_v2, %v3271_v37  ;;  %v3280_v63 = vmul.f32 %v7350_v48, %v3270_v39  ;;  %v3281_v1 = vmul.f32 %v7351_v5, %v3271_v37 }
 0x308   :  { %v3290_v41 = vsel %vm168_vm0, %v3274_v58, 0.0  ;;  %v3291_v33 = vsel %vm168_vm0, %v3275_v43, 0.0  ;;  %v3299_v27 = vsel %vm168_vm0, %v3276_v46, 0.0  ;;  %v3300_v56 = vsel %vm168_vm0, %v3277_v14, 0.0 }
 0x309   :  { %v3292_v21 = vadd.f32 %v3291_v33, %v3290_v41  ;;  %v3301_v40 = vadd.f32 %v3300_v56, %v3299_v27  ;;  %v3308_v8 = vsel %vm168_vm0, %v3278_v25, 0.0  ;;  %v3309_v13 = vsel %vm168_vm0, %v3279_v20, 0.0 }
 0x30a   :  { %v3310_v52 = vadd.f32 %v3309_v13, %v3308_v8  ;;  %v3317_v6 = vsel %vm168_vm0, %v3280_v63, 0.0  ;;  %v3318_v45 = vsel %vm168_vm0, %v3281_v1, 0.0  ;;  %v3265_v44 = vmul.f32 %v4029_v4, %v6833_v0 }
 0x30b   :  { %v3293_v12 = vrot.slane %v3292_v21, 4  ;;  %v3302_v3 = vrot.slane %v3301_v40, 4  ;;  %v3319_v42 = vadd.f32 %v3318_v45, %v3317_v6  ;;  %v3481_v39 = vrot.slane %v3480_v29, 2 }
 0x30c   :  { %v3311_v37 = vrot.slane %v3310_v52, 4  ;;  %v3267_v60 = vsub.f32 2.0, %v3265_v44  ;;  %v3463_v61 = vmax.f32 %v3461_v38, %v3462_v15  ;;  %v6907_v34 = vmax.f32 %v3678_v23, %v3679_v53 }
 0x30d   :  { %v3294_v58 = vadd.f32 %v3293_v12, %v3292_v21  ;;  %v3303_v43 = vadd.f32 %v3302_v3, %v3301_v40  ;;  %v3320_v46 = vrot.slane %v3319_v42, 4  ;;  %v3482_v14 = vadd.f32 %v3481_v39, %v3480_v29 }
 0x30e   :  { %v3312_v25 = vadd.f32 %v3311_v37, %v3310_v52  ;;  %v3269_v20 = vmul.f32 %v4029_v4, %v3267_v60  ;;  %v3466_v63 = vsub.f32 %v6807_v17, %v3463_v61  ;;  %v3467_v1 = vsub.f32 %v6814_v55, %v3463_v61 }
 0x30f   :  { %v3295_v0 = vrot.slane %v3294_v58, 2  ;;  %v3304_v41 = vrot.slane %v3303_v43, 2  ;;  %v3321_v33 = vadd.f32 %v3320_v46, %v3319_v42  ;;  %v3483_v27 = vrot.slane %v3482_v14, 1 }
 0x310   :  { %v3313_v56 = vrot.slane %v3312_v25, 2  ;;  %v3272_v8 = vmul.f32 %v6775_v11, %v3269_v20  ;;  %v3273_v38 = vmul.f32 %v6789_v7, %v3269_v20  ;;  %v3472_v23 = vmul.f32 1.442695, %v3466_v63  ;;  %v7352_v20 = vld [vmem:[#allocation20_spill] sm:$0xff] }
 0x311   :  { %v3296_v15 = vadd.f32 %v3295_v0, %v3294_v58  ;;  %v3305_v53 = vadd.f32 %v3304_v41, %v3303_v43  ;;  %v3322_v21 = vrot.slane %v3321_v33, 2  ;;  %v6913_v29 = vadd.f32 %v3483_v27, %v3482_v14 }
 0x312   :  { %v3314_v4 = vadd.f32 %v3313_v56, %v3312_v25  ;;  %v3282_v17 = vmul.f32 %v6763_v32, %v3272_v8  ;;  %v3283_v55 = vmul.f32 %v6766_v10, %v3273_v38  ;;  %v3284_v40 = vmul.f32 %v6769_v30, %v3272_v8 }
 0x313   :  { %v3297_v13 = vrot.slane %v3296_v15, 1  ;;  %v3306_v52 = vrot.slane %v3305_v53, 1  ;;  %v3323_v6 = vadd.f32 %v3322_v21, %v3321_v33  ;;  %v3285_v11 = vmul.f32 %v6772_v62, %v3273_v38  ;;  %v7353_v33 = vld [vmem:[#allocation13_spill] sm:$0xff] }
 0x314   :  { %v3315_v45 = vrot.slane %v3314_v4, 1  ;;  %v3326_v7 = vsel %vm168_vm0, %v3282_v17, 0.0  ;;  %v3327_v44 = vsel %vm168_vm0, %v3283_v55, 0.0  ;;  %v3335_v12 = vsel %vm168_vm0, %v3284_v40, 0.0 }
 0x315   :  { %v3298_v3 = vadd.f32 %v3297_v13, %v3296_v15  ;;  %v3307_v42 = vadd.f32 %v3306_v52, %v3305_v53  ;;  %v3324_v39 = vrot.slane %v3323_v6, 1  ;;  %v3328_v37 = vadd.f32 %v3327_v44, %v3326_v7 }
 0x316   :  { %v3316_v60 = vadd.f32 %v3315_v45, %v3314_v4  ;;  %v3336_v61 = vsel %vm168_vm0, %v3285_v11, 0.0  ;;  %v3286_v58 = vmul.f32 %v6777_v47, %v3272_v8  ;;  %v3287_v43 = vmul.f32 %v6780_v59, %v3273_v38  ;;  %v4184_v45 = vld [vmem:[#allocation5 + $0x70] sm:$0xff] }
 0x317   :  { %3362 = vst.msk [vmem:[#allocation8 + $0xd] sm:$0x1] %vm345_vm1, %v3298_v3  ;;  %3363 = vst.msk [vmem:[#allocation8 + $0x1d] sm:$0x1] %vm345_vm1, %v3307_v42  ;;  %v3325_v46 = vadd.f32 %v3324_v39, %v3323_v6  ;;  %v3329_v14 = vrot.slane %v3328_v37, 4  ;;  %v3337_v25 = vadd.f32 %v3336_v61, %v3335_v12  ;;  %v3288_v63 = vmul.f32 %v7352_v20, %v3272_v8  ;;  %v4183_v6 = vld [vmem:[#allocation5 + $0x68] sm:$0xff] }
 0x318   :  { %3364 = vst.msk [vmem:[#allocation8 + $0x2d] sm:$0x1] %vm345_vm1, %v3316_v60  ;;  %v3344_v0 = vsel %vm168_vm0, %v3286_v58, 0.0  ;;  %v3345_v41 = vsel %vm168_vm0, %v3287_v43, 0.0  ;;  %v3289_v27 = vmul.f32 %v7353_v33, %v3273_v38  ;;  %4030 = vrcp.f32 %v6913_v29  ;;  %v4185_v42 = vld [vmem:[#allocation5 + $0x78] sm:$0xff] }
 0x319   :  { %3365 = vst.msk [vmem:[#allocation8 + $0x3d] sm:$0x1] %vm345_vm1, %v3325_v46  ;;  %v3330_v56 = vadd.f32 %v3329_v14, %v3328_v37  ;;  %v3338_v15 = vrot.slane %v3337_v25, 4  ;;  %v3346_v53 = vadd.f32 %v3345_v41, %v3344_v0  ;;  %v3353_v21 = vsel %vm168_vm0, %v3288_v63, 0.0 }
 0x31a   :  { %v3354_v4 = vsel %vm168_vm0, %v3289_v27, 0.0  ;;  %4032 = vpow2.f32 %v3472_v23  ;;  %v3474_v8 = vmul.f32 1.442695, %v3467_v1  ;;  %v3681_v17 = vrot.slane %v6907_v34, 4 }
 0x31b   :  { %v3331_v55 = vrot.slane %v3330_v56, 2  ;;  %v3339_v40 = vadd.f32 %v3338_v15, %v3337_v25  ;;  %v3347_v13 = vrot.slane %v3346_v53, 4  ;;  %v3355_v52 = vadd.f32 %v3354_v4, %v3353_v21 }
 0x31c   :  { %4034 = vpow2.f32 %v3474_v8  ;;  %v3682_v38 = vmax.f32 %v6907_v34, %v3681_v17  ;;  %v3647_v11 = vmul.f32 %v4183_v6, %v6865_v57  ;;  %v3648_v7 = vmul.f32 %v4184_v45, %v6869_v54 }
 0x31d   :  { %v3332_v44 = vadd.f32 %v3331_v55, %v3330_v56  ;;  %v3340_v12 = vrot.slane %v3339_v40, 2  ;;  %v3348_v3 = vadd.f32 %v3347_v13, %v3346_v53  ;;  %v3356_v23 = vrot.slane %v3355_v52, 4 }
 0x31e   :  { %v3683_v1 = vrot.slane %v3682_v38, 2  ;;  %v3649_v39 = vmul.f32 %v4185_v42, %v6869_v54  ;;  %v3664_v37 = vsel %vm168_vm0, %v6871_v16, 0.0  ;;  %v3665_v34 = vsel %vm168_vm0, %v6881_v22, 0.0 }
 0x31f   :  { %v3333_v60 = vrot.slane %v3332_v44, 1  ;;  %v3341_v61 = vadd.f32 %v3340_v12, %v3339_v40  ;;  %v3349_v57 = vrot.slane %v3348_v3, 2  ;;  %v3357_v58 = vadd.f32 %v3356_v23, %v3355_v52 }
 0x320   :  { %v3684_v43 = vmax.f32 %v3682_v38, %v3683_v1  ;;  %v3666_v46 = vadd.f32 %v3665_v34, %v3664_v37  ;;  %v3667_v14 = vsel %vm168_vm0, %v6888_v26, 0.0  ;;  %v3669_v25 = vsel %vm168_vm0, %v3648_v7, 0.0 }
 0x321   :  { %v3334_v63 = vadd.f32 %v3333_v60, %v3332_v44  ;;  %v3342_v0 = vrot.slane %v3341_v61, 1  ;;  %v3350_v54 = vadd.f32 %v3349_v57, %v3348_v3  ;;  %v3358_v41 = vrot.slane %v3357_v58, 2 }
 0x322   :  { %v4031_v27 = vpop.eup %4030  ;;  %v3685_v16 = vrot.slane %v3684_v43, 1  ;;  %v3668_v56 = vadd.f32 %v3667_v14, %v3666_v46  ;;  %v3671_v22 = vsel %vm168_vm0, %v6877_v18, 0.0  ;;  %v3672_v15 = vsel %vm168_vm0, %v6885_v31, 0.0 }
 0x323   :  { %3366 = vst.msk [vmem:[#allocation8 + $0x4d] sm:$0x1] %vm345_vm1, %v3334_v63  ;;  %v3343_v53 = vadd.f32 %v3342_v0, %v3341_v61  ;;  %v3351_v21 = vrot.slane %v3350_v54, 1  ;;  %v3359_v26 = vadd.f32 %v3358_v41, %v3357_v58  ;;  %v3496_v4 = vmul.f32 %v4031_v27, %v6913_v29 }
 0x324   :  { %v6954_v8 = vpop.eup %4032  ;;  %v3686_v17 = vmax.f32 %v3684_v43, %v3685_v16  ;;  %v6956_v55 = vadd.f32 %v3669_v25, %v3668_v56  ;;  %v3673_v40 = vadd.f32 %v3672_v15, %v3671_v22  ;;  %v3674_v13 = vsel %vm168_vm0, %v3647_v11, 0.0 }
 0x325   :  { %3367 = vst.msk [vmem:[#allocation8 + $0x5d] sm:$0x1] %vm345_vm1, %v3343_v53  ;;  %v3352_v18 = vadd.f32 %v3351_v21, %v3350_v54  ;;  %v3360_v52 = vrot.slane %v3359_v26, 1  ;;  %v3498_v31 = vsub.f32 2.0, %v3496_v4  ;;  %v3485_v38 = vsel %vm168_vm0, %v6954_v8, 0.0 }
 0x326   :  { %v6962_v6 = vpop.eup %4034  ;;  %v3696_v29 = vsub.f32 %v6861_v50, %v3686_v17  ;;  %v3697_v45 = vsub.f32 %v6873_v35, %v3686_v17  ;;  %v3675_v7 = vadd.f32 %v3674_v13, %v3673_v40  ;;  %v3676_v44 = vsel %vm168_vm0, %v3649_v39, 0.0 }
 0x327   :  { %3368 = vst.msk [vmem:[#allocation8 + $0x6d] sm:$0x1] %vm345_vm1, %v3352_v18  ;;  %v3361_v11 = vadd.f32 %v3360_v52, %v3359_v26  ;;  %v3500_v12 = vmul.f32 %v4031_v27, %v3498_v31  ;;  %v3486_v3 = vsel %vm168_vm0, %v6962_v6, 0.0  ;;  %v3687_v39 = vsel %vm168_vm0, %v6956_v55, -inf }
 0x328   :  { %v3487_v23 = vadd.f32 %v3486_v3, %v3485_v38  ;;  %v3700_v1 = vmul.f32 1.442695, %v3696_v29  ;;  %v6970_v42 = vadd.f32 %v3676_v44, %v3675_v7  ;;  %v3702_v34 = vmul.f32 1.442695, %v3697_v45 }
 0x329   :  { %3369 = vst.msk [vmem:[#allocation8 + $0x7d] sm:$0x1] %vm345_vm1, %v3361_v11  ;;  %v3502_v50 = vmul.f32 %v6837_v51, %v3500_v12  ;;  %v3503_v35 = vmul.f32 %v6852_v36, %v3500_v12 }
 0x32a   :  { %v3488_v37 = vrot.slane %v3487_v23, 4  ;;  %4036 = vpow2.f32 %v3700_v1  ;;  %v3688_v60 = vsel %vm168_vm0, %v6970_v42, -inf }
 0x32b   :  { %v3506_v61 = vmul.f32 %v6678_v49, %v3502_v50  ;;  %v3507_v57 = vmul.f32 %v6681_v24, %v3503_v35  ;;  %v3508_v58 = vmul.f32 %v7346_v9, %v3502_v50  ;;  %v3509_v43 = vmul.f32 %v7347_v28, %v3503_v35 }
 0x32c   :  { %v3510_v51 = vmul.f32 %v7348_v19, %v3502_v50  ;;  %v3511_v36 = vmul.f32 %v7349_v2, %v3503_v35  ;;  %v3512_v46 = vmul.f32 %v7350_v48, %v3502_v50  ;;  %v3513_v14 = vmul.f32 %v7351_v5, %v3503_v35 }
 0x32d   :  { %v3522_v25 = vsel %vm168_vm0, %v3506_v61, 0.0  ;;  %v3523_v63 = vsel %vm168_vm0, %v3507_v57, 0.0  ;;  %v3531_v49 = vsel %vm168_vm0, %v3508_v58, 0.0  ;;  %v3532_v24 = vsel %vm168_vm0, %v3509_v43, 0.0 }
 0x32e   :  { %v3524_v0 = vadd.f32 %v3523_v63, %v3522_v25  ;;  %v3533_v9 = vadd.f32 %v3532_v24, %v3531_v49  ;;  %v3540_v28 = vsel %vm168_vm0, %v3510_v51, 0.0  ;;  %v3541_v19 = vsel %vm168_vm0, %v3511_v36, 0.0 }
 0x32f   :  { %v3542_v54 = vadd.f32 %v3541_v19, %v3540_v28  ;;  %v3549_v2 = vsel %vm168_vm0, %v3512_v46, 0.0  ;;  %v3550_v48 = vsel %vm168_vm0, %v3513_v14, 0.0  ;;  %v3489_v5 = vadd.f32 %v3488_v37, %v3487_v23 }
 0x330   :  { %v3525_v41 = vrot.slane %v3524_v0, 4  ;;  %v3534_v27 = vrot.slane %v3533_v9, 4  ;;  %v3551_v16 = vadd.f32 %v3550_v48, %v3549_v2  ;;  %4038 = vpow2.f32 %v3702_v34 }
 0x331   :  { %v3543_v56 = vrot.slane %v3542_v54, 4  ;;  %v3490_v22 = vrot.slane %v3489_v5, 2  ;;  %v3689_v15 = vmax.f32 %v3687_v39, %v3688_v60 }
 0x332   :  { %v3526_v53 = vadd.f32 %v3525_v41, %v3524_v0  ;;  %v3535_v21 = vadd.f32 %v3534_v27, %v3533_v9  ;;  %v3552_v26 = vrot.slane %v3551_v16, 4 }
 0x333   :  { %v3544_v4 = vadd.f32 %v3543_v56, %v3542_v54  ;;  %v3491_v17 = vadd.f32 %v3490_v22, %v3489_v5  ;;  %v3690_v40 = vrot.slane %v3689_v15, 4 }
 0x334   :  { %v6995_v13 = vpop.eup %4036  ;;  %v3527_v18 = vrot.slane %v3526_v53, 2  ;;  %v3536_v52 = vrot.slane %v3535_v21, 2  ;;  %v3553_v31 = vadd.f32 %v3552_v26, %v3551_v16 }
 0x335   :  { %v3545_v38 = vrot.slane %v3544_v4, 2  ;;  %v3492_v29 = vrot.slane %v3491_v17, 1  ;;  %v3691_v45 = vmax.f32 %v3689_v15, %v3690_v40  ;;  %v3708_v37 = vsel %vm168_vm0, %v6995_v13, 0.0 }
 0x336   :  { %v3528_v7 = vadd.f32 %v3527_v18, %v3526_v53  ;;  %v3537_v44 = vadd.f32 %v3536_v52, %v3535_v21  ;;  %v3554_v11 = vrot.slane %v3553_v31, 2 }
 0x337   :  { %v3546_v12 = vadd.f32 %v3545_v38, %v3544_v4  ;;  %v3493_v3 = vadd.f32 %v3492_v29, %v3491_v17  ;;  %v3692_v23 = vrot.slane %v3691_v45, 2 }
 0x338   :  { %v3529_v1 = vrot.slane %v3528_v7, 1  ;;  %v3538_v50 = vrot.slane %v3537_v44, 1  ;;  %v3555_v35 = vadd.f32 %v3554_v11, %v3553_v31 }
 0x339   :  { %v3547_v39 = vrot.slane %v3546_v12, 1  ;;  %4040 = vrcp.f32 %v3493_v3  ;;  %v3693_v34 = vmax.f32 %v3691_v45, %v3692_v23 }
 0x33a   :  { %v6999_v60 = vpop.eup %4038  ;;  %v3530_v61 = vadd.f32 %v3529_v1, %v3528_v7  ;;  %v3539_v57 = vadd.f32 %v3538_v50, %v3537_v44  ;;  %v3556_v58 = vrot.slane %v3555_v35, 1 }
 0x33b   :  { %v3548_v43 = vadd.f32 %v3547_v39, %v3546_v12  ;;  %v3709_v51 = vsel %vm168_vm0, %v6999_v60, 0.0  ;;  %v3694_v36 = vrot.slane %v3693_v34, 1 }
 0x33c   :  { %3594 = vst.msk [vmem:[#allocation8 + $0xe] sm:$0x1] %vm345_vm1, %v3530_v61  ;;  %3595 = vst.msk [vmem:[#allocation8 + $0x1e] sm:$0x1] %vm345_vm1, %v3539_v57  ;;  %v3557_v46 = vadd.f32 %v3556_v58, %v3555_v35  ;;  %v3710_v14 = vadd.f32 %v3709_v51, %v3708_v37 }
 0x33d   :  { %3596 = vst.msk [vmem:[#allocation8 + $0x2e] sm:$0x1] %vm345_vm1, %v3548_v43  ;;  %v3695_v25 = vmax.f32 %v3693_v34, %v3694_v36 }
 0x33e   :  { %3597 = vst.msk [vmem:[#allocation8 + $0x3e] sm:$0x1] %vm345_vm1, %v3557_v46  ;;  %v3711_v63 = vrot.slane %v3710_v14, 4 }
 0x33f   :  { %v3698_v49 = vsub.f32 %v6956_v55, %v3695_v25  ;;  %v3699_v24 = vsub.f32 %v6970_v42, %v3695_v25 }
 0x340   :  { %v3712_v0 = vadd.f32 %v3711_v63, %v3710_v14 }
 0x341   :  { %v3704_v9 = vmul.f32 1.442695, %v3698_v49  ;;  %v3706_v28 = vmul.f32 1.442695, %v3699_v24 }
 0x342   :  { %v3713_v19 = vrot.slane %v3712_v0, 2 }
 0x343   :  { %v4041_v54 = vpop.eup %4040  ;;  %4042 = vpow2.f32 %v3704_v9 }
 0x344   :  { %v3497_v2 = vmul.f32 %v4041_v54, %v3493_v3  ;;  %v3714_v48 = vadd.f32 %v3713_v19, %v3712_v0  ;;  %4044 = vpow2.f32 %v3706_v28 }
 0x346   :  { %v3499_v5 = vsub.f32 2.0, %v3497_v2  ;;  %v3715_v41 = vrot.slane %v3714_v48, 1 }
 0x348   :  { %v3501_v27 = vmul.f32 %v4041_v54, %v3499_v5  ;;  %v3716_v16 = vadd.f32 %v3715_v41, %v3714_v48 }
 0x34a   :  { %v3504_v56 = vmul.f32 %v6954_v8, %v3501_v27  ;;  %v3505_v22 = vmul.f32 %v6962_v6, %v3501_v27  ;;  %4046 = vrcp.f32 %v3716_v16 }
 0x34c   :  { %v3514_v55 = vmul.f32 %v6763_v32, %v3504_v56  ;;  %v3515_v42 = vmul.f32 %v6766_v10, %v3505_v22  ;;  %v3516_v15 = vmul.f32 %v6769_v30, %v3504_v56  ;;  %v3517_v53 = vmul.f32 %v6772_v62, %v3505_v22 }
 0x34d   :  { %v7015_v21 = vpop.eup %4042  ;;  %v3518_v26 = vmul.f32 %v6777_v47, %v3504_v56  ;;  %v3519_v4 = vmul.f32 %v6780_v59, %v3505_v22  ;;  %v3520_v17 = vmul.f32 %v7352_v20, %v3504_v56  ;;  %v3521_v8 = vmul.f32 %v7353_v33, %v3505_v22 }
 0x34e   :  { %v7021_v6 = vpop.eup %4044  ;;  %v3558_v40 = vsel %vm168_vm0, %v3514_v55, 0.0  ;;  %v3559_v18 = vsel %vm168_vm0, %v3515_v42, 0.0  ;;  %v3567_v52 = vsel %vm168_vm0, %v3516_v15, 0.0  ;;  %v3568_v31 = vsel %vm168_vm0, %v3517_v53, 0.0 }
 0x34f   :  { %v3560_v38 = vadd.f32 %v3559_v18, %v3558_v40  ;;  %v3569_v29 = vadd.f32 %v3568_v31, %v3567_v52  ;;  %v3576_v45 = vsel %vm168_vm0, %v3518_v26, 0.0  ;;  %v3577_v7 = vsel %vm168_vm0, %v3519_v4, 0.0  ;;  %v4187_v40 = vld [vmem:[#allocation7 + $0x10] sm:$0xff]  ;;  %v4188_v52 = vld [vmem:[#allocation7 + $0x20] sm:$0xff] }
 0x350   :  { %v3578_v44 = vadd.f32 %v3577_v7, %v3576_v45  ;;  %v3585_v11 = vsel %vm168_vm0, %v3520_v17, 0.0  ;;  %v3586_v12 = vsel %vm168_vm0, %v3521_v8, 0.0  ;;  %v3717_v3 = vsel %vm168_vm0, %v7015_v21, 0.0  ;;  %v4186_v17 = vld [vmem:[#allocation7] sm:$0xff]  ;;  %v4191_v7 = vld [vmem:[#allocation7 + $0x28] sm:$0xff] }
 0x351   :  { %v3561_v23 = vrot.slane %v3560_v38, 4  ;;  %v3570_v1 = vrot.slane %v3569_v29, 4  ;;  %v3587_v50 = vadd.f32 %v3586_v12, %v3585_v11  ;;  %v3718_v35 = vsel %vm168_vm0, %v7021_v6, 0.0 }
 0x352   :  { %v3579_v39 = vrot.slane %v3578_v44, 4  ;;  %v3719_v37 = vadd.f32 %v3718_v35, %v3717_v3 }
 0x353   :  { %v3562_v34 = vadd.f32 %v3561_v23, %v3560_v38  ;;  %v3571_v61 = vadd.f32 %v3570_v1, %v3569_v29  ;;  %v3588_v57 = vrot.slane %v3587_v50, 4  ;;  %v4189_v38 = vld [vmem:[#allocation7 + $0x8] sm:$0xff]  ;;  %v4193_v1 = vld [vmem:[#allocation7 + $0x38] sm:$0xff] }
 0x354   :  { %v4047_v58 = vpop.eup %4046  ;;  %v3580_v43 = vadd.f32 %v3579_v39, %v3578_v44  ;;  %v3720_v51 = vrot.slane %v3719_v37, 4  ;;  %v4192_v44 = vld [vmem:[#allocation7 + $0x30] sm:$0xff] }
 0x355   :  { %v3563_v36 = vrot.slane %v3562_v34, 2  ;;  %v3572_v46 = vrot.slane %v3571_v61, 2  ;;  %v3589_v14 = vadd.f32 %v3588_v57, %v3587_v50  ;;  %v3728_v25 = vmul.f32 %v4047_v58, %v3716_v16 }
 0x356   :  { %v3581_v63 = vrot.slane %v3580_v43, 2  ;;  %v3721_v49 = vadd.f32 %v3720_v51, %v3719_v37 }
 0x357   :  { %v3564_v24 = vadd.f32 %v3563_v36, %v3562_v34  ;;  %v3573_v0 = vadd.f32 %v3572_v46, %v3571_v61  ;;  %v3590_v9 = vrot.slane %v3589_v14, 2  ;;  %v3730_v28 = vsub.f32 2.0, %v3728_v25 }
 0x358   :  { %v3582_v19 = vadd.f32 %v3581_v63, %v3580_v43  ;;  %v3722_v54 = vrot.slane %v3721_v49, 2 }
 0x359   :  { %v3565_v2 = vrot.slane %v3564_v24, 1  ;;  %v3574_v48 = vrot.slane %v3573_v0, 1  ;;  %v3591_v5 = vadd.f32 %v3590_v9, %v3589_v14  ;;  %v3732_v41 = vmul.f32 %v4047_v58, %v3730_v28 }
 0x35a   :  { %v3583_v27 = vrot.slane %v3582_v19, 1  ;;  %v3723_v56 = vadd.f32 %v3722_v54, %v3721_v49 }
 0x35b   :  { %v3566_v22 = vadd.f32 %v3565_v2, %v3564_v24  ;;  %v3575_v55 = vadd.f32 %v3574_v48, %v3573_v0  ;;  %v3592_v42 = vrot.slane %v3591_v5, 1  ;;  %v3734_v15 = vmul.f32 %v6995_v13, %v3732_v41  ;;  %v4190_v13 = vld [vmem:[#allocation7 + $0x18] sm:$0xff] }
 0x35c   :  { %v3584_v16 = vadd.f32 %v3583_v27, %v3582_v19  ;;  %v3735_v53 = vmul.f32 %v6999_v60, %v3732_v41  ;;  %v3724_v26 = vrot.slane %v3723_v56, 1 }
 0x35d   :  { %3598 = vst.msk [vmem:[#allocation8 + $0x4e] sm:$0x1] %vm345_vm1, %v3566_v22  ;;  %3599 = vst.msk [vmem:[#allocation8 + $0x5e] sm:$0x1] %vm345_vm1, %v3575_v55  ;;  %v3593_v4 = vadd.f32 %v3592_v42, %v3591_v5  ;;  %v3738_v8 = vmul.f32 %v4186_v17, %v3734_v15  ;;  %v3740_v18 = vmul.f32 %v4187_v40, %v3734_v15 }
 0x35e   :  { %v3742_v31 = vmul.f32 %v4188_v52, %v3734_v15  ;;  %3600 = vst.msk [vmem:[#allocation8 + $0x6e] sm:$0x1] %vm345_vm1, %v3584_v16  ;;  %v3739_v29 = vmul.f32 %v4189_v38, %v3735_v53  ;;  %v3741_v45 = vmul.f32 %v4190_v13, %v3735_v53  ;;  %v3743_v60 = vmul.f32 %v4191_v7, %v3735_v53 }
 0x35f   :  { %v3744_v11 = vmul.f32 %v4192_v44, %v3734_v15  ;;  %3601 = vst.msk [vmem:[#allocation8 + $0x7e] sm:$0x1] %vm345_vm1, %v3593_v4  ;;  %v3754_v12 = vsel %vm168_vm0, %v3738_v8, 0.0  ;;  %v3763_v3 = vsel %vm168_vm0, %v3740_v18, 0.0  ;;  %v3745_v50 = vmul.f32 %v4193_v1, %v3735_v53 }
 0x360   :  { %v3772_v23 = vsel %vm168_vm0, %v3742_v31, 0.0  ;;  %v3755_v35 = vsel %vm168_vm0, %v3739_v29, 0.0  ;;  %v3764_v39 = vsel %vm168_vm0, %v3741_v45, 0.0  ;;  %v3773_v37 = vsel %vm168_vm0, %v3743_v60, 0.0 }
 0x361   :  { %v3781_v34 = vsel %vm168_vm0, %v3744_v11, 0.0  ;;  %v3756_v61 = vadd.f32 %v3755_v35, %v3754_v12  ;;  %v3765_v57 = vadd.f32 %v3764_v39, %v3763_v3  ;;  %v3774_v58 = vadd.f32 %v3773_v37, %v3772_v23 }
 0x362   :  { %v3782_v43 = vsel %vm168_vm0, %v3745_v50, 0.0  ;;  %v3725_v36 = vadd.f32 %v3724_v26, %v3723_v56 }
 0x363   :  { %v3783_v51 = vadd.f32 %v3782_v43, %v3781_v34  ;;  %v3757_v46 = vrot.slane %v3756_v61, 4  ;;  %v3766_v14 = vrot.slane %v3765_v57, 4  ;;  %v3775_v25 = vrot.slane %v3774_v58, 4 }
 0x364   :  { %4048 = vrcp.f32 %v3725_v36 }
 0x365   :  { %v3784_v63 = vrot.slane %v3783_v51, 4  ;;  %v3758_v49 = vadd.f32 %v3757_v46, %v3756_v61  ;;  %v3767_v24 = vadd.f32 %v3766_v14, %v3765_v57  ;;  %v3776_v0 = vadd.f32 %v3775_v25, %v3774_v58 }
 0x367   :  { %v3785_v9 = vadd.f32 %v3784_v63, %v3783_v51  ;;  %v3759_v28 = vrot.slane %v3758_v49, 2  ;;  %v3768_v19 = vrot.slane %v3767_v24, 2  ;;  %v3777_v54 = vrot.slane %v3776_v0, 2 }
 0x369   :  { %v3786_v2 = vrot.slane %v3785_v9, 2  ;;  %v3760_v48 = vadd.f32 %v3759_v28, %v3758_v49  ;;  %v3769_v5 = vadd.f32 %v3768_v19, %v3767_v24  ;;  %v3778_v41 = vadd.f32 %v3777_v54, %v3776_v0 }
 0x36b   :  { %v3787_v27 = vadd.f32 %v3786_v2, %v3785_v9  ;;  %v3761_v22 = vrot.slane %v3760_v48, 1  ;;  %v3770_v55 = vrot.slane %v3769_v5, 1  ;;  %v3779_v56 = vrot.slane %v3778_v41, 1 }
 0x36d   :  { %v3788_v42 = vrot.slane %v3787_v27, 1  ;;  %v3762_v15 = vadd.f32 %v3761_v22, %v3760_v48  ;;  %v3771_v16 = vadd.f32 %v3770_v55, %v3769_v5  ;;  %v3780_v53 = vadd.f32 %v3779_v56, %v3778_v41 }
 0x36e   :  { %v4049_v26 = vpop.eup %4048 }
 0x36f   :  { %v3789_v4 = vadd.f32 %v3788_v42, %v3787_v27  ;;  %3826 = vst.msk [vmem:[#allocation8 + $0xf] sm:$0x1] %vm345_vm1, %v3762_v15  ;;  %3827 = vst.msk [vmem:[#allocation8 + $0x1f] sm:$0x1] %vm345_vm1, %v3771_v16  ;;  %v3729_v17 = vmul.f32 %v4049_v26, %v3725_v36 }
 0x370   :  { %3828 = vst.msk [vmem:[#allocation8 + $0x2f] sm:$0x1] %vm345_vm1, %v3780_v53 }
 0x371   :  { %3829 = vst.msk [vmem:[#allocation8 + $0x3f] sm:$0x1] %vm345_vm1, %v3789_v4  ;;  %v3731_v8 = vsub.f32 2.0, %v3729_v17 }
 0x373   :  { %v3733_v40 = vmul.f32 %v4049_v26, %v3731_v8 }
 0x375   :  { %v3736_v18 = vmul.f32 %v7015_v21, %v3733_v40  ;;  %v3737_v52 = vmul.f32 %v7021_v6, %v3733_v40 }
 0x377   :  { %v3746_v31 = vmul.f32 %v6763_v32, %v3736_v18  ;;  %v3747_v38 = vmul.f32 %v6766_v10, %v3737_v52  ;;  %v3748_v29 = vmul.f32 %v6769_v30, %v3736_v18  ;;  %v3749_v13 = vmul.f32 %v6772_v62, %v3737_v52 }
 0x378   :  { %v3750_v45 = vmul.f32 %v6777_v47, %v3736_v18  ;;  %v3751_v7 = vmul.f32 %v6780_v59, %v3737_v52  ;;  %v3752_v60 = vmul.f32 %v7352_v20, %v3736_v18  ;;  %v3753_v44 = vmul.f32 %v7353_v33, %v3737_v52 }
 0x379   :  { %v3790_v21 = vsel %vm168_vm0, %v3746_v31, 0.0  ;;  %v3791_v6 = vsel %vm168_vm0, %v3747_v38, 0.0  ;;  %v3799_v32 = vsel %vm168_vm0, %v3748_v29, 0.0  ;;  %v3800_v10 = vsel %vm168_vm0, %v3749_v13, 0.0 }
 0x37a   :  { %v3792_v11 = vadd.f32 %v3791_v6, %v3790_v21  ;;  %v3801_v30 = vadd.f32 %v3800_v10, %v3799_v32  ;;  %v3808_v62 = vsel %vm168_vm0, %v3750_v45, 0.0  ;;  %v3809_v47 = vsel %vm168_vm0, %v3751_v7, 0.0 }
 0x37b   :  { %v3810_v12 = vadd.f32 %v3809_v47, %v3808_v62  ;;  %v3817_v59 = vsel %vm168_vm0, %v3752_v60, 0.0  ;;  %v3818_v20 = vsel %vm168_vm0, %v3753_v44, 0.0 }
 0x37c   :  { %v3793_v33 = vrot.slane %v3792_v11, 4  ;;  %v3802_v3 = vrot.slane %v3801_v30, 4  ;;  %v3819_v23 = vadd.f32 %v3818_v20, %v3817_v59 }
 0x37d   :  { %v3811_v1 = vrot.slane %v3810_v12, 4 }
 0x37e   :  { %v3794_v50 = vadd.f32 %v3793_v33, %v3792_v11  ;;  %v3803_v35 = vadd.f32 %v3802_v3, %v3801_v30  ;;  %v3820_v39 = vrot.slane %v3819_v23, 4 }
 0x37f   :  { %v3812_v37 = vadd.f32 %v3811_v1, %v3810_v12 }
 0x380   :  { %v3795_v34 = vrot.slane %v3794_v50, 2  ;;  %v3804_v61 = vrot.slane %v3803_v35, 2  ;;  %v3821_v57 = vadd.f32 %v3820_v39, %v3819_v23 }
 0x381   :  { %v3813_v58 = vrot.slane %v3812_v37, 2 }
 0x382   :  { %v3796_v43 = vadd.f32 %v3795_v34, %v3794_v50  ;;  %v3805_v51 = vadd.f32 %v3804_v61, %v3803_v35  ;;  %v3822_v36 = vrot.slane %v3821_v57, 2 }
 0x383   :  { %v3814_v46 = vadd.f32 %v3813_v58, %v3812_v37 }
 0x384   :  { %v3797_v14 = vrot.slane %v3796_v43, 1  ;;  %v3806_v25 = vrot.slane %v3805_v51, 1  ;;  %v3823_v63 = vadd.f32 %v3822_v36, %v3821_v57 }
 0x385   :  { %v3815_v49 = vrot.slane %v3814_v46, 1 }
 0x386   :  { %v3798_v24 = vadd.f32 %v3797_v14, %v3796_v43  ;;  %v3807_v0 = vadd.f32 %v3806_v25, %v3805_v51  ;;  %v3824_v9 = vrot.slane %v3823_v63, 1 }
 0x387   :  { %v3816_v28 = vadd.f32 %v3815_v49, %v3814_v46 }
 0x388   :  { %3830 = vst.msk [vmem:[#allocation8 + $0x4f] sm:$0x1] %vm345_vm1, %v3798_v24  ;;  %3831 = vst.msk [vmem:[#allocation8 + $0x5f] sm:$0x1] %vm345_vm1, %v3807_v0  ;;  %v3825_v19 = vadd.f32 %v3824_v9, %v3823_v63 }
 0x389   :  { %3832 = vst.msk [vmem:[#allocation8 + $0x6f] sm:$0x1] %vm345_vm1, %v3816_v28 }
 0x38a   :  { %3833 = vst.msk [vmem:[#allocation8 + $0x7f] sm:$0x1] %vm345_vm1, %v3825_v19 }
 0x38b   :  { %4271 = shalt.err (!%p4268_p0)
}
 0x38c   :  { %s4272_s27 = scalar_lea.hbm %s7093_s3, 2048 }
 0x38d   :  { %p4273_p1 = scmp.ne.s32.totalorder %s7093_s3, %s4272_s27  ;;  %p4276_p2 = scmp.lt.u32.totalorder %s4272_s27, %s7093_s3 }
 0x38f   :  { %p4278_p3 = pnand %p4276_p2, %p4273_p1 }
 0x391   :  { %4281 = shalt.err (!%p4278_p3)
}
 0x392   :  { %3845 = dma.vmem_to_hbm [thread:$0]  %s3840_s21, 2048, %s7093_s3, [#allocation4], %s4290_s24, %s4290_s24, %s4291_s25  }
 0x393   :  { %4286 = dma.done.wait [#allocation4], 2048  }
 0x394   :  { %4287 = vsyncadd [#allocation4], 4294965248 }
 0x395   :  { %3849 = vsyncpa [#allocation3], 1 }
 0x396   :  { %3850 = vsyncpa [#allocation6], 1 }
 0x397   :  { %3851 = vsyncpa [#allocation4], 1 }

</bundles_post_ra>
